<compile_context>
chip_gen: v7x
topology: tpu7x:2x2x1
jax: 0.10.0
libtpu: 0.0.40
codegen_flags: <defaults>
</compile_context>

<pallas_src>
import jax
import jax.numpy as jnp
from jax import lax
from jax.experimental import pallas as pl
from jax.experimental.pallas import tpu as pltpu

# --- module constants (from the PyTorch file) ---
HEAD_SIZE = 192
SAMPLE_WIDTH = 55
INPUT_SIZE1 = SAMPLE_WIDTH * 2          # T = 110
N_CHROM = 100
N_EMBD = N_CHROM + 2                    # C = 102
NUM_HEADS = 6


def _multihead_kernel(x_ref, wqkv_ref, wout_ref, b_ref, bias_ref, o_ref):
    """Grid = (B,). One step does the full 6-head attention for one batch element."""
    x = x_ref[0]                                   # (T, C)
    T = x.shape[0]
    c_pad = o_ref.shape[-1]

    # Fused Q/K/V projection for all heads: (T, C) @ (C, 3*H*hs).
    qkv = jnp.dot(x, wqkv_ref[...], preferred_element_type=jnp.float32)
    bias = bias_ref[...]                           # (T, T) additive mask (0 / -inf)

    hhs = NUM_HEADS * HEAD_SIZE
    acc = jnp.zeros((T, c_pad), jnp.float32)
    for h in range(NUM_HEADS):                     # static unroll over 6 heads
        lo = h * HEAD_SIZE
        q = qkv[:, lo:lo + HEAD_SIZE]              # head scale pre-folded into Wq
        k = qkv[:, hhs + lo:hhs + lo + HEAD_SIZE]
        v = qkv[:, 2 * hhs + lo:2 * hhs + lo + HEAD_SIZE]

        # scores = q @ k.T, expressed via dot_general (no explicit transpose op)
        s = lax.dot_general(q, k, (((1,), (1,)), ((), ())),
                            preferred_element_type=jnp.float32) + bias
        # numerically stable softmax over the last dim
        s = s - jnp.max(s, axis=-1, keepdims=True)
        p = jnp.exp(s)
        w = p * pl.reciprocal(jnp.sum(p, axis=-1, keepdims=True), approx=True)

        out_h = jnp.dot(w, v, preferred_element_type=jnp.float32)      # (T, hs)
        # concat-over-heads followed by Linear  ==  sum_h out_h @ W_lin_slice_h
        acc = acc + jnp.dot(out_h, wout_ref[h],
                            preferred_element_type=jnp.float32)

    o_ref[0] = (acc + b_ref[...]).astype(o_ref.dtype)


def prepare_params(wq, wk, wv, w_lin, b_lin):
    """One-time weight preparation (outside the per-call path).

    wq/wk/wv: (H, head_size, C)  -- PyTorch nn.Linear weight layout per head.
    w_lin: (C_out, H*head_size), b_lin: (C_out,).
    Returns VMEM-friendly fused / padded arrays + the additive attention mask."""
    H, hs, C = wq.shape
    c_out = w_lin.shape[0]
    c_pad = ((c_out + 127) // 128) * 128           # lane-dense output width

    scale = hs ** -0.5
    # (H, hs, C) -> (C, H*hs); fold the attention scale into the Q weights.
    wq_t = jnp.transpose(wq, (2, 0, 1)).reshape(C, H * hs) * scale
    wk_t = jnp.transpose(wk, (2, 0, 1)).reshape(C, H * hs)
    wv_t = jnp.transpose(wv, (2, 0, 1)).reshape(C, H * hs)
    w_qkv = jnp.concatenate([wq_t, wk_t, wv_t], axis=1)        # (C, 3*H*hs)

    # Output projection per head: (H, hs, c_pad) with zero-padded columns.
    w_out = jnp.transpose(w_lin.reshape(c_out, H, hs), (1, 2, 0))   # (H, hs, c_out)
    w_out = jnp.pad(w_out, ((0, 0), (0, 0), (0, c_pad - c_out)))
    b_out = jnp.pad(b_lin, (0, c_pad - c_out)).reshape(1, c_pad)

    # communication_matrix: 1 everywhere except the two diagonal 55x55 blocks.
    T = INPUT_SIZE1
    rows = jnp.arange(T)[:, None] < T // 2
    cols = jnp.arange(T)[None, :] < T // 2
    allowed = rows != cols
    attn_bias = jnp.where(allowed, 0.0, -jnp.inf).astype(jnp.float32)   # (T, T)

    return w_qkv, w_out, b_out, attn_bias


@jax.jit
def multihead_forward(x, w_qkv, w_out, b_out, attn_bias):
    """x: (B, T, C) f32; remaining args come from prepare_params."""
    B, T, C = x.shape
    c_pad = w_out.shape[-1]

    out = pl.pallas_call(
        _multihead_kernel,
        out_shape=jax.ShapeDtypeStruct((B, T, c_pad), jnp.float32),
        grid_spec=pltpu.PrefetchScalarGridSpec(
            num_scalar_prefetch=0,
            grid=(B,),
            in_specs=[
                pl.BlockSpec((1, T, C), lambda b: (b, 0, 0)),          # x (per batch)
                pl.BlockSpec(w_qkv.shape, lambda b: (0, 0)),           # fused QKV weights (resident)
                pl.BlockSpec(w_out.shape, lambda b: (0, 0, 0)),        # output-proj weights (resident)
                pl.BlockSpec(b_out.shape, lambda b: (0, 0)),           # bias (resident)
                pl.BlockSpec(attn_bias.shape, lambda b: (0, 0)),       # mask bias (resident)
            ],
            out_specs=pl.BlockSpec((1, T, c_pad), lambda b: (b, 0, 0)),
        ),
        compiler_params=pltpu.CompilerParams(
            dimension_semantics=("parallel",)),
    )(x, w_qkv, w_out, b_out, attn_bias)

    return out[:, :, :N_EMBD]


def multihead_reference(x, wq, wk, wv, w_lin, b_lin):
    """Pure-JAX reference mirroring the PyTorch forward (eval mode)."""
    T = x.shape[1]
    half = T // 2
    mask = jnp.ones((T, T), jnp.float32)
    mask = mask.at[:half, :half].set(0.0)
    mask = mask.at[half:, half:].set(0.0)
    outs = []
    for h in range(wq.shape[0]):
        q = x @ wq[h].T
        k = x @ wk[h].T
        v = x @ wv[h].T
        s = (q @ jnp.swapaxes(k, -1, -2)) * (k.shape[-1] ** -0.5)
        s = jnp.where(mask == 0, -jnp.inf, s)
        w = jax.nn.softmax(s, axis=-1)
        outs.append(w @ v)
    cat = jnp.concatenate(outs, axis=-1)
    return cat @ w_lin.T + b_lin


if __name__ == "__main__":
    B, T, C, H, HS = 2, INPUT_SIZE1, N_EMBD, NUM_HEADS, HEAD_SIZE

    key = jax.random.PRNGKey(0)
    kx, kq, kk, kv, kl, kb = jax.random.split(key, 6)

    # Deterministic parameter init (uniform +-1/sqrt(fan_in), like nn.Linear).
    x = jax.random.normal(kx, (B, T, C), jnp.float32)
    s_in = 1.0 / jnp.sqrt(C)
    wq = jax.random.uniform(kq, (H, HS, C), jnp.float32, -s_in, s_in)
    wk = jax.random.uniform(kk, (H, HS, C), jnp.float32, -s_in, s_in)
    wv = jax.random.uniform(kv, (H, HS, C), jnp.float32, -s_in, s_in)
    s_lin = 1.0 / jnp.sqrt(H * HS)
    w_lin = jax.random.uniform(kl, (C, H * HS), jnp.float32, -s_lin, s_lin)
    b_lin = jax.random.uniform(kb, (C,), jnp.float32, -s_lin, s_lin)

    # One-time parameter prep (outside the per-call jitted path).
    w_qkv, w_out, b_out, attn_bias = prepare_params(wq, wk, wv, w_lin, b_lin)

    out = multihead_forward(x, w_qkv, w_out, b_out, attn_bias)
    jax.block_until_ready(out)

    ref = multihead_reference(x, wq, wk, wv, w_lin, b_lin)
    assert out.shape == (B, T, C), out.shape
    # Tolerance loosened from 1e-4 to 1e-3 solely for the EUP approx reciprocal
    # in the softmax denominator; all accumulation is f32.
    assert jnp.allclose(out, ref, atol=1e-3, rtol=1e-3), float(
        jnp.max(jnp.abs(out - ref)))

    print("KERNEL_OK")
</pallas_src>

<mosaic_0001>
module attributes {stable_mosaic.version = 11 : i64} {
  func.func @_multihead_kernel(%arg0: i32, %arg1: memref<1x110x102xf32, #tpu.memory_space<vmem>>, %arg2: memref<102x3456xf32, #tpu.memory_space<vmem>>, %arg3: memref<6x192x128xf32, #tpu.memory_space<vmem>>, %arg4: memref<1x128xf32, #tpu.memory_space<vmem>>, %arg5: memref<110x110xf32, #tpu.memory_space<vmem>>, %arg6: memref<1x110x128xf32, #tpu.memory_space<vmem>>) attributes {dimension_semantics = [#tpu.dimension_semantics<parallel>], iteration_bounds = array<i64: 2>, scalar_prefetch = 0 : i64, scratch_operands = 0 : i64, tpu.core_type = #tpu.core_type<tc>, window_params = [{transform_indices = @transform_0, window_bounds = array<i64: 1, 110, 102>}, {pipeline_mode = #tpu.pipeline_mode<synchronous>, transform_indices = @transform_1, window_bounds = array<i64: 102, 3456>}, {pipeline_mode = #tpu.pipeline_mode<synchronous>, transform_indices = @transform_2, window_bounds = array<i64: 6, 192, 128>}, {pipeline_mode = #tpu.pipeline_mode<synchronous>, transform_indices = @transform_3, window_bounds = array<i64: 1, 128>}, {pipeline_mode = #tpu.pipeline_mode<synchronous>, transform_indices = @transform_4, window_bounds = array<i64: 110, 110>}, {transform_indices = @transform_5, window_bounds = array<i64: 1, 110, 128>}]} {
    %c0 = arith.constant 0 : index
    %c0_0 = arith.constant 0 : index
    %c0_1 = arith.constant 0 : index
    %0 = vector.load %arg1[%c0, %c0_0, %c0_1] : memref<1x110x102xf32, #tpu.memory_space<vmem>>, vector<1x110x102xf32>
    %1 = vector.shape_cast %0 : vector<1x110x102xf32> to vector<110x102xf32>
    %c0_2 = arith.constant 0 : index
    %c0_3 = arith.constant 0 : index
    %2 = vector.load %arg2[%c0_2, %c0_3] : memref<102x3456xf32, #tpu.memory_space<vmem>>, vector<102x3456xf32>
    %cst = arith.constant dense<0.000000e+00> : vector<110x3456xf32>
    %3 = tpu.matmul %1, %2, %cst {dimension_numbers = #tpu.dot_dimension_numbers<[1], [0], [0], [1], [0, 0, 1, 1], [], []>} : vector<110x102xf32>, vector<102x3456xf32>, vector<110x3456xf32> -> vector<110x3456xf32>
    %c0_4 = arith.constant 0 : index
    %c0_5 = arith.constant 0 : index
    %4 = vector.load %arg5[%c0_4, %c0_5] : memref<110x110xf32, #tpu.memory_space<vmem>>, vector<110x110xf32>
    %cst_6 = arith.constant 0.000000e+00 : f32
    %5 = vector.broadcast %cst_6 : f32 to vector<110x128xf32>
    %6 = vector.extract_strided_slice %3 {offsets = [0, 0], sizes = [110, 192], strides = [1, 1]} : vector<110x3456xf32> to vector<110x192xf32>
    %7 = vector.extract_strided_slice %3 {offsets = [0, 1152], sizes = [110, 192], strides = [1, 1]} : vector<110x3456xf32> to vector<110x192xf32>
    %8 = vector.extract_strided_slice %3 {offsets = [0, 2304], sizes = [110, 192], strides = [1, 1]} : vector<110x3456xf32> to vector<110x192xf32>
    %cst_7 = arith.constant dense<0.000000e+00> : vector<110x110xf32>
    %9 = tpu.matmul %6, %7, %cst_7 {dimension_numbers = #tpu.dot_dimension_numbers<[1], [1], [0], [0], [0, 0, 1, 0], [], []>} : vector<110x192xf32>, vector<110x192xf32>, vector<110x110xf32> -> vector<110x110xf32>
    %10 = arith.addf %9, %4 : vector<110x110xf32>
    %cst_8 = arith.constant dense<0xFF800000> : vector<110xf32>
    %11 = vector.multi_reduction <maximumf>, %10, %cst_8 [1] : vector<110x110xf32> to vector<110xf32>
    %12 = vector.shape_cast %11 : vector<110xf32> to vector<110x1xf32>
    %13 = vector.broadcast %12 : vector<110x1xf32> to vector<110x110xf32>
    %14 = arith.subf %10, %13 : vector<110x110xf32>
    %15 = math.exp %14 : vector<110x110xf32>
    %cst_9 = arith.constant dense<0.000000e+00> : vector<110xf32>
    %16 = vector.multi_reduction <add>, %15, %cst_9 [1] : vector<110x110xf32> to vector<110xf32>
    %17 = vector.shape_cast %16 : vector<110xf32> to vector<110x1xf32>
    %18 = tpu.reciprocal %17 {approx = true} : vector<110x1xf32> -> vector<110x1xf32>
    %19 = vector.broadcast %18 : vector<110x1xf32> to vector<110x110xf32>
    %20 = arith.mulf %15, %19 : vector<110x110xf32>
    %cst_10 = arith.constant dense<0.000000e+00> : vector<110x192xf32>
    %21 = tpu.matmul %20, %8, %cst_10 {dimension_numbers = #tpu.dot_dimension_numbers<[1], [0], [0], [1], [0, 0, 1, 1], [], []>} : vector<110x110xf32>, vector<110x192xf32>, vector<110x192xf32> -> vector<110x192xf32>
    %c0_11 = arith.constant 0 : index
    %c0_12 = arith.constant 0 : index
    %c0_13 = arith.constant 0 : index
    %22 = vector.load %arg3[%c0_11, %c0_12, %c0_13] : memref<6x192x128xf32, #tpu.memory_space<vmem>>, vector<1x192x128xf32>
    %23 = vector.shape_cast %22 : vector<1x192x128xf32> to vector<192x128xf32>
    %cst_14 = arith.constant dense<0.000000e+00> : vector<110x128xf32>
    %24 = tpu.matmul %21, %23, %cst_14 {dimension_numbers = #tpu.dot_dimension_numbers<[1], [0], [0], [1], [0, 0, 1, 1], [], []>} : vector<110x192xf32>, vector<192x128xf32>, vector<110x128xf32> -> vector<110x128xf32>
    %25 = arith.addf %5, %24 : vector<110x128xf32>
    %26 = vector.extract_strided_slice %3 {offsets = [0, 192], sizes = [110, 192], strides = [1, 1]} : vector<110x3456xf32> to vector<110x192xf32>
    %27 = vector.extract_strided_slice %3 {offsets = [0, 1344], sizes = [110, 192], strides = [1, 1]} : vector<110x3456xf32> to vector<110x192xf32>
    %28 = vector.extract_strided_slice %3 {offsets = [0, 2496], sizes = [110, 192], strides = [1, 1]} : vector<110x3456xf32> to vector<110x192xf32>
    %cst_15 = arith.constant dense<0.000000e+00> : vector<110x110xf32>
    %29 = tpu.matmul %26, %27, %cst_15 {dimension_numbers = #tpu.dot_dimension_numbers<[1], [1], [0], [0], [0, 0, 1, 0], [], []>} : vector<110x192xf32>, vector<110x192xf32>, vector<110x110xf32> -> vector<110x110xf32>
    %30 = arith.addf %29, %4 : vector<110x110xf32>
    %cst_16 = arith.constant dense<0xFF800000> : vector<110xf32>
    %31 = vector.multi_reduction <maximumf>, %30, %cst_16 [1] : vector<110x110xf32> to vector<110xf32>
    %32 = vector.shape_cast %31 : vector<110xf32> to vector<110x1xf32>
    %33 = vector.broadcast %32 : vector<110x1xf32> to vector<110x110xf32>
    %34 = arith.subf %30, %33 : vector<110x110xf32>
    %35 = math.exp %34 : vector<110x110xf32>
    %cst_17 = arith.constant dense<0.000000e+00> : vector<110xf32>
    %36 = vector.multi_reduction <add>, %35, %cst_17 [1] : vector<110x110xf32> to vector<110xf32>
    %37 = vector.shape_cast %36 : vector<110xf32> to vector<110x1xf32>
    %38 = tpu.reciprocal %37 {approx = true} : vector<110x1xf32> -> vector<110x1xf32>
    %39 = vector.broadcast %38 : vector<110x1xf32> to vector<110x110xf32>
    %40 = arith.mulf %35, %39 : vector<110x110xf32>
    %cst_18 = arith.constant dense<0.000000e+00> : vector<110x192xf32>
    %41 = tpu.matmul %40, %28, %cst_18 {dimension_numbers = #tpu.dot_dimension_numbers<[1], [0], [0], [1], [0, 0, 1, 1], [], []>} : vector<110x110xf32>, vector<110x192xf32>, vector<110x192xf32> -> vector<110x192xf32>
    %c1 = arith.constant 1 : index
    %c0_19 = arith.constant 0 : index
    %c0_20 = arith.constant 0 : index
    %42 = vector.load %arg3[%c1, %c0_19, %c0_20] : memref<6x192x128xf32, #tpu.memory_space<vmem>>, vector<1x192x128xf32>
    %43 = vector.shape_cast %42 : vector<1x192x128xf32> to vector<192x128xf32>
    %cst_21 = arith.constant dense<0.000000e+00> : vector<110x128xf32>
    %44 = tpu.matmul %41, %43, %cst_21 {dimension_numbers = #tpu.dot_dimension_numbers<[1], [0], [0], [1], [0, 0, 1, 1], [], []>} : vector<110x192xf32>, vector<192x128xf32>, vector<110x128xf32> -> vector<110x128xf32>
    %45 = arith.addf %25, %44 : vector<110x128xf32>
    %46 = vector.extract_strided_slice %3 {offsets = [0, 384], sizes = [110, 192], strides = [1, 1]} : vector<110x3456xf32> to vector<110x192xf32>
    %47 = vector.extract_strided_slice %3 {offsets = [0, 1536], sizes = [110, 192], strides = [1, 1]} : vector<110x3456xf32> to vector<110x192xf32>
    %48 = vector.extract_strided_slice %3 {offsets = [0, 2688], sizes = [110, 192], strides = [1, 1]} : vector<110x3456xf32> to vector<110x192xf32>
    %cst_22 = arith.constant dense<0.000000e+00> : vector<110x110xf32>
    %49 = tpu.matmul %46, %47, %cst_22 {dimension_numbers = #tpu.dot_dimension_numbers<[1], [1], [0], [0], [0, 0, 1, 0], [], []>} : vector<110x192xf32>, vector<110x192xf32>, vector<110x110xf32> -> vector<110x110xf32>
    %50 = arith.addf %49, %4 : vector<110x110xf32>
    %cst_23 = arith.constant dense<0xFF800000> : vector<110xf32>
    %51 = vector.multi_reduction <maximumf>, %50, %cst_23 [1] : vector<110x110xf32> to vector<110xf32>
    %52 = vector.shape_cast %51 : vector<110xf32> to vector<110x1xf32>
    %53 = vector.broadcast %52 : vector<110x1xf32> to vector<110x110xf32>
    %54 = arith.subf %50, %53 : vector<110x110xf32>
    %55 = math.exp %54 : vector<110x110xf32>
    %cst_24 = arith.constant dense<0.000000e+00> : vector<110xf32>
    %56 = vector.multi_reduction <add>, %55, %cst_24 [1] : vector<110x110xf32> to vector<110xf32>
    %57 = vector.shape_cast %56 : vector<110xf32> to vector<110x1xf32>
    %58 = tpu.reciprocal %57 {approx = true} : vector<110x1xf32> -> vector<110x1xf32>
    %59 = vector.broadcast %58 : vector<110x1xf32> to vector<110x110xf32>
    %60 = arith.mulf %55, %59 : vector<110x110xf32>
    %cst_25 = arith.constant dense<0.000000e+00> : vector<110x192xf32>
    %61 = tpu.matmul %60, %48, %cst_25 {dimension_numbers = #tpu.dot_dimension_numbers<[1], [0], [0], [1], [0, 0, 1, 1], [], []>} : vector<110x110xf32>, vector<110x192xf32>, vector<110x192xf32> -> vector<110x192xf32>
    %c2 = arith.constant 2 : index
    %c0_26 = arith.constant 0 : index
    %c0_27 = arith.constant 0 : index
    %62 = vector.load %arg3[%c2, %c0_26, %c0_27] : memref<6x192x128xf32, #tpu.memory_space<vmem>>, vector<1x192x128xf32>
    %63 = vector.shape_cast %62 : vector<1x192x128xf32> to vector<192x128xf32>
    %cst_28 = arith.constant dense<0.000000e+00> : vector<110x128xf32>
    %64 = tpu.matmul %61, %63, %cst_28 {dimension_numbers = #tpu.dot_dimension_numbers<[1], [0], [0], [1], [0, 0, 1, 1], [], []>} : vector<110x192xf32>, vector<192x128xf32>, vector<110x128xf32> -> vector<110x128xf32>
    %65 = arith.addf %45, %64 : vector<110x128xf32>
    %66 = vector.extract_strided_slice %3 {offsets = [0, 576], sizes = [110, 192], strides = [1, 1]} : vector<110x3456xf32> to vector<110x192xf32>
    %67 = vector.extract_strided_slice %3 {offsets = [0, 1728], sizes = [110, 192], strides = [1, 1]} : vector<110x3456xf32> to vector<110x192xf32>
    %68 = vector.extract_strided_slice %3 {offsets = [0, 2880], sizes = [110, 192], strides = [1, 1]} : vector<110x3456xf32> to vector<110x192xf32>
    %cst_29 = arith.constant dense<0.000000e+00> : vector<110x110xf32>
    %69 = tpu.matmul %66, %67, %cst_29 {dimension_numbers = #tpu.dot_dimension_numbers<[1], [1], [0], [0], [0, 0, 1, 0], [], []>} : vector<110x192xf32>, vector<110x192xf32>, vector<110x110xf32> -> vector<110x110xf32>
    %70 = arith.addf %69, %4 : vector<110x110xf32>
    %cst_30 = arith.constant dense<0xFF800000> : vector<110xf32>
    %71 = vector.multi_reduction <maximumf>, %70, %cst_30 [1] : vector<110x110xf32> to vector<110xf32>
    %72 = vector.shape_cast %71 : vector<110xf32> to vector<110x1xf32>
    %73 = vector.broadcast %72 : vector<110x1xf32> to vector<110x110xf32>
    %74 = arith.subf %70, %73 : vector<110x110xf32>
    %75 = math.exp %74 : vector<110x110xf32>
    %cst_31 = arith.constant dense<0.000000e+00> : vector<110xf32>
    %76 = vector.multi_reduction <add>, %75, %cst_31 [1] : vector<110x110xf32> to vector<110xf32>
    %77 = vector.shape_cast %76 : vector<110xf32> to vector<110x1xf32>
    %78 = tpu.reciprocal %77 {approx = true} : vector<110x1xf32> -> vector<110x1xf32>
    %79 = vector.broadcast %78 : vector<110x1xf32> to vector<110x110xf32>
    %80 = arith.mulf %75, %79 : vector<110x110xf32>
    %cst_32 = arith.constant dense<0.000000e+00> : vector<110x192xf32>
    %81 = tpu.matmul %80, %68, %cst_32 {dimension_numbers = #tpu.dot_dimension_numbers<[1], [0], [0], [1], [0, 0, 1, 1], [], []>} : vector<110x110xf32>, vector<110x192xf32>, vector<110x192xf32> -> vector<110x192xf32>
    %c3 = arith.constant 3 : index
    %c0_33 = arith.constant 0 : index
    %c0_34 = arith.constant 0 : index
    %82 = vector.load %arg3[%c3, %c0_33, %c0_34] : memref<6x192x128xf32, #tpu.memory_space<vmem>>, vector<1x192x128xf32>
    %83 = vector.shape_cast %82 : vector<1x192x128xf32> to vector<192x128xf32>
    %cst_35 = arith.constant dense<0.000000e+00> : vector<110x128xf32>
    %84 = tpu.matmul %81, %83, %cst_35 {dimension_numbers = #tpu.dot_dimension_numbers<[1], [0], [0], [1], [0, 0, 1, 1], [], []>} : vector<110x192xf32>, vector<192x128xf32>, vector<110x128xf32> -> vector<110x128xf32>
    %85 = arith.addf %65, %84 : vector<110x128xf32>
    %86 = vector.extract_strided_slice %3 {offsets = [0, 768], sizes = [110, 192], strides = [1, 1]} : vector<110x3456xf32> to vector<110x192xf32>
    %87 = vector.extract_strided_slice %3 {offsets = [0, 1920], sizes = [110, 192], strides = [1, 1]} : vector<110x3456xf32> to vector<110x192xf32>
    %88 = vector.extract_strided_slice %3 {offsets = [0, 3072], sizes = [110, 192], strides = [1, 1]} : vector<110x3456xf32> to vector<110x192xf32>
    %cst_36 = arith.constant dense<0.000000e+00> : vector<110x110xf32>
    %89 = tpu.matmul %86, %87, %cst_36 {dimension_numbers = #tpu.dot_dimension_numbers<[1], [1], [0], [0], [0, 0, 1, 0], [], []>} : vector<110x192xf32>, vector<110x192xf32>, vector<110x110xf32> -> vector<110x110xf32>
    %90 = arith.addf %89, %4 : vector<110x110xf32>
    %cst_37 = arith.constant dense<0xFF800000> : vector<110xf32>
    %91 = vector.multi_reduction <maximumf>, %90, %cst_37 [1] : vector<110x110xf32> to vector<110xf32>
    %92 = vector.shape_cast %91 : vector<110xf32> to vector<110x1xf32>
    %93 = vector.broadcast %92 : vector<110x1xf32> to vector<110x110xf32>
    %94 = arith.subf %90, %93 : vector<110x110xf32>
    %95 = math.exp %94 : vector<110x110xf32>
    %cst_38 = arith.constant dense<0.000000e+00> : vector<110xf32>
    %96 = vector.multi_reduction <add>, %95, %cst_38 [1] : vector<110x110xf32> to vector<110xf32>
    %97 = vector.shape_cast %96 : vector<110xf32> to vector<110x1xf32>
    %98 = tpu.reciprocal %97 {approx = true} : vector<110x1xf32> -> vector<110x1xf32>
    %99 = vector.broadcast %98 : vector<110x1xf32> to vector<110x110xf32>
    %100 = arith.mulf %95, %99 : vector<110x110xf32>
    %cst_39 = arith.constant dense<0.000000e+00> : vector<110x192xf32>
    %101 = tpu.matmul %100, %88, %cst_39 {dimension_numbers = #tpu.dot_dimension_numbers<[1], [0], [0], [1], [0, 0, 1, 1], [], []>} : vector<110x110xf32>, vector<110x192xf32>, vector<110x192xf32> -> vector<110x192xf32>
    %c4 = arith.constant 4 : index
    %c0_40 = arith.constant 0 : index
    %c0_41 = arith.constant 0 : index
    %102 = vector.load %arg3[%c4, %c0_40, %c0_41] : memref<6x192x128xf32, #tpu.memory_space<vmem>>, vector<1x192x128xf32>
    %103 = vector.shape_cast %102 : vector<1x192x128xf32> to vector<192x128xf32>
    %cst_42 = arith.constant dense<0.000000e+00> : vector<110x128xf32>
    %104 = tpu.matmul %101, %103, %cst_42 {dimension_numbers = #tpu.dot_dimension_numbers<[1], [0], [0], [1], [0, 0, 1, 1], [], []>} : vector<110x192xf32>, vector<192x128xf32>, vector<110x128xf32> -> vector<110x128xf32>
    %105 = arith.addf %85, %104 : vector<110x128xf32>
    %106 = vector.extract_strided_slice %3 {offsets = [0, 960], sizes = [110, 192], strides = [1, 1]} : vector<110x3456xf32> to vector<110x192xf32>
    %107 = vector.extract_strided_slice %3 {offsets = [0, 2112], sizes = [110, 192], strides = [1, 1]} : vector<110x3456xf32> to vector<110x192xf32>
    %108 = vector.extract_strided_slice %3 {offsets = [0, 3264], sizes = [110, 192], strides = [1, 1]} : vector<110x3456xf32> to vector<110x192xf32>
    %cst_43 = arith.constant dense<0.000000e+00> : vector<110x110xf32>
    %109 = tpu.matmul %106, %107, %cst_43 {dimension_numbers = #tpu.dot_dimension_numbers<[1], [1], [0], [0], [0, 0, 1, 0], [], []>} : vector<110x192xf32>, vector<110x192xf32>, vector<110x110xf32> -> vector<110x110xf32>
    %110 = arith.addf %109, %4 : vector<110x110xf32>
    %cst_44 = arith.constant dense<0xFF800000> : vector<110xf32>
    %111 = vector.multi_reduction <maximumf>, %110, %cst_44 [1] : vector<110x110xf32> to vector<110xf32>
    %112 = vector.shape_cast %111 : vector<110xf32> to vector<110x1xf32>
    %113 = vector.broadcast %112 : vector<110x1xf32> to vector<110x110xf32>
    %114 = arith.subf %110, %113 : vector<110x110xf32>
    %115 = math.exp %114 : vector<110x110xf32>
    %cst_45 = arith.constant dense<0.000000e+00> : vector<110xf32>
    %116 = vector.multi_reduction <add>, %115, %cst_45 [1] : vector<110x110xf32> to vector<110xf32>
    %117 = vector.shape_cast %116 : vector<110xf32> to vector<110x1xf32>
    %118 = tpu.reciprocal %117 {approx = true} : vector<110x1xf32> -> vector<110x1xf32>
    %119 = vector.broadcast %118 : vector<110x1xf32> to vector<110x110xf32>
    %120 = arith.mulf %115, %119 : vector<110x110xf32>
    %cst_46 = arith.constant dense<0.000000e+00> : vector<110x192xf32>
    %121 = tpu.matmul %120, %108, %cst_46 {dimension_numbers = #tpu.dot_dimension_numbers<[1], [0], [0], [1], [0, 0, 1, 1], [], []>} : vector<110x110xf32>, vector<110x192xf32>, vector<110x192xf32> -> vector<110x192xf32>
    %c5 = arith.constant 5 : index
    %c0_47 = arith.constant 0 : index
    %c0_48 = arith.constant 0 : index
    %122 = vector.load %arg3[%c5, %c0_47, %c0_48] : memref<6x192x128xf32, #tpu.memory_space<vmem>>, vector<1x192x128xf32>
    %123 = vector.shape_cast %122 : vector<1x192x128xf32> to vector<192x128xf32>
    %cst_49 = arith.constant dense<0.000000e+00> : vector<110x128xf32>
    %124 = tpu.matmul %121, %123, %cst_49 {dimension_numbers = #tpu.dot_dimension_numbers<[1], [0], [0], [1], [0, 0, 1, 1], [], []>} : vector<110x192xf32>, vector<192x128xf32>, vector<110x128xf32> -> vector<110x128xf32>
    %125 = arith.addf %105, %124 : vector<110x128xf32>
    %c0_50 = arith.constant 0 : index
    %c0_51 = arith.constant 0 : index
    %126 = vector.load %arg4[%c0_50, %c0_51] : memref<1x128xf32, #tpu.memory_space<vmem>>, vector<1x128xf32>
    %127 = vector.broadcast %126 : vector<1x128xf32> to vector<110x128xf32>
    %128 = arith.addf %125, %127 : vector<110x128xf32>
    %c0_52 = arith.constant 0 : index
    %c0_53 = arith.constant 0 : index
    %c0_54 = arith.constant 0 : index
    %129 = vector.load %arg6[%c0_52, %c0_53, %c0_54] : memref<1x110x128xf32, #tpu.memory_space<vmem>>, vector<1x110x128xf32>
    %130 = vector.shape_cast %129 : vector<1x110x128xf32> to vector<110x128xf32>
    %131 = vector.shape_cast %128 : vector<110x128xf32> to vector<1x110x128xf32>
    tpu.vector_store %arg6[%c0_52, %c0_53, %c0_54], %131 {strides = array<i32>} : memref<1x110x128xf32, #tpu.memory_space<vmem>>, vector<1x110x128xf32>,
    return
  }
  func.func @transform_0(%arg0: i32) -> (i32, i32, i32) {
    %c0_i32 = arith.constant 0 : i32
    %c0_i32_0 = arith.constant 0 : i32
    %c0_i32_1 = arith.constant 0 : i32
    return %arg0, %c0_i32, %c0_i32_0 : i32, i32, i32
  }
  func.func @transform_1(%arg0: i32) -> (i32, i32) {
    %c0_i32 = arith.constant 0 : i32
    %c0_i32_0 = arith.constant 0 : i32
    %c0_i32_1 = arith.constant 0 : i32
    return %c0_i32, %c0_i32_0 : i32, i32
  }
  func.func @transform_2(%arg0: i32) -> (i32, i32, i32) {
    %c0_i32 = arith.constant 0 : i32
    %c0_i32_0 = arith.constant 0 : i32
    %c0_i32_1 = arith.constant 0 : i32
    %c0_i32_2 = arith.constant 0 : i32
    return %c0_i32, %c0_i32_0, %c0_i32_1 : i32, i32, i32
  }
  func.func @transform_3(%arg0: i32) -> (i32, i32) {
    %c0_i32 = arith.constant 0 : i32
    %c0_i32_0 = arith.constant 0 : i32
    %c0_i32_1 = arith.constant 0 : i32
    return %c0_i32, %c0_i32_0 : i32, i32
  }
  func.func @transform_4(%arg0: i32) -> (i32, i32) {
    %c0_i32 = arith.constant 0 : i32
    %c0_i32_0 = arith.constant 0 : i32
    %c0_i32_1 = arith.constant 0 : i32
    return %c0_i32, %c0_i32_0 : i32, i32
  }
  func.func @transform_5(%arg0: i32) -> (i32, i32, i32) {
    %c0_i32 = arith.constant 0 : i32
    %c0_i32_0 = arith.constant 0 : i32
    %c0_i32_1 = arith.constant 0 : i32
    return %arg0, %c0_i32, %c0_i32_0 : i32, i32, i32
  }
}

</mosaic_0001>

<bundles_post_ra>
// kernel: multihead_forward.1
= control target key start
LH: loop header
LB: loop body
LE: loop exit
PB: predicated region body
PF: predicated region fallthrough
CT: control target
= control target key end

     0   :  { %10 = vsyncpa [#allocation3], 0  ;;  %s15828_s0 = inlined_call_operand.vmem [shape: f32[2,110,102], index: 0, kind: input, shape index: {}]   ;;  %s15829_s1 = inlined_call_operand.hbm [shape: f32[102,3456], index: 1, kind: input, shape index: {}]   ;;  %s15830_s2 = inlined_call_operand.hbm [shape: f32[6,192,128], index: 2, kind: input, shape index: {}]   ;;  %s15831_s3 = inlined_call_operand.hbm [shape: f32[1,128], index: 3, kind: input, shape index: {}]   ;;  %s15832_s4 = inlined_call_operand.hbm [shape: f32[110,110], index: 4, kind: input, shape index: {}]   ;;  %s15833_s5 = inlined_call_operand.vmem [shape: f32[2,110,128], index: 5, kind: output, shape index: {}]  }
   0x1   :  { %11 = vsyncpa [#allocation5], 0 }
   0x2   :  { %12 = vsyncpa [#allocation8], 0  ;;  %s11238_s18 = smov 0  }
   0x3 LB: > { %s11196_s19 = smov [#allocation4]   ;;  %s11244_s21 = sadd.s32 4294967295, %s11194_s18   ;;  %s11194_s18 = sphi %s11238_s18, %s18_s18  }
   0x4   : > { %s184_s20 = sshll.u32 %s11196_s19, 4  ;;  %p8548_p0 = scmp.ge.s32.totalorder %s11194_s18, 1  ;;  %s11249_s20 = int_to_ptr.vmem [resolvable:$true] %s184_s20 }
   0x5   : > { %p159_p1 = scmp.lt.s32.totalorder %s11194_s18, 3  ;;  %p15834_p2 = scmp.eq.s32.totalorder %s11244_s21, 0 }
   0x6   : > { %s11197_s23 = smov [#allocation2]   ;;  %s11198_s26 = smov [#allocation6]  }
   0x7   : > { %p11251_p3 = pnand %p8548_p0, %p159_p1  ;;  %s171_s24 = sshll.u32 %s11197_s23, 4  ;;  %s11257_s24 = int_to_ptr.vmem [resolvable:$true] %s171_s24 }
   0x8   : > { %s11265_s27 = sshll.u32 %s11198_s26, 4  ;;  %s11064_s30 = scalar_lea.hbm %s15830_s2, 18432  ;;  %s199_s27 = int_to_ptr.vmem [resolvable:$true] %s11265_s27 }
   0x9   : > { %s16134_s22 = scalar_select %p11251_p3, 1, 0 }
   0xa   : > { %p10192_p4 = pneg %p11251_p3  ;;  %p11065_p6 = scmp.ne.s32.totalorder %s15830_s2, %s11064_s30 }
   0xb   : > { %p11071_p10 = scmp.lt.u32.totalorder %s11064_s30, %s15830_s2 }
   0xc   : > { %p11261_p5 = pnand %p15834_p2, %p10192_p4 }
   0xe   : > { %p11275_p7 = pneg %p11261_p5 }
  0x10   : > { %p11067_p8 = pnand %p11275_p7, %p11065_p6 }
  0x12   : > { %p11068_p9 = pneg %p11067_p8 }
  0x14   : > { %p11073_p11 = pnand %p11071_p10, %p11068_p9 }
  0x16   : > { %11076 = shalt.err (!%p11073_p11)
}
  0x17   : > { %s11077_s11 = scalar_lea.vmem %s11249_s20, 18432  ;;  %p11085_p1 = scmp.lt.s32.totalorder %s11249_s20, %s11249_s20 }
  0x18   : > { %p11078_p12 = scmp.ne.s32.totalorder %s11249_s20, %s11077_s11  ;;  %p11086_p4 = scmp.lt.s32.totalorder %s11077_s11, %s11077_s11 }
  0x1a   : > { %p11080_p13 = pnand %p11078_p12, %p11275_p7  ;;  %p11087_p6 = por %p11086_p4, %p11085_p1 }
  0x1c   : > { %p11081_p0 = pneg %p11080_p13 }
  0x1e   : > { %p11088_p8 = pnand %p11087_p6, %p11081_p0 }
  0x20   : > { %11091 = shalt.err (!%p11088_p8)
}
  0x21   : > { %s11199_s12 = smov 128   ;;  %s11200_s13 = smov 8  }
  0x22   : > { %10198 = dma.hbm_to_vmem [thread:$0]  (!%p11261_p5), %s15830_s2, 18432, %s11249_s20, [#allocation5], %s11199_s12, %s11199_s12, %s11200_s13  }
  0x23   : > { %s11092_s19 = scalar_lea.hbm %s15829_s1, 44928 }
  0x24   : > { %p11093_p9 = scmp.ne.s32.totalorder %s15829_s1, %s11092_s19  ;;  %p11099_p12 = scmp.lt.u32.totalorder %s11092_s19, %s15829_s1 }
  0x26   : > { %p11095_p10 = pnand %p11093_p9, %p11275_p7 }
  0x28   : > { %p11096_p11 = pneg %p11095_p10 }
  0x2a   : > { %p11101_p13 = pnand %p11099_p12, %p11096_p11 }
  0x2c   : > { %11104 = shalt.err (!%p11101_p13)
}
  0x2d   : > { %s11105_s20 = scalar_lea.vmem %s11257_s24, 44928  ;;  %p11113_p6 = scmp.lt.s32.totalorder %s11257_s24, %s11257_s24 }
  0x2e   : > { %p11106_p0 = scmp.ne.s32.totalorder %s11257_s24, %s11105_s20  ;;  %p11114_p8 = scmp.lt.s32.totalorder %s11105_s20, %s11105_s20 }
  0x30   : > { %p11108_p1 = pnand %p11106_p0, %p11275_p7  ;;  %p11115_p9 = por %p11114_p8, %p11113_p6 }
  0x32   : > { %p11109_p4 = pneg %p11108_p1 }
  0x34   : > { %p11116_p10 = pnand %p11115_p9, %p11109_p4 }
  0x36   : > { %11119 = shalt.err (!%p11116_p10)
}
  0x37   : > { %s11201_s30 = smov 3456   ;;  %s11202_s6 = smov 216  }
  0x38   : > { %10195 = dma.hbm_to_vmem [thread:$0]  (!%p11261_p5), %s15829_s1, 44928, %s11257_s24, [#allocation3], %s11201_s30, %s11201_s30, %s11202_s6  }
  0x39   : > { %s11203_s10 = smov [#allocation7]   ;;  %s11120_s16 = scalar_lea.hbm %s15831_s3, 16 }
  0x3a   : > { %s208_s11 = sshll.u32 %s11203_s10, 4  ;;  %p11121_p11 = scmp.ne.s32.totalorder %s15831_s3, %s11120_s16  ;;  %s209_s11 = int_to_ptr.vmem [resolvable:$true] %s208_s11 }
  0x3b   : > { %p11127_p0 = scmp.lt.u32.totalorder %s11120_s16, %s15831_s3 }
  0x3c   : > { %p11123_p12 = pnand %p11121_p11, %p11275_p7 }
  0x3e   : > { %p11124_p13 = pneg %p11123_p12 }
  0x40   : > { %p11129_p1 = pnand %p11127_p0, %p11124_p13 }
  0x42   : > { %11132 = shalt.err (!%p11129_p1)
}
  0x43   : > { %s11133_s24 = scalar_lea.vmem %s199_s27, 16  ;;  %s11140_s28 = scalar_lea.vmem %s199_s27, 32 }
  0x44   : > { %p11134_p4 = scmp.ne.s32.totalorder %s199_s27, %s11133_s24  ;;  %p11141_p9 = scmp.lt.s32.totalorder %s199_s27, %s199_s27 }
  0x45   : > { %p11142_p10 = scmp.lt.s32.totalorder %s11140_s28, %s11133_s24 }
  0x46   : > { %p11136_p6 = pnand %p11134_p4, %p11275_p7 }
  0x47   : > { %p11143_p2 = por %p11142_p10, %p11141_p9 }
  0x48   : > { %p11137_p8 = pneg %p11136_p6 }
  0x4a   : > { %p11144_p3 = pnand %p11143_p2, %p11137_p8 }
  0x4c   : > { %11147 = shalt.err (!%p11144_p3)
}
  0x4d   : > { %10201 = dma.hbm_to_vmem [thread:$0]  (!%p11261_p5), %s15831_s3, 16, %s199_s27, [#allocation5]  }
  0x4e   : > { %s11148_s7 = scalar_lea.hbm %s15832_s4, 1792 }
  0x4f   : > { %p11149_p11 = scmp.ne.s32.totalorder %s15832_s4, %s11148_s7  ;;  %p11155_p3 = scmp.lt.u32.totalorder %s11148_s7, %s15832_s4 }
  0x51   : > { %p11151_p12 = pnand %p11149_p11, %p11275_p7 }
  0x53   : > { %p11152_p2 = pneg %p11151_p12 }
  0x55   : > { %p11157_p13 = pnand %p11155_p3, %p11152_p2 }
  0x57   : > { %11160 = shalt.err (!%p11157_p13)
}
  0x58   : > { %s11161_s16 = scalar_lea.vmem %s209_s11, 1792  ;;  %p11169_p6 = scmp.lt.s32.totalorder %s209_s11, %s209_s11 }
  0x59   : > { %p11162_p0 = scmp.ne.s32.totalorder %s209_s11, %s11161_s16  ;;  %p11170_p8 = scmp.lt.s32.totalorder %s11161_s16, %s11161_s16 }
  0x5b   : > { %p11164_p1 = pnand %p11162_p0, %p11275_p7  ;;  %p11171_p9 = por %p11170_p8, %p11169_p6 }
  0x5d   : > { %p11165_p4 = pneg %p11164_p1 }
  0x5f   : > { %p11172_p10 = pnand %p11171_p9, %p11165_p4 }
  0x61   : > { %11175 = shalt.err (!%p11172_p10)
}
  0x62   : > { %10204 = dma.hbm_to_vmem [thread:$0]  (!%p11261_p5), %s15832_s4, 1792, %s209_s11, [#allocation8], %s11199_s12, %s11199_s12, %s11200_s13  }
  0x63   : > { %p16137_p11 = scmp.ne.s32.totalorder %s16134_s22, 0 }
  0x65   : > { %232 = sbr.rel (%p16137_p11) target bundleno = 5222 (0x1466), region = 40 }
  0x6c   : > { %p16138_p7 = scmp.eq.s32.totalorder %s11244_s21, 0 }
  0x6e   : > { %11181 = dma.done.wait (%p16138_p7), [#allocation3], 44928   ;;  %p16139_p12 = pmov %p16138_p7 }
  0x6f   : > { %p16140_p2 = pmov %p16138_p7 }
  0x70   : > { %11183 = vsyncadd (%p16139_p12), [#allocation3], 4294922368 }
  0x71   : > { %11185 = dma.done.wait (%p16140_p2), [#allocation5], 18448   ;;  %p16141_p3 = pmov %p16140_p2 }
  0x72   : > { %p16142_p13 = pmov %p16140_p2 }
  0x73   : > { %11187 = vsyncadd (%p16141_p3), [#allocation5], 4294948848 }
  0x74   : > { %11189 = dma.done.wait (%p16142_p13), [#allocation8], 1792   ;;  %p16143_p5 = pmov %p16140_p2 }
  0x75   : > { %v15843_v0 = vmov 0.0   ;;  %v297_v1 = vld [vmem:[#allocation2 + $0x8] sm:$0xff]  ;;  %v324_v2 = vld [vmem:[#allocation2 + $0xe0] sm:$0xff]  ;;  %v299_v3 = vld [vmem:[#allocation2 + $0x18] sm:$0xff]  ;;  %p272_p0 = scmp.lt.s32.totalorder %s11244_s21, 1  ;;  %vm690_vm0 = vcmask 1045504  }
  0x76   : > { %11191 = vsyncadd (%p16143_p5), [#allocation8], 4294965504  ;;  %836 = vmatprep.mubr.f32.mxu0 %v15843_v0  ;;  %985 = vmatprep.mubr.f32.mxu1 %v15843_v0  ;;  %v9209_v4 = vpack.c.bf16 %v324_v2, %v297_v1  ;;  %v326_v5 = vld [vmem:[#allocation2 + $0xf0] sm:$0xff]  ;;  %v296_v6 = vld [vmem:[#allocation2] sm:$0xff]  ;;  %vm647_vm1 = vcmask 834560   ;;  %vm2858_vm2 = vcmask 523264  }
  0x77   : > { %v323_v7 = vld [vmem:[#allocation2 + $0xd8] sm:$0xff]  ;;  %v9233_v8 = vpack.c.bf16 %v326_v5, %v299_v3  ;;  %v298_v10 = vld [vmem:[#allocation2 + $0x10] sm:$0xff]  ;;  %v325_v11 = vld [vmem:[#allocation2 + $0xe8] sm:$0xff]  ;;  %s16974_s21 = smov (!%p272_p0, %s11244_s21), 1  ;;  %s11205_s13 = smov 64   ;;  %vm11206_vm4 = vmmov 1  }
  0x78   : > { %v9211_v9 = vpack.c.bf16 %v323_v7, %v296_v6  ;;  %v351_v12 = vld [vmem:[#allocation2 + $0x1b8] sm:$0xff]  ;;  %9210 = vmatprep.subr.bf16.mxu0 %v9209_v4  ;;  %v9235_v13 = vpack.c.bf16 %v325_v11, %v298_v10  ;;  %v378_v14 = vld [vmem:[#allocation2 + $0x290] sm:$0xff]  ;;  %v353_v15 = vld [vmem:[#allocation2 + $0x1c8] sm:$0xff]  ;;  %s10175_s22 = smul.u32 112, %s16974_s21  ;;  %vm3078_vm6 = vcmask 900096   ;;  %vm3118_vm7 = vcmask 898048  }
  0x79   : > { %v380_v16 = vld [vmem:[#allocation2 + $0x2a0] sm:$0xff]  ;;  %9234 = vmatprep.subr.bf16.mxu1 %v9233_v8  ;;  %v9213_v17 = vpack.c.bf16 %v378_v14, %v351_v12  ;;  %v350_v19 = vld [vmem:[#allocation2 + $0x1b0] sm:$0xff]  ;;  %v377_v20 = vld [vmem:[#allocation2 + $0x288] sm:$0xff] }
  0x7a   : > { %9212 = vmatpush1.bf16.msra.mxu0 %v9211_v9  ;;  %v9237_v18 = vpack.c.bf16 %v380_v16, %v353_v15  ;;  %v352_v21 = vld [vmem:[#allocation2 + $0x1c0] sm:$0xff]  ;;  %9236 = vmatpush1.bf16.msra.mxu1 %v9235_v13  ;;  %v9215_v22 = vpack.c.bf16 %v377_v20, %v350_v19  ;;  %v379_v23 = vld [vmem:[#allocation2 + $0x298] sm:$0xff]  ;;  %v405_v24 = vld [vmem:[#allocation2 + $0x368] sm:$0xff]  ;;  %s11390_s12 = scalar_lea.vmem %s15828_s0, %s10175_s22  ;;  %s15782_s23 = scalar_lea.vmem %s15833_s5, %s10175_s22 }
  0x7b   : > { %v432_v25 = vld [vmem:[#allocation2 + $0x440] sm:$0xff]  ;;  %9214 = vmatprep.subr.bf16.mxu0 %v9213_v17  ;;  %v9239_v26 = vpack.c.bf16 %v379_v23, %v352_v21  ;;  %v407_v28 = vld [vmem:[#allocation2 + $0x378] sm:$0xff]  ;;  %v434_v29 = vld [vmem:[#allocation2 + $0x450] sm:$0xff] }
  0x7c   : > { %9238 = vmatprep.subr.bf16.mxu1 %v9237_v18  ;;  %v9217_v27 = vpack.c.bf16 %v432_v25, %v405_v24  ;;  %v404_v30 = vld [vmem:[#allocation2 + $0x360] sm:$0xff]  ;;  %v9241_v31 = vpack.c.bf16 %v434_v29, %v407_v28  ;;  %v431_v32 = vld [vmem:[#allocation2 + $0x438] sm:$0xff]  ;;  %v406_v33 = vld [vmem:[#allocation2 + $0x370] sm:$0xff] }
  0x7d   : > { %v433_v34 = vld [vmem:[#allocation2 + $0x448] sm:$0xff]  ;;  %v9219_v35 = vpack.c.bf16 %v431_v32, %v404_v30  ;;  %v459_v36 = vld [vmem:[#allocation2 + $0x518] sm:$0xff]  ;;  %v486_v37 = vld [vmem:[#allocation2 + $0x5f0] sm:$0xff] }
  0x7e   : > { %9216 = vmatpush1.bf16.msra.mxu0 %v9215_v22  ;;  %v461_v38 = vld [vmem:[#allocation2 + $0x528] sm:$0xff]  ;;  %9240 = vmatpush1.bf16.msra.mxu1 %v9239_v26  ;;  %v9243_v39 = vpack.c.bf16 %v433_v34, %v406_v33  ;;  %v9221_v40 = vpack.c.bf16 %v486_v37, %v459_v36  ;;  %v488_v41 = vld [vmem:[#allocation2 + $0x600] sm:$0xff]  ;;  %v458_v42 = vld [vmem:[#allocation2 + $0x510] sm:$0xff] }
  0x7f   : > { %9218 = vmatprep.subr.bf16.mxu0 %v9217_v27  ;;  %v485_v43 = vld [vmem:[#allocation2 + $0x5e8] sm:$0xff]  ;;  %9242 = vmatprep.subr.bf16.mxu1 %v9241_v31  ;;  %v9245_v44 = vpack.c.bf16 %v488_v41, %v461_v38  ;;  %v460_v45 = vld [vmem:[#allocation2 + $0x520] sm:$0xff]  ;;  %v487_v46 = vld [vmem:[#allocation2 + $0x5f8] sm:$0xff] }
  0x80   : > { %v513_v47 = vld [vmem:[#allocation2 + $0x6c8] sm:$0xff]  ;;  %v540_v48 = vld [vmem:[#allocation2 + $0x7a0] sm:$0xff]  ;;  %v515_v49 = vld [vmem:[#allocation2 + $0x6d8] sm:$0xff]  ;;  %v9223_v51 = vpack.c.bf16 %v485_v43, %v458_v42  ;;  %v9247_v52 = vpack.c.bf16 %v487_v46, %v460_v45 }
  0x81   : > { %v542_v50 = vld [vmem:[#allocation2 + $0x7b0] sm:$0xff]  ;;  %v9225_v53 = vpack.c.bf16 %v540_v48, %v513_v47  ;;  %v512_v54 = vld [vmem:[#allocation2 + $0x6c0] sm:$0xff]  ;;  %v539_v55 = vld [vmem:[#allocation2 + $0x798] sm:$0xff] }
  0x82   : > { %9220 = vmatpush1.bf16.msra.mxu0 %v9219_v35  ;;  %9244 = vmatpush1.bf16.msra.mxu1 %v9243_v39  ;;  %v514_v56 = vld [vmem:[#allocation2 + $0x6d0] sm:$0xff]  ;;  %v9249_v57 = vpack.c.bf16 %v542_v50, %v515_v49  ;;  %v541_v58 = vld [vmem:[#allocation2 + $0x7a8] sm:$0xff]  ;;  %v567_v59 = vld [vmem:[#allocation2 + $0x878] sm:$0xff]  ;;  %v9227_v63 = vpack.c.bf16 %v539_v55, %v512_v54 }
  0x83   : > { %9222 = vmatprep.subr.bf16.mxu0 %v9221_v40  ;;  %9246 = vmatprep.subr.bf16.mxu1 %v9245_v44  ;;  %v594_v60 = vld [vmem:[#allocation2 + $0x950] sm:$0xff]  ;;  %v569_v61 = vld [vmem:[#allocation2 + $0x888] sm:$0xff]  ;;  %v596_v62 = vld [vmem:[#allocation2 + $0x960] sm:$0xff]  ;;  %v9251_v1 = vpack.c.bf16 %v541_v58, %v514_v56 }
  0x84   : > { %v9229_v2 = vpack.c.bf16 %v594_v60, %v567_v59  ;;  %v566_v3 = vld [vmem:[#allocation2 + $0x870] sm:$0xff]  ;;  %v593_v4 = vld [vmem:[#allocation2 + $0x948] sm:$0xff]  ;;  %v9253_v5 = vpack.c.bf16 %v596_v62, %v569_v61  ;;  %v568_v6 = vld [vmem:[#allocation2 + $0x880] sm:$0xff] }
  0x85   : > { %v595_v7 = vld [vmem:[#allocation2 + $0x958] sm:$0xff]  ;;  %v9231_v8 = vpack.c.bf16 %v593_v4, %v566_v3  ;;  %v621_v10 = vld [vmem:[#allocation2 + $0xa28] sm:$0x3f]  ;;  %v328_v13 = vld [vmem:[#allocation2 + $0x100] sm:$0xff] }
  0x86   : > { %9224 = vmatpush1.bf16.msra.mxu0 %v9223_v51  ;;  %9248 = vmatpush1.bf16.msra.mxu1 %v9247_v52  ;;  %v9255_v9 = vpack.c.bf16 %v595_v7, %v568_v6  ;;  %v623_v11 = vld [vmem:[#allocation2 + $0xa38] sm:$0x3f]  ;;  %v301_v12 = vld [vmem:[#allocation2 + $0x28] sm:$0xff]  ;;  %v620_v14 = vld [vmem:[#allocation2 + $0xa20] sm:$0x3f] }
  0x87   : > { %9226 = vmatprep.subr.bf16.mxu0 %v9225_v53  ;;  %9250 = vmatprep.subr.bf16.mxu1 %v9249_v57  ;;  %v300_v15 = vld [vmem:[#allocation2 + $0x20] sm:$0xff]  ;;  %v327_v16 = vld [vmem:[#allocation2 + $0xf8] sm:$0xff]  ;;  %v622_v17 = vld [vmem:[#allocation2 + $0xa30] sm:$0x3f]  ;;  %v9257_v21 = vpack.c.bf16 %v328_v13, %v301_v12 }
  0x88   : > { %v303_v18 = vld [vmem:[#allocation2 + $0x38] sm:$0xff]  ;;  %v330_v19 = vld [vmem:[#allocation2 + $0x110] sm:$0xff]  ;;  %v11395_v20 = vld [vmem:[%s11390_s12] sm:$0xff]  ;;  %v9259_v24 = vpack.c.bf16 %v327_v16, %v300_v15 }
  0x89   : > { %v302_v22 = vld [vmem:[#allocation2 + $0x30] sm:$0xff]  ;;  %v329_v23 = vld [vmem:[#allocation2 + $0x108] sm:$0xff]  ;;  %v9281_v25 = vpack.c.bf16 %v330_v19, %v303_v18  ;;  %v355_v26 = vld [vmem:[#allocation2 + $0x1d8] sm:$0xff] }
  0x8a   : > { %9228 = vmatpush1.bf16.msra.mxu0 %v9227_v63  ;;  %9252 = vmatpush1.bf16.msra.mxu1 %v9251_v1  ;;  %v382_v27 = vld [vmem:[#allocation2 + $0x2b0] sm:$0xff]  ;;  %v9283_v29 = vpack.c.bf16 %v329_v23, %v302_v22  ;;  %v381_v30 = vld [vmem:[#allocation2 + $0x2a8] sm:$0xff]  ;;  %v384_v32 = vld [vmem:[#allocation2 + $0x2c0] sm:$0xff] }
  0x8b   : > { %9230 = vmatprep.subr.bf16.mxu0 %v9229_v2  ;;  %9254 = vmatprep.subr.bf16.mxu1 %v9253_v5  ;;  %v354_v28 = vld [vmem:[#allocation2 + $0x1d0] sm:$0xff]  ;;  %v357_v31 = vld [vmem:[#allocation2 + $0x1e8] sm:$0xff]  ;;  %v356_v34 = vld [vmem:[#allocation2 + $0x1e0] sm:$0xff]  ;;  %v9261_v36 = vpack.c.bf16 %v382_v27, %v355_v26 }
  0x8c   : > { %v11404_v33 = vld [vmem:[%s11390_s12 + $0x8] sm:$0xff]  ;;  %v383_v35 = vld [vmem:[#allocation2 + $0x2b8] sm:$0xff]  ;;  %v9263_v37 = vpack.c.bf16 %v381_v30, %v354_v28  ;;  %v9285_v38 = vpack.c.bf16 %v384_v32, %v357_v31  ;;  %v436_v40 = vld [vmem:[#allocation2 + $0x460] sm:$0xff] }
  0x8d   : > { %v409_v39 = vld [vmem:[#allocation2 + $0x388] sm:$0xff]  ;;  %v408_v41 = vld [vmem:[#allocation2 + $0x380] sm:$0xff]  ;;  %v9287_v42 = vpack.c.bf16 %v383_v35, %v356_v34  ;;  %v435_v43 = vld [vmem:[#allocation2 + $0x458] sm:$0xff] }
  0x8e   : > { %9232 = vmatpush1.bf16.msra.mxu0 %v9231_v8  ;;  %9256 = vmatpush1.bf16.msra.mxu1 %v9255_v9  ;;  %v411_v44 = vld [vmem:[#allocation2 + $0x398] sm:$0xff]  ;;  %v438_v45 = vld [vmem:[#allocation2 + $0x470] sm:$0xff]  ;;  %v437_v48 = vld [vmem:[#allocation2 + $0x468] sm:$0xff]  ;;  %v9265_v49 = vpack.c.bf16 %v436_v40, %v409_v39  ;;  %v9267_v50 = vpack.c.bf16 %v435_v43, %v408_v41 }
  0x8f   : > { %8561 = vmatprep.subr.msk.mxu0 %vm690_vm0, %v621_v10  ;;  %8577 = vmatprep.subr.msk.mxu1 %vm690_vm0, %v623_v11  ;;  %v11414_v46 = vld [vmem:[%s11390_s12 + $0x10] sm:$0xff]  ;;  %v9289_v51 = vpack.c.bf16 %v438_v45, %v411_v44  ;;  %v463_v52 = vld [vmem:[#allocation2 + $0x538] sm:$0xff]  ;;  %v489_v56 = vld [vmem:[#allocation2 + $0x608] sm:$0xff] }
  0x90   : > { %v410_v47 = vld [vmem:[#allocation2 + $0x390] sm:$0xff]  ;;  %v465_v57 = vld [vmem:[#allocation2 + $0x548] sm:$0xff]  ;;  %v492_v58 = vld [vmem:[#allocation2 + $0x620] sm:$0xff] }
  0x91   : > { %v490_v53 = vld [vmem:[#allocation2 + $0x610] sm:$0xff]  ;;  %v9291_v55 = vpack.c.bf16 %v437_v48, %v410_v47  ;;  %v11423_v59 = vld [vmem:[%s11390_s12 + $0x18] sm:$0xff]  ;;  %v464_v60 = vld [vmem:[#allocation2 + $0x540] sm:$0xff]  ;;  %v9293_v1 = vpack.c.bf16 %v492_v58, %v465_v57 }
  0x92   : > { %8562 = vmatpush1.msk.msra.mxu0 %vm690_vm0, %v620_v14  ;;  %8578 = vmatpush1.msk.msra.mxu1 %vm690_vm0, %v622_v17  ;;  %v462_v54 = vld [vmem:[#allocation2 + $0x530] sm:$0xff]  ;;  %v491_v61 = vld [vmem:[#allocation2 + $0x618] sm:$0xff]  ;;  %v9269_v62 = vpack.c.bf16 %v490_v53, %v463_v52  ;;  %v517_v2 = vld [vmem:[#allocation2 + $0x6e8] sm:$0xff] }
  0x93   : > { %8563 = vmatmul.mubr.msk.f32.vlgmr.msra.gmra.mrb[0].mxu0 %vm647_vm1, %v11395_v20  ;;  %8579 = vmatmul.mubr.msk.f32.vlgmr.msra.gmra.mrb[0].mxu1 %vm647_vm1, %v11395_v20  ;;  %v9271_v63 = vpack.c.bf16 %v489_v56, %v462_v54  ;;  %v544_v3 = vld [vmem:[#allocation2 + $0x7c0] sm:$0xff]  ;;  %v9295_v5 = vpack.c.bf16 %v491_v61, %v464_v60  ;;  %v543_v6 = vld [vmem:[#allocation2 + $0x7b8] sm:$0xff]  ;;  %v546_v8 = vld [vmem:[#allocation2 + $0x7d0] sm:$0xff] }
  0x94   : > { %9258 = vmatprep.subr.bf16.mxu0 %v9257_v21  ;;  %842 = vmatprep.mubr.f32.mxu0 %v15843_v0  ;;  %v516_v4 = vld [vmem:[#allocation2 + $0x6e0] sm:$0xff]  ;;  %v519_v7 = vld [vmem:[#allocation2 + $0x6f8] sm:$0xff]  ;;  %v518_v10 = vld [vmem:[#allocation2 + $0x6f0] sm:$0xff]  ;;  %v9273_v12 = vpack.c.bf16 %v544_v3, %v517_v2 }
  0x95   : > { %9260 = vmatpush1.bf16.msra.mxu0 %v9259_v24  ;;  %991 = vmatprep.mubr.f32.mxu1 %v15843_v0  ;;  %v11432_v9 = vld [vmem:[%s11390_s12 + $0x20] sm:$0xff]  ;;  %v545_v11 = vld [vmem:[#allocation2 + $0x7c8] sm:$0xff]  ;;  %v9275_v13 = vpack.c.bf16 %v543_v6, %v516_v4  ;;  %v9297_v14 = vpack.c.bf16 %v546_v8, %v519_v7  ;;  %v571_v15 = vld [vmem:[#allocation2 + $0x898] sm:$0xff] }
  0x96   : > { %9282 = vmatprep.subr.bf16.mxu1 %v9281_v25  ;;  %9262 = vmatprep.subr.bf16.mxu0 %v9261_v36  ;;  %v598_v16 = vld [vmem:[#allocation2 + $0x970] sm:$0xff]  ;;  %v9299_v18 = vpack.c.bf16 %v545_v11, %v518_v10  ;;  %v597_v19 = vld [vmem:[#allocation2 + $0x968] sm:$0xff]  ;;  %v600_v22 = vld [vmem:[#allocation2 + $0x980] sm:$0xff] }
  0x97   : > { %8564 = vmatmul.mubr.msk.f32.gmra.mrb[2].mxu0 %vm647_vm1, %v11404_v33  ;;  %9284 = vmatpush1.bf16.msra.mxu1 %v9283_v29  ;;  %v570_v17 = vld [vmem:[#allocation2 + $0x890] sm:$0xff]  ;;  %v573_v21 = vld [vmem:[#allocation2 + $0x8a8] sm:$0xff]  ;;  %v572_v24 = vld [vmem:[#allocation2 + $0x8a0] sm:$0xff]  ;;  %v9277_v26 = vpack.c.bf16 %v598_v16, %v571_v15 }
  0x98   : > { %8580 = vmatmul.mubr.msk.f32.gmra.mrb[2].mxu1 %vm647_vm1, %v11404_v33  ;;  %848 = vmatprep.mubr.f32.mxu0 %v15843_v0  ;;  %v11441_v23 = vld [vmem:[%s11390_s12 + $0x28] sm:$0xff]  ;;  %v599_v25 = vld [vmem:[#allocation2 + $0x978] sm:$0xff]  ;;  %v9279_v27 = vpack.c.bf16 %v597_v19, %v570_v17  ;;  %v9301_v28 = vpack.c.bf16 %v600_v22, %v573_v21  ;;  %v11450_v30 = vld [vmem:[%s11390_s12 + $0x30] sm:$0xff] }
  0x99   : > { %997 = vmatprep.mubr.f32.mxu1 %v15843_v0  ;;  %9264 = vmatpush1.bf16.msra.mxu0 %v9263_v37  ;;  %v9303_v29 = vpack.c.bf16 %v599_v25, %v572_v24  ;;  %v625_v31 = vld [vmem:[#allocation2 + $0xa48] sm:$0x3f]  ;;  %v624_v32 = vld [vmem:[#allocation2 + $0xa40] sm:$0x3f]  ;;  %v627_v36 = vld [vmem:[#allocation2 + $0xa58] sm:$0x3f] }
  0x9a   : > { %9286 = vmatprep.subr.bf16.mxu1 %v9285_v38  ;;  %9266 = vmatprep.subr.bf16.mxu0 %v9265_v49  ;;  %v305_v34 = vld [vmem:[#allocation2 + $0x48] sm:$0xff]  ;;  %v332_v35 = vld [vmem:[#allocation2 + $0x120] sm:$0xff]  ;;  %v307_v37 = vld [vmem:[#allocation2 + $0x58] sm:$0xff] }
  0x9b   : > { %8565 = vmatmul.mubr.msk.f32.gmra.mrb[4].mxu0 %vm647_vm1, %v11414_v46  ;;  %9288 = vmatpush1.bf16.msra.mxu1 %v9287_v42  ;;  %v334_v38 = vld [vmem:[#allocation2 + $0x130] sm:$0xff]  ;;  %v11459_v39 = vld [vmem:[%s11390_s12 + $0x38] sm:$0xff]  ;;  %v9305_v41 = vpack.c.bf16 %v332_v35, %v305_v34  ;;  %v11472_v43 = vld [vmem:[%s11390_s12 + $0x40] sm:$0xff] }
  0x9c   : > { %8581 = vmatmul.mubr.msk.f32.gmra.mrb[4].mxu1 %vm647_vm1, %v11414_v46  ;;  %854 = vmatprep.mubr.f32.mxu0 %v15843_v0  ;;  %v626_v40 = vld [vmem:[#allocation2 + $0xa50] sm:$0x3f]  ;;  %v9329_v42 = vpack.c.bf16 %v334_v38, %v307_v37  ;;  %v11481_v44 = vld [vmem:[%s11390_s12 + $0x48] sm:$0xff]  ;;  %v11499_v47 = vld [vmem:[%s11390_s12 + $0x58] sm:$0xff] }
  0x9d   : > { %1003 = vmatprep.mubr.f32.mxu1 %v15843_v0  ;;  %9268 = vmatpush1.bf16.msra.mxu0 %v9267_v50  ;;  %v11490_v45 = vld [vmem:[%s11390_s12 + $0x50] sm:$0xff]  ;;  %v11508_v48 = vld [vmem:[%s11390_s12 + $0x60] sm:$0xff]  ;;  %v11517_v49 = vld [vmem:[%s11390_s12 + $0x68] sm:$0x3f] }
  0x9e   : > { %9290 = vmatprep.subr.bf16.mxu1 %v9289_v51  ;;  %9270 = vmatprep.subr.bf16.mxu0 %v9269_v62  ;;  %v304_v50 = vld [vmem:[#allocation2 + $0x40] sm:$0xff]  ;;  %v331_v51 = vld [vmem:[#allocation2 + $0x118] sm:$0xff]  ;;  %v306_v52 = vld [vmem:[#allocation2 + $0x50] sm:$0xff] }
  0x9f   : > { %8566 = vmatmul.mubr.msk.f32.gmra.mrb[6].mxu0 %vm647_vm1, %v11423_v59  ;;  %9292 = vmatpush1.bf16.msra.mxu1 %v9291_v55  ;;  %v333_v53 = vld [vmem:[#allocation2 + $0x128] sm:$0xff]  ;;  %v359_v54 = vld [vmem:[#allocation2 + $0x1f8] sm:$0xff]  ;;  %v386_v55 = vld [vmem:[#allocation2 + $0x2d0] sm:$0xff]  ;;  %v9307_v56 = vpack.c.bf16 %v331_v51, %v304_v50 }
  0xa0   : > { %8582 = vmatmul.mubr.msk.f32.gmra.mrb[6].mxu1 %vm647_vm1, %v11423_v59  ;;  %860 = vmatprep.mubr.f32.mxu0 %v15843_v0  ;;  %v361_v57 = vld [vmem:[#allocation2 + $0x208] sm:$0xff]  ;;  %v388_v58 = vld [vmem:[#allocation2 + $0x2e0] sm:$0xff]  ;;  %v9331_v60 = vpack.c.bf16 %v333_v53, %v306_v52  ;;  %v9309_v61 = vpack.c.bf16 %v386_v55, %v359_v54  ;;  %v358_v62 = vld [vmem:[#allocation2 + $0x1f0] sm:$0xff] }
  0xa1   : > { %1009 = vmatprep.mubr.f32.mxu1 %v15843_v0  ;;  %9272 = vmatpush1.bf16.msra.mxu0 %v9271_v63  ;;  %v385_v63 = vld [vmem:[#allocation2 + $0x2c8] sm:$0xff]  ;;  %v9333_v2 = vpack.c.bf16 %v388_v58, %v361_v57  ;;  %v387_v3 = vld [vmem:[#allocation2 + $0x2d8] sm:$0xff]  ;;  %v442_v7 = vld [vmem:[#allocation2 + $0x490] sm:$0xff] }
  0xa2   : > { %9294 = vmatprep.subr.bf16.mxu1 %v9293_v1  ;;  %9274 = vmatprep.subr.bf16.mxu0 %v9273_v12  ;;  %v360_v1 = vld [vmem:[#allocation2 + $0x200] sm:$0xff]  ;;  %v413_v4 = vld [vmem:[#allocation2 + $0x3a8] sm:$0xff]  ;;  %v415_v6 = vld [vmem:[#allocation2 + $0x3b8] sm:$0xff]  ;;  %v9311_v8 = vpack.c.bf16 %v385_v63, %v358_v62 }
  0xa3   : > { %8567 = vmatmul.mubr.msk.f32.gmra.mrb[8].mxu0 %vm647_vm1, %v11432_v9  ;;  %9296 = vmatpush1.bf16.msra.mxu1 %v9295_v5  ;;  %v440_v5 = vld [vmem:[#allocation2 + $0x480] sm:$0xff]  ;;  %v9335_v10 = vpack.c.bf16 %v387_v3, %v360_v1  ;;  %v9337_v15 = vpack.c.bf16 %v442_v7, %v415_v6  ;;  %v441_v16 = vld [vmem:[#allocation2 + $0x488] sm:$0xff]  ;;  %v467_v17 = vld [vmem:[#allocation2 + $0x558] sm:$0xff] }
  0xa4   : > { %8583 = vmatmul.mubr.msk.f32.gmra.mrb[8].mxu1 %vm647_vm1, %v11432_v9  ;;  %866 = vmatprep.mubr.f32.mxu0 %v15843_v0  ;;  %v9313_v11 = vpack.c.bf16 %v440_v5, %v413_v4  ;;  %v412_v12 = vld [vmem:[#allocation2 + $0x3a0] sm:$0xff]  ;;  %v469_v19 = vld [vmem:[#allocation2 + $0x568] sm:$0xff]  ;;  %v523_v35 = vld [vmem:[#allocation2 + $0x718] sm:$0xff] }
  0xa5   : > { %1015 = vmatprep.mubr.f32.mxu1 %v15843_v0  ;;  %9276 = vmatpush1.bf16.msra.mxu0 %v9275_v13  ;;  %v439_v13 = vld [vmem:[#allocation2 + $0x478] sm:$0xff]  ;;  %v496_v21 = vld [vmem:[#allocation2 + $0x640] sm:$0xff]  ;;  %v522_v50 = vld [vmem:[#allocation2 + $0x710] sm:$0xff] }
  0xa6   : > { %9298 = vmatprep.subr.bf16.mxu1 %v9297_v14  ;;  %9278 = vmatprep.subr.bf16.mxu0 %v9277_v26  ;;  %v414_v14 = vld [vmem:[#allocation2 + $0x3b0] sm:$0xff]  ;;  %v9315_v22 = vpack.c.bf16 %v439_v13, %v412_v12  ;;  %v548_v34 = vld [vmem:[#allocation2 + $0x7e0] sm:$0xff]  ;;  %v549_v52 = vld [vmem:[#allocation2 + $0x7e8] sm:$0xff] }
  0xa7   : > { %8568 = vmatmul.mubr.msk.f32.gmra.mrb[10].mxu0 %vm647_vm1, %v11441_v23  ;;  %9300 = vmatpush1.bf16.msra.mxu1 %v9299_v18  ;;  %v494_v18 = vld [vmem:[#allocation2 + $0x630] sm:$0xff]  ;;  %v9339_v24 = vpack.c.bf16 %v441_v16, %v414_v14  ;;  %v575_v53 = vld [vmem:[#allocation2 + $0x8b8] sm:$0xff]  ;;  %v577_v55 = vld [vmem:[#allocation2 + $0x8c8] sm:$0xff]  ;;  %v9347_v58 = vpack.c.bf16 %v549_v52, %v522_v50 }
  0xa8   : > { %8584 = vmatmul.mubr.msk.f32.gmra.mrb[10].mxu1 %vm647_vm1, %v11441_v23  ;;  %872 = vmatprep.mubr.f32.mxu0 %v15843_v0  ;;  %v9317_v25 = vpack.c.bf16 %v494_v18, %v467_v17  ;;  %v466_v26 = vld [vmem:[#allocation2 + $0x550] sm:$0xff]  ;;  %v601_v62 = vld [vmem:[#allocation2 + $0x988] sm:$0xff]  ;;  %v576_v1 = vld [vmem:[#allocation2 + $0x8c0] sm:$0xff] }
  0xa9   : > { %1021 = vmatprep.mubr.f32.mxu1 %v15843_v0  ;;  %9280 = vmatpush1.bf16.msra.mxu0 %v9279_v27  ;;  %v493_v27 = vld [vmem:[#allocation2 + $0x628] sm:$0xff]  ;;  %v602_v54 = vld [vmem:[#allocation2 + $0x990] sm:$0xff]  ;;  %v336_v7 = vld [vmem:[#allocation2 + $0x140] sm:$0xff] }
  0xaa   : > { %9302 = vmatprep.subr.bf16.mxu1 %v9301_v28  ;;  %8593 = vmatprep.subr.msk.mxu0 %vm690_vm0, %v625_v31  ;;  %v468_v28 = vld [vmem:[#allocation2 + $0x560] sm:$0xff]  ;;  %v495_v31 = vld [vmem:[#allocation2 + $0x638] sm:$0xff]  ;;  %v9319_v37 = vpack.c.bf16 %v493_v27, %v466_v26  ;;  %v629_v5 = vld [vmem:[#allocation2 + $0xa68] sm:$0x3f] }
  0xab   : > { %8569 = vmatmul.mubr.msk.f32.gmra.mrb[12].mxu0 %vm647_vm1, %v11450_v30  ;;  %9304 = vmatpush1.bf16.msra.mxu1 %v9303_v29  ;;  %v9341_v29 = vpack.c.bf16 %v496_v21, %v469_v19  ;;  %v9343_v38 = vpack.c.bf16 %v495_v31, %v468_v28  ;;  %v309_v6 = vld [vmem:[#allocation2 + $0x68] sm:$0xff]  ;;  %v628_v12 = vld [vmem:[#allocation2 + $0xa60] sm:$0x3f]  ;;  %v630_v14 = vld [vmem:[#allocation2 + $0xa70] sm:$0x3f] }
  0xac   : > { %8585 = vmatmul.mubr.msk.f32.gmra.mrb[12].mxu1 %vm647_vm1, %v11450_v30  ;;  %878 = vmatprep.mubr.f32.mxu0 %v15843_v0  ;;  %v9353_v13 = vpack.c.bf16 %v336_v7, %v309_v6  ;;  %v308_v16 = vld [vmem:[#allocation2 + $0x60] sm:$0xff]  ;;  %v335_v17 = vld [vmem:[#allocation2 + $0x138] sm:$0xff]  ;;  %v390_v19 = vld [vmem:[#allocation2 + $0x2f0] sm:$0xff] }
  0xad   : > { %1027 = vmatprep.mubr.f32.mxu1 %v15843_v0  ;;  %8594 = vmatpush1.msk.msra.mxu0 %vm690_vm0, %v624_v32  ;;  %v521_v32 = vld [vmem:[#allocation2 + $0x708] sm:$0xff]  ;;  %v363_v18 = vld [vmem:[#allocation2 + $0x218] sm:$0xff]  ;;  %v310_v21 = vld [vmem:[#allocation2 + $0x70] sm:$0xff] }
  0xae   : > { %8609 = vmatprep.subr.msk.mxu1 %vm690_vm0, %v627_v36  ;;  %9306 = vmatprep.subr.bf16.mxu0 %v9305_v41  ;;  %v550_v36 = vld [vmem:[#allocation2 + $0x7f0] sm:$0xff]  ;;  %v520_v41 = vld [vmem:[#allocation2 + $0x700] sm:$0xff]  ;;  %v9357_v27 = vpack.c.bf16 %v390_v19, %v363_v18  ;;  %v417_v31 = vld [vmem:[#allocation2 + $0x3c8] sm:$0xff] }
  0xaf   : > { %8570 = vmatmul.mubr.msk.f32.gmra.mrb[14].mxu0 %vm647_vm1, %v11459_v39  ;;  %8610 = vmatpush1.msk.msra.mxu1 %vm690_vm0, %v626_v40  ;;  %v9321_v40 = vpack.c.bf16 %v548_v34, %v521_v32  ;;  %v9345_v51 = vpack.c.bf16 %v550_v36, %v523_v35  ;;  %v392_v26 = vld [vmem:[#allocation2 + $0x300] sm:$0xff]  ;;  %v362_v28 = vld [vmem:[#allocation2 + $0x210] sm:$0xff]  ;;  %v471_v52 = vld [vmem:[#allocation2 + $0x578] sm:$0xff] }
  0xb0   : > { %8586 = vmatmul.mubr.msk.f32.gmra.mrb[14].mxu1 %vm647_vm1, %v11459_v39  ;;  %884 = vmatprep.mubr.f32.mxu0 %v15843_v0  ;;  %v444_v34 = vld [vmem:[#allocation2 + $0x4a0] sm:$0xff]  ;;  %v527_v6 = vld [vmem:[#allocation2 + $0x738] sm:$0xff]  ;;  %v554_v7 = vld [vmem:[#allocation2 + $0x810] sm:$0xff] }
  0xb1   : > { %1033 = vmatprep.mubr.f32.mxu1 %v15843_v0  ;;  %9330 = vmatprep.subr.bf16.mxu1 %v9329_v42  ;;  %v547_v42 = vld [vmem:[#allocation2 + $0x7d8] sm:$0xff]  ;;  %v364_v36 = vld [vmem:[#allocation2 + $0x220] sm:$0xff]  ;;  %v581_v18 = vld [vmem:[#allocation2 + $0x8e8] sm:$0xff] }
  0xb2   : > { %v9323_v57 = vpack.c.bf16 %v547_v42, %v520_v41  ;;  %v9361_v42 = vpack.c.bf16 %v444_v34, %v417_v31  ;;  %v416_v50 = vld [vmem:[#allocation2 + $0x3c0] sm:$0xff]  ;;  %v633_v34 = vld [vmem:[#allocation2 + $0xa88] sm:$0x3f]  ;;  %vm12233_vm3 = vmpackc.low %vm2858_vm2, %vm2858_vm2 }
  0xb3   : > { %8571 = vmatmul.mubr.msk.f32.gmra.mrb[16].mxu0 %vm647_vm1, %v11472_v43  ;;  %v608_v19 = vld [vmem:[#allocation2 + $0x9c0] sm:$0xff]  ;;  %vm12806_vm5 = vmpackc.low %vm690_vm0, %vm11206_vm4 }
  0xb4   : > { %8587 = vmatmul.mubr.msk.f32.gmra.mrb[16].mxu1 %vm647_vm1, %v11472_v43  ;;  %890 = vmatprep.mubr.f32.mxu0 %v15843_v0 }
  0xb5   : > { %1039 = vmatprep.mubr.f32.mxu1 %v15843_v0 }
  0xb7   : > { %8572 = vmatmul.mubr.msk.f32.gmra.mrb[18].mxu0 %vm647_vm1, %v11481_v44 }
  0xb8   : > { %8588 = vmatmul.mubr.msk.f32.gmra.mrb[18].mxu1 %vm647_vm1, %v11481_v44  ;;  %896 = vmatprep.mubr.f32.mxu0 %v15843_v0 }
  0xb9   : > { %1045 = vmatprep.mubr.f32.mxu1 %v15843_v0 }
  0xbb   : > { %8573 = vmatmul.mubr.msk.f32.gmra.mrb[20].mxu0 %vm647_vm1, %v11490_v45 }
  0xbc   : > { %8589 = vmatmul.mubr.msk.f32.gmra.mrb[20].mxu1 %vm647_vm1, %v11490_v45  ;;  %902 = vmatprep.mubr.f32.mxu0 %v15843_v0 }
  0xbd   : > { %1051 = vmatprep.mubr.f32.mxu1 %v15843_v0 }
  0xbf   : > { %8574 = vmatmul.mubr.msk.f32.gmra.mrb[22].mxu0 %vm647_vm1, %v11499_v47 }
  0xc0   : > { %8590 = vmatmul.mubr.msk.f32.gmra.mrb[22].mxu1 %vm647_vm1, %v11499_v47  ;;  %908 = vmatprep.mubr.f32.mxu0 %v15843_v0 }
  0xc1   : > { %1057 = vmatprep.mubr.f32.mxu1 %v15843_v0 }
  0xc3   : > { %8575 = vmatmul.mubr.msk.f32.gmra.mrb[24].mxu0 %vm647_vm1, %v11508_v48 }
  0xc4   : > { %8591 = vmatmul.mubr.msk.f32.gmra.mrb[24].mxu1 %vm647_vm1, %v11508_v48  ;;  %914 = vmatprep.mubr.f32.mxu0 %v15843_v0 }
  0xc5   : > { %1063 = vmatprep.mubr.f32.mxu1 %v15843_v0 }
  0xc7   : > { %8576 = vmatmul.mubr.msk.f32.gmra.mrb[26].mxu0 %vm647_vm1, %v11517_v49 }
  0xc8   : > { %8592 = vmatmul.mubr.msk.f32.gmra.mrb[26].mxu1 %vm647_vm1, %v11517_v49  ;;  %1134 = vmatprep.mubr.f32.mxu0 %v15843_v0 }
  0xc9   : > { %1283 = vmatprep.mubr.f32.mxu1 %v15843_v0 }
  0xcb   : > { %8595 = vmatmul.mubr.msk.f32.vlgmr.msra.gmra.mrb[28].mxu0 %vm647_vm1, %v11395_v20 }
  0xcc   : > { %8611 = vmatmul.mubr.msk.f32.vlgmr.msra.gmra.mrb[28].mxu1 %vm647_vm1, %v11395_v20  ;;  %9308 = vmatpush1.bf16.msra.mxu0 %v9307_v56  ;;  %v604_v56 = vld [vmem:[#allocation2 + $0x9a0] sm:$0xff] }
  0xcd   : > { %1140 = vmatprep.mubr.f32.mxu0 %v15843_v0  ;;  %1289 = vmatprep.mubr.f32.mxu1 %v15843_v0  ;;  %v9349_v63 = vpack.c.bf16 %v604_v56, %v577_v55  ;;  %v418_v55 = vld [vmem:[#allocation2 + $0x3d0] sm:$0xff]  ;;  %v445_v56 = vld [vmem:[#allocation2 + $0x4a8] sm:$0xff] }
  0xce   : > { %9332 = vmatpush1.bf16.msra.mxu1 %v9331_v60  ;;  %9310 = vmatprep.subr.bf16.mxu0 %v9309_v61  ;;  %v9325_v60 = vpack.c.bf16 %v602_v54, %v575_v53  ;;  %v574_v61 = vld [vmem:[#allocation2 + $0x8b0] sm:$0xff] }
  0xcf   : > { %8596 = vmatmul.mubr.msk.f32.gmra.mrb[30].mxu0 %vm647_vm1, %v11404_v33  ;;  %9334 = vmatprep.subr.bf16.mxu1 %v9333_v2  ;;  %v603_v2 = vld [vmem:[#allocation2 + $0x998] sm:$0xff]  ;;  %v9327_v3 = vpack.c.bf16 %v601_v62, %v574_v61  ;;  %v498_v54 = vld [vmem:[#allocation2 + $0x650] sm:$0xff] }
  0xd0   : > { %8612 = vmatmul.mubr.msk.f32.gmra.mrb[30].mxu1 %vm647_vm1, %v11404_v33  ;;  %1146 = vmatprep.mubr.f32.mxu0 %v15843_v0  ;;  %v9351_v4 = vpack.c.bf16 %v603_v2, %v576_v1  ;;  %v9365_v61 = vpack.c.bf16 %v498_v54, %v471_v52  ;;  %v470_v62 = vld [vmem:[#allocation2 + $0x570] sm:$0xff]  ;;  %v525_v1 = vld [vmem:[#allocation2 + $0x728] sm:$0xff]  ;;  %v9387_v2 = vpack.c.bf16 %v445_v56, %v418_v55  ;;  %v312_v52 = vld [vmem:[#allocation2 + $0x80] sm:$0xff] }
  0xd1   : > { %1295 = vmatprep.mubr.f32.mxu1 %v15843_v0  ;;  %9312 = vmatpush1.bf16.msra.mxu0 %v9311_v8  ;;  %v631_v8 = vld [vmem:[#allocation2 + $0xa78] sm:$0x3f]  ;;  %v314_v55 = vld [vmem:[#allocation2 + $0x90] sm:$0xff]  ;;  %v341_v56 = vld [vmem:[#allocation2 + $0x168] sm:$0xff] }
  0xd2   : > { %9336 = vmatpush1.bf16.msra.mxu1 %v9335_v10  ;;  %9314 = vmatprep.subr.bf16.mxu0 %v9313_v11  ;;  %v311_v10 = vld [vmem:[#allocation2 + $0x78] sm:$0xff]  ;;  %v338_v11 = vld [vmem:[#allocation2 + $0x150] sm:$0xff] }
  0xd3   : > { %8597 = vmatmul.mubr.msk.f32.gmra.mrb[32].mxu0 %vm647_vm1, %v11414_v46  ;;  %9338 = vmatprep.subr.bf16.mxu1 %v9337_v15  ;;  %v9377_v15 = vpack.c.bf16 %v338_v11, %v311_v10  ;;  %v524_v11 = vld [vmem:[#allocation2 + $0x720] sm:$0xff]  ;;  %v367_v54 = vld [vmem:[#allocation2 + $0x238] sm:$0xff] }
  0xd4   : > { %8613 = vmatmul.mubr.msk.f32.gmra.mrb[32].mxu1 %vm647_vm1, %v11414_v46  ;;  %1152 = vmatprep.mubr.f32.mxu0 %v15843_v0 }
  0xd5   : > { %1301 = vmatprep.mubr.f32.mxu1 %v15843_v0  ;;  %9316 = vmatpush1.bf16.msra.mxu0 %v9315_v22  ;;  %v337_v22 = vld [vmem:[#allocation2 + $0x148] sm:$0xff] }
  0xd6   : > { %9340 = vmatpush1.bf16.msra.mxu1 %v9339_v24  ;;  %9318 = vmatprep.subr.bf16.mxu0 %v9317_v25  ;;  %v9355_v24 = vpack.c.bf16 %v335_v17, %v308_v16  ;;  %v365_v25 = vld [vmem:[#allocation2 + $0x228] sm:$0xff]  ;;  %v9379_v32 = vpack.c.bf16 %v337_v22, %v310_v21  ;;  %v526_v16 = vld [vmem:[#allocation2 + $0x730] sm:$0xff] }
  0xd7   : > { %8598 = vmatmul.mubr.msk.f32.gmra.mrb[34].mxu0 %vm647_vm1, %v11423_v59  ;;  %9342 = vmatprep.subr.bf16.mxu1 %v9341_v29  ;;  %v389_v29 = vld [vmem:[#allocation2 + $0x2e8] sm:$0xff]  ;;  %v9381_v35 = vpack.c.bf16 %v392_v26, %v365_v25 }
  0xd8   : > { %8614 = vmatmul.mubr.msk.f32.gmra.mrb[34].mxu1 %vm647_vm1, %v11423_v59  ;;  %1158 = vmatprep.mubr.f32.mxu0 %v15843_v0  ;;  %v9359_v41 = vpack.c.bf16 %v389_v29, %v362_v28  ;;  %v553_v17 = vld [vmem:[#allocation2 + $0x808] sm:$0xff]  ;;  %v580_v28 = vld [vmem:[#allocation2 + $0x8e0] sm:$0xff]  ;;  %v607_v29 = vld [vmem:[#allocation2 + $0x9b8] sm:$0xff] }
  0xd9   : > { %1307 = vmatprep.mubr.f32.mxu1 %v15843_v0  ;;  %9320 = vmatpush1.bf16.msra.mxu0 %v9319_v37  ;;  %v391_v37 = vld [vmem:[#allocation2 + $0x2f8] sm:$0xff]  ;;  %v605_v25 = vld [vmem:[#allocation2 + $0x9a8] sm:$0xff]  ;;  %v9395_v26 = vpack.c.bf16 %v553_v17, %v526_v16  ;;  %v502_v16 = vld [vmem:[#allocation2 + $0x670] sm:$0xff] }
  0xda   : > { %9344 = vmatpush1.bf16.msra.mxu1 %v9343_v38  ;;  %9322 = vmatprep.subr.bf16.mxu0 %v9321_v40  ;;  %v419_v38 = vld [vmem:[#allocation2 + $0x3d8] sm:$0xff]  ;;  %v446_v40 = vld [vmem:[#allocation2 + $0x4b0] sm:$0xff]  ;;  %v9383_v53 = vpack.c.bf16 %v391_v37, %v364_v36  ;;  %v340_v36 = vld [vmem:[#allocation2 + $0x160] sm:$0xff] }
  0xdb   : > { %8599 = vmatmul.mubr.msk.f32.gmra.mrb[36].mxu0 %vm647_vm1, %v11432_v9  ;;  %9346 = vmatprep.subr.bf16.mxu1 %v9345_v51  ;;  %v443_v51 = vld [vmem:[#allocation2 + $0x498] sm:$0xff] }
  0xdc   : > { %8615 = vmatmul.mubr.msk.f32.gmra.mrb[36].mxu1 %vm647_vm1, %v11432_v9  ;;  %1164 = vmatprep.mubr.f32.mxu0 %v15843_v0  ;;  %v635_v37 = vld [vmem:[#allocation2 + $0xa98] sm:$0x3f] }
  0xdd   : > { %1313 = vmatprep.mubr.f32.mxu1 %v15843_v0  ;;  %9324 = vmatpush1.bf16.msra.mxu0 %v9323_v57  ;;  %v473_v57 = vld [vmem:[#allocation2 + $0x588] sm:$0xff] }
  0xde   : > { %9348 = vmatpush1.bf16.msra.mxu1 %v9347_v58  ;;  %9326 = vmatprep.subr.bf16.mxu0 %v9325_v60  ;;  %v500_v58 = vld [vmem:[#allocation2 + $0x660] sm:$0xff]  ;;  %v9363_v60 = vpack.c.bf16 %v443_v51, %v416_v50  ;;  %v634_v50 = vld [vmem:[#allocation2 + $0xa90] sm:$0x3f] }
  0xdf   : > { %8600 = vmatmul.mubr.msk.f32.gmra.mrb[38].mxu0 %vm647_vm1, %v11441_v23  ;;  %9350 = vmatprep.subr.bf16.mxu1 %v9349_v63  ;;  %v497_v63 = vld [vmem:[#allocation2 + $0x648] sm:$0xff] }
  0xe0   : > { %8616 = vmatmul.mubr.msk.f32.gmra.mrb[38].mxu1 %vm647_vm1, %v11441_v23  ;;  %1170 = vmatprep.mubr.f32.mxu0 %v15843_v0 }
  0xe1   : > { %1319 = vmatprep.mubr.f32.mxu1 %v15843_v0  ;;  %9328 = vmatpush1.bf16.msra.mxu0 %v9327_v3  ;;  %v552_v3 = vld [vmem:[#allocation2 + $0x800] sm:$0xff] }
  0xe2   : > { %9352 = vmatpush1.bf16.msra.mxu1 %v9351_v4  ;;  %8625 = vmatprep.subr.msk.mxu0 %vm690_vm0, %v629_v5  ;;  %v472_v4 = vld [vmem:[#allocation2 + $0x580] sm:$0xff]  ;;  %v499_v5 = vld [vmem:[#allocation2 + $0x658] sm:$0xff]  ;;  %v9369_v10 = vpack.c.bf16 %v552_v3, %v525_v1  ;;  %v421_v1 = vld [vmem:[#allocation2 + $0x3e8] sm:$0xff] }
  0xe3   : > { %8601 = vmatmul.mubr.msk.f32.gmra.mrb[40].mxu0 %vm647_vm1, %v11450_v30  ;;  %8641 = vmatprep.subr.msk.mxu1 %vm690_vm0, %v631_v8  ;;  %v9367_v8 = vpack.c.bf16 %v497_v63, %v470_v62  ;;  %v366_v62 = vld [vmem:[#allocation2 + $0x230] sm:$0xff]  ;;  %v393_v63 = vld [vmem:[#allocation2 + $0x308] sm:$0xff]  ;;  %v11703_v3 = vld [vmem:[%s11390_s12] sm:$0xff] }
  0xe4   : > { %8617 = vmatmul.mubr.msk.f32.gmra.mrb[40].mxu1 %vm647_vm1, %v11450_v30  ;;  %1176 = vmatprep.mubr.f32.mxu0 %v15843_v0 }
  0xe5   : > { %1325 = vmatprep.mubr.f32.mxu1 %v15843_v0  ;;  %8626 = vmatpush1.msk.msra.mxu0 %vm690_vm0, %v628_v12  ;;  %v551_v12 = vld [vmem:[#allocation2 + $0x7f8] sm:$0xff] }
  0xe6   : > { %8642 = vmatpush1.msk.msra.mxu1 %vm690_vm0, %v630_v14  ;;  %9354 = vmatprep.subr.bf16.mxu0 %v9353_v13  ;;  %v579_v13 = vld [vmem:[#allocation2 + $0x8d8] sm:$0xff]  ;;  %v9391_v14 = vpack.c.bf16 %v499_v5, %v472_v4  ;;  %v9371_v21 = vpack.c.bf16 %v551_v12, %v524_v11  ;;  %v368_v5 = vld [vmem:[#allocation2 + $0x240] sm:$0xff] }
  0xe7   : > { %8602 = vmatmul.mubr.msk.f32.gmra.mrb[42].mxu0 %vm647_vm1, %v11459_v39  ;;  %9378 = vmatprep.subr.bf16.mxu1 %v9377_v15  ;;  %v606_v15 = vld [vmem:[#allocation2 + $0x9b0] sm:$0xff]  ;;  %v420_v12 = vld [vmem:[#allocation2 + $0x3e0] sm:$0xff] }
  0xe8   : > { %8618 = vmatmul.mubr.msk.f32.gmra.mrb[42].mxu1 %vm647_vm1, %v11459_v39  ;;  %1182 = vmatprep.mubr.f32.mxu0 %v15843_v0  ;;  %v9373_v22 = vpack.c.bf16 %v606_v15, %v579_v13  ;;  %v447_v13 = vld [vmem:[#allocation2 + $0x4b8] sm:$0xff] }
  0xe9   : > { %1331 = vmatprep.mubr.f32.mxu1 %v15843_v0 }
  0xeb   : > { %8603 = vmatmul.mubr.msk.f32.gmra.mrb[44].mxu0 %vm647_vm1, %v11472_v43 }
  0xec   : > { %8619 = vmatmul.mubr.msk.f32.gmra.mrb[44].mxu1 %vm647_vm1, %v11472_v43  ;;  %1188 = vmatprep.mubr.f32.mxu0 %v15843_v0 }
  0xed   : > { %1337 = vmatprep.mubr.f32.mxu1 %v15843_v0 }
  0xef   : > { %8604 = vmatmul.mubr.msk.f32.gmra.mrb[46].mxu0 %vm647_vm1, %v11481_v44 }
  0xf0   : > { %8620 = vmatmul.mubr.msk.f32.gmra.mrb[46].mxu1 %vm647_vm1, %v11481_v44  ;;  %1194 = vmatprep.mubr.f32.mxu0 %v15843_v0 }
  0xf1   : > { %1343 = vmatprep.mubr.f32.mxu1 %v15843_v0 }
  0xf3   : > { %8605 = vmatmul.mubr.msk.f32.gmra.mrb[48].mxu0 %vm647_vm1, %v11490_v45 }
  0xf4   : > { %8621 = vmatmul.mubr.msk.f32.gmra.mrb[48].mxu1 %vm647_vm1, %v11490_v45  ;;  %1200 = vmatprep.mubr.f32.mxu0 %v15843_v0 }
  0xf5   : > { %1349 = vmatprep.mubr.f32.mxu1 %v15843_v0 }
  0xf7   : > { %8606 = vmatmul.mubr.msk.f32.gmra.mrb[50].mxu0 %vm647_vm1, %v11499_v47 }
  0xf8   : > { %8622 = vmatmul.mubr.msk.f32.gmra.mrb[50].mxu1 %vm647_vm1, %v11499_v47  ;;  %1206 = vmatprep.mubr.f32.mxu0 %v15843_v0 }
  0xf9   : > { %1355 = vmatprep.mubr.f32.mxu1 %v15843_v0 }
  0xfb   : > { %8607 = vmatmul.mubr.msk.f32.gmra.mrb[52].mxu0 %vm647_vm1, %v11508_v48 }
  0xfc   : > { %8623 = vmatmul.mubr.msk.f32.gmra.mrb[52].mxu1 %vm647_vm1, %v11508_v48  ;;  %1212 = vmatprep.mubr.f32.mxu0 %v15843_v0 }
  0xfd   : > { %1361 = vmatprep.mubr.f32.mxu1 %v15843_v0 }
  0xff   : > { %8608 = vmatmul.mubr.msk.f32.gmra.mrb[54].mxu0 %vm647_vm1, %v11517_v49 }
 0x100   : > { %8624 = vmatmul.mubr.msk.f32.gmra.mrb[54].mxu1 %vm647_vm1, %v11517_v49  ;;  %1432 = vmatprep.mubr.f32.mxu0 %v15843_v0 }
 0x101   : > { %1581 = vmatprep.mubr.f32.mxu1 %v15843_v0 }
 0x103   : > { %8627 = vmatmul.mubr.msk.f32.vlgmr.msra.gmra.mrb[56].mxu0 %vm647_vm1, %v11395_v20 }
 0x104   : > { %8643 = vmatmul.mubr.msk.f32.vlgmr.msra.gmra.mrb[56].mxu1 %vm647_vm1, %v11395_v20  ;;  %9356 = vmatpush1.bf16.msra.mxu0 %v9355_v24  ;;  %v9385_v20 = vpack.c.bf16 %v446_v40, %v419_v38  ;;  %v578_v24 = vld [vmem:[#allocation2 + $0x8d0] sm:$0xff]  ;;  %v315_v38 = vld [vmem:[#allocation2 + $0x98] sm:$0xff] }
 0x105   : > { %1438 = vmatprep.mubr.f32.mxu0 %v15843_v0  ;;  %1587 = vmatprep.mubr.f32.mxu1 %v15843_v0  ;;  %v9375_v31 = vpack.c.bf16 %v605_v25, %v578_v24  ;;  %v342_v40 = vld [vmem:[#allocation2 + $0x170] sm:$0xff]  ;;  %v9411_v24 = vpack.c.bf16 %v447_v13, %v420_v12  ;;  %v636_v13 = vld [vmem:[#allocation2 + $0xaa0] sm:$0x3f] }
 0x106   : > { %9358 = vmatprep.subr.bf16.mxu0 %v9357_v27  ;;  %9380 = vmatpush1.bf16.msra.mxu1 %v9379_v32  ;;  %v9397_v27 = vpack.c.bf16 %v608_v19, %v581_v18  ;;  %v9399_v32 = vpack.c.bf16 %v607_v29, %v580_v28  ;;  %v9425_v51 = vpack.c.bf16 %v342_v40, %v315_v38  ;;  %v422_v18 = vld [vmem:[#allocation2 + $0x3f0] sm:$0xff]  ;;  %v449_v19 = vld [vmem:[#allocation2 + $0x4c8] sm:$0xff] }
 0x107   : > { %8628 = vmatmul.mubr.msk.f32.gmra.mrb[58].mxu0 %vm647_vm1, %v11404_v33  ;;  %9382 = vmatprep.subr.bf16.mxu1 %v9381_v35  ;;  %v313_v35 = vld [vmem:[#allocation2 + $0x88] sm:$0xff]  ;;  %v9435_v29 = vpack.c.bf16 %v449_v19, %v422_v18  ;;  %v558_v38 = vld [vmem:[#allocation2 + $0x830] sm:$0xff]  ;;  %v316_v18 = vld [vmem:[#allocation2 + $0xa0] sm:$0xff] }
 0x108   : > { %8644 = vmatmul.mubr.msk.f32.gmra.mrb[58].mxu1 %vm647_vm1, %v11404_v33  ;;  %1444 = vmatprep.mubr.f32.mxu0 %v15843_v0  ;;  %v9389_v33 = vpack.c.bf16 %v500_v58, %v473_v57  ;;  %v369_v58 = vld [vmem:[#allocation2 + $0x248] sm:$0xff]  ;;  %v346_v12 = vld [vmem:[#allocation2 + $0x190] sm:$0xff]  ;;  %v343_v19 = vld [vmem:[#allocation2 + $0x178] sm:$0xff] }
 0x109   : > { %1593 = vmatprep.mubr.f32.mxu1 %v15843_v0  ;;  %9360 = vmatpush1.bf16.msra.mxu0 %v9359_v41  ;;  %v632_v41 = vld [vmem:[#allocation2 + $0xa80] sm:$0x3f]  ;;  %v529_v28 = vld [vmem:[#allocation2 + $0x748] sm:$0xff] }
 0x10a   : > { %9362 = vmatprep.subr.bf16.mxu0 %v9361_v42  ;;  %9384 = vmatpush1.bf16.msra.mxu1 %v9383_v53  ;;  %v9401_v42 = vpack.c.bf16 %v340_v36, %v313_v35  ;;  %v339_v53 = vld [vmem:[#allocation2 + $0x158] sm:$0xff]  ;;  %v476_v35 = vld [vmem:[#allocation2 + $0x5a0] sm:$0xff] }
 0x10b   : > { %8629 = vmatmul.mubr.msk.f32.gmra.mrb[60].mxu0 %vm647_vm1, %v11414_v46  ;;  %9386 = vmatprep.subr.bf16.mxu1 %v9385_v20  ;;  %v394_v20 = vld [vmem:[#allocation2 + $0x310] sm:$0xff]  ;;  %v9403_v57 = vpack.c.bf16 %v339_v53, %v312_v52  ;;  %v503_v36 = vld [vmem:[#allocation2 + $0x678] sm:$0xff] }
 0x10c   : > { %8645 = vmatmul.mubr.msk.f32.gmra.mrb[60].mxu1 %vm647_vm1, %v11414_v46  ;;  %1450 = vmatprep.mubr.f32.mxu0 %v15843_v0  ;;  %v9393_v46 = vpack.c.bf16 %v554_v7, %v527_v6  ;;  %v395_v6 = vld [vmem:[#allocation2 + $0x318] sm:$0xff]  ;;  %v9439_v52 = vpack.c.bf16 %v503_v36, %v476_v35  ;;  %v610_v53 = vld [vmem:[#allocation2 + $0x9d0] sm:$0xff] }
 0x10d   : > { %1599 = vmatprep.mubr.f32.mxu1 %v15843_v0  ;;  %9364 = vmatpush1.bf16.msra.mxu0 %v9363_v60  ;;  %v396_v60 = vld [vmem:[#allocation2 + $0x320] sm:$0xff]  ;;  %v423_v7 = vld [vmem:[#allocation2 + $0x3f8] sm:$0xff]  ;;  %v9431_v15 = vpack.c.bf16 %v395_v6, %v368_v5 }
 0x10e   : > { %9366 = vmatprep.subr.bf16.mxu0 %v9365_v61  ;;  %9388 = vmatpush1.bf16.msra.mxu1 %v9387_v2  ;;  %v9405_v61 = vpack.c.bf16 %v394_v20, %v367_v54  ;;  %v9427_v2 = vpack.c.bf16 %v341_v56, %v314_v55  ;;  %v9429_v4 = vpack.c.bf16 %v396_v60, %v369_v58  ;;  %v530_v20 = vld [vmem:[#allocation2 + $0x750] sm:$0xff]  ;;  %v557_v55 = vld [vmem:[#allocation2 + $0x828] sm:$0xff]  ;;  %v11732_v56 = vld [vmem:[%s11390_s12 + $0x18] sm:$0xff] }
 0x10f   : > { %8630 = vmatmul.mubr.msk.f32.gmra.mrb[62].mxu0 %vm647_vm1, %v11423_v59  ;;  %9390 = vmatprep.subr.bf16.mxu1 %v9389_v33  ;;  %v448_v33 = vld [vmem:[#allocation2 + $0x4c0] sm:$0xff] }
 0x110   : > { %8646 = vmatmul.mubr.msk.f32.gmra.mrb[62].mxu1 %vm647_vm1, %v11423_v59  ;;  %1456 = vmatprep.mubr.f32.mxu0 %v15843_v0  ;;  %v9409_v11 = vpack.c.bf16 %v448_v33, %v421_v1  ;;  %v612_v58 = vld [vmem:[#allocation2 + $0x9e0] sm:$0xff]  ;;  %v611_v33 = vld [vmem:[#allocation2 + $0x9d8] sm:$0xff] }
 0x111   : > { %1605 = vmatprep.mubr.f32.mxu1 %v15843_v0  ;;  %9368 = vmatpush1.bf16.msra.mxu0 %v9367_v8  ;;  %v450_v8 = vld [vmem:[#allocation2 + $0x4d0] sm:$0xff] }
 0x112   : > { %9370 = vmatprep.subr.bf16.mxu0 %v9369_v10  ;;  %9392 = vmatpush1.bf16.msra.mxu1 %v9391_v14  ;;  %v9407_v10 = vpack.c.bf16 %v393_v63, %v366_v62  ;;  %v475_v14 = vld [vmem:[#allocation2 + $0x598] sm:$0xff]  ;;  %v9433_v17 = vpack.c.bf16 %v450_v8, %v423_v7  ;;  %v609_v62 = vld [vmem:[#allocation2 + $0x9c8] sm:$0xff]  ;;  %v9443_v63 = vpack.c.bf16 %v557_v55, %v530_v20  ;;  %v344_v8 = vld [vmem:[#allocation2 + $0x180] sm:$0xff] }
 0x113   : > { %8631 = vmatmul.mubr.msk.f32.gmra.mrb[64].mxu0 %vm647_vm1, %v11432_v9  ;;  %9394 = vmatprep.subr.bf16.mxu1 %v9393_v46  ;;  %v11712_v46 = vld [vmem:[%s11390_s12 + $0x8] sm:$0xff]  ;;  %v9413_v25 = vpack.c.bf16 %v502_v16, %v475_v14  ;;  %v427_v20 = vld [vmem:[#allocation2 + $0x418] sm:$0xff]  ;;  %v454_v55 = vld [vmem:[#allocation2 + $0x4f0] sm:$0xff] }
 0x114   : > { %8647 = vmatmul.mubr.msk.f32.gmra.mrb[64].mxu1 %vm647_vm1, %v11432_v9  ;;  %1462 = vmatprep.mubr.f32.mxu0 %v15843_v0  ;;  %v317_v7 = vld [vmem:[#allocation2 + $0xa8] sm:$0xff] }
 0x115   : > { %1611 = vmatprep.mubr.f32.mxu1 %v15843_v0  ;;  %9372 = vmatpush1.bf16.msra.mxu0 %v9371_v21  ;;  %v477_v21 = vld [vmem:[#allocation2 + $0x5a8] sm:$0xff]  ;;  %v9449_v14 = vpack.c.bf16 %v344_v8, %v317_v7 }
 0x116   : > { %9374 = vmatprep.subr.bf16.mxu0 %v9373_v22  ;;  %9396 = vmatpush1.bf16.msra.mxu1 %v9395_v26  ;;  %v504_v22 = vld [vmem:[#allocation2 + $0x680] sm:$0xff]  ;;  %v474_v26 = vld [vmem:[#allocation2 + $0x590] sm:$0xff]  ;;  %v481_v8 = vld [vmem:[#allocation2 + $0x5c8] sm:$0xff] }
 0x117   : > { %8632 = vmatmul.mubr.msk.f32.gmra.mrb[66].mxu0 %vm647_vm1, %v11441_v23  ;;  %9398 = vmatprep.subr.bf16.mxu1 %v9397_v27  ;;  %v501_v27 = vld [vmem:[#allocation2 + $0x668] sm:$0xff] }
 0x118   : > { %8648 = vmatmul.mubr.msk.f32.gmra.mrb[66].mxu1 %vm647_vm1, %v11441_v23  ;;  %1468 = vmatprep.mubr.f32.mxu0 %v15843_v0  ;;  %v9415_v40 = vpack.c.bf16 %v501_v27, %v474_v26  ;;  %v398_v26 = vld [vmem:[#allocation2 + $0x330] sm:$0xff]  ;;  %v345_v27 = vld [vmem:[#allocation2 + $0x188] sm:$0xff] }
 0x119   : > { %1617 = vmatprep.mubr.f32.mxu1 %v15843_v0  ;;  %9376 = vmatpush1.bf16.msra.mxu0 %v9375_v31  ;;  %v11721_v31 = vld [vmem:[%s11390_s12 + $0x10] sm:$0xff] }
 0x11a   : > { %8657 = vmatprep.subr.msk.mxu0 %vm690_vm0, %v633_v34  ;;  %9400 = vmatpush1.bf16.msra.mxu1 %v9399_v32  ;;  %v556_v32 = vld [vmem:[#allocation2 + $0x820] sm:$0xff]  ;;  %v9437_v34 = vpack.c.bf16 %v504_v22, %v477_v21  ;;  %v371_v22 = vld [vmem:[#allocation2 + $0x258] sm:$0xff] }
 0x11b   : > { %8633 = vmatmul.mubr.msk.f32.gmra.mrb[68].mxu0 %vm647_vm1, %v11450_v30  ;;  %8673 = vmatprep.subr.msk.mxu1 %vm690_vm0, %v635_v37  ;;  %v531_v37 = vld [vmem:[#allocation2 + $0x758] sm:$0xff]  ;;  %v9453_v36 = vpack.c.bf16 %v398_v26, %v371_v22  ;;  %v560_v26 = vld [vmem:[#allocation2 + $0x840] sm:$0xff] }
 0x11c   : > { %8649 = vmatmul.mubr.msk.f32.gmra.mrb[68].mxu1 %vm647_vm1, %v11450_v30  ;;  %1474 = vmatprep.mubr.f32.mxu0 %v15843_v0  ;;  %v9441_v54 = vpack.c.bf16 %v558_v38, %v531_v37  ;;  %v370_v37 = vld [vmem:[#allocation2 + $0x250] sm:$0xff]  ;;  %v397_v38 = vld [vmem:[#allocation2 + $0x328] sm:$0xff] }
 0x11d   : > { %1623 = vmatprep.mubr.f32.mxu1 %v15843_v0  ;;  %8658 = vmatpush1.msk.msra.mxu0 %vm690_vm0, %v632_v41  ;;  %v9417_v41 = vpack.c.bf16 %v556_v32, %v529_v28  ;;  %v373_v32 = vld [vmem:[#allocation2 + $0x268] sm:$0xff] }
 0x11e   : > { %8674 = vmatpush1.msk.msra.mxu1 %vm690_vm0, %v634_v50  ;;  %9402 = vmatprep.subr.bf16.mxu0 %v9401_v42  ;;  %v528_v42 = vld [vmem:[#allocation2 + $0x740] sm:$0xff]  ;;  %v555_v50 = vld [vmem:[#allocation2 + $0x818] sm:$0xff] }
 0x11f   : > { %8634 = vmatmul.mubr.msk.f32.gmra.mrb[70].mxu0 %vm647_vm1, %v11459_v39  ;;  %9426 = vmatprep.subr.bf16.mxu1 %v9425_v51  ;;  %v583_v51 = vld [vmem:[#allocation2 + $0x8f8] sm:$0xff]  ;;  %v9419_v60 = vpack.c.bf16 %v555_v50, %v528_v42  ;;  %v452_v50 = vld [vmem:[#allocation2 + $0x4e0] sm:$0xff] }
 0x120   : > { %8650 = vmatmul.mubr.msk.f32.gmra.mrb[70].mxu1 %vm647_vm1, %v11459_v39  ;;  %1480 = vmatprep.mubr.f32.mxu0 %v15843_v0 }
 0x121   : > { %1629 = vmatprep.mubr.f32.mxu1 %v15843_v0 }
 0x123   : > { %8635 = vmatmul.mubr.msk.f32.gmra.mrb[72].mxu0 %vm647_vm1, %v11472_v43 }
 0x124   : > { %8651 = vmatmul.mubr.msk.f32.gmra.mrb[72].mxu1 %vm647_vm1, %v11472_v43  ;;  %1486 = vmatprep.mubr.f32.mxu0 %v15843_v0 }
 0x125   : > { %1635 = vmatprep.mubr.f32.mxu1 %v15843_v0 }
 0x127   : > { %8636 = vmatmul.mubr.msk.f32.gmra.mrb[74].mxu0 %vm647_vm1, %v11481_v44 }
 0x128   : > { %8652 = vmatmul.mubr.msk.f32.gmra.mrb[74].mxu1 %vm647_vm1, %v11481_v44  ;;  %1492 = vmatprep.mubr.f32.mxu0 %v15843_v0 }
 0x129   : > { %1641 = vmatprep.mubr.f32.mxu1 %v15843_v0 }
 0x12b   : > { %8637 = vmatmul.mubr.msk.f32.gmra.mrb[76].mxu0 %vm647_vm1, %v11490_v45 }
 0x12c   : > { %8653 = vmatmul.mubr.msk.f32.gmra.mrb[76].mxu1 %vm647_vm1, %v11490_v45  ;;  %1498 = vmatprep.mubr.f32.mxu0 %v15843_v0 }
 0x12d   : > { %1647 = vmatprep.mubr.f32.mxu1 %v15843_v0 }
 0x12f   : > { %8638 = vmatmul.mubr.msk.f32.gmra.mrb[78].mxu0 %vm647_vm1, %v11499_v47 }
 0x130   : > { %8654 = vmatmul.mubr.msk.f32.gmra.mrb[78].mxu1 %vm647_vm1, %v11499_v47  ;;  %1504 = vmatprep.mubr.f32.mxu0 %v15843_v0 }
 0x131   : > { %1653 = vmatprep.mubr.f32.mxu1 %v15843_v0 }
 0x133   : > { %8639 = vmatmul.mubr.msk.f32.gmra.mrb[80].mxu0 %vm647_vm1, %v11508_v48 }
 0x134   : > { %8655 = vmatmul.mubr.msk.f32.gmra.mrb[80].mxu1 %vm647_vm1, %v11508_v48  ;;  %1510 = vmatprep.mubr.f32.mxu0 %v15843_v0 }
 0x135   : > { %1659 = vmatprep.mubr.f32.mxu1 %v15843_v0 }
 0x137   : > { %8640 = vmatmul.mubr.msk.f32.gmra.mrb[82].mxu0 %vm647_vm1, %v11517_v49 }
 0x138   : > { %8656 = vmatmul.mubr.msk.f32.gmra.mrb[82].mxu1 %vm647_vm1, %v11517_v49  ;;  %1730 = vmatprep.mubr.f32.mxu0 %v15843_v0 }
 0x139   : > { %1879 = vmatprep.mubr.f32.mxu1 %v15843_v0 }
 0x13b   : > { %8659 = vmatmul.mubr.msk.f32.vlgmr.msra.gmra.mrb[84].mxu0 %vm647_vm1, %v11703_v3 }
 0x13c   : > { %8675 = vmatmul.mubr.msk.f32.vlgmr.msra.gmra.mrb[84].mxu1 %vm647_vm1, %v11703_v3  ;;  %9404 = vmatpush1.bf16.msra.mxu0 %v9403_v57  ;;  %v585_v57 = vld [vmem:[#allocation2 + $0x908] sm:$0xff] }
 0x13d   : > { %1736 = vmatprep.mubr.f32.mxu0 %v15843_v0  ;;  %1885 = vmatprep.mubr.f32.mxu1 %v15843_v0  ;;  %v9445_v1 = vpack.c.bf16 %v612_v58, %v585_v57  ;;  %v9455_v57 = vpack.c.bf16 %v397_v38, %v370_v37 }
 0x13e   : > { %9406 = vmatprep.subr.bf16.mxu0 %v9405_v61  ;;  %9428 = vmatpush1.bf16.msra.mxu1 %v9427_v2  ;;  %v582_v61 = vld [vmem:[#allocation2 + $0x8f0] sm:$0xff]  ;;  %v584_v2 = vld [vmem:[#allocation2 + $0x900] sm:$0xff] }
 0x13f   : > { %8660 = vmatmul.mubr.msk.f32.gmra.mrb[86].mxu0 %vm647_vm1, %v11712_v46  ;;  %9430 = vmatprep.subr.bf16.mxu1 %v9429_v4  ;;  %v11741_v4 = vld [vmem:[%s11390_s12 + $0x20] sm:$0xff]  ;;  %v9423_v5 = vpack.c.bf16 %v609_v62, %v582_v61  ;;  %v9447_v6 = vpack.c.bf16 %v611_v33, %v584_v2  ;;  %v451_v61 = vld [vmem:[#allocation2 + $0x4d8] sm:$0xff]  ;;  %v506_v33 = vld [vmem:[#allocation2 + $0x690] sm:$0xff] }
 0x140   : > { %8676 = vmatmul.mubr.msk.f32.gmra.mrb[86].mxu1 %vm647_vm1, %v11712_v46  ;;  %1742 = vmatprep.mubr.f32.mxu0 %v15843_v0  ;;  %v479_v62 = vld [vmem:[#allocation2 + $0x5b8] sm:$0xff] }
 0x141   : > { %1891 = vmatprep.mubr.f32.mxu1 %v15843_v0  ;;  %9408 = vmatpush1.bf16.msra.mxu0 %v9407_v10  ;;  %v639_v10 = vld [vmem:[#allocation2 + $0xab8] sm:$0x3f] }
 0x142   : > { %9410 = vmatprep.subr.bf16.mxu0 %v9409_v11  ;;  %9432 = vmatpush1.bf16.msra.mxu1 %v9431_v15  ;;  %v319_v11 = vld [vmem:[#allocation2 + $0xb8] sm:$0xff]  ;;  %v638_v15 = vld [vmem:[#allocation2 + $0xab0] sm:$0x3f] }
 0x143   : > { %8661 = vmatmul.mubr.msk.f32.gmra.mrb[88].mxu0 %vm647_vm1, %v11721_v31  ;;  %9434 = vmatprep.subr.bf16.mxu1 %v9433_v17 }
 0x144   : > { %8677 = vmatmul.mubr.msk.f32.gmra.mrb[88].mxu1 %vm647_vm1, %v11721_v31  ;;  %1748 = vmatprep.mubr.f32.mxu0 %v15843_v0 }
 0x145   : > { %1897 = vmatprep.mubr.f32.mxu1 %v15843_v0  ;;  %9412 = vmatpush1.bf16.msra.mxu0 %v9411_v24 }
 0x146   : > { %9414 = vmatprep.subr.bf16.mxu0 %v9413_v25  ;;  %9436 = vmatpush1.bf16.msra.mxu1 %v9435_v29  ;;  %v9451_v29 = vpack.c.bf16 %v343_v19, %v316_v18 }
 0x147   : > { %8662 = vmatmul.mubr.msk.f32.gmra.mrb[90].mxu0 %vm647_vm1, %v11423_v59  ;;  %9438 = vmatprep.subr.bf16.mxu1 %v9437_v34  ;;  %v9421_v59 = vpack.c.bf16 %v610_v53, %v583_v51  ;;  %v400_v34 = vld [vmem:[#allocation2 + $0x340] sm:$0xff]  ;;  %v399_v53 = vld [vmem:[#allocation2 + $0x338] sm:$0xff] }
 0x148   : > { %8678 = vmatmul.mubr.msk.f32.gmra.mrb[90].mxu1 %vm647_vm1, %v11732_v56  ;;  %1754 = vmatprep.mubr.f32.mxu0 %v15843_v0  ;;  %v9477_v51 = vpack.c.bf16 %v400_v34, %v373_v32  ;;  %v535_v34 = vld [vmem:[#allocation2 + $0x778] sm:$0xff] }
 0x149   : > { %1903 = vmatprep.mubr.f32.mxu1 %v15843_v0  ;;  %9416 = vmatpush1.bf16.msra.mxu0 %v9415_v40  ;;  %v425_v40 = vld [vmem:[#allocation2 + $0x408] sm:$0xff] }
 0x14a   : > { %9418 = vmatprep.subr.bf16.mxu0 %v9417_v41  ;;  %9440 = vmatpush1.bf16.msra.mxu1 %v9439_v52  ;;  %v372_v52 = vld [vmem:[#allocation2 + $0x260] sm:$0xff] }
 0x14b   : > { %8663 = vmatmul.mubr.msk.f32.gmra.mrb[92].mxu0 %vm647_vm1, %v11432_v9  ;;  %9442 = vmatprep.subr.bf16.mxu1 %v9441_v54  ;;  %v637_v9 = vld [vmem:[#allocation2 + $0xaa8] sm:$0x3f] }
 0x14c   : > { %8679 = vmatmul.mubr.msk.f32.gmra.mrb[92].mxu1 %vm647_vm1, %v11741_v4  ;;  %1760 = vmatprep.mubr.f32.mxu0 %v15843_v0 }
 0x14d   : > { %1909 = vmatprep.mubr.f32.mxu1 %v15843_v0  ;;  %9420 = vmatpush1.bf16.msra.mxu0 %v9419_v60  ;;  %v9457_v60 = vpack.c.bf16 %v452_v50, %v425_v40  ;;  %v559_v50 = vld [vmem:[#allocation2 + $0x838] sm:$0xff] }
 0x14e   : > { %9422 = vmatprep.subr.bf16.mxu0 %v9421_v59  ;;  %9444 = vmatpush1.bf16.msra.mxu1 %v9443_v63  ;;  %v424_v59 = vld [vmem:[#allocation2 + $0x400] sm:$0xff]  ;;  %v9479_v63 = vpack.c.bf16 %v399_v53, %v372_v52 }
 0x14f   : > { %8664 = vmatmul.mubr.msk.f32.gmra.mrb[94].mxu0 %vm647_vm1, %v11441_v23  ;;  %9446 = vmatprep.subr.bf16.mxu1 %v9445_v1 }
 0x150   : > { %8680 = vmatmul.mubr.msk.f32.gmra.mrb[94].mxu1 %vm647_vm1, %v11441_v23  ;;  %1766 = vmatprep.mubr.f32.mxu0 %v15843_v0  ;;  %v9473_v23 = vpack.c.bf16 %v346_v12, %v319_v11  ;;  %v9459_v11 = vpack.c.bf16 %v451_v61, %v424_v59  ;;  %v561_v59 = vld [vmem:[#allocation2 + $0x848] sm:$0xff] }
 0x151   : > { %1915 = vmatprep.mubr.f32.mxu1 %v15843_v0  ;;  %9424 = vmatpush1.bf16.msra.mxu0 %v9423_v5  ;;  %v9481_v5 = vpack.c.bf16 %v454_v55, %v427_v20  ;;  %v614_v55 = vld [vmem:[#allocation2 + $0x9f0] sm:$0xff] }
 0x152   : > { %8689 = vmatprep.subr.msk.mxu0 %vm690_vm0, %v637_v9  ;;  %9448 = vmatpush1.bf16.msra.mxu1 %v9447_v6  ;;  %v426_v6 = vld [vmem:[#allocation2 + $0x410] sm:$0xff]  ;;  %v453_v9 = vld [vmem:[#allocation2 + $0x4e8] sm:$0xff] }
 0x153   : > { %8665 = vmatmul.mubr.msk.f32.gmra.mrb[96].mxu0 %vm647_vm1, %v11450_v30  ;;  %8705 = vmatprep.subr.msk.mxu1 %vm690_vm0, %v639_v10  ;;  %v508_v10 = vld [vmem:[#allocation2 + $0x6a0] sm:$0xff]  ;;  %v9483_v18 = vpack.c.bf16 %v453_v9, %v426_v6  ;;  %v586_v9 = vld [vmem:[#allocation2 + $0x910] sm:$0xff] }
 0x154   : > { %8681 = vmatmul.mubr.msk.f32.gmra.mrb[96].mxu1 %vm647_vm1, %v11450_v30  ;;  %1772 = vmatprep.mubr.f32.mxu0 %v15843_v0 }
 0x155   : > { %1921 = vmatprep.mubr.f32.mxu1 %v15843_v0  ;;  %8690 = vmatpush1.msk.msra.mxu0 %vm690_vm0, %v636_v13  ;;  %v9461_v13 = vpack.c.bf16 %v506_v33, %v479_v62  ;;  %v589_v62 = vld [vmem:[#allocation2 + $0x928] sm:$0xff] }
 0x156   : > { %8706 = vmatpush1.msk.msra.mxu1 %vm690_vm0, %v638_v15  ;;  %9450 = vmatprep.subr.bf16.mxu0 %v9449_v14  ;;  %v478_v14 = vld [vmem:[#allocation2 + $0x5b0] sm:$0xff]  ;;  %v505_v15 = vld [vmem:[#allocation2 + $0x688] sm:$0xff] }
 0x157   : > { %8666 = vmatmul.mubr.msk.f32.gmra.mrb[98].mxu0 %vm647_vm1, %v11459_v39  ;;  %9474 = vmatprep.subr.bf16.mxu1 %v9473_v23  ;;  %v533_v23 = vld [vmem:[#allocation2 + $0x768] sm:$0xff]  ;;  %v9463_v37 = vpack.c.bf16 %v505_v15, %v478_v14  ;;  %v588_v15 = vld [vmem:[#allocation2 + $0x920] sm:$0xff] }
 0x158   : > { %8682 = vmatmul.mubr.msk.f32.gmra.mrb[98].mxu1 %vm647_vm1, %v11459_v39  ;;  %1778 = vmatprep.mubr.f32.mxu0 %v15843_v0  ;;  %v9465_v40 = vpack.c.bf16 %v560_v26, %v533_v23  ;;  %v615_v23 = vld [vmem:[#allocation2 + $0x9f8] sm:$0xff] }
 0x159   : > { %1927 = vmatprep.mubr.f32.mxu1 %v15843_v0 }
 0x15b   : > { %8667 = vmatmul.mubr.msk.f32.gmra.mrb[100].mxu0 %vm647_vm1, %v11472_v43 }
 0x15c   : > { %8683 = vmatmul.mubr.msk.f32.gmra.mrb[100].mxu1 %vm647_vm1, %v11472_v43  ;;  %1784 = vmatprep.mubr.f32.mxu0 %v15843_v0 }
 0x15d   : > { %1933 = vmatprep.mubr.f32.mxu1 %v15843_v0 }
 0x15f   : > { %8668 = vmatmul.mubr.msk.f32.gmra.mrb[102].mxu0 %vm647_vm1, %v11481_v44 }
 0x160   : > { %8684 = vmatmul.mubr.msk.f32.gmra.mrb[102].mxu1 %vm647_vm1, %v11481_v44  ;;  %1790 = vmatprep.mubr.f32.mxu0 %v15843_v0 }
 0x161   : > { %1939 = vmatprep.mubr.f32.mxu1 %v15843_v0 }
 0x163   : > { %8669 = vmatmul.mubr.msk.f32.gmra.mrb[104].mxu0 %vm647_vm1, %v11490_v45 }
 0x164   : > { %8685 = vmatmul.mubr.msk.f32.gmra.mrb[104].mxu1 %vm647_vm1, %v11490_v45  ;;  %1796 = vmatprep.mubr.f32.mxu0 %v15843_v0 }
 0x165   : > { %1945 = vmatprep.mubr.f32.mxu1 %v15843_v0 }
 0x166   : > { %v11787_v30 = vpop.f32.mrb[0].mxu0  ;;  %v11793_v43 = vpop.f32.mrb[0].mxu1 }
 0x167   : > { %v11789_v39 = vpop.f32.mrb[1].mxu0  ;;  %8670 = vmatmul.mubr.msk.f32.gmra.mrb[106].mxu0 %vm647_vm1, %v11499_v47  ;;  %16144 = vst [vmem:[#allocation12_spill] sm:$0xff] %v11793_v43  ;;  %v11798_v44 = vpop.f32.mrb[1].mxu1 }
 0x168   : > { %8686 = vmatmul.mubr.msk.f32.gmra.mrb[106].mxu1 %vm647_vm1, %v11499_v47  ;;  %1802 = vmatprep.mubr.f32.mxu0 %v15843_v0  ;;  %16145 = vst [vmem:[#allocation13_spill] sm:$0xff] %v11798_v44 }
 0x169   : > { %1951 = vmatprep.mubr.f32.mxu1 %v15843_v0 }
 0x16a   : > { %v11801_v45 = vpop.f32.mrb[2].mxu0 }
 0x16b   : > { %v11803_v16 = vpop.f32.mrb[3].mxu0  ;;  %8671 = vmatmul.mubr.msk.f32.gmra.mrb[108].mxu0 %vm647_vm1, %v11508_v48  ;;  %v11807_v17 = vpop.f32.mrb[2].mxu1 }
 0x16c   : > { %16146 = vst [vmem:[#allocation14_spill] sm:$0xff] %v11807_v17  ;;  %8687 = vmatmul.mubr.msk.f32.gmra.mrb[108].mxu1 %vm647_vm1, %v11508_v48  ;;  %1808 = vmatprep.mubr.f32.mxu0 %v15843_v0  ;;  %v11812_v47 = vpop.f32.mrb[3].mxu1  ;;  %v318_v48 = vld [vmem:[#allocation2 + $0xb0] sm:$0xff] }
 0x16d   : > { %16147 = vst [vmem:[#allocation15_spill] sm:$0xff] %v11812_v47  ;;  %1957 = vmatprep.mubr.f32.mxu1 %v15843_v0  ;;  %v9475_v41 = vpack.c.bf16 %v345_v27, %v318_v48  ;;  %v9485_v48 = vpack.c.bf16 %v508_v10, %v481_v8  ;;  %v480_v27 = vld [vmem:[#allocation2 + $0x5c0] sm:$0xff]  ;;  %v613_v8 = vld [vmem:[#allocation2 + $0x9e8] sm:$0xff]  ;;  %v402_v17 = vld [vmem:[#allocation2 + $0x350] sm:$0xff] }
 0x16e   : > { %v11815_v21 = vpop.f32.mrb[4].mxu0  ;;  %v9471_v26 = vpack.c.bf16 %v613_v8, %v586_v9 }
 0x16f   : > { %v11817_v24 = vpop.f32.mrb[5].mxu0  ;;  %8672 = vmatmul.mubr.msk.f32.gmra.mrb[110].mxu0 %vm647_vm1, %v11517_v49  ;;  %v11821_v25 = vpop.f32.mrb[4].mxu1 }
 0x170   : > { %16148 = vst [vmem:[#allocation16_spill] sm:$0xff] %v11821_v25  ;;  %8688 = vmatmul.mubr.msk.f32.gmra.mrb[110].mxu1 %vm647_vm1, %v11517_v49  ;;  %2028 = vmatprep.mubr.f32.mxu0 %v15843_v0  ;;  %v11826_v28 = vpop.f32.mrb[5].mxu1  ;;  %v375_v25 = vld [vmem:[#allocation2 + $0x278] sm:$0xff] }
 0x171   : > { %16149 = vst [vmem:[#allocation17_spill] sm:$0xff] %v11826_v28  ;;  %2177 = vmatprep.mubr.f32.mxu1 %v15843_v0  ;;  %v12030_v28 = vld [vmem:[%s11390_s12 + $0x60] sm:$0xff] }
 0x172   : > { %v11829_v35 = vpop.f32.mrb[6].mxu0 }
 0x173   : > { %v11831_v42 = vpop.f32.mrb[7].mxu0  ;;  %8691 = vmatmul.mubr.msk.f32.vlgmr.msra.gmra.mrb[112].mxu0 %vm647_vm1, %v11703_v3  ;;  %v11835_v49 = vpop.f32.mrb[6].mxu1 }
 0x174   : > { %16150 = vst [vmem:[#allocation18_spill] sm:$0xff] %v11835_v49  ;;  %8707 = vmatmul.mubr.msk.f32.vlgmr.msra.gmra.mrb[112].mxu1 %vm647_vm1, %v11703_v3  ;;  %9452 = vmatpush1.bf16.msra.mxu0 %v9451_v29  ;;  %v11839_v54 = vpop.f32.mrb[7].mxu1  ;;  %v507_v29 = vld [vmem:[#allocation2 + $0x698] sm:$0xff] }
 0x175   : > { %16151 = vst [vmem:[#allocation19_spill] sm:$0xff] %v11839_v54  ;;  %2034 = vmatprep.mubr.f32.mxu0 %v15843_v0  ;;  %2183 = vmatprep.mubr.f32.mxu1 %v15843_v0  ;;  %v9487_v52 = vpack.c.bf16 %v507_v29, %v480_v27  ;;  %v9495_v27 = vpack.c.bf16 %v615_v23, %v588_v15  ;;  %v11944_v15 = vld [vmem:[%s11390_s12 + $0x38] sm:$0xff] }
 0x176   : > { %v11843_v58 = vpop.f32.mrb[8].mxu0  ;;  %9454 = vmatprep.subr.bf16.mxu0 %v9453_v36  ;;  %9476 = vmatpush1.bf16.msra.mxu1 %v9475_v41  ;;  %v562_v36 = vld [vmem:[#allocation2 + $0x850] sm:$0xff]  ;;  %v532_v41 = vld [vmem:[#allocation2 + $0x760] sm:$0xff] }
 0x177   : > { %v11845_v1 = vpop.f32.mrb[9].mxu0  ;;  %8692 = vmatmul.mubr.msk.f32.gmra.mrb[114].mxu0 %vm647_vm1, %v11712_v46  ;;  %v11849_v2 = vpop.f32.mrb[8].mxu1  ;;  %9478 = vmatprep.subr.bf16.mxu1 %v9477_v51  ;;  %v587_v51 = vld [vmem:[#allocation2 + $0x918] sm:$0xff]  ;;  %v9467_v33 = vpack.c.bf16 %v559_v50, %v532_v41  ;;  %v348_v41 = vld [vmem:[#allocation2 + $0x1a0] sm:$0xff] }
 0x178   : > { %16152 = vst [vmem:[#allocation20_spill] sm:$0xff] %v11849_v2  ;;  %8708 = vmatmul.mubr.msk.f32.gmra.mrb[114].mxu1 %vm647_vm1, %v11712_v46  ;;  %2040 = vmatprep.mubr.f32.mxu0 %v15843_v0  ;;  %v11854_v7 = vpop.f32.mrb[9].mxu1  ;;  %v9469_v6 = vpack.c.bf16 %v614_v55, %v587_v51  ;;  %v643_v51 = vld [vmem:[#allocation2 + $0xad8] sm:$0x3f]  ;;  %v349_v55 = vld [vmem:[#allocation2 + $0x1a8] sm:$0xff] }
 0x179   : > { %16153 = vst [vmem:[#allocation21_spill] sm:$0xff] %v11854_v7  ;;  %2189 = vmatprep.mubr.f32.mxu1 %v15843_v0  ;;  %9456 = vmatpush1.bf16.msra.mxu0 %v9455_v57  ;;  %v9489_v57 = vpack.c.bf16 %v562_v36, %v535_v34  ;;  %v11904_v34 = vld [vmem:[%s11390_s12 + $0x28] sm:$0xff] }
 0x17a   : > { %v11857_v12 = vpop.f32.mrb[10].mxu0  ;;  %9458 = vmatprep.subr.bf16.mxu0 %v9457_v60  ;;  %9480 = vmatpush1.bf16.msra.mxu1 %v9479_v63  ;;  %v534_v60 = vld [vmem:[#allocation2 + $0x770] sm:$0xff]  ;;  %v616_v63 = vld [vmem:[#allocation2 + $0xa00] sm:$0xff] }
 0x17b   : > { %v11859_v19 = vpop.f32.mrb[11].mxu0  ;;  %8693 = vmatmul.mubr.msk.f32.gmra.mrb[116].mxu0 %vm647_vm1, %v11721_v31  ;;  %v11863_v22 = vpop.f32.mrb[10].mxu1  ;;  %9482 = vmatprep.subr.bf16.mxu1 %v9481_v5  ;;  %v9491_v10 = vpack.c.bf16 %v561_v59, %v534_v60  ;;  %v9493_v14 = vpack.c.bf16 %v616_v63, %v589_v62  ;;  %v640_v60 = vld [vmem:[#allocation2 + $0xac0] sm:$0x3f]  ;;  %v11922_v63 = vld [vmem:[%s11390_s12 + $0x30] sm:$0xff] }
 0x17c   : > { %16154 = vst [vmem:[#allocation22_spill] sm:$0xff] %v11863_v22  ;;  %8709 = vmatmul.mubr.msk.f32.gmra.mrb[116].mxu1 %vm647_vm1, %v11721_v31  ;;  %2046 = vmatprep.mubr.f32.mxu0 %v15843_v0  ;;  %v11868_v32 = vpop.f32.mrb[11].mxu1  ;;  %v455_v22 = vld [vmem:[#allocation2 + $0x4f8] sm:$0xff] }
 0x17d   : > { %16155 = vst [vmem:[#allocation23_spill] sm:$0xff] %v11868_v32  ;;  %2195 = vmatprep.mubr.f32.mxu1 %v15843_v0  ;;  %9460 = vmatpush1.bf16.msra.mxu0 %v9459_v11  ;;  %v12013_v32 = vld [vmem:[%s11390_s12 + $0x58] sm:$0xff] }
 0x17e   : > { %v11871_v38 = vpop.f32.mrb[12].mxu0  ;;  %9462 = vmatprep.subr.bf16.mxu0 %v9461_v13  ;;  %9484 = vmatpush1.bf16.msra.mxu1 %v9483_v18 }
 0x17f   : > { %v11873_v53 = vpop.f32.mrb[13].mxu0  ;;  %8694 = vmatmul.mubr.msk.f32.gmra.mrb[118].mxu0 %vm647_vm1, %v11732_v56  ;;  %v11877_v20 = vpop.f32.mrb[12].mxu1  ;;  %9486 = vmatprep.subr.bf16.mxu1 %v9485_v48 }
 0x180   : > { %16156 = vst [vmem:[#allocation24_spill] sm:$0xff] %v11877_v20  ;;  %8710 = vmatmul.mubr.msk.f32.gmra.mrb[118].mxu1 %vm647_vm1, %v11732_v56  ;;  %2052 = vmatprep.mubr.f32.mxu0 %v15843_v0  ;;  %v11882_v61 = vpop.f32.mrb[13].mxu1  ;;  %v456_v20 = vld [vmem:[#allocation2 + $0x500] sm:$0xff] }
 0x181   : > { %16157 = vst [vmem:[#allocation25_spill] sm:$0xff] %v11882_v61  ;;  %2201 = vmatprep.mubr.f32.mxu1 %v15843_v0  ;;  %9464 = vmatpush1.bf16.msra.mxu0 %v9463_v37  ;;  %v641_v37 = vld [vmem:[#allocation2 + $0xac8] sm:$0x3f] }
 0x182   : > { %v11885_v5 = vpop.f32.mrb[14].mxu0  ;;  %9466 = vmatprep.subr.bf16.mxu0 %v9465_v40  ;;  %9488 = vmatpush1.bf16.msra.mxu1 %v9487_v52  ;;  %v321_v40 = vld [vmem:[#allocation2 + $0xc8] sm:$0xff]  ;;  %v322_v52 = vld [vmem:[#allocation2 + $0xd0] sm:$0xff] }
 0x183   : > { %v11887_v11 = vpop.f32.mrb[15].mxu0  ;;  %8695 = vmatmul.mubr.msk.f32.gmra.mrb[120].mxu0 %vm647_vm1, %v11741_v4  ;;  %v11891_v13 = vpop.f32.mrb[14].mxu1  ;;  %9490 = vmatprep.subr.bf16.mxu1 %v9489_v57  ;;  %v9497_v59 = vpack.c.bf16 %v348_v41, %v321_v40  ;;  %v11929_v9 = vpack.c.bf16 %v349_v55, %v322_v52  ;;  %v11962_v40 = vld [vmem:[%s11390_s12 + $0x40] sm:$0xff] }
 0x184   : > { %16158 = vst [vmem:[#allocation26_spill] sm:$0xff] %v11891_v13  ;;  %8711 = vmatmul.mubr.msk.f32.gmra.mrb[120].mxu1 %vm647_vm1, %v11741_v4  ;;  %2058 = vmatprep.mubr.f32.mxu0 %v15843_v0  ;;  %v11896_v18 = vpop.f32.mrb[15].mxu1  ;;  %v429_v13 = vld [vmem:[#allocation2 + $0x428] sm:$0xff] }
 0x185   : > { %16159 = vst [vmem:[#allocation27_spill] sm:$0xff] %v11896_v18  ;;  %2207 = vmatprep.mubr.f32.mxu1 %v15843_v0  ;;  %9468 = vmatpush1.bf16.msra.mxu0 %v9467_v33 }
 0x186   : > { %v11899_v48 = vpop.f32.mrb[16].mxu0  ;;  %9470 = vmatprep.subr.bf16.mxu0 %v9469_v6  ;;  %9492 = vmatpush1.bf16.msra.mxu1 %v9491_v10  ;;  %v642_v6 = vld [vmem:[#allocation2 + $0xad0] sm:$0x3f] }
 0x187   : > { %v11901_v29 = vpop.f32.mrb[17].mxu0  ;;  %8696 = vmatmul.mubr.msk.f32.gmra.mrb[122].mxu0 %vm647_vm1, %v11904_v34  ;;  %v11908_v36 = vpop.f32.mrb[16].mxu1  ;;  %9494 = vmatprep.subr.bf16.mxu1 %v9493_v14 }
 0x188   : > { %16160 = vst [vmem:[#allocation28_spill] sm:$0xff] %v11908_v36  ;;  %8712 = vmatmul.mubr.msk.f32.gmra.mrb[122].mxu1 %vm647_vm1, %v11904_v34  ;;  %2064 = vmatprep.mubr.f32.mxu0 %v15843_v0  ;;  %v11913_v50 = vpop.f32.mrb[17].mxu1 }
 0x189   : > { %16161 = vst [vmem:[#allocation29_spill] sm:$0xff] %v11913_v50  ;;  %2213 = vmatprep.mubr.f32.mxu1 %v15843_v0  ;;  %9472 = vmatpush1.bf16.msra.mxu0 %v9471_v26 }
 0x18a   : > { %v11916_v57 = vpop.f32.mrb[18].mxu0  ;;  %8721 = vmatprep.subr.msk.mxu0 %vm690_vm0, %v641_v37  ;;  %9496 = vmatpush1.bf16.msra.mxu1 %v9495_v27 }
 0x18b   : > { %v11919_v62 = vpop.f32.mrb[19].mxu0  ;;  %8697 = vmatmul.mubr.msk.f32.gmra.mrb[124].mxu0 %vm647_vm1, %v11922_v63  ;;  %v11926_v33 = vpop.f32.mrb[18].mxu1  ;;  %8737 = vmatprep.subr.msk.mxu1 %vm690_vm0, %v643_v51 }
 0x18c   : > { %16162 = vst [vmem:[#allocation30_spill] sm:$0xff] %v11926_v33  ;;  %8713 = vmatmul.mubr.msk.f32.gmra.mrb[124].mxu1 %vm647_vm1, %v11922_v63  ;;  %2070 = vmatprep.mubr.f32.mxu0 %v15843_v0  ;;  %v11934_v8 = vpop.f32.mrb[19].mxu1  ;;  %v401_v33 = vld [vmem:[#allocation2 + $0x348] sm:$0xff] }
 0x18d   : > { %16163 = vst [vmem:[#allocation31_spill] sm:$0xff] %v11934_v8  ;;  %2219 = vmatprep.mubr.f32.mxu1 %v15843_v0  ;;  %8722 = vmatpush1.msk.msra.mxu0 %vm690_vm0, %v640_v60  ;;  %v11979_v60 = vld [vmem:[%s11390_s12 + $0x48] sm:$0xff]  ;;  %v11996_v8 = vld [vmem:[%s11390_s12 + $0x50] sm:$0xff] }
 0x18e   : > { %v11938_v10 = vpop.f32.mrb[20].mxu0  ;;  %8738 = vmatpush1.msk.msra.mxu1 %vm690_vm0, %v642_v6  ;;  %9498 = vmatprep.subr.bf16.mxu0 %v9497_v59 }
 0x18f   : > { %v11941_v14 = vpop.f32.mrb[21].mxu0  ;;  %8698 = vmatmul.mubr.msk.f32.gmra.mrb[126].mxu0 %vm647_vm1, %v11944_v15  ;;  %v11948_v23 = vpop.f32.mrb[20].mxu1  ;;  %9522 = vmatprep.subr.bf16.mxu1 %v11929_v9 }
 0x190   : > { %16164 = vst [vmem:[#allocation32_spill] sm:$0xff] %v11941_v14  ;;  %16165 = vst [vmem:[#allocation33_spill] sm:$0xff] %v11948_v23  ;;  %8714 = vmatmul.mubr.msk.f32.gmra.mrb[126].mxu1 %vm647_vm1, %v11944_v15  ;;  %2076 = vmatprep.mubr.f32.mxu0 %v15843_v0  ;;  %v11954_v26 = vpop.f32.mrb[21].mxu1  ;;  %v374_v23 = vld [vmem:[#allocation2 + $0x270] sm:$0xff] }
 0x191   : > { %16166 = vst [vmem:[#allocation34_spill] sm:$0xff] %v11954_v26  ;;  %2225 = vmatprep.mubr.f32.mxu1 %v15843_v0 }
 0x192   : > { %v11957_v27 = vpop.f32.mrb[22].mxu0 }
 0x193   : > { %v11959_v37 = vpop.f32.mrb[23].mxu0  ;;  %8699 = vmatmul.mubr.msk.f32.gmra.mrb[128].mxu0 %vm647_vm1, %v11962_v40  ;;  %v11966_v41 = vpop.f32.mrb[22].mxu1 }
 0x194   : > { %16167 = vst [vmem:[#allocation35_spill] sm:$0xff] %v11959_v37  ;;  %16168 = vst [vmem:[#allocation36_spill] sm:$0xff] %v11966_v41  ;;  %8715 = vmatmul.mubr.msk.f32.gmra.mrb[128].mxu1 %vm647_vm1, %v11962_v40  ;;  %2082 = vmatprep.mubr.f32.mxu0 %v15843_v0  ;;  %v11971_v51 = vpop.f32.mrb[23].mxu1  ;;  %v9501_v41 = vpack.c.bf16 %v402_v17, %v375_v25  ;;  %v457_v17 = vld [vmem:[#allocation2 + $0x508] sm:$0xff]  ;;  %v9503_v25 = vpack.c.bf16 %v401_v33, %v374_v23  ;;  %v16195_v33 = vmov 0.0  }
 0x195   : > { %16169 = vst [vmem:[#allocation37_spill] sm:$0xff] %v11971_v51  ;;  %2231 = vmatprep.mubr.f32.mxu1 %v15843_v0 }
 0x196   : > { %v11974_v52 = vpop.f32.mrb[24].mxu0 }
 0x197   : > { %v11976_v55 = vpop.f32.mrb[25].mxu0  ;;  %8700 = vmatmul.mubr.msk.f32.gmra.mrb[130].mxu0 %vm647_vm1, %v11979_v60  ;;  %v11983_v59 = vpop.f32.mrb[24].mxu1 }
 0x198   : > { %16170 = vst [vmem:[#allocation38_spill] sm:$0xff] %v11976_v55  ;;  %16171 = vst [vmem:[#allocation39_spill] sm:$0xff] %v11983_v59  ;;  %8716 = vmatmul.mubr.msk.f32.gmra.mrb[130].mxu1 %vm647_vm1, %v11979_v60  ;;  %2088 = vmatprep.mubr.f32.mxu0 %v15843_v0  ;;  %v11988_v6 = vpop.f32.mrb[25].mxu1  ;;  %v403_v59 = vld [vmem:[#allocation2 + $0x358] sm:$0xff] }
 0x199   : > { %16172 = vst [vmem:[#allocation40_spill] sm:$0xff] %v11988_v6  ;;  %2237 = vmatprep.mubr.f32.mxu1 %v15843_v0 }
 0x19a   : > { %v11991_v51 = vpop.f32.mrb[26].mxu0 }
 0x19b   : > { %v11993_v26 = vpop.f32.mrb[27].mxu0  ;;  %8701 = vmatmul.mubr.msk.f32.gmra.mrb[132].mxu0 %vm647_vm1, %v11996_v8  ;;  %v12000_v50 = vpop.f32.mrb[26].mxu1 }
 0x19c   : > { %16173 = vst [vmem:[#allocation41_spill] sm:$0xff] %v11993_v26  ;;  %16174 = vst [vmem:[#allocation42_spill] sm:$0xff] %v12000_v50  ;;  %8717 = vmatmul.mubr.msk.f32.gmra.mrb[132].mxu1 %vm647_vm1, %v11996_v8  ;;  %2094 = vmatprep.mubr.f32.mxu0 %v15843_v0  ;;  %v12005_v6 = vpop.f32.mrb[27].mxu1 }
 0x19d   : > { %16175 = vst [vmem:[#allocation43_spill] sm:$0xff] %v12005_v6  ;;  %2243 = vmatprep.mubr.f32.mxu1 %v15843_v0 }
 0x19e   : > { %v12008_v18 = vpop.f32.mrb[28].mxu0 }
 0x19f   : > { %16176 = vst [vmem:[#allocation44_spill] sm:$0xff] %v12008_v18  ;;  %v12010_v61 = vpop.f32.mrb[29].mxu0  ;;  %8702 = vmatmul.mubr.msk.f32.gmra.mrb[134].mxu0 %vm647_vm1, %v12013_v32  ;;  %v12017_v7 = vpop.f32.mrb[28].mxu1  ;;  %v12047_v18 = vld [vmem:[%s11390_s12 + $0x68] sm:$0x3f] }
 0x1a0   : > { %16177 = vst [vmem:[#allocation45_spill] sm:$0xff] %v12010_v61  ;;  %16178 = vst [vmem:[#allocation46_spill] sm:$0xff] %v12017_v7  ;;  %8718 = vmatmul.mubr.msk.f32.gmra.mrb[134].mxu1 %vm647_vm1, %v12013_v32  ;;  %2100 = vmatprep.mubr.f32.mxu0 %v15843_v0  ;;  %v12022_v6 = vpop.f32.mrb[29].mxu1 }
 0x1a1   : > { %16179 = vst [vmem:[#allocation47_spill] sm:$0xff] %v12022_v6  ;;  %2249 = vmatprep.mubr.f32.mxu1 %v15843_v0  ;;  %v320_v6 = vld [vmem:[#allocation2 + $0xc0] sm:$0xff] }
 0x1a2   : > { %v12025_v54 = vpop.f32.mrb[30].mxu0 }
 0x1a3   : > { %16180 = vst [vmem:[#allocation48_spill] sm:$0xff] %v12025_v54  ;;  %v12027_v61 = vpop.f32.mrb[31].mxu0  ;;  %8703 = vmatmul.mubr.msk.f32.gmra.mrb[136].mxu0 %vm647_vm1, %v12030_v28  ;;  %v12034_v7 = vpop.f32.mrb[30].mxu1  ;;  %v347_v54 = vld [vmem:[#allocation2 + $0x198] sm:$0xff] }
 0x1a4   : > { %16181 = vst [vmem:[#allocation49_spill] sm:$0xff] %v12027_v61  ;;  %16182 = vst [vmem:[#allocation50_spill] sm:$0xff] %v12034_v7  ;;  %8719 = vmatmul.mubr.msk.f32.gmra.mrb[136].mxu1 %vm647_vm1, %v12030_v28  ;;  %2106 = vmatprep.mubr.f32.mxu0 %v15843_v0  ;;  %v12039_v47 = vpop.f32.mrb[31].mxu1  ;;  %v9499_v50 = vpack.c.bf16 %v347_v54, %v320_v6  ;;  %v430_v6 = vld [vmem:[#allocation2 + $0x430] sm:$0xff] }
 0x1a5   : > { %16183 = vst [vmem:[#allocation51_spill] sm:$0xff] %v12039_v47  ;;  %2255 = vmatprep.mubr.f32.mxu1 %v15843_v0 }
 0x1a6   : > { %v12042_v44 = vpop.f32.mrb[32].mxu0 }
 0x1a7   : > { %16184 = vst [vmem:[#allocation52_spill] sm:$0xff] %v12042_v44  ;;  %v12044_v61 = vpop.f32.mrb[33].mxu0  ;;  %8704 = vmatmul.mubr.msk.f32.gmra.mrb[138].mxu0 %vm647_vm1, %v12047_v18  ;;  %v12051_v7 = vpop.f32.mrb[32].mxu1  ;;  %v376_v44 = vld [vmem:[#allocation2 + $0x280] sm:$0xff] }
 0x1a8   : > { %16185 = vst [vmem:[#allocation53_spill] sm:$0xff] %v12044_v61  ;;  %16186 = vst [vmem:[#allocation54_spill] sm:$0xff] %v12051_v7  ;;  %8720 = vmatmul.mubr.msk.f32.gmra.mrb[138].mxu1 %vm647_vm1, %v12047_v18  ;;  %2326 = vmatprep.mubr.f32.mxu0 %v15843_v0  ;;  %v12056_v47 = vpop.f32.mrb[33].mxu1 }
 0x1a9   : > { %16187 = vst [vmem:[#allocation55_spill] sm:$0xff] %v12056_v47  ;;  %2475 = vmatprep.mubr.f32.mxu1 %v15843_v0  ;;  %v9525_v47 = vpack.c.bf16 %v403_v59, %v376_v44  ;;  %v510_v59 = vld [vmem:[#allocation2 + $0x6b0] sm:$0xff] }
 0x1aa   : > { %v12059_v61 = vpop.f32.mrb[34].mxu0 }
 0x1ab   : > { %16188 = vst [vmem:[#allocation56_spill] sm:$0xff] %v12059_v61  ;;  %v12061_v7 = vpop.f32.mrb[35].mxu0  ;;  %8723 = vmatmul.mubr.msk.f32.vlgmr.msra.gmra.mrb[140].mxu0 %vm647_vm1, %v11703_v3  ;;  %v12065_v36 = vpop.f32.mrb[34].mxu1  ;;  %v428_v61 = vld [vmem:[#allocation2 + $0x420] sm:$0xff] }
 0x1ac   : > { %16189 = vst [vmem:[#allocation57_spill] sm:$0xff] %v12061_v7  ;;  %16190 = vst [vmem:[#allocation58_spill] sm:$0xff] %v12065_v36  ;;  %8739 = vmatmul.mubr.msk.f32.vlgmr.msra.gmra.mrb[140].mxu1 %vm647_vm1, %v11703_v3  ;;  %9500 = vmatpush1.bf16.msra.mxu0 %v9499_v50  ;;  %v12069_v54 = vpop.f32.mrb[35].mxu1  ;;  %v9505_v36 = vpack.c.bf16 %v456_v20, %v429_v13  ;;  %v483_v50 = vld [vmem:[#allocation2 + $0x5d8] sm:$0xff]  ;;  %v484_v13 = vld [vmem:[#allocation2 + $0x5e0] sm:$0xff]  ;;  %v9507_v23 = vpack.c.bf16 %v455_v22, %v428_v61 }
 0x1ad   : > { %16191 = vst [vmem:[#allocation59_spill] sm:$0xff] %v12069_v54  ;;  %2332 = vmatprep.mubr.f32.mxu0 %v15843_v0  ;;  %2481 = vmatprep.mubr.f32.mxu1 %v15843_v0  ;;  %v9529_v0 = vpack.c.bf16 %v457_v17, %v430_v6  ;;  %v482_v54 = vld [vmem:[#allocation2 + $0x5d0] sm:$0xff]  ;;  %v537_v17 = vld [vmem:[#allocation2 + $0x788] sm:$0xff] }
 0x1ae   : > { %v12073_v7 = vpop.f32.mrb[36].mxu0  ;;  %9502 = vmatprep.subr.bf16.mxu0 %v9501_v41  ;;  %9524 = vmatpush3.bf16.msra.mxu1 %v11929_v9  ;;  %v511_v9 = vld [vmem:[#allocation2 + $0x6b8] sm:$0xff]  ;;  %v538_v61 = vld [vmem:[#allocation2 + $0x790] sm:$0xff] }
 0x1af   : > { %16192 = vst [vmem:[#allocation60_spill] sm:$0xff] %v12073_v7  ;;  %v12076_v44 = vpop.f32.mrb[37].mxu0  ;;  %8724 = vmatmul.mubr.msk.f32.gmra.mrb[142].mxu0 %vm647_vm1, %v11712_v46  ;;  %v12080_v3 = vpop.f32.mrb[36].mxu1  ;;  %9526 = vmatprep.subr.bf16.mxu1 %v9525_v47  ;;  %v9533_v7 = vpack.c.bf16 %v511_v9, %v484_v13  ;;  %v591_v9 = vld [vmem:[#allocation2 + $0x938] sm:$0xff] }
 0x1b0   : > { %16193 = vst [vmem:[#allocation61_spill] sm:$0xff] %v12076_v44  ;;  %16194 = vst [vmem:[#allocation62_spill] sm:$0xff] %v12080_v3  ;;  %8740 = vmatmul.mubr.msk.f32.gmra.mrb[142].mxu1 %vm647_vm1, %v11712_v46  ;;  %2338 = vmatprep.mubr.f32.mxu0 %v16195_v33  ;;  %v12085_v20 = vpop.f32.mrb[37].mxu1  ;;  %v9509_v3 = vpack.c.bf16 %v510_v59, %v483_v50  ;;  %v509_v44 = vld [vmem:[#allocation2 + $0x6a8] sm:$0xff]  ;;  %v536_v59 = vld [vmem:[#allocation2 + $0x780] sm:$0xff] }
 0x1b1   : > { %16196 = vst [vmem:[#allocation63_spill] sm:$0xff] %v12085_v20  ;;  %2487 = vmatprep.mubr.f32.mxu1 %v16195_v33  ;;  %9504 = vmatpush1.bf16.msra.mxu0 %v9503_v25  ;;  %v564_v20 = vld [vmem:[#allocation2 + $0x860] sm:$0xff] }
 0x1b2   : > { %v12088_v41 = vpop.f32.mrb[38].mxu0  ;;  %9506 = vmatprep.subr.bf16.mxu0 %v9505_v36  ;;  %9528 = vmatpush3.bf16.msra.mxu1 %v9525_v47  ;;  %v565_v47 = vld [vmem:[#allocation2 + $0x868] sm:$0xff]  ;;  %v9511_v36 = vpack.c.bf16 %v509_v44, %v482_v54  ;;  %v9513_v50 = vpack.c.bf16 %v564_v20, %v537_v17  ;;  %v592_v44 = vld [vmem:[#allocation2 + $0x940] sm:$0xff]  ;;  %v590_v17 = vld [vmem:[#allocation2 + $0x930] sm:$0xff] }
 0x1b3   : > { %16197 = vst [vmem:[#allocation64_spill] sm:$0xff] %v12088_v41  ;;  %v12090_v6 = vpop.f32.mrb[39].mxu0  ;;  %8725 = vmatmul.mubr.msk.f32.gmra.mrb[144].mxu0 %vm647_vm1, %v11721_v31  ;;  %v12094_v46 = vpop.f32.mrb[38].mxu1  ;;  %9530 = vmatprep.subr.bf16.mxu1 %v9529_v0 }
 0x1b4   : > { %16198 = vst [vmem:[#allocation65_spill] sm:$0xff] %v12090_v6  ;;  %16199 = vst [vmem:[#allocation66_spill] sm:$0xff] %v12094_v46  ;;  %8741 = vmatmul.mubr.msk.f32.gmra.mrb[144].mxu1 %vm647_vm1, %v11721_v31  ;;  %2344 = vmatprep.mubr.f32.mxu0 %v16195_v33  ;;  %v12099_v22 = vpop.f32.mrb[39].mxu1  ;;  %v563_v46 = vld [vmem:[#allocation2 + $0x858] sm:$0xff]  ;;  %v9537_v6 = vpack.c.bf16 %v565_v47, %v538_v61 }
 0x1b5   : > { %16200 = vst [vmem:[#allocation67_spill] sm:$0xff] %v12099_v22  ;;  %2493 = vmatprep.mubr.f32.mxu1 %v16195_v33  ;;  %9508 = vmatpush1.bf16.msra.mxu0 %v9507_v23  ;;  %v618_v22 = vld [vmem:[#allocation2 + $0xa10] sm:$0xff] }
 0x1b6   : > { %v12102_v25 = vpop.f32.mrb[40].mxu0  ;;  %9510 = vmatprep.subr.bf16.mxu0 %v9509_v3  ;;  %9532 = vmatpush3.bf16.msra.mxu1 %v9529_v0  ;;  %v619_v0 = vld [vmem:[#allocation2 + $0xa18] sm:$0xff]  ;;  %v9515_v3 = vpack.c.bf16 %v563_v46, %v536_v59  ;;  %v9517_v23 = vpack.c.bf16 %v618_v22, %v591_v9  ;;  %v644_v9 = vld [vmem:[#allocation2 + $0xae0] sm:$0x3f] }
 0x1b7   : > { %16201 = vst [vmem:[#allocation68_spill] sm:$0xff] %v12102_v25  ;;  %v12104_v13 = vpop.f32.mrb[41].mxu0  ;;  %8726 = vmatmul.mubr.msk.f32.gmra.mrb[146].mxu0 %vm647_vm1, %v11732_v56  ;;  %v12108_v31 = vpop.f32.mrb[40].mxu1  ;;  %9534 = vmatprep.subr.bf16.mxu1 %v9533_v7  ;;  %v9541_v47 = vpack.c.bf16 %v619_v0, %v592_v44 }
 0x1b8   : > { %16202 = vst [vmem:[#allocation69_spill] sm:$0xff] %v12104_v13  ;;  %16203 = vst [vmem:[#allocation70_spill] sm:$0xff] %v12108_v31  ;;  %8742 = vmatmul.mubr.msk.f32.gmra.mrb[146].mxu1 %vm647_vm1, %v11732_v56  ;;  %2350 = vmatprep.mubr.f32.mxu0 %v16195_v33  ;;  %v12113_v54 = vpop.f32.mrb[41].mxu1  ;;  %v617_v31 = vld [vmem:[#allocation2 + $0xa08] sm:$0xff] }
 0x1b9   : > { %16204 = vst [vmem:[#allocation71_spill] sm:$0xff] %v12113_v54  ;;  %2499 = vmatprep.mubr.f32.mxu1 %v16195_v33  ;;  %9512 = vmatpush1.bf16.msra.mxu0 %v9511_v36 }
 0x1ba   : > { %v12116_v20 = vpop.f32.mrb[42].mxu0  ;;  %9514 = vmatprep.subr.bf16.mxu0 %v9513_v50  ;;  %9536 = vmatpush3.bf16.msra.mxu1 %v9533_v7  ;;  %v9519_v7 = vpack.c.bf16 %v617_v31, %v590_v17  ;;  %v646_v31 = vld [vmem:[#allocation2 + $0xaf0] sm:$0x3f] }
 0x1bb   : > { %16205 = vst [vmem:[#allocation72_spill] sm:$0xff] %v12116_v20  ;;  %v12118_v61 = vpop.f32.mrb[43].mxu0  ;;  %8727 = vmatmul.mubr.msk.f32.gmra.mrb[148].mxu0 %vm647_vm1, %v11741_v4  ;;  %v12122_v56 = vpop.f32.mrb[42].mxu1  ;;  %9538 = vmatprep.subr.bf16.mxu1 %v9537_v6 }
 0x1bc   : > { %16206 = vst [vmem:[#allocation73_spill] sm:$0xff] %v12118_v61  ;;  %16207 = vst [vmem:[#allocation74_spill] sm:$0xff] %v12122_v56  ;;  %8743 = vmatmul.mubr.msk.f32.gmra.mrb[148].mxu1 %vm647_vm1, %v11741_v4  ;;  %2356 = vmatprep.mubr.f32.mxu0 %v16195_v33  ;;  %v12127_v46 = vpop.f32.mrb[43].mxu1  ;;  %v645_v4 = vld [vmem:[#allocation2 + $0xae8] sm:$0x3f] }
 0x1bd   : > { %16208 = vst [vmem:[#allocation75_spill] sm:$0xff] %v12127_v46  ;;  %2505 = vmatprep.mubr.f32.mxu1 %v16195_v33  ;;  %9516 = vmatpush1.bf16.msra.mxu0 %v9515_v3  ;;  %v11004_v61 = vld [vmem:[%s11390_s12 + $0x8] sm:$0xff] }
 0x1be   : > { %v12130_v22 = vpop.f32.mrb[44].mxu0  ;;  %9518 = vmatprep.subr.bf16.mxu0 %v9517_v23  ;;  %9540 = vmatpush3.bf16.msra.mxu1 %v9537_v6 }
 0x1bf   : > { %16209 = vst [vmem:[#allocation76_spill] sm:$0xff] %v12130_v22  ;;  %v12132_v36 = vpop.f32.mrb[45].mxu0  ;;  %8728 = vmatmul.mubr.msk.f32.gmra.mrb[150].mxu0 %vm647_vm1, %v11904_v34  ;;  %v12136_v50 = vpop.f32.mrb[44].mxu1  ;;  %9542 = vmatprep.subr.bf16.mxu1 %v9541_v47 }
 0x1c0   : > { %16210 = vst [vmem:[#allocation77_spill] sm:$0xff] %v12132_v36  ;;  %16211 = vst [vmem:[#allocation78_spill] sm:$0xff] %v12136_v50  ;;  %8744 = vmatmul.mubr.msk.f32.gmra.mrb[150].mxu1 %vm647_vm1, %v11904_v34  ;;  %2362 = vmatprep.mubr.f32.mxu0 %v16195_v33  ;;  %v12141_v59 = vpop.f32.mrb[45].mxu1 }
 0x1c1   : > { %16212 = vst [vmem:[#allocation79_spill] sm:$0xff] %v12141_v59  ;;  %2511 = vmatprep.mubr.f32.mxu1 %v16195_v33  ;;  %9520 = vmatpush1.bf16.msra.mxu0 %v9519_v7 }
 0x1c2   : > { %v12144_v6 = vpop.f32.mrb[46].mxu0  ;;  %8753 = vmatprep.subr.msk.mxu0 %vm690_vm0, %v645_v4  ;;  %9544 = vmatpush3.bf16.msra.mxu1 %v9541_v47 }
 0x1c3   : > { %16213 = vst [vmem:[#allocation80_spill] sm:$0xff] %v12144_v6  ;;  %v12147_v44 = vpop.f32.mrb[47].mxu0  ;;  %8729 = vmatmul.mubr.msk.f32.gmra.mrb[152].mxu0 %vm647_vm1, %v11922_v63  ;;  %v12151_v0 = vpop.f32.mrb[46].mxu1  ;;  %9186 = vmatprep.subr.msk.mxu1 %vm690_vm0, %v646_v31 }
 0x1c4   : > { %16214 = vst [vmem:[#allocation81_spill] sm:$0xff] %v12147_v44  ;;  %16215 = vst [vmem:[#allocation82_spill] sm:$0xff] %v12151_v0  ;;  %8745 = vmatmul.mubr.msk.f32.gmra.mrb[152].mxu1 %vm647_vm1, %v11922_v63  ;;  %2368 = vmatprep.mubr.f32.mxu0 %v16195_v33  ;;  %v12157_v3 = vpop.f32.mrb[47].mxu1 }
 0x1c5   : > { %16216 = vst [vmem:[#allocation83_spill] sm:$0xff] %v12157_v3  ;;  %2517 = vmatprep.mubr.f32.mxu1 %v16195_v33  ;;  %8754 = vmatpush1.msk.msra.mxu0 %vm690_vm0, %v644_v9 }
 0x1c6   : > { %v12161_v23 = vpop.f32.mrb[48].mxu0  ;;  %9187 = vmatpush3.msk.msra.mxu1 %vm690_vm0, %v646_v31 }
 0x1c7   : > { %16217 = vst [vmem:[#allocation84_spill] sm:$0xff] %v12161_v23  ;;  %v12164_v17 = vpop.f32.mrb[49].mxu0  ;;  %8730 = vmatmul.mubr.msk.f32.gmra.mrb[154].mxu0 %vm647_vm1, %v11944_v15  ;;  %v12168_v47 = vpop.f32.mrb[48].mxu1 }
 0x1c8   : > { %16218 = vst [vmem:[#allocation85_spill] sm:$0xff] %v12164_v17  ;;  %16219 = vst [vmem:[#allocation86_spill] sm:$0xff] %v12168_v47  ;;  %8746 = vmatmul.mubr.msk.f32.gmra.mrb[154].mxu1 %vm647_vm1, %v11944_v15  ;;  %2374 = vmatprep.mubr.f32.mxu0 %v16195_v33  ;;  %v12173_v7 = vpop.f32.mrb[49].mxu1 }
 0x1c9   : > { %16220 = vst [vmem:[#allocation87_spill] sm:$0xff] %v12173_v7  ;;  %2523 = vmatprep.mubr.f32.mxu1 %v16195_v33 }
 0x1ca   : > { %v12176_v4 = vpop.f32.mrb[50].mxu0 }
 0x1cb   : > { %16221 = vst [vmem:[#allocation88_spill] sm:$0xff] %v12176_v4  ;;  %v12178_v9 = vpop.f32.mrb[51].mxu0  ;;  %8731 = vmatmul.mubr.msk.f32.gmra.mrb[156].mxu0 %vm647_vm1, %v11962_v40  ;;  %v12182_v31 = vpop.f32.mrb[50].mxu1 }
 0x1cc   : > { %16222 = vst [vmem:[#allocation89_spill] sm:$0xff] %v12178_v9  ;;  %16223 = vst [vmem:[#allocation90_spill] sm:$0xff] %v12182_v31  ;;  %8747 = vmatmul.mubr.msk.f32.gmra.mrb[156].mxu1 %vm647_vm1, %v11962_v40  ;;  %2380 = vmatprep.mubr.f32.mxu0 %v16195_v33  ;;  %v12187_v47 = vpop.f32.mrb[51].mxu1 }
 0x1cd   : > { %16224 = vst [vmem:[#allocation91_spill] sm:$0xff] %v12187_v47  ;;  %2529 = vmatprep.mubr.f32.mxu1 %v16195_v33 }
 0x1ce   : > { %v12190_v7 = vpop.f32.mrb[52].mxu0 }
 0x1cf   : > { %16225 = vst [vmem:[#allocation92_spill] sm:$0xff] %v12190_v7  ;;  %v12192_v0 = vpop.f32.mrb[53].mxu0  ;;  %8732 = vmatmul.mubr.msk.f32.gmra.mrb[158].mxu0 %vm647_vm1, %v11979_v60  ;;  %v12196_v3 = vpop.f32.mrb[52].mxu1 }
 0x1d0   : > { %16226 = vst [vmem:[#allocation93_spill] sm:$0xff] %v12192_v0  ;;  %16227 = vst [vmem:[#allocation94_spill] sm:$0xff] %v12196_v3  ;;  %8748 = vmatmul.mubr.msk.f32.gmra.mrb[158].mxu1 %vm647_vm1, %v11979_v60  ;;  %2386 = vmatprep.mubr.f32.mxu0 %v16195_v33  ;;  %v12201_v31 = vpop.f32.mrb[53].mxu1 }
 0x1d1   : > { %16228 = vst [vmem:[#allocation95_spill] sm:$0xff] %v12201_v31  ;;  %2535 = vmatprep.mubr.f32.mxu1 %v16195_v33 }
 0x1d2   : > { %v12204_v47 = vpop.f32.mrb[54].mxu0 }
 0x1d3   : > { %16229 = vst [vmem:[#allocation96_spill] sm:$0xff] %v12204_v47  ;;  %v12206_v50 = vpop.f32.mrb[55].mxu0  ;;  %8733 = vmatmul.mubr.msk.f32.gmra.mrb[160].mxu0 %vm647_vm1, %v11996_v8  ;;  %v12210_v59 = vpop.f32.mrb[54].mxu1  ;;  %v11005_v47 = vld [vmem:[%s11390_s12 + $0x10] sm:$0xff] }
 0x1d4   : > { %16230 = vst [vmem:[#allocation97_spill] sm:$0xff] %v12206_v50  ;;  %16231 = vst [vmem:[#allocation98_spill] sm:$0xff] %v12210_v59  ;;  %8749 = vmatmul.mubr.msk.f32.gmra.mrb[160].mxu1 %vm647_vm1, %v11996_v8  ;;  %2392 = vmatprep.mubr.f32.mxu0 %v16195_v33  ;;  %v12215_v3 = vpop.f32.mrb[55].mxu1 }
 0x1d5   : > { %16232 = vst [vmem:[#allocation99_spill] sm:$0xff] %v12215_v3  ;;  %2541 = vmatprep.mubr.f32.mxu1 %v16195_v33 }
 0x1d6   : > { %v12218_v31 = vpop.f32.mrb[56].mxu0 }
 0x1d7   : > { %16233 = vst [vmem:[#allocation100_spill] sm:$0xff] %v12218_v31  ;;  %v1436_v56 = vpop.f32.mrb[57].mxu0  ;;  %8734 = vmatmul.mubr.msk.f32.gmra.mrb[162].mxu0 %vm647_vm1, %v12013_v32  ;;  %v1583_v46 = vpop.f32.mrb[56].mxu1  ;;  %v16235_v31 = vmov 0 }
 0x1d8   : > { %8750 = vmatmul.mubr.msk.f32.gmra.mrb[162].mxu1 %vm647_vm1, %v12013_v32  ;;  %v1585_v59 = vpop.f32.mrb[57].mxu1  ;;  %2398 = vmatprep.mubr.f32.mxu0 %v16195_v33  ;;  %v16236_v31 = vsel %vm12233_vm3, 4294967295, %v16235_v31 }
 0x1d9   : > { %2547 = vmatprep.mubr.f32.mxu1 %v16195_v33  ;;  %v10233_v54 = vpack.i.bf16 %v1585_v59, %v1583_v46  ;;  %16237 = vst [vmem:[#allocation102_spill] sm:$0xff] %v16236_v31 }
 0x1da   : > { %v12226_v3 = vpop.f32.mrb[58].mxu0 }
 0x1db   : > { %16234 = vst [vmem:[#allocation101_spill] sm:$0xff] %v12226_v3  ;;  %v1442_v50 = vpop.f32.mrb[59].mxu0  ;;  %v1589_v0 = vpop.f32.mrb[58].mxu1  ;;  %8735 = vmatmul.mubr.msk.f32.gmra.mrb[164].mxu0 %vm647_vm1, %v12030_v28  ;;  %10234 = vrot.lane.b32.xlu1 %v10233_v54, %s11205_s13 }
 0x1dc   : > { %v9548_v9 = vpack.c.bf16 %v1442_v50, %v1436_v56  ;;  %v9545_v17 = vpack.c.bf16 %v1589_v0, %v1583_v46  ;;  %8751 = vmatmul.mubr.msk.f32.gmra.mrb[164].mxu1 %vm647_vm1, %v12030_v28  ;;  %v1591_v59 = vpop.f32.mrb[59].mxu1  ;;  %2404 = vmatprep.mubr.f32.mxu0 %v16195_v33 }
 0x1dd   : > { %2553 = vmatprep.mubr.f32.mxu1 %v16195_v33  ;;  %v10238_v3 = vpack.i.bf16 %v1591_v59, %v1589_v0  ;;  %v11003_v0 = vld [vmem:[%s11390_s12] sm:$0xff] }
 0x1de   : > { %v12241_v44 = vpop.f32.mrb[60].mxu0  ;;  %9547 = vmatprep.subr.msk.bf16.mxu0 %vm12233_vm3, %v9545_v17 }
 0x1df   : > { %16238 = vst [vmem:[#allocation103_spill] sm:$0xff] %v12241_v44  ;;  %10239 = vrot.lane.b32.xlu0 %v10238_v3, %s11205_s13  ;;  %v1448_v54 = vpop.f32.mrb[61].mxu0  ;;  %8736 = vmatmul.mubr.msk.f32.gmra.mrb[166].mxu0 %vm647_vm1, %v12047_v18  ;;  %v1595_v56 = vpop.f32.mrb[60].mxu1 }
 0x1e0   : > { %8752 = vmatmul.mubr.msk.f32.gmra.mrb[166].mxu1 %vm647_vm1, %v12047_v18  ;;  %v1597_v46 = vpop.f32.mrb[61].mxu1  ;;  %2624 = vmatprep.mubr.f32.mxu0 %v16195_v33 }
 0x1e1   : > { %v10243_v50 = vpack.i.bf16 %v1597_v46, %v1595_v56  ;;  %9188 = vmatprep.mubr.msk.f32.mxu1 %vm647_vm1, %v11003_v0 }
 0x1e2   : > { %v12253_v17 = vpop.f32.mrb[62].mxu0 }
 0x1e3   : > { %16239 = vst [vmem:[#allocation104_spill] sm:$0xff] %v12253_v17  ;;  %v1454_v3 = vpop.f32.mrb[63].mxu0  ;;  %v1601_v59 = vpop.f32.mrb[62].mxu1  ;;  %8755 = vmatmul.mubr.msk.f32.vlgmr.msra.gmra.mrb[168].mxu0 %vm647_vm1, %v11003_v0  ;;  %10244 = vrot.lane.b32.xlu1 %v10243_v50, %s11205_s13  ;;  %v11006_v50 = vld [vmem:[%s11390_s12 + $0x18] sm:$0xff] }
 0x1e4   : > { %v9553_v44 = vpack.c.bf16 %v1454_v3, %v1448_v54  ;;  %v9550_v36 = vpack.c.bf16 %v1601_v59, %v1595_v56  ;;  %9189 = vmatmul.mubr.msk.f32.vlgmr.msra.gmra.mrb[168].mxu1 %vm647_vm1, %v11004_v61  ;;  %9549 = vmatpush1.bf16.xpose.msra.mxu0 %v9548_v9  ;;  %v1603_v46 = vpop.f32.mrb[63].mxu1  ;;  %v11007_v3 = vld [vmem:[%s11390_s12 + $0x20] sm:$0xff] }
 0x1e5   : > { %v10248_v13 = vpack.i.bf16 %v1603_v46, %v1601_v59  ;;  %2630 = vmatprep.mubr.f32.mxu0 %v16195_v33  ;;  %9191 = vmatprep.mubr.msk.f32.mxu1 %vm647_vm1, %v11005_v47 }
 0x1e6   : > { %v12262_v17 = vpop.f32.mrb[64].mxu0  ;;  %9552 = vmatprep.subr.msk.bf16.mxu0 %vm12233_vm3, %v9550_v36 }
 0x1e7   : > { %16240 = vst [vmem:[#allocation105_spill] sm:$0xff] %v12262_v17  ;;  %10249 = vrot.lane.b32.xlu0 %v10248_v13, %s11205_s13  ;;  %v1460_v54 = vpop.f32.mrb[65].mxu0  ;;  %8756 = vmatmul.mubr.msk.f32.gmra.mrb[170].mxu0 %vm647_vm1, %v11004_v61  ;;  %v12268_v56 = vpop.f32.mrb[64].mxu1 }
 0x1e8   : > { %2636 = vmatprep.mubr.f32.mxu0 %v16195_v33  ;;  %v12271_v9 = vpop.f32.mrb[65].mxu1  ;;  %9192 = vmatmul.mubr.msk.f32.gmra.mrb[170].mxu1 %vm647_vm1, %v11006_v50 }
 0x1e9   : > { %9194 = vmatprep.mubr.msk.f32.mxu1 %vm647_vm1, %v11007_v3 }
 0x1ea   : > { %v12279_v36 = vpop.f32.mrb[66].mxu0 }
 0x1eb   : > { %16241 = vst [vmem:[#allocation106_spill] sm:$0xff] %v12279_v36  ;;  %v1466_v13 = vpop.f32.mrb[67].mxu0  ;;  %8757 = vmatmul.mubr.msk.f32.gmra.mrb[172].mxu0 %vm647_vm1, %v11005_v47  ;;  %v12282_v61 = vpop.f32.mrb[66].mxu1 }
 0x1ec   : > { %v9558_v59 = vpack.c.bf16 %v1466_v13, %v1460_v54  ;;  %9554 = vmatpush1.bf16.xpose.msra.mxu0 %v9553_v44  ;;  %v9555_v46 = vpack.c.bf16 %v12282_v61, %v12268_v56  ;;  %2642 = vmatprep.mubr.f32.mxu0 %v16195_v33  ;;  %v12287_v17 = vpop.f32.mrb[67].mxu1 }
 0x1ed   : > { %9195 = vmatmul.mubr.msk.f32.gmra.mrb[172].mxu1 %vm647_vm1, %v11904_v34 }
 0x1ee   : > { %v12293_v36 = vpop.f32.mrb[68].mxu0  ;;  %9557 = vmatprep.subr.msk.bf16.mxu0 %vm12233_vm3, %v9555_v46  ;;  %9197 = vmatprep.mubr.msk.f32.mxu1 %vm647_vm1, %v11922_v63 }
 0x1ef   : > { %16242 = vst [vmem:[#allocation107_spill] sm:$0xff] %v12293_v36  ;;  %v1472_v44 = vpop.f32.mrb[69].mxu0  ;;  %8758 = vmatmul.mubr.msk.f32.gmra.mrb[174].mxu0 %vm647_vm1, %v11006_v50  ;;  %v12300_v47 = vpop.f32.mrb[68].mxu1 }
 0x1f0   : > { %2648 = vmatprep.mubr.f32.mxu0 %v16195_v33  ;;  %v12303_v54 = vpop.f32.mrb[69].mxu1 }
 0x1f1   : > { %9198 = vmatmul.mubr.msk.f32.gmra.mrb[174].mxu1 %vm647_vm1, %v11944_v15 }
 0x1f2   : > { %v12309_v0 = vpop.f32.mrb[70].mxu0  ;;  %9200 = vmatprep.mubr.msk.f32.mxu1 %vm647_vm1, %v11962_v40 }
 0x1f3   : > { %16243 = vst [vmem:[#allocation108_spill] sm:$0xff] %v12309_v0  ;;  %v1478_v46 = vpop.f32.mrb[71].mxu0  ;;  %8759 = vmatmul.mubr.msk.f32.gmra.mrb[176].mxu0 %vm647_vm1, %v11007_v3  ;;  %v12314_v50 = vpop.f32.mrb[70].mxu1 }
 0x1f4   : > { %v9563_v36 = vpack.c.bf16 %v1478_v46, %v1472_v44  ;;  %9559 = vmatpush1.bf16.xpose.msra.mxu0 %v9558_v59  ;;  %v9560_v7 = vpack.c.bf16 %v12314_v50, %v12300_v47  ;;  %2654 = vmatprep.mubr.f32.mxu0 %v16195_v33  ;;  %v12319_v13 = vpop.f32.mrb[71].mxu1 }
 0x1f5   : > { %9201 = vmatmul.mubr.msk.f32.gmra.mrb[176].mxu1 %vm647_vm1, %v11979_v60 }
 0x1f6   : > { %v12325_v4 = vpop.f32.mrb[72].mxu0  ;;  %9562 = vmatprep.subr.msk.bf16.mxu0 %vm12233_vm3, %v9560_v7  ;;  %9203 = vmatprep.mubr.msk.f32.mxu1 %vm647_vm1, %v11996_v8 }
 0x1f7   : > { %16244 = vst [vmem:[#allocation109_spill] sm:$0xff] %v12325_v4  ;;  %v1484_v3 = vpop.f32.mrb[73].mxu0  ;;  %8760 = vmatmul.mubr.msk.f32.gmra.mrb[178].mxu0 %vm647_vm1, %v11904_v34  ;;  %v12333_v59 = vpop.f32.mrb[72].mxu1 }
 0x1f8   : > { %2660 = vmatprep.mubr.f32.mxu0 %v16195_v33  ;;  %v12336_v44 = vpop.f32.mrb[73].mxu1 }
 0x1f9   : > { %9204 = vmatmul.mubr.msk.f32.gmra.mrb[178].mxu1 %vm647_vm1, %v12013_v32 }
 0x1fa   : > { %v12342_v7 = vpop.f32.mrb[74].mxu0  ;;  %9206 = vmatprep.mubr.msk.f32.mxu1 %vm647_vm1, %v12030_v28 }
 0x1fb   : > { %16245 = vst [vmem:[#allocation110_spill] sm:$0xff] %v12342_v7  ;;  %v1490_v0 = vpop.f32.mrb[75].mxu0  ;;  %8761 = vmatmul.mubr.msk.f32.gmra.mrb[180].mxu0 %vm647_vm1, %v11922_v63  ;;  %v12348_v34 = vpop.f32.mrb[74].mxu1 }
 0x1fc   : > { %v9568_v4 = vpack.c.bf16 %v1490_v0, %v1484_v3  ;;  %9564 = vmatpush1.bf16.xpose.msra.mxu0 %v9563_v36  ;;  %v9565_v23 = vpack.c.bf16 %v12348_v34, %v12333_v59  ;;  %2666 = vmatprep.mubr.f32.mxu0 %v16195_v33  ;;  %v12353_v46 = vpop.f32.mrb[75].mxu1 }
 0x1fd   : > { %9207 = vmatmul.mubr.msk.f32.gmra.mrb[180].mxu1 %vm647_vm1, %v12047_v18 }
 0x1fe   : > { %v12359_v6 = vpop.f32.mrb[76].mxu0  ;;  %9567 = vmatprep.subr.msk.bf16.mxu0 %vm12233_vm3, %v9565_v23  ;;  %3346 = vmatprep.mubr.f32.mxu1 %v16195_v33 }
 0x1ff   : > { %16246 = vst [vmem:[#allocation111_spill] sm:$0xff] %v12359_v6  ;;  %v1496_v63 = vpop.f32.mrb[77].mxu0  ;;  %8762 = vmatmul.mubr.msk.f32.gmra.mrb[182].mxu0 %vm647_vm1, %v11944_v15  ;;  %v12366_v0 = vpop.f32.mrb[76].mxu1 }
 0x200   : > { %2672 = vmatprep.mubr.f32.mxu0 %v16195_v33  ;;  %v12369_v36 = vpop.f32.mrb[77].mxu1 }
 0x202   : > { %v12373_v7 = vpop.f32.mrb[78].mxu0 }
 0x203   : > { %16247 = vst [vmem:[#allocation112_spill] sm:$0xff] %v12373_v7  ;;  %v1502_v6 = vpop.f32.mrb[79].mxu0  ;;  %8763 = vmatmul.mubr.msk.f32.gmra.mrb[184].mxu0 %vm647_vm1, %v11962_v40  ;;  %v12377_v23 = vpop.f32.mrb[78].mxu1 }
 0x204   : > { %v9573_v22 = vpack.c.bf16 %v1502_v6, %v1496_v63  ;;  %9569 = vmatpush1.bf16.xpose.msra.mxu0 %v9568_v4  ;;  %v9570_v15 = vpack.c.bf16 %v12377_v23, %v12366_v0  ;;  %2678 = vmatprep.mubr.f32.mxu0 %v16195_v33  ;;  %v12382_v20 = vpop.f32.mrb[79].mxu1 }
 0x206   : > { %v12386_v25 = vpop.f32.mrb[80].mxu0  ;;  %9572 = vmatprep.subr.msk.bf16.mxu0 %vm12233_vm3, %v9570_v15 }
 0x207   : > { %16248 = vst [vmem:[#allocation113_spill] sm:$0xff] %v12386_v25  ;;  %v1508_v40 = vpop.f32.mrb[81].mxu0  ;;  %8764 = vmatmul.mubr.msk.f32.gmra.mrb[186].mxu0 %vm647_vm1, %v11979_v60  ;;  %v12392_v6 = vpop.f32.mrb[80].mxu1 }
 0x208   : > { %2684 = vmatprep.mubr.f32.mxu0 %v16195_v33  ;;  %v12395_v4 = vpop.f32.mrb[81].mxu1 }
 0x20a   : > { %v12399_v7 = vpop.f32.mrb[82].mxu0 }
 0x20b   : > { %16249 = vst [vmem:[#allocation114_spill] sm:$0xff] %v12399_v7  ;;  %v1514_v3 = vpop.f32.mrb[83].mxu0  ;;  %8765 = vmatmul.mubr.msk.f32.gmra.mrb[188].mxu0 %vm647_vm1, %v11996_v8  ;;  %v12403_v15 = vpop.f32.mrb[82].mxu1 }
 0x20c   : > { %v9578_v25 = vpack.c.bf16 %v1514_v3, %v1508_v40  ;;  %9574 = vmatpush1.bf16.xpose.msra.mxu0 %v9573_v22  ;;  %v9575_v60 = vpack.c.bf16 %v12403_v15, %v12392_v6  ;;  %v12407_v41 = vpop.f32.mrb[83].mxu1  ;;  %2690 = vmatprep.mubr.f32.mxu0 %v16195_v33 }
 0x20e   : > { %v12412_v2 = vpop.f32.mrb[84].mxu0  ;;  %9577 = vmatprep.subr.msk.bf16.mxu0 %vm12233_vm3, %v9575_v60 }
 0x20f   : > { %16250 = vst [vmem:[#allocation115_spill] sm:$0xff] %v12412_v2  ;;  %v12416_v8 = vpop.f32.mrb[85].mxu0  ;;  %v12418_v7 = vpop.f32.mrb[84].mxu1  ;;  %8766 = vmatmul.mubr.msk.f32.gmra.mrb[190].mxu0 %vm647_vm1, %v12013_v32 }
 0x210   : > { %16251 = vst [vmem:[#allocation116_spill] sm:$0xff] %v12416_v8  ;;  %16252 = vst [vmem:[#allocation117_spill] sm:$0xff] %v12418_v7  ;;  %v12424_v3 = vpop.f32.mrb[85].mxu1  ;;  %2696 = vmatprep.mubr.f32.mxu0 %v16195_v33 }
 0x211   : > { %16253 = vst [vmem:[#allocation118_spill] sm:$0xff] %v12424_v3 }
 0x212   : > { %v12427_v40 = vpop.f32.mrb[86].mxu0 }
 0x213   : > { %16254 = vst [vmem:[#allocation119_spill] sm:$0xff] %v12427_v40  ;;  %v12431_v60 = vpop.f32.mrb[87].mxu0  ;;  %v12433_v49 = vpop.f32.mrb[86].mxu1  ;;  %8767 = vmatmul.mubr.msk.f32.gmra.mrb[192].mxu0 %vm647_vm1, %v12030_v28 }
 0x214   : > { %16255 = vst [vmem:[#allocation120_spill] sm:$0xff] %v12431_v60  ;;  %16256 = vst [vmem:[#allocation121_spill] sm:$0xff] %v12433_v49  ;;  %9579 = vmatpush1.bf16.xpose.msra.mxu0 %v9578_v25  ;;  %v12441_v7 = vpop.f32.mrb[87].mxu1  ;;  %2702 = vmatprep.mubr.f32.mxu0 %v16195_v33 }
 0x215   : > { %16257 = vst [vmem:[#allocation122_spill] sm:$0xff] %v12441_v7 }
 0x216   : > { %v12446_v2 = vpop.f32.mrb[88].mxu0 }
 0x217   : > { %16258 = vst [vmem:[#allocation123_spill] sm:$0xff] %v12446_v2  ;;  %v12448_v40 = vpop.f32.mrb[89].mxu0  ;;  %v12450_v43 = vpop.f32.mrb[88].mxu1  ;;  %8768 = vmatmul.mubr.msk.f32.gmra.mrb[194].mxu0 %vm647_vm1, %v12047_v18 }
 0x218   : > { %16259 = vst [vmem:[#allocation124_spill] sm:$0xff] %v12448_v40  ;;  %16260 = vst [vmem:[#allocation125_spill] sm:$0xff] %v12450_v43  ;;  %8798 = vmatprep.mubr.msk.f32.mxu0 %vm2858_vm2, %v11789_v39  ;;  %v12458_v25 = vpop.f32.mrb[89].mxu1 }
 0x219   : > { %16261 = vst [vmem:[#allocation126_spill] sm:$0xff] %v12458_v25 }
 0x21a   : > { %v12460_v22 = vpop.f32.mrb[90].mxu0 }
 0x21b   : > { %16262 = vst [vmem:[#allocation127_spill] sm:$0xff] %v12460_v22  ;;  %v12464_v32 = vpop.f32.mrb[91].mxu0  ;;  %v12466_v3 = vpop.f32.mrb[90].mxu1  ;;  %3008 = vmatmul.mubr.f32.vlgmr.msra.gmra.mrb[196].mxu0 %v11787_v30 }
 0x21c   : > { %16263 = vst [vmem:[#allocation128_spill] sm:$0xff] %v12464_v32  ;;  %16264 = vst [vmem:[#allocation129_spill] sm:$0xff] %v12466_v3  ;;  %8799 = vmatprep.mubr.msk.f32.mxu0 %vm2858_vm2, %v11803_v16  ;;  %v12475_v7 = vpop.f32.mrb[91].mxu1 }
 0x21d   : > { %16265 = vst [vmem:[#allocation130_spill] sm:$0xff] %v12475_v7 }
 0x21e   : > { %v12479_v2 = vpop.f32.mrb[92].mxu0 }
 0x21f   : > { %16266 = vst [vmem:[#allocation131_spill] sm:$0xff] %v12479_v2  ;;  %v12481_v22 = vpop.f32.mrb[93].mxu0  ;;  %v12483_v43 = vpop.f32.mrb[92].mxu1  ;;  %3013 = vmatmul.mubr.f32.gmra.mrb[198].mxu0 %v11801_v45 }
 0x220   : > { %16267 = vst [vmem:[#allocation132_spill] sm:$0xff] %v12481_v22  ;;  %16268 = vst [vmem:[#allocation133_spill] sm:$0xff] %v12483_v43  ;;  %8800 = vmatprep.mubr.msk.f32.mxu0 %vm2858_vm2, %v11817_v24  ;;  %v12490_v18 = vpop.f32.mrb[93].mxu1 }
 0x221   : > { %16269 = vst [vmem:[#allocation134_spill] sm:$0xff] %v12490_v18 }
 0x222   : > { %v12492_v28 = vpop.f32.mrb[94].mxu0 }
 0x223   : > { %16270 = vst [vmem:[#allocation135_spill] sm:$0xff] %v12492_v28  ;;  %v12496_v25 = vpop.f32.mrb[95].mxu0  ;;  %v12498_v7 = vpop.f32.mrb[94].mxu1  ;;  %3018 = vmatmul.mubr.f32.gmra.mrb[200].mxu0 %v11815_v21 }
 0x224   : > { %16271 = vst [vmem:[#allocation136_spill] sm:$0xff] %v12496_v25  ;;  %16272 = vst [vmem:[#allocation137_spill] sm:$0xff] %v12498_v7  ;;  %8801 = vmatprep.mubr.msk.f32.mxu0 %vm2858_vm2, %v11831_v42  ;;  %v12507_v43 = vpop.f32.mrb[95].mxu1 }
 0x225   : > { %16273 = vst [vmem:[#allocation138_spill] sm:$0xff] %v12507_v43 }
 0x226   : > { %v12511_v2 = vpop.f32.mrb[96].mxu0 }
 0x227   : > { %16274 = vst [vmem:[#allocation139_spill] sm:$0xff] %v12511_v2  ;;  %v12513_v28 = vpop.f32.mrb[97].mxu0  ;;  %v12515_v40 = vpop.f32.mrb[96].mxu1  ;;  %3023 = vmatmul.mubr.f32.gmra.mrb[202].mxu0 %v11829_v35 }
 0x228   : > { %16275 = vst [vmem:[#allocation140_spill] sm:$0xff] %v12513_v28  ;;  %16276 = vst [vmem:[#allocation141_spill] sm:$0xff] %v12515_v40  ;;  %8802 = vmatprep.mubr.msk.f32.mxu0 %vm2858_vm2, %v11845_v1  ;;  %v12522_v30 = vpop.f32.mrb[97].mxu1 }
 0x229   : > { %16277 = vst [vmem:[#allocation142_spill] sm:$0xff] %v12522_v30 }
 0x22a   : > { %v12524_v45 = vpop.f32.mrb[98].mxu0 }
 0x22b   : > { %16278 = vst [vmem:[#allocation143_spill] sm:$0xff] %v12524_v45  ;;  %v12528_v18 = vpop.f32.mrb[99].mxu0  ;;  %v12530_v43 = vpop.f32.mrb[98].mxu1  ;;  %3028 = vmatmul.mubr.f32.gmra.mrb[204].mxu0 %v11843_v58 }
 0x22c   : > { %16279 = vst [vmem:[#allocation144_spill] sm:$0xff] %v12528_v18  ;;  %16280 = vst [vmem:[#allocation145_spill] sm:$0xff] %v12530_v43  ;;  %8803 = vmatprep.mubr.msk.f32.mxu0 %vm2858_vm2, %v11859_v19  ;;  %v12539_v40 = vpop.f32.mrb[99].mxu1 }
 0x22d   : > { %16281 = vst [vmem:[#allocation146_spill] sm:$0xff] %v12539_v40 }
 0x22e   : > { %v12543_v7 = vpop.f32.mrb[100].mxu0 }
 0x22f   : > { %16282 = vst [vmem:[#allocation147_spill] sm:$0xff] %v12543_v7  ;;  %v12545_v2 = vpop.f32.mrb[101].mxu0  ;;  %v12547_v45 = vpop.f32.mrb[100].mxu1  ;;  %3033 = vmatmul.mubr.f32.gmra.mrb[206].mxu0 %v11857_v12 }
 0x230   : > { %16283 = vst [vmem:[#allocation148_spill] sm:$0xff] %v12545_v2  ;;  %16284 = vst [vmem:[#allocation149_spill] sm:$0xff] %v12547_v45  ;;  %8804 = vmatprep.mubr.msk.f32.mxu0 %vm2858_vm2, %v11873_v53  ;;  %v12554_v21 = vpop.f32.mrb[101].mxu1 }
 0x231   : > { %16285 = vst [vmem:[#allocation150_spill] sm:$0xff] %v12554_v21 }
 0x232   : > { %v12556_v35 = vpop.f32.mrb[102].mxu0 }
 0x233   : > { %16286 = vst [vmem:[#allocation151_spill] sm:$0xff] %v12556_v35  ;;  %v12560_v30 = vpop.f32.mrb[103].mxu0  ;;  %v12562_v40 = vpop.f32.mrb[102].mxu1  ;;  %3038 = vmatmul.mubr.f32.gmra.mrb[208].mxu0 %v11871_v38 }
 0x234   : > { %16287 = vst [vmem:[#allocation152_spill] sm:$0xff] %v12560_v30  ;;  %16288 = vst [vmem:[#allocation153_spill] sm:$0xff] %v12562_v40  ;;  %8805 = vmatprep.mubr.msk.f32.mxu0 %vm2858_vm2, %v11887_v11  ;;  %v12571_v45 = vpop.f32.mrb[103].mxu1 }
 0x235   : > { %16289 = vst [vmem:[#allocation154_spill] sm:$0xff] %v12571_v45 }
 0x236   : > { %v12575_v43 = vpop.f32.mrb[104].mxu0 }
 0x237   : > { %16290 = vst [vmem:[#allocation155_spill] sm:$0xff] %v12575_v43  ;;  %v12577_v7 = vpop.f32.mrb[105].mxu0  ;;  %v12579_v35 = vpop.f32.mrb[104].mxu1  ;;  %3043 = vmatmul.mubr.f32.gmra.mrb[210].mxu0 %v11885_v5 }
 0x238   : > { %16291 = vst [vmem:[#allocation156_spill] sm:$0xff] %v12577_v7  ;;  %16292 = vst [vmem:[#allocation157_spill] sm:$0xff] %v12579_v35  ;;  %8806 = vmatprep.mubr.msk.f32.mxu0 %vm2858_vm2, %v11901_v29  ;;  %v12586_v58 = vpop.f32.mrb[105].mxu1 }
 0x239   : > { %16293 = vst [vmem:[#allocation158_spill] sm:$0xff] %v12586_v58 }
 0x23a   : > { %v12588_v12 = vpop.f32.mrb[106].mxu0 }
 0x23b   : > { %16294 = vst [vmem:[#allocation159_spill] sm:$0xff] %v12588_v12  ;;  %v12592_v21 = vpop.f32.mrb[107].mxu0  ;;  %v12594_v45 = vpop.f32.mrb[106].mxu1  ;;  %3048 = vmatmul.mubr.f32.gmra.mrb[212].mxu0 %v11899_v48 }
 0x23c   : > { %16295 = vst [vmem:[#allocation160_spill] sm:$0xff] %v12592_v21  ;;  %16296 = vst [vmem:[#allocation161_spill] sm:$0xff] %v12594_v45  ;;  %8807 = vmatprep.mubr.msk.f32.mxu0 %vm2858_vm2, %v11919_v62  ;;  %v12603_v35 = vpop.f32.mrb[107].mxu1 }
 0x23d   : > { %16297 = vst [vmem:[#allocation162_spill] sm:$0xff] %v12603_v35 }
 0x23e   : > { %v12607_v40 = vpop.f32.mrb[108].mxu0 }
 0x23f   : > { %16298 = vst [vmem:[#allocation163_spill] sm:$0xff] %v12607_v40  ;;  %v12609_v43 = vpop.f32.mrb[109].mxu0  ;;  %v12611_v12 = vpop.f32.mrb[108].mxu1  ;;  %3053 = vmatmul.mubr.f32.gmra.mrb[214].mxu0 %v11916_v57 }
 0x240   : > { %16299 = vst [vmem:[#allocation164_spill] sm:$0xff] %v12609_v43  ;;  %16300 = vst [vmem:[#allocation165_spill] sm:$0xff] %v12611_v12  ;;  %8808 = vmatprep.mubr.msk.f32.mxu0 %vm2858_vm2, %v11941_v14  ;;  %v12618_v38 = vpop.f32.mrb[109].mxu1 }
 0x241   : > { %16301 = vst [vmem:[#allocation166_spill] sm:$0xff] %v12618_v38 }
 0x242   : > { %v12620_v5 = vpop.f32.mrb[110].mxu0 }
 0x243   : > { %16302 = vst [vmem:[#allocation167_spill] sm:$0xff] %v12620_v5  ;;  %v12624_v58 = vpop.f32.mrb[111].mxu0  ;;  %v12626_v35 = vpop.f32.mrb[110].mxu1  ;;  %3058 = vmatmul.mubr.f32.gmra.mrb[216].mxu0 %v11938_v10 }
 0x244   : > { %16303 = vst [vmem:[#allocation168_spill] sm:$0xff] %v12624_v58  ;;  %16304 = vst [vmem:[#allocation169_spill] sm:$0xff] %v12626_v35  ;;  %8809 = vmatprep.mubr.msk.f32.mxu0 %vm2858_vm2, %v11959_v37  ;;  %v12635_v12 = vpop.f32.mrb[111].mxu1 }
 0x245   : > { %16305 = vst [vmem:[#allocation170_spill] sm:$0xff] %v12635_v12 }
 0x246   : > { %v12639_v45 = vpop.f32.mrb[112].mxu0 }
 0x247   : > { %16306 = vst [vmem:[#allocation171_spill] sm:$0xff] %v12639_v45  ;;  %v12641_v40 = vpop.f32.mrb[113].mxu0  ;;  %3063 = vmatmul.mubr.f32.gmra.mrb[218].mxu0 %v11957_v27  ;;  %v2179_v10 = vpop.f32.mrb[112].mxu1 }
 0x248   : > { %16307 = vst [vmem:[#allocation172_spill] sm:$0xff] %v12641_v40  ;;  %8810 = vmatprep.mubr.msk.f32.mxu0 %vm2858_vm2, %v11976_v55  ;;  %v12648_v48 = vpop.f32.mrb[113].mxu1 }
 0x24a   : > { %v12650_v35 = vpop.f32.mrb[114].mxu0 }
 0x24b   : > { %16308 = vst [vmem:[#allocation173_spill] sm:$0xff] %v12650_v35  ;;  %v12654_v38 = vpop.f32.mrb[115].mxu0  ;;  %3068 = vmatmul.mubr.f32.gmra.mrb[220].mxu0 %v11974_v52  ;;  %v2185_v12 = vpop.f32.mrb[114].mxu1 }
 0x24c   : > { %16309 = vst [vmem:[#allocation174_spill] sm:$0xff] %v12654_v38  ;;  %8811 = vmatprep.mubr.msk.f32.mxu0 %vm2858_vm2, %v11993_v26  ;;  %v9582_v57 = vpack.c.bf16 %v2185_v12, %v2179_v10  ;;  %v12661_v40 = vpop.f32.mrb[115].mxu1 }
 0x24d   : > { %16310 = vst [vmem:[#allocation175_spill] sm:$0xff] %v12661_v40  ;;  %v12663_v5 = vpop.permute.xlu1 %10234  ;;  %v9580_v43 = vpack.c.bf16 %v12661_v40, %v12648_v48 }
 0x24e   : > { %v12667_v63 = vpop.f32.mrb[116].mxu0  ;;  %v15923_v45 = vunpack.i.h.bf16 %v12663_v5  ;;  %v10236_v52 = vunpack.i.l.bf16 %v12663_v5 }
 0x24f   : > { %16311 = vst [vmem:[#allocation176_spill] sm:$0xff] %v12667_v63  ;;  %v12671_v58 = vpop.f32.mrb[117].mxu0  ;;  %3073 = vmatmul.mubr.f32.gmra.mrb[222].mxu0 %v11991_v51  ;;  %v2191_v27 = vpop.f32.mrb[116].mxu1  ;;  %9581 = vmatprep.subr.bf16.mxu1 %v9580_v43 }
 0x250   : > { %16312 = vst [vmem:[#allocation177_spill] sm:$0xff] %v12671_v58  ;;  %v12676_v10 = vpop.f32.mrb[117].mxu1  ;;  %9583 = vmatpush1.bf16.msra.mxu1 %v9582_v57  ;;  %4229 = vmatprep.mubr.f32.mxu0 %v16195_v33  ;;  %v12684_v38 = vsel %vm2858_vm2, %v10236_v52, %v15923_v45 }
 0x251   : > { %16313 = vst [vmem:[#allocation178_spill] sm:$0xff] %v12676_v10  ;;  %v12679_v35 = vpop.permute.xlu0 %10239 }
 0x252   : > { %v15934_v7 = vunpack.i.h.bf16 %v12679_v35  ;;  %v10241_v51 = vunpack.i.l.bf16 %v12679_v35  ;;  %v12688_v43 = vpop.f32.mrb[118].mxu0 }
 0x253   : > { %16314 = vst [vmem:[#allocation179_spill] sm:$0xff] %v12688_v43  ;;  %v12692_v58 = vpop.f32.mrb[119].mxu0  ;;  %v2197_v57 = vpop.f32.mrb[118].mxu1 }
 0x254   : > { %16315 = vst [vmem:[#allocation180_spill] sm:$0xff] %v12692_v58  ;;  %v12697_v21 = vsel %vm2858_vm2, %v10241_v51, %v15934_v7  ;;  %v9586_v45 = vpack.c.bf16 %v2197_v57, %v2191_v27  ;;  %v12701_v2 = vpop.f32.mrb[119].mxu1 }
 0x255   : > { %16316 = vst [vmem:[#allocation181_spill] sm:$0xff] %v12701_v2  ;;  %v9584_v30 = vpack.c.bf16 %v12701_v2, %v12676_v10 }
 0x256   : > { %v12707_v63 = vpop.f32.mrb[120].mxu0 }
 0x257   : > { %16317 = vst [vmem:[#allocation182_spill] sm:$0xff] %v12707_v63  ;;  %v12709_v28 = vpop.f32.mrb[121].mxu0  ;;  %v2203_v18 = vpop.f32.mrb[120].mxu1  ;;  %9585 = vmatprep.subr.bf16.mxu1 %v9584_v30 }
 0x258   : > { %16318 = vst [vmem:[#allocation183_spill] sm:$0xff] %v12709_v28  ;;  %v12713_v7 = vpop.f32.mrb[121].mxu1  ;;  %9587 = vmatpush1.bf16.msra.mxu1 %v9586_v45 }
 0x25a   : > { %v12715_v27 = vpop.f32.mrb[122].mxu0 }
 0x25b   : > { %16319 = vst [vmem:[#allocation184_spill] sm:$0xff] %v12715_v27  ;;  %v12719_v52 = vpop.f32.mrb[123].mxu0  ;;  %v2209_v12 = vpop.f32.mrb[122].mxu1 }
 0x25c   : > { %16320 = vst [vmem:[#allocation185_spill] sm:$0xff] %v12719_v52  ;;  %v9590_v58 = vpack.c.bf16 %v2209_v12, %v2203_v18  ;;  %v12723_v25 = vpop.f32.mrb[123].mxu1 }
 0x25d   : > { %16321 = vst [vmem:[#allocation186_spill] sm:$0xff] %v12723_v25  ;;  %v9588_v30 = vpack.c.bf16 %v12723_v25, %v12713_v7 }
 0x25e   : > { %v12727_v51 = vpop.f32.mrb[124].mxu0 }
 0x25f   : > { %16322 = vst [vmem:[#allocation187_spill] sm:$0xff] %v12727_v51  ;;  %v12729_v45 = vpop.f32.mrb[125].mxu0  ;;  %v2215_v28 = vpop.f32.mrb[124].mxu1  ;;  %9589 = vmatprep.subr.bf16.mxu1 %v9588_v30 }
 0x260   : > { %16323 = vst [vmem:[#allocation188_spill] sm:$0xff] %v12729_v45  ;;  %v12733_v63 = vpop.f32.mrb[125].mxu1  ;;  %9591 = vmatpush1.bf16.msra.mxu1 %v9590_v58 }
 0x261   : > { %16324 = vst [vmem:[#allocation189_spill] sm:$0xff] %v12733_v63 }
 0x262   : > { %v12735_v22 = vpop.f32.mrb[126].mxu0 }
 0x263   : > { %16325 = vst [vmem:[#allocation190_spill] sm:$0xff] %v12735_v22  ;;  %v12739_v12 = vpop.f32.mrb[127].mxu0  ;;  %v2221_v43 = vpop.f32.mrb[126].mxu1 }
 0x264   : > { %16326 = vst [vmem:[#allocation191_spill] sm:$0xff] %v12739_v12  ;;  %v9594_v27 = vpack.c.bf16 %v2221_v43, %v2215_v28  ;;  %v12743_v32 = vpop.f32.mrb[127].mxu1 }
 0x265   : > { %16327 = vst [vmem:[#allocation192_spill] sm:$0xff] %v12743_v32  ;;  %v9592_v30 = vpack.c.bf16 %v12743_v32, %v12733_v63 }
 0x266   : > { %v12747_v57 = vpop.f32.mrb[128].mxu0 }
 0x267   : > { %16328 = vst [vmem:[#allocation193_spill] sm:$0xff] %v12747_v57  ;;  %v12749_v58 = vpop.f32.mrb[129].mxu0  ;;  %v2227_v45 = vpop.f32.mrb[128].mxu1  ;;  %9593 = vmatprep.subr.bf16.mxu1 %v9592_v30 }
 0x268   : > { %16329 = vst [vmem:[#allocation194_spill] sm:$0xff] %v12749_v58  ;;  %v12753_v51 = vpop.f32.mrb[129].mxu1  ;;  %9595 = vmatpush1.bf16.msra.mxu1 %v9594_v27 }
 0x26a   : > { %v12755_v3 = vpop.f32.mrb[130].mxu0 }
 0x26b   : > { %16330 = vst [vmem:[#allocation195_spill] sm:$0xff] %v12755_v3  ;;  %v12759_v43 = vpop.f32.mrb[131].mxu0  ;;  %v2233_v52 = vpop.f32.mrb[130].mxu1 }
 0x26c   : > { %16331 = vst [vmem:[#allocation196_spill] sm:$0xff] %v12759_v43  ;;  %v9598_v22 = vpack.c.bf16 %v2233_v52, %v2227_v45  ;;  %v12763_v49 = vpop.f32.mrb[131].mxu1 }
 0x26d   : > { %16332 = vst [vmem:[#allocation197_spill] sm:$0xff] %v12763_v49  ;;  %v9596_v30 = vpack.c.bf16 %v12763_v49, %v12753_v51 }
 0x26e   : > { %v12767_v18 = vpop.f32.mrb[132].mxu0 }
 0x26f   : > { %16333 = vst [vmem:[#allocation198_spill] sm:$0xff] %v12767_v18  ;;  %v12769_v27 = vpop.f32.mrb[133].mxu0  ;;  %v2239_v58 = vpop.f32.mrb[132].mxu1  ;;  %9597 = vmatprep.subr.bf16.mxu1 %v9596_v30 }
 0x270   : > { %16334 = vst [vmem:[#allocation199_spill] sm:$0xff] %v12769_v27  ;;  %v12773_v57 = vpop.f32.mrb[133].mxu1  ;;  %9599 = vmatpush1.bf16.msra.mxu1 %v9598_v22 }
 0x271   : > { %16335 = vst [vmem:[#allocation200_spill] sm:$0xff] %v12773_v57 }
 0x272   : > { %v12775_v8 = vpop.f32.mrb[134].mxu0 }
 0x273   : > { %16336 = vst [vmem:[#allocation201_spill] sm:$0xff] %v12775_v8  ;;  %v12779_v45 = vpop.f32.mrb[135].mxu0  ;;  %v2245_v12 = vpop.f32.mrb[134].mxu1 }
 0x274   : > { %16337 = vst [vmem:[#allocation202_spill] sm:$0xff] %v12779_v45  ;;  %v9602_v3 = vpack.c.bf16 %v2245_v12, %v2239_v58  ;;  %v12783_v60 = vpop.f32.mrb[135].mxu1  ;;  %v16348_v12 = vunpack.i.h.bf16 %v12663_v5 }
 0x275   : > { %16338 = vst [vmem:[#allocation203_spill] sm:$0xff] %v12783_v60  ;;  %v9600_v30 = vpack.c.bf16 %v12783_v60, %v12773_v57 }
 0x276   : > { %v12787_v28 = vpop.f32.mrb[136].mxu0 }
 0x277   : > { %16339 = vst [vmem:[#allocation204_spill] sm:$0xff] %v12787_v28  ;;  %v12789_v22 = vpop.f32.mrb[137].mxu0  ;;  %v2251_v27 = vpop.f32.mrb[136].mxu1  ;;  %9601 = vmatprep.subr.bf16.mxu1 %v9600_v30  ;;  %v16345_v30 = vmov 0 }
 0x278   : > { %16340 = vst [vmem:[#allocation205_spill] sm:$0xff] %v12789_v22  ;;  %v12793_v18 = vpop.f32.mrb[137].mxu1  ;;  %9603 = vmatpush1.bf16.msra.mxu1 %v9602_v3  ;;  %v16346_v30 = vsel %vm12806_vm5, 4294967295, %v16345_v30 }
 0x279   : > { %16341 = vst [vmem:[#allocation206_spill] sm:$0xff] %v12793_v18  ;;  %16347 = vst [vmem:[#allocation210_spill] sm:$0xff] %v16346_v30 }
 0x27a   : > { %v12795_v26 = vpop.f32.mrb[138].mxu0 }
 0x27b   : > { %16342 = vst [vmem:[#allocation207_spill] sm:$0xff] %v12795_v26  ;;  %v2257_v58 = vpop.f32.mrb[138].mxu1  ;;  %v12799_v43 = vpop.f32.mrb[139].mxu0 }
 0x27c   : > { %16343 = vst [vmem:[#allocation208_spill] sm:$0xff] %v12799_v43  ;;  %v9607_v45 = vpack.c.bf16 %v2257_v58, %v2251_v27  ;;  %v12803_v55 = vpop.f32.mrb[139].mxu1  ;;  %v16349_v27 = vunpack.i.h.bf16 %v12679_v35 }
 0x27d   : > { %16344 = vst [vmem:[#allocation209_spill] sm:$0xff] %v12803_v55  ;;  %v9604_v3 = vpack.c.bf16 %v12803_v55, %v12793_v18 }
 0x27e   : > { %v12812_v52 = vpop.f32.mrb[140].mxu0  ;;  %v9610_v58 = vpack.c.bf16 %v16349_v27, %v16348_v12 }
 0x27f   : > { %9606 = vmatprep.subr.msk.bf16.mxu1 %vm12806_vm5, %v9604_v3  ;;  %v12822_v43 = vpop.f32.mrb[141].mxu0  ;;  %v12824_v22 = vpop.f32.mrb[140].mxu1 }
 0x280   : > { %16350 = vst [vmem:[#allocation211_spill] sm:$0xff] %v12822_v43  ;;  %16351 = vst [vmem:[#allocation212_spill] sm:$0xff] %v12824_v22  ;;  %9609 = vmatpush1.bf16.msk.msra.mxu1 %vm12806_vm5, %v9607_v45  ;;  %v12828_v28 = vpop.f32.mrb[141].mxu1 }
 0x281   : > { %16352 = vst [vmem:[#allocation213_spill] sm:$0xff] %v12828_v28  ;;  %9612 = vmatprep.subr.msk.bf16.mxu1 %vm12233_vm3, %v9610_v58 }
 0x282   : > { %v12834_v5 = vpop.f32.mrb[142].mxu0 }
 0x283   : > { %16353 = vst [vmem:[#allocation214_spill] sm:$0xff] %v12834_v5  ;;  %v12838_v3 = vpop.f32.mrb[143].mxu0  ;;  %v12840_v27 = vpop.f32.mrb[142].mxu1 }
 0x284   : > { %16354 = vst [vmem:[#allocation215_spill] sm:$0xff] %v12838_v3  ;;  %16355 = vst [vmem:[#allocation216_spill] sm:$0xff] %v12840_v27  ;;  %v12844_v8 = vpop.f32.mrb[143].mxu1 }
 0x285   : > { %16356 = vst [vmem:[#allocation217_spill] sm:$0xff] %v12844_v8 }
 0x286   : > { %v12848_v26 = vpop.f32.mrb[144].mxu0 }
 0x287   : > { %16357 = vst [vmem:[#allocation218_spill] sm:$0xff] %v12848_v26  ;;  %v12852_v28 = vpop.f32.mrb[145].mxu0  ;;  %v12854_v12 = vpop.f32.mrb[144].mxu1 }
 0x288   : > { %16358 = vst [vmem:[#allocation219_spill] sm:$0xff] %v12852_v28  ;;  %16359 = vst [vmem:[#allocation220_spill] sm:$0xff] %v12854_v12  ;;  %v12856_v30 = vpop.f32.mrb[145].mxu1 }
 0x289   : > { %16360 = vst [vmem:[#allocation221_spill] sm:$0xff] %v12856_v30 }
 0x28a   : > { %v12860_v45 = vpop.f32.mrb[146].mxu0 }
 0x28b   : > { %16361 = vst [vmem:[#allocation222_spill] sm:$0xff] %v12860_v45  ;;  %v12864_v58 = vpop.f32.mrb[147].mxu0  ;;  %v12866_v8 = vpop.f32.mrb[146].mxu1 }
 0x28c   : > { %16362 = vst [vmem:[#allocation223_spill] sm:$0xff] %v12864_v58  ;;  %16363 = vst [vmem:[#allocation224_spill] sm:$0xff] %v12866_v8  ;;  %v12870_v3 = vpop.f32.mrb[147].mxu1 }
 0x28d   : > { %16364 = vst [vmem:[#allocation225_spill] sm:$0xff] %v12870_v3 }
 0x28e   : > { %v12874_v10 = vpop.f32.mrb[148].mxu0 }
 0x28f   : > { %v12878_v30 = vpop.f32.mrb[149].mxu0  ;;  %v12880_v43 = vpop.f32.mrb[148].mxu1 }
 0x290   : > { %16365 = vst [vmem:[#allocation226_spill] sm:$0xff] %v12878_v30  ;;  %16366 = vst [vmem:[#allocation227_spill] sm:$0xff] %v12880_v43  ;;  %v12882_v12 = vpop.f32.mrb[149].mxu1 }
 0x291   : > { %16367 = vst [vmem:[#allocation228_spill] sm:$0xff] %v12882_v12 }
 0x292   : > { %v12886_v35 = vpop.f32.mrb[150].mxu0 }
 0x293   : > { %16368 = vst [vmem:[#allocation229_spill] sm:$0xff] %v12886_v35  ;;  %v12890_v27 = vpop.f32.mrb[151].mxu0  ;;  %v12892_v3 = vpop.f32.mrb[150].mxu1 }
 0x294   : > { %16369 = vst [vmem:[#allocation230_spill] sm:$0xff] %v12890_v27  ;;  %16370 = vst [vmem:[#allocation231_spill] sm:$0xff] %v12892_v3  ;;  %v12896_v58 = vpop.f32.mrb[151].mxu1 }
 0x295   : > { %16371 = vst [vmem:[#allocation232_spill] sm:$0xff] %v12896_v58 }
 0x296   : > { %v12900_v45 = vpop.f32.mrb[152].mxu0 }
 0x297   : > { %16372 = vst [vmem:[#allocation233_spill] sm:$0xff] %v12900_v45  ;;  %v12904_v12 = vpop.f32.mrb[153].mxu0  ;;  %v12906_v28 = vpop.f32.mrb[152].mxu1 }
 0x298   : > { %16373 = vst [vmem:[#allocation234_spill] sm:$0xff] %v12904_v12  ;;  %16374 = vst [vmem:[#allocation235_spill] sm:$0xff] %v12906_v28  ;;  %v12908_v43 = vpop.f32.mrb[153].mxu1 }
 0x299   : > { %16375 = vst [vmem:[#allocation236_spill] sm:$0xff] %v12908_v43 }
 0x29a   : > { %v12912_v22 = vpop.f32.mrb[154].mxu0 }
 0x29b   : > { %16376 = vst [vmem:[#allocation237_spill] sm:$0xff] %v12912_v22  ;;  %v12916_v8 = vpop.f32.mrb[155].mxu0  ;;  %v12918_v58 = vpop.f32.mrb[154].mxu1 }
 0x29c   : > { %16377 = vst [vmem:[#allocation238_spill] sm:$0xff] %v12916_v8  ;;  %16378 = vst [vmem:[#allocation239_spill] sm:$0xff] %v12918_v58  ;;  %v12922_v27 = vpop.f32.mrb[155].mxu1 }
 0x29d   : > { %16379 = vst [vmem:[#allocation240_spill] sm:$0xff] %v12922_v27 }
 0x29e   : > { %v12926_v63 = vpop.f32.mrb[156].mxu0 }
 0x29f   : > { %v12930_v43 = vpop.f32.mrb[157].mxu0  ;;  %v12932_v30 = vpop.f32.mrb[156].mxu1 }
 0x2a0   : > { %16380 = vst [vmem:[#allocation241_spill] sm:$0xff] %v12930_v43  ;;  %16381 = vst [vmem:[#allocation242_spill] sm:$0xff] %v12932_v30  ;;  %v12934_v28 = vpop.f32.mrb[157].mxu1 }
 0x2a1   : > { %16382 = vst [vmem:[#allocation243_spill] sm:$0xff] %v12934_v28 }
 0x2a2   : > { %v12938_v2 = vpop.f32.mrb[158].mxu0 }
 0x2a3   : > { %16383 = vst [vmem:[#allocation244_spill] sm:$0xff] %v12938_v2  ;;  %v12942_v3 = vpop.f32.mrb[159].mxu0  ;;  %v12944_v27 = vpop.f32.mrb[158].mxu1 }
 0x2a4   : > { %16384 = vst [vmem:[#allocation245_spill] sm:$0xff] %v12942_v3  ;;  %16385 = vst [vmem:[#allocation246_spill] sm:$0xff] %v12944_v27  ;;  %v12948_v8 = vpop.f32.mrb[159].mxu1 }
 0x2a5   : > { %16386 = vst [vmem:[#allocation247_spill] sm:$0xff] %v12948_v8 }
 0x2a6   : > { %v12952_v22 = vpop.f32.mrb[160].mxu0 }
 0x2a7   : > { %16387 = vst [vmem:[#allocation248_spill] sm:$0xff] %v12952_v22  ;;  %v12956_v28 = vpop.f32.mrb[161].mxu0  ;;  %v12958_v12 = vpop.f32.mrb[160].mxu1 }
 0x2a8   : > { %16388 = vst [vmem:[#allocation249_spill] sm:$0xff] %v12956_v28  ;;  %16389 = vst [vmem:[#allocation250_spill] sm:$0xff] %v12958_v12  ;;  %v12960_v49 = vpop.f32.mrb[161].mxu1 }
 0x2a9   : > { %16390 = vst [vmem:[#allocation251_spill] sm:$0xff] %v12960_v49 }
 0x2aa   : > { %v12964_v25 = vpop.f32.mrb[162].mxu0 }
 0x2ab   : > { %16391 = vst [vmem:[#allocation252_spill] sm:$0xff] %v12964_v25  ;;  %v12968_v58 = vpop.f32.mrb[163].mxu0  ;;  %v12970_v8 = vpop.f32.mrb[162].mxu1 }
 0x2ac   : > { %16392 = vst [vmem:[#allocation253_spill] sm:$0xff] %v12968_v58  ;;  %16393 = vst [vmem:[#allocation254_spill] sm:$0xff] %v12970_v8  ;;  %v12974_v3 = vpop.f32.mrb[163].mxu1 }
 0x2ad   : > { %16394 = vst [vmem:[#allocation255_spill] sm:$0xff] %v12974_v3 }
 0x2ae   : > { %v12978_v22 = vpop.f32.mrb[164].mxu0 }
 0x2af   : > { %16395 = vst [vmem:[#allocation256_spill] sm:$0xff] %v12978_v22  ;;  %v12982_v49 = vpop.f32.mrb[165].mxu0  ;;  %v12984_v43 = vpop.f32.mrb[164].mxu1 }
 0x2b0   : > { %16396 = vst [vmem:[#allocation257_spill] sm:$0xff] %v12982_v49  ;;  %16397 = vst [vmem:[#allocation258_spill] sm:$0xff] %v12984_v43  ;;  %v12986_v60 = vpop.f32.mrb[165].mxu1 }
 0x2b1   : > { %16398 = vst [vmem:[#allocation259_spill] sm:$0xff] %v12986_v60 }
 0x2b2   : > { %v12990_v32 = vpop.f32.mrb[166].mxu0 }
 0x2b3   : > { %16399 = vst [vmem:[#allocation260_spill] sm:$0xff] %v12990_v32  ;;  %v12994_v57 = vpop.f32.mrb[167].mxu0  ;;  %v12996_v3 = vpop.f32.mrb[166].mxu1 }
 0x2b4   : > { %16400 = vst [vmem:[#allocation261_spill] sm:$0xff] %v12994_v57  ;;  %16401 = vst [vmem:[#allocation262_spill] sm:$0xff] %v12996_v3  ;;  %v13002_v18 = vpop.f32.mrb[167].mxu1 }
 0x2b5   : > { %16402 = vst [vmem:[#allocation263_spill] sm:$0xff] %v13002_v18 }
 0x2b6   : > { %v13006_v60 = vpop.f32.mrb[168].mxu0 }
 0x2b7   : > { %16403 = vst [vmem:[#allocation264_spill] sm:$0xff] %v13006_v60  ;;  %v13008_v22 = vpop.f32.mrb[168].mxu1  ;;  %v13010_v28 = vpop.f32.mrb[169].mxu0 }
 0x2b8   : > { %16404 = vst [vmem:[#allocation265_spill] sm:$0xff] %v13008_v22  ;;  %16405 = vst [vmem:[#allocation266_spill] sm:$0xff] %v13010_v28  ;;  %v13012_v55 = vpop.f32.mrb[169].mxu1 }
 0x2b9   : > { %16406 = vst [vmem:[#allocation267_spill] sm:$0xff] %v13012_v55 }
 0x2ba   : > { %v13016_v2 = vpop.f32.mrb[170].mxu0 }
 0x2bb   : > { %16407 = vst [vmem:[#allocation268_spill] sm:$0xff] %v13016_v2  ;;  %v13020_v49 = vpop.f32.mrb[171].mxu0  ;;  %v13022_v57 = vpop.f32.mrb[170].mxu1 }
 0x2bc   : > { %16408 = vst [vmem:[#allocation269_spill] sm:$0xff] %v13020_v49  ;;  %16409 = vst [vmem:[#allocation270_spill] sm:$0xff] %v13022_v57  ;;  %v13026_v18 = vpop.f32.mrb[171].mxu1 }
 0x2bd   : > { %16410 = vst [vmem:[#allocation271_spill] sm:$0xff] %v13026_v18 }
 0x2be   : > { %v13030_v3 = vpop.f32.mrb[172].mxu0 }
 0x2bf   : > { %16411 = vst [vmem:[#allocation272_spill] sm:$0xff] %v13030_v3  ;;  %v13032_v32 = vpop.f32.mrb[173].mxu0 }
 0x2c0   : > { %16412 = vst [vmem:[#allocation273_spill] sm:$0xff] %v13032_v32  ;;  %v13036_v58 = vpop.f32.mrb[172].mxu1 }
 0x2c1   : > { %16413 = vst [vmem:[#allocation274_spill] sm:$0xff] %v13036_v58  ;;  %v13038_v60 = vpop.f32.mrb[173].mxu1 }
 0x2c2   : > { %16414 = vst [vmem:[#allocation275_spill] sm:$0xff] %v13038_v60  ;;  %v13040_v2 = vpop.f32.mrb[174].mxu0 }
 0x2c3   : > { %16415 = vst [vmem:[#allocation276_spill] sm:$0xff] %v13040_v2  ;;  %v13044_v22 = vpop.f32.mrb[175].mxu0 }
 0x2c4   : > { %16416 = vst [vmem:[#allocation277_spill] sm:$0xff] %v13044_v22  ;;  %v13048_v28 = vpop.f32.mrb[174].mxu1 }
 0x2c5   : > { %16417 = vst [vmem:[#allocation278_spill] sm:$0xff] %v13048_v28  ;;  %v13052_v55 = vpop.f32.mrb[175].mxu1 }
 0x2c6   : > { %16418 = vst [vmem:[#allocation279_spill] sm:$0xff] %v13052_v55  ;;  %v13054_v18 = vpop.f32.mrb[176].mxu0  ;;  %v2845_v55 = vld [vmem:[#allocation7 + $0x8] sm:$0xff] }
 0x2c7   : > { %16419 = vst [vmem:[#allocation280_spill] sm:$0xff] %v13054_v18  ;;  %v13056_v8 = vpop.f32.mrb[177].mxu0 }
 0x2c8   : > { %16420 = vst [vmem:[#allocation281_spill] sm:$0xff] %v13056_v8  ;;  %v13060_v25 = vpop.f32.mrb[176].mxu1 }
 0x2c9   : > { %16421 = vst [vmem:[#allocation282_spill] sm:$0xff] %v13060_v25  ;;  %v13062_v3 = vpop.f32.mrb[177].mxu1 }
 0x2ca   : > { %16422 = vst [vmem:[#allocation283_spill] sm:$0xff] %v13062_v3  ;;  %v13064_v2 = vpop.f32.mrb[178].mxu0 }
 0x2cb   : > { %16423 = vst [vmem:[#allocation284_spill] sm:$0xff] %v13064_v2  ;;  %v13068_v57 = vpop.f32.mrb[179].mxu0 }
 0x2cc   : > { %16424 = vst [vmem:[#allocation285_spill] sm:$0xff] %v13068_v57  ;;  %v13072_v32 = vpop.f32.mrb[178].mxu1 }
 0x2cd   : > { %16425 = vst [vmem:[#allocation286_spill] sm:$0xff] %v13072_v32  ;;  %v13076_v12 = vpop.f32.mrb[179].mxu1  ;;  %v2844_v32 = vld [vmem:[#allocation7] sm:$0xff] }
 0x2ce   : > { %16426 = vst [vmem:[#allocation287_spill] sm:$0xff] %v13076_v12  ;;  %v13078_v60 = vpop.f32.mrb[180].mxu0 }
 0x2cf   : > { %16427 = vst [vmem:[#allocation288_spill] sm:$0xff] %v13078_v60  ;;  %v13080_v27 = vpop.f32.mrb[181].mxu0 }
 0x2d0   : > { %16428 = vst [vmem:[#allocation289_spill] sm:$0xff] %v13080_v27  ;;  %v13084_v43 = vpop.f32.mrb[180].mxu1 }
 0x2d1   : > { %16429 = vst [vmem:[#allocation290_spill] sm:$0xff] %v13084_v43  ;;  %v13086_v18 = vpop.f32.mrb[181].mxu1 }
 0x2d2   : > { %16430 = vst [vmem:[#allocation291_spill] sm:$0xff] %v13086_v18  ;;  %v13088_v2 = vpop.f32.mrb[182].mxu0 }
 0x2d3   : > { %16431 = vst [vmem:[#allocation292_spill] sm:$0xff] %v13088_v2  ;;  %v13092_v58 = vpop.f32.mrb[183].mxu0 }
 0x2d4   : > { %16432 = vst [vmem:[#allocation293_spill] sm:$0xff] %v13092_v58 }
 0x2d6   : > { %v13098_v57 = vpop.f32.mrb[184].mxu0 }
 0x2d7   : > { %16433 = vst [vmem:[#allocation294_spill] sm:$0xff] %v13098_v57  ;;  %v13100_v30 = vpop.f32.mrb[185].mxu0 }
 0x2d8   : > { %16434 = vst [vmem:[#allocation295_spill] sm:$0xff] %v13100_v30 }
 0x2da   : > { %v13104_v45 = vpop.f32.mrb[186].mxu0 }
 0x2db   : > { %16435 = vst [vmem:[#allocation296_spill] sm:$0xff] %v13104_v45  ;;  %v13108_v60 = vpop.f32.mrb[187].mxu0 }
 0x2dc   : > { %16436 = vst [vmem:[#allocation297_spill] sm:$0xff] %v13108_v60 }
 0x2de   : > { %v13114_v28 = vpop.f32.mrb[188].mxu0 }
 0x2df   : > { %16437 = vst [vmem:[#allocation298_spill] sm:$0xff] %v13114_v28  ;;  %v13116_v2 = vpop.f32.mrb[189].mxu0 }
 0x2e0   : > { %16438 = vst [vmem:[#allocation299_spill] sm:$0xff] %v13116_v2 }
 0x2e2   : > { %v13120_v3 = vpop.f32.mrb[190].mxu0 }
 0x2e3   : > { %16439 = vst [vmem:[#allocation300_spill] sm:$0xff] %v13120_v3  ;;  %v13124_v57 = vpop.f32.mrb[191].mxu0 }
 0x2e4   : > { %16440 = vst [vmem:[#allocation301_spill] sm:$0xff] %v13124_v57 }
 0x2e6   : > { %v13130_v25 = vpop.f32.mrb[192].mxu0 }
 0x2e7   : > { %16441 = vst [vmem:[#allocation302_spill] sm:$0xff] %v13130_v25  ;;  %v13132_v45 = vpop.f32.mrb[193].mxu0 }
 0x2e8   : > { %16442 = vst [vmem:[#allocation303_spill] sm:$0xff] %v13132_v45 }
 0x2ea   : > { %v13136_v12 = vpop.f32.mrb[194].mxu0 }
 0x2eb   : > { %16443 = vst [vmem:[#allocation304_spill] sm:$0xff] %v13136_v12  ;;  %v13140_v28 = vpop.f32.mrb[195].mxu0  ;;  %v2846_v12 = vld [vmem:[#allocation7 + $0x10] sm:$0xff] }
 0x2ec   : > { %16444 = vst [vmem:[#allocation305_spill] sm:$0xff] %v13140_v28 }
 0x2ee   : > { %v3009_v3 = vpop.f32.mrb[196].mxu0 }
 0x2ef   : > { %v13146_v2 = vadd.f32 %v3009_v3, %v2844_v32  ;;  %v3011_v57 = vpop.f32.mrb[197].mxu0  ;;  %v2847_v3 = vld [vmem:[#allocation7 + $0x18] sm:$0xff] }
 0x2f1   : > { %v3079_v18 = vsel %vm3078_vm6, %v13146_v2, -inf }
 0x2f2   : > { %v3014_v30 = vpop.f32.mrb[198].mxu0  ;;  %3080 = vmax.xlane.f32.xlu0 %v3079_v18  ;;  %v2848_v18 = vld [vmem:[#allocation7 + $0x20] sm:$0xff] }
 0x2f3   : > { %v13150_v49 = vadd.f32 %v3014_v30, %v2845_v55  ;;  %v3016_v25 = vpop.f32.mrb[199].mxu0 }
 0x2f5   : > { %v3082_v22 = vsel %vm3078_vm6, %v13150_v49, -inf }
 0x2f6   : > { %v3019_v8 = vpop.f32.mrb[200].mxu0  ;;  %3083 = vmax.xlane.f32.xlu0 %v3082_v22  ;;  %v2849_v22 = vld [vmem:[#allocation7 + $0x28] sm:$0xff] }
 0x2f7   : > { %v13154_v43 = vadd.f32 %v3019_v8, %v2846_v12  ;;  %v3021_v32 = vpop.f32.mrb[201].mxu0 }
 0x2f9   : > { %v3085_v57 = vsel %vm3078_vm6, %v13154_v43, -inf }
 0x2fa   : > { %v3024_v45 = vpop.f32.mrb[202].mxu0  ;;  %3086 = vmax.xlane.f32.xlu1 %v3085_v57 }
 0x2fb   : > { %v13158_v28 = vadd.f32 %v3024_v45, %v2847_v3  ;;  %v3026_v55 = vpop.f32.mrb[203].mxu0  ;;  %v2850_v3 = vld [vmem:[#allocation7 + $0x30] sm:$0xff] }
 0x2fd   : > { %v3088_v25 = vsel %vm3078_vm6, %v13158_v28, -inf }
 0x2fe   : > { %v3029_v30 = vpop.f32.mrb[204].mxu0  ;;  %3089 = vmax.xlane.f32.xlu1 %v3088_v25  ;;  %v2851_v25 = vld [vmem:[#allocation7 + $0x38] sm:$0xff] }
 0x2ff   : > { %v13162_v60 = vadd.f32 %v3029_v30, %v2848_v18  ;;  %v3031_v8 = vpop.f32.mrb[205].mxu0 }
 0x301   : > { %v3091_v12 = vsel %vm3078_vm6, %v13162_v60, -inf }
 0x302   : > { %v3034_v32 = vpop.f32.mrb[206].mxu0  ;;  %3092 = vmax.xlane.f32.xlu0 %v3091_v12  ;;  %v2852_v12 = vld [vmem:[#allocation7 + $0x40] sm:$0xff] }
 0x303   : > { %v13166_v27 = vadd.f32 %v3034_v32, %v2849_v22  ;;  %v3036_v45 = vpop.f32.mrb[207].mxu0 }
 0x305   : > { %v3094_v57 = vsel %vm3078_vm6, %v13166_v27, -inf }
 0x306   : > { %v3039_v55 = vpop.f32.mrb[208].mxu0  ;;  %3095 = vmax.xlane.f32.xlu1 %v3094_v57  ;;  %v2853_v57 = vld [vmem:[#allocation7 + $0x48] sm:$0xff] }
 0x307   : > { %v13170_v58 = vadd.f32 %v3039_v55, %v2850_v3  ;;  %v3041_v18 = vpop.f32.mrb[209].mxu0 }
 0x309   : > { %v3097_v30 = vsel %vm3078_vm6, %v13170_v58, -inf }
 0x30a   : > { %v3044_v8 = vpop.f32.mrb[210].mxu0  ;;  %3098 = vmax.xlane.f32.xlu0 %v3097_v30  ;;  %v2854_v30 = vld [vmem:[#allocation7 + $0x50] sm:$0xff] }
 0x30b   : > { %v13174_v35 = vadd.f32 %v3044_v8, %v2851_v25  ;;  %v3046_v22 = vpop.f32.mrb[211].mxu0 }
 0x30d   : > { %v3100_v32 = vsel %vm3078_vm6, %v13174_v35, -inf }
 0x30e   : > { %v3049_v45 = vpop.f32.mrb[212].mxu0  ;;  %3101 = vmax.xlane.f32.xlu1 %v3100_v32  ;;  %v2855_v32 = vld [vmem:[#allocation7 + $0x58] sm:$0xff] }
 0x30f   : > { %v13178_v26 = vadd.f32 %v3049_v45, %v2852_v12  ;;  %v3051_v3 = vpop.f32.mrb[213].mxu0 }
 0x311   : > { %v3103_v55 = vsel %vm3078_vm6, %v13178_v26, -inf }
 0x312   : > { %v3054_v18 = vpop.f32.mrb[214].mxu0  ;;  %3104 = vmax.xlane.f32.xlu0 %v3103_v55  ;;  %v2856_v55 = vld [vmem:[#allocation7 + $0x60] sm:$0xff] }
 0x313   : > { %v13182_v40 = vadd.f32 %v3054_v18, %v2853_v57  ;;  %v3056_v25 = vpop.f32.mrb[215].mxu0 }
 0x315   : > { %v3106_v8 = vsel %vm3078_vm6, %v13182_v40, -inf }
 0x316   : > { %v3059_v22 = vpop.f32.mrb[216].mxu0  ;;  %3107 = vmax.xlane.f32.xlu1 %v3106_v8  ;;  %v2857_v8 = vld [vmem:[#allocation7 + $0x68] sm:$0x3f] }
 0x317   : > { %v13186_v5 = vadd.f32 %v3059_v22, %v2854_v30  ;;  %v3061_v12 = vpop.f32.mrb[217].mxu0 }
 0x319   : > { %v3109_v45 = vsel %vm3078_vm6, %v13186_v5, -inf }
 0x31a   : > { %v3064_v3 = vpop.f32.mrb[218].mxu0  ;;  %3110 = vmax.xlane.f32.xlu0 %v3109_v45 }
 0x31b   : > { %v13190_v37 = vadd.f32 %v3064_v3, %v2855_v32  ;;  %v3066_v57 = vpop.f32.mrb[219].mxu0 }
 0x31c   : > { %v16445_v57 = vpack.i.bf16 %v12271_v9, %v12268_v56 }
 0x31d   : > { %v3112_v18 = vsel %vm3078_vm6, %v13190_v37, -inf }
 0x31e   : > { %v3069_v25 = vpop.f32.mrb[220].mxu0  ;;  %3113 = vmax.xlane.f32.xlu1 %v3112_v18  ;;  %v13210_v18 = vpop.permute.xlu0 %10249 }
 0x31f   : > { %v13194_v14 = vadd.f32 %v3069_v25, %v2856_v55  ;;  %v3071_v30 = vpop.f32.mrb[221].mxu0  ;;  %v16446_v55 = vpack.i.bf16 %v12287_v17, %v12282_v61 }
 0x321   : > { %v3115_v22 = vsel %vm3078_vm6, %v13194_v14, -inf }
 0x322   : > { %v3074_v12 = vpop.f32.mrb[222].mxu0  ;;  %3116 = vmax.xlane.f32.xlu0 %v3115_v22  ;;  %v13213_v22 = vpop.permute.xlu1 %10244 }
 0x323   : > { %v13198_v45 = vadd.f32 %v3074_v12, %v2857_v8  ;;  %v3076_v32 = vpop.f32.mrb[223].mxu0 }
 0x325   : > { %v3119_v3 = vsel %vm3118_vm7, %v13198_v45, -inf }
 0x326   : > { %3120 = vmax.xlane.f32.xlu1 %v3119_v3 }
 0x337   : > { %10254 = vrot.lane.b32.xlu1 %v16445_v57, %s11205_s13 }
 0x338   : > { %10259 = vrot.lane.b32.xlu0 %v16446_v55, %s11205_s13 }
 0x37f   : > { %v3081_v25 = vpop.xlane.xlu0 %3080 }
 0x380   : > { %v3122_v30 = vsub.f32 %v13146_v2, %v3081_v25 }
 0x382   : > { %v3136_v8 = vmul.f32 1.442695, %v3122_v30 }
 0x383   : > { %v3084_v12 = vpop.xlane.xlu0 %3083 }
 0x384   : > { %10653 = vpow2.f32 %v3136_v8  ;;  %v3123_v32 = vsub.f32 %v13150_v49, %v3084_v12 }
 0x386   : > { %v3138_v3 = vmul.f32 1.442695, %v3123_v32 }
 0x387   : > { %v3087_v56 = vpop.xlane.xlu1 %3086 }
 0x388   : > { %10655 = vpow2.f32 %v3138_v3  ;;  %v3124_v9 = vsub.f32 %v13154_v43, %v3087_v56 }
 0x38a   : > { %v3140_v57 = vmul.f32 1.442695, %v3124_v9 }
 0x38b   : > { %v3090_v17 = vpop.xlane.xlu1 %3089 }
 0x38c   : > { %10657 = vpow2.f32 %v3140_v57  ;;  %v3125_v61 = vsub.f32 %v13158_v28, %v3090_v17 }
 0x38e   : > { %v13218_v55 = vpop.eup %10653  ;;  %v3142_v2 = vmul.f32 1.442695, %v3125_v61 }
 0x38f   : > { %v3093_v25 = vpop.xlane.xlu0 %3092  ;;  %v3164_v30 = vsel %vm3078_vm6, %v13218_v55, 0.0 }
 0x390   : > { %10659 = vpow2.f32 %v3142_v2  ;;  %v3126_v49 = vsub.f32 %v13162_v60, %v3093_v25  ;;  %3165 = vadd.xlane.f32.xlu0 %v3164_v30 }
 0x392   : > { %v13223_v8 = vpop.eup %10655  ;;  %v3144_v12 = vmul.f32 1.442695, %v3126_v49 }
 0x393   : > { %v3096_v43 = vpop.xlane.xlu1 %3095  ;;  %v3167_v32 = vsel %vm3078_vm6, %v13223_v8, 0.0 }
 0x394   : > { %10661 = vpow2.f32 %v3144_v12  ;;  %v3127_v28 = vsub.f32 %v13166_v27, %v3096_v43  ;;  %3168 = vadd.xlane.f32.xlu1 %v3167_v32 }
 0x396   : > { %v13228_v3 = vpop.eup %10657  ;;  %v3146_v56 = vmul.f32 1.442695, %v3127_v28 }
 0x397   : > { %v3099_v9 = vpop.xlane.xlu0 %3098  ;;  %v3170_v57 = vsel %vm3078_vm6, %v13228_v3, 0.0 }
 0x398   : > { %10663 = vpow2.f32 %v3146_v56  ;;  %v3128_v60 = vsub.f32 %v13170_v58, %v3099_v9  ;;  %3171 = vadd.xlane.f32.xlu0 %v3170_v57 }
 0x39a   : > { %v13233_v17 = vpop.eup %10659  ;;  %v3148_v61 = vmul.f32 1.442695, %v3128_v60 }
 0x39b   : > { %v3102_v2 = vpop.xlane.xlu1 %3101  ;;  %v3173_v25 = vsel %vm3078_vm6, %v13233_v17, 0.0 }
 0x39c   : > { %10665 = vpow2.f32 %v3148_v61  ;;  %v3129_v27 = vsub.f32 %v13174_v35, %v3102_v2  ;;  %3174 = vadd.xlane.f32.xlu1 %v3173_v25 }
 0x39e   : > { %v13238_v30 = vpop.eup %10661  ;;  %v3150_v49 = vmul.f32 1.442695, %v3129_v27 }
 0x39f   : > { %v3105_v12 = vpop.xlane.xlu0 %3104  ;;  %v3176_v43 = vsel %vm3078_vm6, %v13238_v30, 0.0 }
 0x3a0   : > { %10667 = vpow2.f32 %v3150_v49  ;;  %v3130_v58 = vsub.f32 %v13178_v26, %v3105_v12  ;;  %3177 = vadd.xlane.f32.xlu0 %v3176_v43  ;;  %v16447_v12 = vpack.i.bf16 %v12303_v54, %v12300_v47  ;;  %v16448_v43 = vpack.i.bf16 %v12319_v13, %v12314_v50 }
 0x3a1   : > { %v16451_v47 = vpack.i.bf16 %v12369_v36, %v12366_v0  ;;  %v16452_v50 = vpack.i.bf16 %v12382_v20, %v12377_v23 }
 0x3a2   : > { %v13243_v32 = vpop.eup %10663  ;;  %v3152_v28 = vmul.f32 1.442695, %v3130_v58  ;;  %v16449_v58 = vpack.i.bf16 %v12336_v44, %v12333_v59 }
 0x3a3   : > { %v3108_v56 = vpop.xlane.xlu1 %3107  ;;  %v3179_v9 = vsel %vm3078_vm6, %v13243_v32, 0.0 }
 0x3a4   : > { %10669 = vpow2.f32 %v3152_v28  ;;  %v3131_v35 = vsub.f32 %v13182_v40, %v3108_v56  ;;  %3180 = vadd.xlane.f32.xlu1 %v3179_v9  ;;  %v16450_v28 = vpack.i.bf16 %v12353_v46, %v12348_v34  ;;  %v16453_v46 = vpack.i.bf16 %v12395_v4, %v12392_v6  ;;  %v16456_v9 = vld [vmem:[#allocation18_spill] sm:$0xff] }
 0x3a6   : > { %v13248_v57 = vpop.eup %10665  ;;  %v3154_v60 = vmul.f32 1.442695, %v3131_v35  ;;  %v16457_v35 = vld [vmem:[#allocation20_spill] sm:$0xff] }
 0x3a7   : > { %v3182_v61 = vsel %vm3078_vm6, %v13248_v57, 0.0  ;;  %v3111_v0 = vpop.xlane.xlu0 %3110 }
 0x3a8   : > { %10671 = vpow2.f32 %v3154_v60  ;;  %3183 = vadd.xlane.f32.xlu0 %v3182_v61  ;;  %v3132_v20 = vsub.f32 %v13186_v5, %v3111_v0  ;;  %v16455_v5 = vld [vmem:[#allocation12_spill] sm:$0xff]  ;;  %v16458_v60 = vld [vmem:[#allocation22_spill] sm:$0xff] }
 0x3a9   : > { %v16459_v61 = vld [vmem:[#allocation24_spill] sm:$0xff]  ;;  %v16466_v0 = vld [vmem:[#allocation42_spill] sm:$0xff] }
 0x3aa   : > { %v13252_v26 = vpop.eup %10667  ;;  %v3156_v6 = vmul.f32 1.442695, %v3132_v20  ;;  %v10246_v20 = vunpack.i.l.bf16 %v13213_v22 }
 0x3ab   : > { %v3185_v2 = vsel %vm3078_vm6, %v13252_v26, 0.0  ;;  %v3114_v56 = vpop.xlane.xlu1 %3113 }
 0x3ac   : > { %3186 = vadd.xlane.f32.xlu1 %v3185_v2  ;;  %v3133_v54 = vsub.f32 %v13190_v37, %v3114_v56  ;;  %v16454_v37 = vpack.i.bf16 %v12407_v41, %v12403_v15  ;;  %v16460_v2 = vld [vmem:[#allocation26_spill] sm:$0xff] }
 0x3ae   : > { %v13256_v25 = vpop.eup %10669  ;;  %v3158_v59 = vmul.f32 1.442695, %v3133_v54 }
 0x3af   : > { %v3188_v40 = vsel %vm3078_vm6, %v13256_v25, 0.0 }
 0x3b0   : > { %3189 = vadd.xlane.f32.xlu0 %v3188_v40  ;;  %10673 = vpow2.f32 %v3158_v59  ;;  %v3117_v40 = vpop.xlane.xlu0 %3116  ;;  %v16465_v59 = vld [vmem:[#allocation39_spill] sm:$0xff] }
 0x3b2   : > { %v13260_v27 = vpop.eup %10671 }
 0x3b3   : > { %v3191_v49 = vsel %vm3078_vm6, %v13260_v27, 0.0  ;;  %v3121_v13 = vpop.xlane.xlu1 %3120 }
 0x3b4   : > { %3192 = vadd.xlane.f32.xlu1 %v3191_v49  ;;  %v3135_v44 = vsub.f32 %v13198_v45, %v3121_v13  ;;  %v16461_v49 = vld [vmem:[#allocation28_spill] sm:$0xff] }
 0x3b6   : > { %v3162_v34 = vmul.f32 1.442695, %v3135_v44  ;;  %v10252_v44 = vunpack.i.h.bf16 %v13210_v18 }
 0x3b8   : > { %10675 = vpow2.f32 %v3162_v34 }
 0x3b9   : > { %10677 = vpow2.f32 %v3156_v6  ;;  %v10251_v6 = vunpack.i.l.bf16 %v13210_v18  ;;  %v16468_v18 = vpack.i.bf16 %v12812_v52, %v12648_v48  ;;  %v16469_v48 = vpack.i.bf16 %v12874_v10, %v12713_v7 }
 0x3ba   : > { %v13298_v36 = vpop.eup %10673  ;;  %v16470_v7 = vpack.i.bf16 %v12926_v63, %v12753_v51 }
 0x3bb   : > { %v3197_v23 = vsel %vm3078_vm6, %v13298_v36, 0.0 }
 0x3c2   : > { %v13303_v45 = vpop.eup %10675 }
 0x3c3   : > { %v3203_v4 = vsel %vm3118_vm7, %v13303_v45, 0.0  ;;  %v13307_v41 = vpop.eup %10677 }
 0x3c4   : > { %v3194_v15 = vsel %vm3078_vm6, %v13307_v41, 0.0 }
 0x3c5   : > { %10264 = vrot.lane.b32.xlu1 %v16447_v12, %s11205_s13  ;;  %v13327_v12 = vpop.permute.xlu0 %10259 }
 0x3c6   : > { %10269 = vrot.lane.b32.xlu0 %v16448_v43, %s11205_s13  ;;  %v16462_v43 = vld [vmem:[#allocation30_spill] sm:$0xff] }
 0x3ca   : > { %10274 = vrot.lane.b32.xlu0 %v16449_v58, %s11205_s13  ;;  %v3134_v58 = vsub.f32 %v13194_v14, %v3117_v40  ;;  %v10247_v14 = vunpack.i.h.bf16 %v13213_v22 }
 0x3cc   : > { %v3160_v54 = vmul.f32 1.442695, %v3134_v58  ;;  %v3625_v22 = vsel %vm2858_vm2, %v10246_v20, %v10247_v14  ;;  %v10261_v58 = vunpack.i.l.bf16 %v13327_v12 }
 0x3ce   : > { %10279 = vrot.lane.b32.xlu0 %v16450_v28, %s11205_s13  ;;  %v10255_v28 = vpop.permute.xlu1 %10254 }
 0x3cf   : > { %v10256_v40 = vunpack.i.l.bf16 %v10255_v28 }
 0x3d2   : > { %10284 = vrot.lane.b32.xlu0 %v16451_v47, %s11205_s13  ;;  %v16463_v47 = vld [vmem:[#allocation33_spill] sm:$0xff] }
 0x3d6   : > { %10289 = vrot.lane.b32.xlu0 %v16452_v50, %s11205_s13 }
 0x3da   : > { %10294 = vrot.lane.b32.xlu0 %v16453_v46, %s11205_s13 }
 0x3de   : > { %10299 = vrot.lane.b32.xlu0 %v16454_v37, %s11205_s13 }
 0x3e9   : > { %3198 = vadd.xlane.f32.xlu1 %v3197_v23  ;;  %v9615_v23 = vpack.c.bf16 %v10252_v44, %v10247_v14 }
 0x3ed   : > { %3204 = vadd.xlane.f32.xlu1 %v3203_v4 }
 0x3fd   : > { %3195 = vadd.xlane.f32.xlu0 %v3194_v15  ;;  %v16467_v15 = vpack.c.bf16 %v12697_v21, %v12684_v38  ;;  %v3626_v21 = vsel %vm2858_vm2, %v10251_v6, %v10252_v44  ;;  %v10257_v38 = vunpack.i.h.bf16 %v10255_v28 }
 0x3fe   : > { %3471 = vrot.lane.b32.xlu1 %v16455_v5, %s11205_s13  ;;  %v9618_v52 = vpack.c.bf16 %v3626_v21, %v3625_v22 }
 0x3ff   : > { %v3627_v10 = vsel %vm2858_vm2, %v10256_v40, %v10257_v38 }
 0x402   : > { %3483 = vrot.lane.b32.xlu1 %v16456_v9, %s11205_s13 }
 0x406   : > { %3487 = vrot.lane.b32.xlu1 %v16457_v35, %s11205_s13 }
 0x40a   : > { %3491 = vrot.lane.b32.xlu1 %v16458_v60, %s11205_s13 }
 0x40e   : > { %3495 = vrot.lane.b32.xlu1 %v16459_v61, %s11205_s13 }
 0x412   : > { %3499 = vrot.lane.b32.xlu1 %v16460_v2, %s11205_s13 }
 0x413   : > { %3469 = vrot.lane.b32.xlu0 %v11789_v39, %s11205_s13  ;;  %v16464_v39 = vld [vmem:[#allocation36_spill] sm:$0xff] }
 0x416   : > { %3503 = vrot.lane.b32.xlu1 %v16461_v49, %s11205_s13 }
 0x41a   : > { %3507 = vrot.lane.b32.xlu1 %v16462_v43, %s11205_s13 }
 0x41d   : > { %v3166_v56 = vpop.xlane.xlu0 %3165 }
 0x41e   : > { %10679 = vrcp.f32 %v3166_v56  ;;  %3511 = vrot.lane.b32.xlu1 %v16463_v47, %s11205_s13 }
 0x421   : > { %v3169_v13 = vpop.xlane.xlu1 %3168 }
 0x422   : > { %10681 = vrcp.f32 %v3169_v13  ;;  %3515 = vrot.lane.b32.xlu1 %v16464_v39, %s11205_s13 }
 0x423   : > { %10683 = vpow2.f32 %v3160_v54 }
 0x425   : > { %v3172_v50 = vpop.xlane.xlu0 %3171 }
 0x426   : > { %10685 = vrcp.f32 %v3172_v50  ;;  %3519 = vrot.lane.b32.xlu1 %v16465_v59, %s11205_s13 }
 0x428   : > { %v10680_v46 = vpop.eup %10679 }
 0x429   : > { %v3220_v34 = vmul.f32 %v10680_v46, %v13218_v55  ;;  %v3175_v37 = vpop.xlane.xlu1 %3174 }
 0x42a   : > { %10687 = vrcp.f32 %v3175_v37  ;;  %3523 = vrot.lane.b32.xlu1 %v16466_v0, %s11205_s13 }
 0x42b   : > { %8814 = vmatmul.mubr.msk.f32.vlgmr.msra.gmra.mrb[182].mxu1 %vm3078_vm6, %v3220_v34 }
 0x42c   : > { %v10682_v4 = vpop.eup %10681  ;;  %9614 = vmatpush1.bf16.xpose.msra.mxu1 %v16467_v15  ;;  %3352 = vmatprep.mubr.f32.mxu1 %v16195_v33 }
 0x42d   : > { %9617 = vmatprep.subr.msk.bf16.mxu1 %vm12233_vm3, %v9615_v23  ;;  %v3178_v55 = vpop.xlane.xlu0 %3177  ;;  %v3221_v5 = vmul.f32 %v10682_v4, %v13223_v8  ;;  %v13353_v9 = vpop.eup %10683  ;;  %v10262_v8 = vunpack.i.h.bf16 %v13327_v12 }
 0x42e   : > { %10689 = vrcp.f32 %v3178_v55  ;;  %10304 = vrot.lane.b32.xlu1 %v16468_v18, %s11205_s13  ;;  %v3200_v61 = vsel %vm3078_vm6, %v13353_v9, 0.0 }
 0x42f   : > { %8815 = vmatmul.mubr.msk.f32.gmra.mrb[184].mxu1 %vm3078_vm6, %v3221_v5  ;;  %v9620_v49 = vpack.c.bf16 %v10262_v8, %v10257_v38  ;;  %v3628_v12 = vsel %vm2858_vm2, %v10261_v58, %v10262_v8 }
 0x430   : > { %v10686_v35 = vpop.eup %10685  ;;  %3358 = vmatprep.mubr.f32.mxu1 %v16195_v33 }
 0x431   : > { %v3181_v60 = vpop.xlane.xlu1 %3180  ;;  %v3222_v2 = vmul.f32 %v10686_v35, %v13228_v3  ;;  %v16471_v35 = vld [vmem:[#allocation14_spill] sm:$0xff] }
 0x432   : > { %10691 = vrcp.f32 %v3181_v60  ;;  %10324 = vrot.lane.b32.xlu1 %v16469_v48, %s11205_s13  ;;  %3201 = vadd.xlane.f32.xlu0 %v3200_v61 }
 0x433   : > { %8816 = vmatmul.mubr.msk.f32.gmra.mrb[186].mxu1 %vm3078_vm6, %v3222_v2 }
 0x434   : > { %v10688_v43 = vpop.eup %10687  ;;  %9619 = vmatpush1.bf16.xpose.msra.mxu1 %v9618_v52  ;;  %3364 = vmatprep.mubr.f32.mxu1 %v16195_v33 }
 0x435   : > { %9622 = vmatprep.subr.msk.bf16.mxu1 %vm12233_vm3, %v9620_v49  ;;  %v3184_v3 = vpop.xlane.xlu0 %3183  ;;  %v3223_v56 = vmul.f32 %v10688_v43, %v13233_v17  ;;  %v9623_v17 = vpack.c.bf16 %v3628_v12, %v3627_v10  ;;  %v16472_v43 = vld [vmem:[#allocation16_spill] sm:$0xff] }
 0x436   : > { %10693 = vrcp.f32 %v3184_v3  ;;  %10344 = vrot.lane.b32.xlu1 %v16470_v7, %s11205_s13 }
 0x437   : > { %8817 = vmatmul.mubr.msk.f32.gmra.mrb[188].mxu1 %vm3078_vm6, %v3223_v56 }
 0x438   : > { %v10690_v28 = vpop.eup %10689  ;;  %3370 = vmatprep.mubr.f32.mxu1 %v16195_v33 }
 0x439   : > { %v3187_v47 = vpop.xlane.xlu1 %3186  ;;  %v3224_v54 = vmul.f32 %v10690_v28, %v13238_v30 }
 0x43a   : > { %10695 = vrcp.f32 %v3187_v47 }
 0x43b   : > { %8818 = vmatmul.mubr.msk.f32.gmra.mrb[190].mxu1 %vm3078_vm6, %v3224_v54 }
 0x43c   : > { %v10692_v13 = vpop.eup %10691  ;;  %9624 = vmatpush1.bf16.xpose.msra.mxu1 %v9623_v17  ;;  %3376 = vmatprep.mubr.f32.mxu1 %v16195_v33 }
 0x43d   : > { %v3190_v63 = vpop.xlane.xlu0 %3189  ;;  %v3225_v51 = vmul.f32 %v10692_v13, %v13243_v32 }
 0x43e   : > { %10697 = vrcp.f32 %v3190_v63 }
 0x43f   : > { %8819 = vmatmul.mubr.msk.f32.gmra.mrb[192].mxu1 %vm3078_vm6, %v3225_v51  ;;  %v16120_v51 = vmov 0.0|0.0  }
 0x440   : > { %v10694_v39 = vpop.eup %10693  ;;  %3382 = vmatprep.mubr.f32.mxu1 %v16195_v33 }
 0x441   : > { %v3193_v50 = vpop.xlane.xlu1 %3192  ;;  %v10270_v59 = vpop.permute.xlu0 %10269  ;;  %v3226_v30 = vmul.f32 %v10694_v39, %v13248_v57  ;;  %v16476_v39 = vld [vmem:[#allocation41_spill] sm:$0xff] }
 0x442   : > { %10699 = vrcp.f32 %v3193_v50  ;;  %v10272_v44 = vunpack.i.h.bf16 %v10270_v59  ;;  %v10271_v46 = vunpack.i.l.bf16 %v10270_v59  ;;  %v16478_v50 = vld [vmem:[#allocation175_spill] sm:$0xff] }
 0x443   : > { %8820 = vmatmul.mubr.msk.f32.gmra.mrb[194].mxu1 %vm3078_vm6, %v3226_v30 }
 0x444   : > { %v10696_v14 = vpop.eup %10695  ;;  %3388 = vmatprep.mubr.f32.mxu1 %v16195_v33  ;;  %v3630_v6 = vsel %vm2858_vm2, %v10271_v46, %v10272_v44  ;;  %v16483_v46 = vld [vmem:[#allocation222_spill] sm:$0xff] }
 0x445   : > { %v10265_v34 = vpop.permute.xlu1 %10264  ;;  %v10275_v32 = vpop.permute.xlu0 %10274  ;;  %v3227_v37 = vmul.f32 %v10696_v14, %v13252_v26 }
 0x446   : > { %v10267_v0 = vunpack.i.h.bf16 %v10265_v34  ;;  %v10266_v20 = vunpack.i.l.bf16 %v10265_v34  ;;  %v10277_v26 = vunpack.i.h.bf16 %v10275_v32  ;;  %v16484_v34 = vld [vmem:[#allocation181_spill] sm:$0xff] }
 0x447   : > { %8821 = vmatmul.mubr.msk.f32.gmra.mrb[196].mxu1 %vm3078_vm6, %v3227_v37  ;;  %v16486_v37 = vld [vmem:[#allocation229_spill] sm:$0xff] }
 0x448   : > { %v10698_v23 = vpop.eup %10697  ;;  %v3629_v57 = vsel %vm2858_vm2, %v10266_v20, %v10267_v0  ;;  %v9625_v4 = vpack.c.bf16 %v10272_v44, %v10267_v0  ;;  %3473 = vrot.lane.b32.xlu0 %v11803_v16, %s11205_s13  ;;  %3394 = vmatprep.mubr.f32.mxu1 %v16195_v33  ;;  %v10276_v16 = vunpack.i.l.bf16 %v10275_v32  ;;  %v16485_v32 = vpack.i.bf16 %v16483_v46, %v16484_v34  ;;  %v16487_v0 = vld [vmem:[#allocation186_spill] sm:$0xff] }
 0x449   : > { %v10280_v15 = vpop.permute.xlu0 %10279  ;;  %v3228_v55 = vmul.f32 %v10698_v23, %v13256_v25  ;;  %v9628_v5 = vpack.c.bf16 %v3630_v6, %v3629_v57  ;;  %v16488_v20 = vpack.i.bf16 %v16486_v37, %v16487_v0  ;;  %v16489_v23 = vld [vmem:[#allocation233_spill] sm:$0xff]  ;;  %v4320_v34 = vld [vmem:[#allocation4 + $0xe8] sm:$0xff] }
 0x44a   : > { %v10282_v18 = vunpack.i.h.bf16 %v10280_v15  ;;  %9627 = vmatprep.subr.msk.bf16.mxu1 %vm12233_vm3, %v9625_v4  ;;  %v10281_v22 = vunpack.i.l.bf16 %v10280_v15  ;;  %v3631_v61 = vsel %vm2858_vm2, %v10276_v16, %v10277_v26  ;;  %v16490_v6 = vld [vmem:[#allocation189_spill] sm:$0xff]  ;;  %v16498_v16 = vld [vmem:[#allocation224_spill] sm:$0xff] }
 0x44b   : > { %8822 = vmatmul.mubr.msk.f32.gmra.mrb[198].mxu1 %vm3078_vm6, %v3228_v55  ;;  %v16491_v57 = vpack.i.bf16 %v16489_v23, %v16490_v6  ;;  %v4319_v46 = vld [vmem:[#allocation4 + $0xe0] sm:$0xff]  ;;  %v4322_v23 = vld [vmem:[#allocation4 + $0xf8] sm:$0xff] }
 0x44c   : > { %v10700_v21 = vpop.eup %10699  ;;  %v9630_v38 = vpack.c.bf16 %v10282_v18, %v10277_v26  ;;  %9629 = vmatpush1.bf16.xpose.msra.mxu1 %v9628_v5  ;;  %3475 = vrot.lane.b32.xlu0 %v16471_v35, %s11205_s13  ;;  %v3632_v60 = vsel %vm2858_vm2, %v10281_v22, %v10282_v18  ;;  %v16492_v5 = vld [vmem:[#allocation237_spill] sm:$0xff]  ;;  %v16493_v26 = vld [vmem:[#allocation192_spill] sm:$0xff]  ;;  %v9682_v37 = vpack.c.bf16 %v4320_v34, %v4319_v46  ;;  %v11016_v35 = vld [vmem:[#allocation7 + $0x40] sm:$0xff] }
 0x44d   : > { %v10285_v8 = vpop.permute.xlu0 %10284  ;;  %3400 = vmatprep.mubr.f32.mxu1 %v16195_v33  ;;  %v3229_v25 = vmul.f32 %v10700_v21, %v13260_v27  ;;  %v9633_v40 = vpack.c.bf16 %v3632_v60, %v3631_v61  ;;  %v16494_v18 = vpack.i.bf16 %v16492_v5, %v16493_v26  ;;  %v16495_v21 = vld [vmem:[#allocation212_spill] sm:$0xff]  ;;  %v16500_v60 = vld [vmem:[#allocation231_spill] sm:$0xff] }
 0x44e   : > { %9632 = vmatprep.subr.msk.bf16.mxu1 %vm12233_vm3, %v9630_v38  ;;  %v10287_v48 = vunpack.i.h.bf16 %v10285_v8  ;;  %v10286_v58 = vunpack.i.l.bf16 %v10285_v8  ;;  %v16496_v38 = vld [vmem:[#allocation216_spill] sm:$0xff]  ;;  %v4324_v5 = vld [vmem:[#allocation4 + $0x108] sm:$0xff]  ;;  %v11015_v8 = vld [vmem:[#allocation7 + $0x38] sm:$0xff] }
 0x44f   : > { %8823 = vmatmul.mubr.msk.f32.gmra.mrb[200].mxu1 %vm3078_vm6, %v3229_v25  ;;  %v16499_v25 = vld [vmem:[#allocation227_spill] sm:$0xff]  ;;  %v11014_v61 = vld [vmem:[#allocation7 + $0x30] sm:$0xff] }
 0x450   : > { %3477 = vrot.lane.b32.xlu0 %v11817_v24, %s11205_s13  ;;  %3406 = vmatprep.mubr.f32.mxu1 %v16195_v33  ;;  %v3633_v56 = vsel %vm2858_vm2, %v10286_v58, %v10287_v48  ;;  %v11012_v58 = vld [vmem:[#allocation7 + $0x20] sm:$0xff] }
 0x451   : > { %v10290_v2 = vpop.permute.xlu0 %10289 }
 0x452   : > { %v10292_v52 = vunpack.i.h.bf16 %v10290_v2  ;;  %v10291_v49 = vunpack.i.l.bf16 %v10290_v2 }
 0x454   : > { %v9635_v27 = vpack.c.bf16 %v10292_v52, %v10287_v48  ;;  %9634 = vmatpush1.bf16.xpose.msra.mxu1 %v9633_v40  ;;  %3479 = vrot.lane.b32.xlu0 %v16472_v43, %s11205_s13  ;;  %v3634_v24 = vsel %vm2858_vm2, %v10291_v49, %v10292_v52  ;;  %v16501_v48 = vld [vmem:[#allocation235_spill] sm:$0xff]  ;;  %v16504_v43 = vld [vmem:[#allocation246_spill] sm:$0xff] }
 0x455   : > { %v10295_v3 = vpop.permute.xlu0 %10294  ;;  %v9638_v12 = vpack.c.bf16 %v3634_v24, %v3633_v56  ;;  %v16502_v52 = vld [vmem:[#allocation239_spill] sm:$0xff] }
 0x456   : > { %9637 = vmatprep.subr.msk.bf16.mxu1 %vm12233_vm3, %v9635_v27  ;;  %v10297_v10 = vunpack.i.h.bf16 %v10295_v3  ;;  %v10296_v17 = vunpack.i.l.bf16 %v10295_v3  ;;  %v11013_v40 = vld [vmem:[#allocation7 + $0x28] sm:$0xff] }
 0x458   : > { %3481 = vrot.lane.b32.xlu0 %v11831_v42, %s11205_s13  ;;  %v3635_v42 = vsel %vm2858_vm2, %v10296_v17, %v10297_v10 }
 0x459   : > { %v10300_v7 = vpop.permute.xlu0 %10299 }
 0x45a   : > { %v10302_v28 = vunpack.i.h.bf16 %v10300_v7  ;;  %v10301_v47 = vunpack.i.l.bf16 %v10300_v7  ;;  %v16505_v7 = vld [vmem:[#allocation250_spill] sm:$0xff] }
 0x45c   : > { %v9640_v54 = vpack.c.bf16 %v10302_v28, %v10297_v10  ;;  %9639 = vmatpush1.bf16.xpose.msra.mxu1 %v9638_v12  ;;  %3485 = vrot.lane.b32.xlu0 %v11845_v1, %s11205_s13  ;;  %v3636_v13 = vsel %vm2858_vm2, %v10301_v47, %v10302_v28  ;;  %v16473_v1 = vld [vmem:[#allocation32_spill] sm:$0xff]  ;;  %v16506_v10 = vld [vmem:[#allocation254_spill] sm:$0xff]  ;;  %v11011_v28 = vld [vmem:[#allocation7 + $0x18] sm:$0xff] }
 0x45d   : > { %v9643_v63 = vpack.c.bf16 %v3636_v13, %v3635_v42 }
 0x45e   : > { %9642 = vmatprep.subr.msk.bf16.mxu1 %vm12233_vm3, %v9640_v54 }
 0x460   : > { %3489 = vrot.lane.b32.xlu0 %v11859_v19, %s11205_s13  ;;  %v16474_v19 = vld [vmem:[#allocation35_spill] sm:$0xff] }
 0x464   : > { %9644 = vmatpush1.bf16.xpose.msra.mxu1 %v9643_v63  ;;  %3493 = vrot.lane.b32.xlu0 %v11873_v53, %s11205_s13  ;;  %v16475_v53 = vld [vmem:[#allocation38_spill] sm:$0xff] }
 0x465   : > { %9675 = vmatprep.subr.bf16.mxu1 %v16120_v51 }
 0x468   : > { %3497 = vrot.lane.b32.xlu0 %v11887_v11, %s11205_s13  ;;  %v16477_v11 = vld [vmem:[#allocation214_spill] sm:$0xff] }
 0x469   : > { %v16479_v59 = vpack.i.bf16 %v16477_v11, %v16478_v50  ;;  %v4316_v11 = vld [vmem:[#allocation4 + $0xc8] sm:$0xff] }
 0x46c   : > { %3501 = vrot.lane.b32.xlu0 %v11901_v29, %s11205_s13  ;;  %v16480_v29 = vld [vmem:[#allocation218_spill] sm:$0xff] }
 0x470   : > { %3505 = vrot.lane.b32.xlu0 %v11919_v62, %s11205_s13  ;;  %v16481_v62 = vld [vmem:[#allocation178_spill] sm:$0xff] }
 0x471   : > { %v16482_v30 = vpack.i.bf16 %v16480_v29, %v16481_v62  ;;  %v4317_v62 = vld [vmem:[#allocation4 + $0xd0] sm:$0xff] }
 0x474   : > { %3509 = vrot.lane.b32.xlu0 %v16473_v1, %s11205_s13 }
 0x476   : > { %v3199_v14 = vpop.xlane.xlu1 %3198 }
 0x478   : > { %3513 = vrot.lane.b32.xlu0 %v16474_v19, %s11205_s13 }
 0x47a   : > { %v3205_v2 = vpop.xlane.xlu1 %3204 }
 0x47c   : > { %3517 = vrot.lane.b32.xlu0 %v16475_v53, %s11205_s13 }
 0x47e   : > { %v3472_v49 = vpop.permute.xlu1 %3471 }
 0x480   : > { %3521 = vrot.lane.b32.xlu0 %v16476_v39, %s11205_s13  ;;  %v4315_v39 = vld [vmem:[#allocation4 + $0xc0] sm:$0xff] }
 0x482   : > { %v3484_v27 = vpop.permute.xlu1 %3483 }
 0x484   : > { %10309 = vrot.lane.b32.xlu0 %v16479_v59, %s11205_s13  ;;  %v9676_v59 = vpack.c.bf16 %v4316_v11, %v4315_v39 }
 0x486   : > { %v13490_v24 = vpop.permute.xlu1 %3487 }
 0x488   : > { %10314 = vrot.lane.b32.xlu0 %v16482_v30, %s11205_s13 }
 0x48a   : > { %v3196_v44 = vpop.xlane.xlu0 %3195  ;;  %v13494_v47 = vpop.permute.xlu1 %3491 }
 0x48b   : > { %10701 = vrcp.f32 %v3196_v44 }
 0x48c   : > { %10319 = vrot.lane.b32.xlu0 %v16485_v32, %s11205_s13  ;;  %10703 = vrcp.f32 %v3199_v14 }
 0x48e   : > { %v3470_v3 = vpop.permute.xlu0 %3469  ;;  %v13496_v13 = vpop.permute.xlu1 %3495 }
 0x48f   : > { %v3525_v30 = vsel %vm2858_vm2, %v3470_v3, %v3472_v49  ;;  %v4326_v3 = vld [vmem:[#allocation4 + $0x118] sm:$0xff] }
 0x490   : > { %10329 = vrot.lane.b32.xlu0 %v16488_v20, %s11205_s13  ;;  %v4321_v20 = vld [vmem:[#allocation4 + $0xf0] sm:$0xff] }
 0x492   : > { %v13502_v50 = vpop.permute.xlu1 %3499 }
 0x494   : > { %10334 = vrot.lane.b32.xlu0 %v16491_v57, %s11205_s13 }
 0x495   : > { %v10702_v4 = vpop.eup %10701 }
 0x496   : > { %v3230_v15 = vmul.f32 %v10702_v4, %v13307_v41  ;;  %v10704_v55 = vpop.eup %10703  ;;  %v16497_v41 = vld [vmem:[#allocation220_spill] sm:$0xff]  ;;  %v9685_v4 = vpack.c.bf16 %v4322_v23, %v4321_v20 }
 0x497   : > { %v3231_v22 = vmul.f32 %v10704_v55, %v13298_v36  ;;  %v16503_v36 = vld [vmem:[#allocation242_spill] sm:$0xff] }
 0x498   : > { %10339 = vrot.lane.b32.xlu0 %v16494_v18, %s11205_s13  ;;  %8824 = vmatmul.mubr.msk.f32.gmra.mrb[202].mxu1 %vm3078_vm6, %v3230_v15  ;;  %v4323_v55 = vld [vmem:[#allocation4 + $0x100] sm:$0xff] }
 0x499   : > { %3412 = vmatprep.mubr.f32.mxu1 %v16195_v33  ;;  %v9688_v18 = vpack.c.bf16 %v4324_v5, %v4323_v55 }
 0x49c   : > { %8825 = vmatmul.mubr.msk.f32.gmra.mrb[204].mxu1 %vm3078_vm6, %v3231_v22 }
 0x49d   : > { %3418 = vmatprep.mubr.f32.mxu1 %v16195_v33 }
 0x4bf   : > { %v3202_v56 = vpop.xlane.xlu0 %3201 }
 0x4c0   : > { %10705 = vrcp.f32 %v3202_v56 }
 0x4c1   : > { %10707 = vrcp.f32 %v3205_v2 }
 0x4c3   : > { %v3474_v12 = vpop.permute.xlu0 %3473 }
 0x4c7   : > { %v3476_v54 = vpop.permute.xlu0 %3475 }
 0x4c8   : > { %v3526_v32 = vsel %vm2858_vm2, %v3474_v12, %v3476_v54 }
 0x4ca   : > { %v10706_v17 = vpop.eup %10705 }
 0x4cb   : > { %v3478_v42 = vpop.permute.xlu0 %3477  ;;  %v3232_v63 = vmul.f32 %v10706_v17, %v13353_v9  ;;  %v10708_v1 = vpop.eup %10707  ;;  %v4318_v9 = vld [vmem:[#allocation4 + $0xd8] sm:$0xff]  ;;  %v4328_v17 = vld [vmem:[#allocation4 + $0x128] sm:$0xff] }
 0x4cc   : > { %v3233_v53 = vmul.f32 %v10708_v1, %v13303_v45  ;;  %v9679_v14 = vpack.c.bf16 %v4318_v9, %v4317_v62  ;;  %v13508_v45 = vpop.permute.xlu1 %3503  ;;  %v4332_v62 = vld [vmem:[#allocation4 + $0x148] sm:$0xff] }
 0x4cd   : > { %8826 = vmatmul.mubr.msk.f32.gmra.mrb[206].mxu1 %vm3078_vm6, %v3232_v63 }
 0x4ce   : > { %3424 = vmatprep.mubr.f32.mxu1 %v16195_v33 }
 0x4cf   : > { %v3480_v19 = vpop.permute.xlu0 %3479 }
 0x4d0   : > { %v3527_v6 = vsel %vm2858_vm2, %v3478_v42, %v3480_v19  ;;  %v13515_v57 = vpop.permute.xlu1 %3507 }
 0x4d1   : > { %8827 = vmatmul.mubr.msk.f32.gmra.mrb[208].mxu1 %vm3078_vm6, %v3233_v53  ;;  %v4330_v53 = vld [vmem:[#allocation4 + $0x138] sm:$0xff] }
 0x4d2   : > { %8842 = vmatprep.mubr.msk.f32.mxu1 %vm2858_vm2, %v3472_v49  ;;  %v4325_v49 = vld [vmem:[#allocation4 + $0x110] sm:$0xff] }
 0x4d3   : > { %v3482_v29 = vpop.permute.xlu0 %3481 }
 0x4d4   : > { %v3528_v26 = vsel %vm2858_vm2, %v3482_v29, %v3484_v27  ;;  %v13522_v22 = vpop.permute.xlu1 %3511  ;;  %v4331_v29 = vld [vmem:[#allocation4 + $0x140] sm:$0xff] }
 0x4d5   : > { %3772 = vmatmul.mubr.f32.vlgmr.msra.gmra.mrb[210].mxu1 %v3525_v30 }
 0x4d6   : > { %9677 = vmatpush1.bf16.msra.mxu1 %v9676_v59  ;;  %8843 = vmatprep.mubr.msk.f32.mxu1 %vm2858_vm2, %v3476_v54  ;;  %v4327_v54 = vld [vmem:[#allocation4 + $0x120] sm:$0xff] }
 0x4d7   : > { %v3486_v44 = vpop.permute.xlu0 %3485  ;;  %9678 = vmatprep.subr.bf16.mxu1 %v16120_v51 }
 0x4d8   : > { %v3529_v56 = vsel %vm2858_vm2, %v3486_v44, %v13490_v24  ;;  %v3516_v63 = vpop.permute.xlu1 %3515  ;;  %v4334_v44 = vld [vmem:[#allocation4 + $0x158] sm:$0xff] }
 0x4d9   : > { %3777 = vmatmul.mubr.f32.gmra.mrb[212].mxu1 %v3526_v32 }
 0x4da   : > { %9680 = vmatpush1.bf16.msra.mxu1 %v9679_v14  ;;  %8844 = vmatprep.mubr.msk.f32.mxu1 %vm2858_vm2, %v3480_v19  ;;  %v4329_v19 = vld [vmem:[#allocation4 + $0x130] sm:$0xff] }
 0x4db   : > { %v3490_v0 = vpop.permute.xlu0 %3489  ;;  %9681 = vmatprep.subr.bf16.mxu1 %v16120_v51  ;;  %v4333_v14 = vld [vmem:[#allocation4 + $0x150] sm:$0xff] }
 0x4dc   : > { %v3530_v42 = vsel %vm2858_vm2, %v3490_v0, %v13494_v47  ;;  %v3520_v11 = vpop.permute.xlu1 %3519  ;;  %v4336_v0 = vld [vmem:[#allocation4 + $0x168] sm:$0xff] }
 0x4dd   : > { %3782 = vmatmul.mubr.f32.gmra.mrb[214].mxu1 %v3527_v6 }
 0x4de   : > { %9683 = vmatpush1.bf16.msra.mxu1 %v9682_v37  ;;  %8845 = vmatprep.mubr.msk.f32.mxu1 %vm2858_vm2, %v3484_v27  ;;  %v9691_v27 = vpack.c.bf16 %v4326_v3, %v4325_v49  ;;  %v4335_v37 = vld [vmem:[#allocation4 + $0x160] sm:$0xff] }
 0x4df   : > { %v3494_v15 = vpop.permute.xlu0 %3493  ;;  %9684 = vmatprep.subr.bf16.mxu1 %v16120_v51 }
 0x4e0   : > { %v3531_v39 = vsel %vm2858_vm2, %v3494_v15, %v13496_v13  ;;  %v3524_v34 = vpop.permute.xlu1 %3523  ;;  %v4338_v15 = vld [vmem:[#allocation4 + $0x178] sm:$0xff] }
 0x4e1   : > { %3787 = vmatmul.mubr.f32.gmra.mrb[216].mxu1 %v3528_v26 }
 0x4e2   : > { %9686 = vmatpush1.bf16.msra.mxu1 %v9685_v4  ;;  %8846 = vmatprep.mubr.msk.f32.mxu1 %vm2858_vm2, %v13490_v24  ;;  %v9694_v24 = vpack.c.bf16 %v4328_v17, %v4327_v54  ;;  %v4337_v4 = vld [vmem:[#allocation4 + $0x170] sm:$0xff] }
 0x4e3   : > { %v3498_v2 = vpop.permute.xlu0 %3497  ;;  %9687 = vmatprep.subr.bf16.mxu1 %v16120_v51 }
 0x4e4   : > { %v3532_v9 = vsel %vm2858_vm2, %v3498_v2, %v13502_v50  ;;  %v10305_v23 = vpop.permute.xlu1 %10304 }
 0x4e5   : > { %3792 = vmatmul.mubr.f32.gmra.mrb[218].mxu1 %v3529_v56  ;;  %v10307_v5 = vunpack.i.h.bf16 %v10305_v23  ;;  %v10306_v26 = vunpack.i.l.bf16 %v10305_v23 }
 0x4e6   : > { %9689 = vmatpush1.bf16.msra.mxu1 %v9688_v18  ;;  %8847 = vmatprep.mubr.msk.f32.mxu1 %vm2858_vm2, %v13494_v47  ;;  %v9697_v47 = vpack.c.bf16 %v4330_v53, %v4329_v19  ;;  %v9709_v18 = vpack.c.bf16 %v4338_v15, %v4337_v4 }
 0x4e7   : > { %v3502_v12 = vpop.permute.xlu0 %3501  ;;  %9690 = vmatprep.subr.bf16.mxu1 %v16120_v51 }
 0x4e8   : > { %v3533_v46 = vsel %vm2858_vm2, %v3502_v12, %v13508_v45 }
 0x4e9   : > { %3797 = vmatmul.mubr.f32.gmra.mrb[220].mxu1 %v3530_v42  ;;  %v16507_v42 = vld [vmem:[#allocation120_spill] sm:$0xff] }
 0x4ea   : > { %9692 = vmatpush1.bf16.msra.mxu1 %v9691_v27  ;;  %8848 = vmatprep.mubr.msk.f32.mxu1 %vm2858_vm2, %v13496_v13  ;;  %v9700_v13 = vpack.c.bf16 %v4332_v62, %v4331_v29 }
 0x4eb   : > { %v3506_v1 = vpop.permute.xlu0 %3505  ;;  %9693 = vmatprep.subr.bf16.mxu1 %v16120_v51 }
 0x4ec   : > { %v3534_v20 = vsel %vm2858_vm2, %v3506_v1, %v13515_v57 }
 0x4ed   : > { %3802 = vmatmul.mubr.f32.gmra.mrb[222].mxu1 %v3531_v39 }
 0x4ee   : > { %9695 = vmatpush1.bf16.msra.mxu1 %v9694_v24  ;;  %8849 = vmatprep.mubr.msk.f32.mxu1 %vm2858_vm2, %v13502_v50  ;;  %v9703_v50 = vpack.c.bf16 %v4334_v44, %v4333_v14  ;;  %v16508_v24 = vld [vmem:[#allocation116_spill] sm:$0xff] }
 0x4ef   : > { %v3510_v59 = vpop.permute.xlu0 %3509  ;;  %9696 = vmatprep.subr.bf16.mxu1 %v16120_v51  ;;  %v16509_v1 = vpack.c.bf16 %v16507_v42, %v16508_v24 }
 0x4f0   : > { %v3535_v55 = vsel %vm2858_vm2, %v3510_v59, %v13522_v22 }
 0x4f1   : > { %3807 = vmatmul.mubr.f32.gmra.mrb[224].mxu1 %v3532_v9 }
 0x4f2   : > { %9698 = vmatpush1.bf16.msra.mxu1 %v9697_v47  ;;  %8850 = vmatprep.mubr.msk.f32.mxu1 %vm2858_vm2, %v13508_v45  ;;  %v9706_v45 = vpack.c.bf16 %v4336_v0, %v4335_v37  ;;  %v10325_v47 = vpop.permute.xlu1 %10324 }
 0x4f3   : > { %v3514_v30 = vpop.permute.xlu0 %3513  ;;  %9699 = vmatprep.subr.bf16.mxu1 %v16120_v51 }
 0x4f4   : > { %v3536_v27 = vsel %vm2858_vm2, %v3514_v30, %v3516_v63 }
 0x4f5   : > { %3812 = vmatmul.mubr.f32.gmra.mrb[226].mxu1 %v3533_v46  ;;  %v10327_v46 = vunpack.i.h.bf16 %v10325_v47 }
 0x4f6   : > { %9701 = vmatpush1.bf16.msra.mxu1 %v9700_v13  ;;  %8851 = vmatprep.mubr.msk.f32.mxu1 %vm2858_vm2, %v13515_v57 }
 0x4f7   : > { %v3518_v32 = vpop.permute.xlu0 %3517  ;;  %9702 = vmatprep.subr.bf16.mxu1 %v16120_v51 }
 0x4f8   : > { %v3537_v39 = vsel %vm2858_vm2, %v3518_v32, %v3520_v11 }
 0x4f9   : > { %3817 = vmatmul.mubr.f32.gmra.mrb[228].mxu1 %v3534_v20 }
 0x4fa   : > { %9704 = vmatpush1.bf16.msra.mxu1 %v9703_v50  ;;  %8852 = vmatprep.mubr.msk.f32.mxu1 %vm2858_vm2, %v13522_v22  ;;  %v4079_v22 = vsel %vm2858_vm2, %v10306_v26, %v10307_v5  ;;  %v10326_v50 = vunpack.i.l.bf16 %v10325_v47 }
 0x4fb   : > { %v3522_v6 = vpop.permute.xlu0 %3521  ;;  %9705 = vmatprep.subr.bf16.mxu1 %v16120_v51 }
 0x4fc   : > { %v3538_v44 = vsel %vm2858_vm2, %v3522_v6, %v3524_v34 }
 0x4fd   : > { %3822 = vmatmul.mubr.f32.gmra.mrb[230].mxu1 %v3535_v55 }
 0x4fe   : > { %9707 = vmatpush1.bf16.msra.mxu1 %v9706_v45  ;;  %v13557_v57 = vpop.f32.mrb[182].mxu1  ;;  %8853 = vmatprep.mubr.msk.f32.mxu1 %vm2858_vm2, %v3516_v63 }
 0x4ff   : > { %v13560_v2 = vpop.f32.mrb[183].mxu1  ;;  %v10310_v49 = vpop.permute.xlu0 %10309  ;;  %9708 = vmatprep.subr.bf16.mxu1 %v16120_v51  ;;  %v11017_v51 = vld [vmem:[#allocation7 + $0x48] sm:$0xff] }
 0x500   : > { %v10312_v3 = vunpack.i.h.bf16 %v10310_v49  ;;  %v10311_v56 = vunpack.i.l.bf16 %v10310_v49 }
 0x501   : > { %3827 = vmatmul.mubr.f32.gmra.mrb[232].mxu1 %v3536_v27 }
 0x502   : > { %v4080_v12 = vsel %vm2858_vm2, %v10311_v56, %v10312_v3  ;;  %9710 = vmatpush1.bf16.msra.mxu1 %v9709_v18  ;;  %v13566_v54 = vpop.f32.mrb[184].mxu1  ;;  %8854 = vmatprep.mubr.msk.f32.mxu1 %vm2858_vm2, %v3520_v11  ;;  %v9645_v17 = vpack.c.bf16 %v10312_v3, %v10307_v5 }
 0x503   : > { %9749 = vmatprep.subr.msk.bf16.mxu1 %vm12233_vm3, %v16509_v1  ;;  %v13574_v19 = vpop.f32.mrb[185].mxu1  ;;  %v10315_v63 = vpop.permute.xlu0 %10314  ;;  %v9647_v53 = vpack.c.bf16 %v4080_v12, %v4079_v22 }
 0x504   : > { %9646 = vmatprep.subr.bf16.mxu0 %v9645_v17  ;;  %v10317_v59 = vunpack.i.h.bf16 %v10315_v63  ;;  %v10316_v29 = vunpack.i.l.bf16 %v10315_v63 }
 0x505   : > { %3832 = vmatmul.mubr.f32.gmra.mrb[234].mxu1 %v3537_v39  ;;  %9648 = vmatpush1.bf16.msra.mxu0 %v9647_v53 }
 0x506   : > { %v13577_v62 = vpop.f32.mrb[186].mxu1  ;;  %8855 = vmatprep.mubr.msk.f32.mxu1 %vm2858_vm2, %v3524_v34  ;;  %v4081_v11 = vsel %vm2858_vm2, %v10316_v29, %v10317_v59  ;;  %v4083_v34 = vsel %vm2858_vm2, %v10326_v50, %v10327_v46 }
 0x507   : > { %v13580_v9 = vpop.f32.mrb[187].mxu1  ;;  %v10320_v13 = vpop.permute.xlu0 %10319 }
 0x508   : > { %v10322_v30 = vunpack.i.h.bf16 %v10320_v13  ;;  %v10321_v14 = vunpack.i.l.bf16 %v10320_v13 }
 0x509   : > { %3837 = vmatmul.mubr.f32.gmra.mrb[236].mxu1 %v3538_v44 }
 0x50a   : > { %v4082_v32 = vsel %vm2858_vm2, %v10321_v14, %v10322_v30  ;;  %v13585_v37 = vpop.f32.mrb[188].mxu1  ;;  %v9649_v0 = vpack.c.bf16 %v10322_v30, %v10317_v59 }
 0x50b   : > { %v13587_v20 = vpop.f32.mrb[189].mxu1  ;;  %v10330_v45 = vpop.permute.xlu0 %10329  ;;  %v9651_v23 = vpack.c.bf16 %v4082_v32, %v4081_v11 }
 0x50c   : > { %v10332_v4 = vunpack.i.h.bf16 %v10330_v45  ;;  %v10331_v15 = vunpack.i.l.bf16 %v10330_v45  ;;  %9650 = vmatprep.subr.bf16.mxu0 %v9649_v0 }
 0x50d   : > { %9652 = vmatpush1.bf16.msra.mxu0 %v9651_v23 }
 0x50e   : > { %v4084_v6 = vsel %vm2858_vm2, %v10331_v15, %v10332_v4  ;;  %v13591_v55 = vpop.f32.mrb[190].mxu1  ;;  %v9653_v5 = vpack.c.bf16 %v10332_v4, %v10327_v46 }
 0x50f   : > { %v13593_v26 = vpop.f32.mrb[191].mxu1  ;;  %v10335_v18 = vpop.permute.xlu0 %10334  ;;  %v9655_v49 = vpack.c.bf16 %v4084_v6, %v4083_v34 }
 0x510   : > { %9654 = vmatprep.subr.bf16.mxu0 %v9653_v5  ;;  %v10337_v3 = vunpack.i.h.bf16 %v10335_v18  ;;  %v10336_v56 = vunpack.i.l.bf16 %v10335_v18  ;;  %v11008_v5 = vld [vmem:[#allocation7] sm:$0xff] }
 0x511   : > { %9656 = vmatpush1.bf16.msra.mxu0 %v9655_v49 }
 0x512   : > { %v13595_v27 = vpop.f32.mrb[192].mxu1  ;;  %v4085_v63 = vsel %vm2858_vm2, %v10336_v56, %v10337_v3 }
 0x513   : > { %v13597_v22 = vpop.f32.mrb[193].mxu1  ;;  %v10340_v12 = vpop.permute.xlu0 %10339 }
 0x514   : > { %v10342_v17 = vunpack.i.h.bf16 %v10340_v12  ;;  %v10341_v1 = vunpack.i.l.bf16 %v10340_v12  ;;  %v11009_v12 = vld [vmem:[#allocation7 + $0x8] sm:$0xff] }
 0x516   : > { %v4086_v53 = vsel %vm2858_vm2, %v10341_v1, %v10342_v17  ;;  %v13601_v39 = vpop.f32.mrb[194].mxu1  ;;  %v9657_v47 = vpack.c.bf16 %v10342_v17, %v10337_v3 }
 0x517   : > { %v13603_v59 = vpop.f32.mrb[195].mxu1  ;;  %v9659_v29 = vpack.c.bf16 %v4086_v53, %v4085_v63 }
 0x518   : > { %9658 = vmatprep.subr.bf16.mxu0 %v9657_v47  ;;  %v11010_v47 = vld [vmem:[#allocation7 + $0x10] sm:$0xff] }
 0x519   : > { %9660 = vmatpush1.bf16.msra.mxu0 %v9659_v29 }
 0x51a   : > { %v13605_v13 = vpop.f32.mrb[196].mxu1 }
 0x51b   : > { %16510 = vst [vmem:[#allocation12_spill] sm:$0xff] %v13605_v13  ;;  %v13607_v30 = vpop.f32.mrb[197].mxu1 }
 0x51c   : > { %16511 = vst [vmem:[#allocation18_spill] sm:$0xff] %v13607_v30 }
 0x51e   : > { %v13609_v14 = vpop.f32.mrb[198].mxu1 }
 0x51f   : > { %16512 = vst [vmem:[#allocation20_spill] sm:$0xff] %v13609_v14  ;;  %v13611_v44 = vpop.f32.mrb[199].mxu1 }
 0x520   : > { %16513 = vst [vmem:[#allocation22_spill] sm:$0xff] %v13611_v44 }
 0x522   : > { %v13613_v46 = vpop.f32.mrb[200].mxu1 }
 0x523   : > { %16514 = vst [vmem:[#allocation24_spill] sm:$0xff] %v13613_v46  ;;  %v13615_v50 = vpop.f32.mrb[201].mxu1 }
 0x524   : > { %16515 = vst [vmem:[#allocation26_spill] sm:$0xff] %v13615_v50 }
 0x56b   : > { %v13617_v11 = vpop.f32.mrb[202].mxu1 }
 0x56c   : > { %16516 = vst [vmem:[#allocation28_spill] sm:$0xff] %v13617_v11  ;;  %v13619_v32 = vpop.f32.mrb[203].mxu1 }
 0x56d   : > { %16517 = vst [vmem:[#allocation30_spill] sm:$0xff] %v13619_v32 }
 0x56f   : > { %v13621_v0 = vpop.f32.mrb[204].mxu1 }
 0x570   : > { %16518 = vst [vmem:[#allocation33_spill] sm:$0xff] %v13621_v0  ;;  %v13623_v45 = vpop.f32.mrb[205].mxu1 }
 0x571   : > { %16519 = vst [vmem:[#allocation36_spill] sm:$0xff] %v13623_v45 }
 0x5a0   : > { %v13625_v23 = vpop.f32.mrb[206].mxu1 }
 0x5a1   : > { %16520 = vst [vmem:[#allocation39_spill] sm:$0xff] %v13625_v23  ;;  %v13627_v4 = vpop.f32.mrb[207].mxu1 }
 0x5a2   : > { %16521 = vst [vmem:[#allocation42_spill] sm:$0xff] %v13627_v4  ;;  %v11020_v4 = vld [vmem:[#allocation7 + $0x68] sm:$0x3f] }
 0x5a4   : > { %v13629_v15 = vpop.f32.mrb[208].mxu1 }
 0x5a5   : > { %16522 = vst [vmem:[#allocation14_spill] sm:$0xff] %v13629_v15  ;;  %v13631_v34 = vpop.f32.mrb[209].mxu1  ;;  %v11018_v15 = vld [vmem:[#allocation7 + $0x50] sm:$0xff] }
 0x5a6   : > { %16523 = vst [vmem:[#allocation16_spill] sm:$0xff] %v13631_v34  ;;  %v11019_v34 = vld [vmem:[#allocation7 + $0x58] sm:$0xff] }
 0x5a8   : > { %v3773_v6 = vpop.f32.mrb[210].mxu1 }
 0x5a9   : > { %v13633_v18 = vadd.f32 %v11008_v5, %v3773_v6  ;;  %v3775_v49 = vpop.f32.mrb[211].mxu1 }
 0x5ab   : > { %v3842_v3 = vsel %vm3078_vm6, %v13633_v18, -inf }
 0x5ac   : > { %v3778_v56 = vpop.f32.mrb[212].mxu1  ;;  %3843 = vmax.xlane.f32.xlu0 %v3842_v3 }
 0x5ad   : > { %v13637_v17 = vadd.f32 %v11009_v12, %v3778_v56  ;;  %v3780_v1 = vpop.f32.mrb[213].mxu1 }
 0x5af   : > { %v3845_v63 = vsel %vm3078_vm6, %v13637_v17, -inf }
 0x5b0   : > { %v3783_v53 = vpop.f32.mrb[214].mxu1  ;;  %3846 = vmax.xlane.f32.xlu1 %v3845_v63 }
 0x5b1   : > { %v13641_v29 = vadd.f32 %v11010_v47, %v3783_v53  ;;  %v3785_v6 = vpop.f32.mrb[215].mxu1 }
 0x5b3   : > { %v3848_v5 = vsel %vm3078_vm6, %v13641_v29, -inf }
 0x5b4   : > { %v3788_v49 = vpop.f32.mrb[216].mxu1  ;;  %3849 = vmax.xlane.f32.xlu0 %v3848_v5 }
 0x5b5   : > { %v13645_v3 = vadd.f32 %v11011_v28, %v3788_v49  ;;  %v3790_v56 = vpop.f32.mrb[217].mxu1 }
 0x5b7   : > { %v3851_v12 = vsel %vm3078_vm6, %v13645_v3, -inf }
 0x5b8   : > { %v3793_v1 = vpop.f32.mrb[218].mxu1  ;;  %3852 = vmax.xlane.f32.xlu0 %v3851_v12 }
 0x5b9   : > { %v13649_v63 = vadd.f32 %v11012_v58, %v3793_v1  ;;  %v3795_v53 = vpop.f32.mrb[219].mxu1 }
 0x5bb   : > { %v3854_v47 = vsel %vm3078_vm6, %v13649_v63, -inf }
 0x5bc   : > { %v3798_v6 = vpop.f32.mrb[220].mxu1  ;;  %3855 = vmax.xlane.f32.xlu1 %v3854_v47 }
 0x5bd   : > { %v13653_v5 = vadd.f32 %v11013_v40, %v3798_v6  ;;  %v3800_v28 = vpop.f32.mrb[221].mxu1 }
 0x5bf   : > { %v3857_v49 = vsel %vm3078_vm6, %v13653_v5, -inf }
 0x5c0   : > { %v3803_v56 = vpop.f32.mrb[222].mxu1  ;;  %3858 = vmax.xlane.f32.xlu0 %v3857_v49 }
 0x5c1   : > { %v13657_v12 = vadd.f32 %v11014_v61, %v3803_v56  ;;  %v3805_v58 = vpop.f32.mrb[223].mxu1 }
 0x5c3   : > { %v3860_v1 = vsel %vm3078_vm6, %v13657_v12, -inf }
 0x5c4   : > { %v3808_v53 = vpop.f32.mrb[224].mxu1  ;;  %3861 = vmax.xlane.f32.xlu1 %v3860_v1 }
 0x5c5   : > { %v13661_v47 = vadd.f32 %v11015_v8, %v3808_v53  ;;  %v3810_v40 = vpop.f32.mrb[225].mxu1 }
 0x5c7   : > { %v3863_v6 = vsel %vm3078_vm6, %v13661_v47, -inf }
 0x5c8   : > { %v3813_v28 = vpop.f32.mrb[226].mxu1  ;;  %3864 = vmax.xlane.f32.xlu0 %v3863_v6 }
 0x5c9   : > { %v13665_v49 = vadd.f32 %v11016_v35, %v3813_v28  ;;  %v3815_v61 = vpop.f32.mrb[227].mxu1 }
 0x5cb   : > { %v3866_v56 = vsel %vm3078_vm6, %v13665_v49, -inf }
 0x5cc   : > { %v3818_v58 = vpop.f32.mrb[228].mxu1  ;;  %3867 = vmax.xlane.f32.xlu1 %v3866_v56 }
 0x5cd   : > { %v13669_v1 = vadd.f32 %v11017_v51, %v3818_v58  ;;  %v3820_v8 = vpop.f32.mrb[229].mxu1 }
 0x5cf   : > { %v3869_v53 = vsel %vm3078_vm6, %v13669_v1, -inf }
 0x5d0   : > { %v3823_v40 = vpop.f32.mrb[230].mxu1  ;;  %3870 = vmax.xlane.f32.xlu0 %v3869_v53 }
 0x5d1   : > { %v13673_v6 = vadd.f32 %v11018_v15, %v3823_v40  ;;  %v3825_v35 = vpop.f32.mrb[231].mxu1 }
 0x5d3   : > { %v3872_v28 = vsel %vm3078_vm6, %v13673_v6, -inf }
 0x5d4   : > { %v3828_v61 = vpop.f32.mrb[232].mxu1  ;;  %3873 = vmax.xlane.f32.xlu1 %v3872_v28  ;;  %v16524_v28 = vld [vmem:[#allocation244_spill] sm:$0xff] }
 0x5d5   : > { %v13677_v56 = vadd.f32 %v11019_v34, %v3828_v61  ;;  %v3830_v51 = vpop.f32.mrb[233].mxu1  ;;  %v16525_v34 = vld [vmem:[#allocation197_spill] sm:$0xff] }
 0x5d6   : > { %v16526_v61 = vpack.i.bf16 %v16524_v28, %v16525_v34  ;;  %v11021_v51 = vld [vmem:[#allocation7 + $0x60] sm:$0xff] }
 0x5d7   : > { %v3875_v58 = vsel %vm3078_vm6, %v13677_v56, -inf }
 0x5d8   : > { %v3833_v8 = vpop.f32.mrb[234].mxu1  ;;  %3876 = vmax.xlane.f32.xlu0 %v3875_v58  ;;  %v10345_v58 = vpop.permute.xlu1 %10344 }
 0x5d9   : > { %v3835_v23 = vpop.f32.mrb[235].mxu1  ;;  %v13689_v0 = vadd.f32 %v11021_v51, %v3833_v8 }
 0x5db   : > { %v3878_v23 = vsel %vm3078_vm6, %v13689_v0, -inf }
 0x5dc   : > { %v3838_v53 = vpop.f32.mrb[236].mxu1 }
 0x5dd   : > { %v13681_v15 = vadd.f32 %v11020_v4, %v3838_v53  ;;  %v3840_v40 = vpop.f32.mrb[237].mxu1 }
 0x5df   : > { %v3881_v35 = vsel %vm3118_vm7, %v13681_v15, -inf }
 0x5e0   : > { %3882 = vmax.xlane.f32.xlu0 %v3881_v35 }
 0x5e5   : > { %10349 = vrot.lane.b32.xlu1 %v16526_v61, %s11205_s13 }
 0x609   : > { %3879 = vmax.xlane.f32.xlu1 %v3878_v23 }
 0x639   : > { %v3844_v4 = vpop.xlane.xlu0 %3843 }
 0x63a   : > { %v3884_v53 = vsub.f32 %v13633_v18, %v3844_v4  ;;  %v16527_v4 = vld [vmem:[#allocation248_spill] sm:$0xff] }
 0x63c   : > { %v3898_v40 = vmul.f32 1.442695, %v3884_v53  ;;  %v16528_v53 = vld [vmem:[#allocation200_spill] sm:$0xff] }
 0x63d   : > { %v3847_v45 = vpop.xlane.xlu1 %3846 }
 0x63e   : > { %10709 = vpow2.f32 %v3898_v40  ;;  %v3885_v35 = vsub.f32 %v13637_v17, %v3847_v45  ;;  %v16529_v40 = vpack.i.bf16 %v16527_v4, %v16528_v53 }
 0x640   : > { %v3900_v11 = vmul.f32 1.442695, %v3885_v35  ;;  %v10347_v35 = vunpack.i.h.bf16 %v10345_v58 }
 0x641   : > { %v3850_v32 = vpop.xlane.xlu0 %3849 }
 0x642   : > { %10711 = vpow2.f32 %v3900_v11  ;;  %v3886_v28 = vsub.f32 %v13641_v29, %v3850_v32 }
 0x644   : > { %v3902_v8 = vmul.f32 1.442695, %v3886_v28  ;;  %v10346_v28 = vunpack.i.l.bf16 %v10345_v58 }
 0x645   : > { %v3853_v30 = vpop.xlane.xlu0 %3852 }
 0x646   : > { %10713 = vpow2.f32 %v3902_v8  ;;  %v16530_v8 = vld [vmem:[#allocation252_spill] sm:$0xff]  ;;  %v4087_v14 = vsel %vm2858_vm2, %v10346_v28, %v10347_v35  ;;  %v3887_v4 = vsub.f32 %v13645_v3, %v3853_v30 }
 0x648   : > { %v13696_v34 = vpop.eup %10709 }
 0x649   : > { %v3926_v61 = vsel %vm3078_vm6, %v13696_v34, 0.0  ;;  %v3856_v32 = vpop.xlane.xlu1 %3855 }
 0x64a   : > { %3927 = vadd.xlane.f32.xlu1 %v3926_v61  ;;  %v16531_v61 = vld [vmem:[#allocation203_spill] sm:$0xff]  ;;  %v3888_v53 = vsub.f32 %v13649_v63, %v3856_v32 }
 0x64c   : > { %v13700_v51 = vpop.eup %10711 }
 0x64d   : > { %v3929_v18 = vsel %vm3078_vm6, %v13700_v51, 0.0  ;;  %v3859_v58 = vpop.xlane.xlu0 %3858 }
 0x64e   : > { %3930 = vadd.xlane.f32.xlu0 %v3929_v18  ;;  %v16532_v18 = vpack.i.bf16 %v16530_v8, %v16531_v61  ;;  %v3889_v8 = vsub.f32 %v13653_v5, %v3859_v58 }
 0x650   : > { %v13704_v45 = vpop.eup %10713 }
 0x651   : > { %v3932_v11 = vsel %vm3078_vm6, %v13704_v45, 0.0  ;;  %v13708_v17 = vpop.xlane.xlu1 %3861 }
 0x652   : > { %3933 = vadd.xlane.f32.xlu1 %v3932_v11 }
 0x655   : > { %v3865_v61 = vpop.xlane.xlu0 %3864 }
 0x656   : > { %v3891_v28 = vsub.f32 %v13661_v47, %v3865_v61 }
 0x659   : > { %v3868_v29 = vpop.xlane.xlu1 %3867 }
 0x661   : > { %v3874_v23 = vpop.xlane.xlu1 %3873 }
 0x662   : > { %v3894_v63 = vsub.f32 %v13673_v6, %v3874_v23 }
 0x663   : > { %10354 = vrot.lane.b32.xlu1 %v16529_v40, %s11205_s13  ;;  %v3904_v40 = vmul.f32 1.442695, %v3887_v4 }
 0x664   : > { %10359 = vrot.lane.b32.xlu0 %v16532_v18, %s11205_s13  ;;  %v3906_v18 = vmul.f32 1.442695, %v3888_v53 }
 0x665   : > { %v10350_v46 = vpop.permute.xlu1 %10349  ;;  %10715 = vpow2.f32 %v3904_v40 }
 0x666   : > { %v10352_v50 = vunpack.i.h.bf16 %v10350_v46  ;;  %v10351_v11 = vunpack.i.l.bf16 %v10350_v46  ;;  %v3908_v46 = vmul.f32 1.442695, %v3889_v8  ;;  %10717 = vpow2.f32 %v3906_v18 }
 0x668   : > { %v4088_v44 = vsel %vm2858_vm2, %v10351_v11, %v10352_v50  ;;  %v9661_v13 = vpack.c.bf16 %v10352_v50, %v10347_v35  ;;  %10719 = vpow2.f32 %v3908_v46 }
 0x669   : > { %v9663_v31 = vpack.c.bf16 %v4088_v44, %v4087_v14  ;;  %v3912_v14 = vmul.f32 1.442695, %v3891_v28 }
 0x66a   : > { %9662 = vmatprep.subr.bf16.mxu0 %v9661_v13  ;;  %v3892_v13 = vsub.f32 %v13665_v49, %v3868_v29  ;;  %v3918_v49 = vmul.f32 1.442695, %v3894_v63  ;;  %v16537_v63 = vld [vmem:[#allocation209_spill] sm:$0xff] }
 0x66b   : > { %9664 = vmatpush1.bf16.msra.mxu0 %v9663_v31  ;;  %v3871_v31 = vpop.xlane.xlu0 %3870  ;;  %10721 = vpow2.f32 %v3912_v14 }
 0x66c   : > { %v3914_v30 = vmul.f32 1.442695, %v3892_v13  ;;  %v3893_v44 = vsub.f32 %v13669_v1, %v3871_v31  ;;  %v16533_v31 = vld [vmem:[#allocation256_spill] sm:$0xff] }
 0x66e   : > { %10723 = vpow2.f32 %v3914_v30  ;;  %v3916_v3 = vmul.f32 1.442695, %v3893_v44  ;;  %v16534_v30 = vld [vmem:[#allocation206_spill] sm:$0xff] }
 0x66f   : > { %v13726_v50 = vpop.eup %10715  ;;  %v3877_v32 = vpop.xlane.xlu0 %3876  ;;  %v16535_v44 = vpack.i.bf16 %v16533_v31, %v16534_v30  ;;  %v16546_v30 = vld [vmem:[#allocation125_spill] sm:$0xff] }
 0x670   : > { %v13729_v5 = vpop.eup %10717  ;;  %v3935_v47 = vsel %vm3078_vm6, %v13726_v50, 0.0  ;;  %10725 = vpow2.f32 %v3916_v3  ;;  %v3895_v29 = vsub.f32 %v13677_v56, %v3877_v32  ;;  %v16536_v3 = vld [vmem:[#allocation260_spill] sm:$0xff] }
 0x671   : > { %v3938_v1 = vsel %vm3078_vm6, %v13729_v5, 0.0  ;;  %10727 = vpow2.f32 %v3918_v49  ;;  %v16538_v32 = vpack.i.bf16 %v16536_v3, %v16537_v63  ;;  %v3890_v49 = vsub.f32 %v13657_v12, %v13708_v17 }
 0x672   : > { %v13733_v35 = vpop.eup %10719  ;;  %v3920_v23 = vmul.f32 1.442695, %v3895_v29 }
 0x673   : > { %v3941_v11 = vsel %vm3078_vm6, %v13733_v35, 0.0  ;;  %v3883_v29 = vpop.xlane.xlu0 %3882 }
 0x674   : > { %10729 = vpow2.f32 %v3920_v23 }
 0x675   : > { %v13740_v6 = vpop.eup %10721 }
 0x676   : > { %v3947_v4 = vsel %vm3078_vm6, %v13740_v6, 0.0 }
 0x678   : > { %v13744_v58 = vpop.eup %10723 }
 0x679   : > { %v3950_v56 = vsel %vm3078_vm6, %v13744_v58, 0.0 }
 0x67a   : > { %v13748_v53 = vpop.eup %10725 }
 0x67b   : > { %v3953_v40 = vsel %vm3078_vm6, %v13748_v53, 0.0  ;;  %v13752_v8 = vpop.eup %10727 }
 0x67c   : > { %v3956_v18 = vsel %vm3078_vm6, %v13752_v8, 0.0 }
 0x67e   : > { %v13756_v46 = vpop.eup %10729 }
 0x67f   : > { %v3959_v13 = vsel %vm3078_vm6, %v13756_v46, 0.0 }
 0x683   : > { %3936 = vadd.xlane.f32.xlu0 %v3935_v47 }
 0x687   : > { %3939 = vadd.xlane.f32.xlu0 %v3938_v1  ;;  %3942 = vadd.xlane.f32.xlu1 %v3941_v11  ;;  %v3910_v1 = vmul.f32 1.442695, %v3890_v49  ;;  %v3897_v11 = vsub.f32 %v13681_v15, %v3883_v29  ;;  %v16549_v29 = vld [vmem:[#allocation133_spill] sm:$0xff] }
 0x689   : > { %v3924_v23 = vmul.f32 1.442695, %v3897_v11 }
 0x68b   : > { %3948 = vadd.xlane.f32.xlu1 %v3947_v4  ;;  %v16539_v4 = vld [vmem:[#allocation121_spill] sm:$0xff] }
 0x68f   : > { %3951 = vadd.xlane.f32.xlu1 %v3950_v56  ;;  %v16540_v56 = vpack.i.bf16 %v16539_v4, %v16507_v42  ;;  %v16544_v42 = vld [vmem:[#allocation117_spill] sm:$0xff] }
 0x693   : > { %3954 = vadd.xlane.f32.xlu1 %v3953_v40 }
 0x696   : > { %v3880_v61 = vpop.xlane.xlu1 %3879 }
 0x697   : > { %v3896_v28 = vsub.f32 %v13689_v0, %v3880_v61  ;;  %3957 = vadd.xlane.f32.xlu1 %v3956_v18  ;;  %v16541_v61 = vld [vmem:[#allocation129_spill] sm:$0xff]  ;;  %v16542_v18 = vld [vmem:[#allocation128_spill] sm:$0xff] }
 0x699   : > { %v3922_v14 = vmul.f32 1.442695, %v3896_v28  ;;  %v16543_v28 = vpack.i.bf16 %v16541_v61, %v16542_v18 }
 0x69b   : > { %10731 = vpow2.f32 %v3922_v14  ;;  %3960 = vadd.xlane.f32.xlu1 %v3959_v13  ;;  %v16545_v14 = vpack.i.bf16 %v16544_v42, %v16508_v24 }
 0x69c   : > { %10733 = vpow2.f32 %v3910_v1  ;;  %v16550_v1 = vld [vmem:[#allocation132_spill] sm:$0xff] }
 0x69d   : > { %10364 = vrot.lane.b32.xlu0 %v16535_v44, %s11205_s13  ;;  %10735 = vpow2.f32 %v3924_v23  ;;  %v16547_v44 = vld [vmem:[#allocation124_spill] sm:$0xff]  ;;  %v16551_v11 = vpack.i.bf16 %v16549_v29, %v16550_v1 }
 0x69e   : > { %v16548_v3 = vpack.i.bf16 %v16546_v30, %v16547_v44 }
 0x6a1   : > { %10369 = vrot.lane.b32.xlu0 %v16538_v32, %s11205_s13 }
 0x6a5   : > { %v13769_v47 = vpop.eup %10731 }
 0x6a6   : > { %v3962_v0 = vsel %vm3078_vm6, %v13769_v47, 0.0  ;;  %v13780_v40 = vpop.eup %10733 }
 0x6a7   : > { %3963 = vadd.xlane.f32.xlu1 %v3962_v0  ;;  %v3944_v12 = vsel %vm3078_vm6, %v13780_v40, 0.0  ;;  %v13788_v17 = vpop.eup %10735 }
 0x6a8   : > { %v3965_v15 = vsel %vm3118_vm7, %v13788_v17, 0.0 }
 0x6b8   : > { %10379 = vrot.lane.b32.xlu1 %v16540_v56, %s11205_s13 }
 0x6bc   : > { %10389 = vrot.lane.b32.xlu1 %v16543_v28, %s11205_s13 }
 0x6c0   : > { %3945 = vadd.xlane.f32.xlu0 %v3944_v12 }
 0x6c4   : > { %3966 = vadd.xlane.f32.xlu0 %v3965_v15 }
 0x6d7   : > { %v3928_v13 = vpop.xlane.xlu1 %3927 }
 0x6d8   : > { %10737 = vrcp.f32 %v3928_v13 }
 0x6da   : > { %10374 = vrot.lane.b32.xlu0 %v16545_v14, %s11205_s13 }
 0x6db   : > { %v3931_v31 = vpop.xlane.xlu0 %3930 }
 0x6dc   : > { %10739 = vrcp.f32 %v3931_v31 }
 0x6de   : > { %10384 = vrot.lane.b32.xlu0 %v16548_v3, %s11205_s13 }
 0x6df   : > { %v3934_v63 = vpop.xlane.xlu1 %3933  ;;  %v10360_v32 = vpop.permute.xlu0 %10359 }
 0x6e0   : > { %v10362_v0 = vunpack.i.h.bf16 %v10360_v32  ;;  %v10361_v49 = vunpack.i.l.bf16 %v10360_v32  ;;  %10741 = vrcp.f32 %v3934_v63  ;;  %v16553_v63 = vmov 0.0|0.0  }
 0x6e2   : > { %10394 = vrot.lane.b32.xlu0 %v16551_v11, %s11205_s13  ;;  %v4090_v56 = vsel %vm2858_vm2, %v10361_v49, %v10362_v0 }
 0x6e3   : > { %v10355_v23 = vpop.permute.xlu1 %10354 }
 0x6e4   : > { %v10357_v4 = vunpack.i.h.bf16 %v10355_v23  ;;  %v10356_v24 = vunpack.i.l.bf16 %v10355_v23 }
 0x6e6   : > { %v4089_v61 = vsel %vm2858_vm2, %v10356_v24, %v10357_v4  ;;  %v9665_v28 = vpack.c.bf16 %v10362_v0, %v10357_v4  ;;  %v3431_v0 = vld [vmem:[#allocation4] sm:$0xff]  ;;  %v3432_v4 = vld [vmem:[#allocation4 + $0x8] sm:$0xff] }
 0x6e7   : > { %v9667_v12 = vpack.c.bf16 %v4090_v56, %v4089_v61  ;;  %v10738_v56 = vpop.eup %10737  ;;  %v9712_v13 = vpack.c.bf16 %v3432_v4, %v3431_v0 }
 0x6e8   : > { %9666 = vmatprep.subr.bf16.mxu0 %v9665_v28  ;;  %v3982_v31 = vmul.f32 %v10738_v56, %v13696_v34 }
 0x6e9   : > { %9668 = vmatpush1.bf16.msra.mxu0 %v9667_v12  ;;  %v3433_v12 = vld [vmem:[#allocation4 + $0x10] sm:$0xff] }
 0x710   : > { %v3937_v15 = vpop.xlane.xlu0 %3936 }
 0x711   : > { %10743 = vrcp.f32 %v3937_v15 }
 0x714   : > { %v3940_v42 = vpop.xlane.xlu0 %3939 }
 0x715   : > { %10745 = vrcp.f32 %v3940_v42 }
 0x718   : > { %v10365_v14 = vpop.permute.xlu0 %10364 }
 0x719   : > { %v10367_v30 = vunpack.i.h.bf16 %v10365_v14  ;;  %v10366_v3 = vunpack.i.l.bf16 %v10365_v14  ;;  %v3434_v14 = vld [vmem:[#allocation4 + $0x18] sm:$0xff] }
 0x71b   : > { %v4091_v23 = vsel %vm2858_vm2, %v10366_v3, %v10367_v30  ;;  %v10740_v3 = vpop.eup %10739 }
 0x71c   : > { %v10370_v32 = vpop.permute.xlu0 %10369  ;;  %v3983_v15 = vmul.f32 %v10740_v3, %v13700_v51  ;;  %v10742_v34 = vpop.eup %10741  ;;  %v3442_v3 = vld [vmem:[#allocation4 + $0x58] sm:$0xff] }
 0x71d   : > { %v10372_v29 = vunpack.i.h.bf16 %v10370_v32  ;;  %v10371_v11 = vunpack.i.l.bf16 %v10370_v32  ;;  %v3943_v32 = vpop.xlane.xlu1 %3942  ;;  %v3984_v42 = vmul.f32 %v10742_v34, %v13704_v45  ;;  %v10744_v0 = vpop.eup %10743 }
 0x71e   : > { %10747 = vrcp.f32 %v3943_v32  ;;  %v3985_v56 = vmul.f32 %v10744_v0, %v13726_v50 }
 0x71f   : > { %v4092_v49 = vsel %vm2858_vm2, %v10371_v11, %v10372_v29  ;;  %v9669_v24 = vpack.c.bf16 %v10372_v29, %v10367_v30  ;;  %v9715_v30 = vpack.c.bf16 %v3434_v14, %v3433_v12  ;;  %v3435_v29 = vld [vmem:[#allocation4 + $0x20] sm:$0xff]  ;;  %v3436_v11 = vld [vmem:[#allocation4 + $0x28] sm:$0xff]  ;;  %v3441_v14 = vld [vmem:[#allocation4 + $0x50] sm:$0xff] }
 0x720   : > { %v9672_v61 = vpack.c.bf16 %v4092_v49, %v4091_v23  ;;  %v9718_v23 = vpack.c.bf16 %v3436_v11, %v3435_v29  ;;  %v3437_v49 = vld [vmem:[#allocation4 + $0x30] sm:$0xff]  ;;  %v9727_v50 = vpack.c.bf16 %v3442_v3, %v3441_v14  ;;  %v3443_v29 = vld [vmem:[#allocation4 + $0x60] sm:$0xff]  ;;  %v3444_v11 = vld [vmem:[#allocation4 + $0x68] sm:$0xff] }
 0x721   : > { %9671 = vmatprep.subr.msk.bf16.mxu0 %vm12806_vm5, %v9669_v24  ;;  %v3438_v24 = vld [vmem:[#allocation4 + $0x38] sm:$0xff]  ;;  %v3949_v4 = vpop.xlane.xlu1 %3948 }
 0x722   : > { %9674 = vmatpush1.bf16.msk.msra.mxu0 %vm12806_vm5, %v9672_v61  ;;  %v9721_v51 = vpack.c.bf16 %v3438_v24, %v3437_v49  ;;  %v3439_v61 = vld [vmem:[#allocation4 + $0x40] sm:$0xff]  ;;  %v3448_v24 = vld [vmem:[#allocation4 + $0x88] sm:$0xff] }
 0x723   : > { %9711 = vmatprep.subr.bf16.mxu0 %v16553_v63 }
 0x725   : > { %8858 = vmatmul.mubr.msk.f32.vlgmr.msra.gmra.mrb[224].mxu0 %vm3078_vm6, %v3982_v31  ;;  %v10746_v31 = vpop.eup %10745  ;;  %v3952_v32 = vpop.xlane.xlu1 %3951 }
 0x726   : > { %9713 = vmatpush1.bf16.msra.mxu0 %v9712_v13  ;;  %4235 = vmatprep.mubr.f32.mxu0 %v16195_v33  ;;  %v3440_v13 = vld [vmem:[#allocation4 + $0x48] sm:$0xff]  ;;  %v3986_v12 = vmul.f32 %v10746_v31, %v13729_v5  ;;  %v9730_v5 = vpack.c.bf16 %v3444_v11, %v3443_v29 }
 0x727   : > { %9714 = vmatprep.subr.bf16.mxu0 %v16553_v63  ;;  %v9724_v45 = vpack.c.bf16 %v3440_v13, %v3439_v61  ;;  %v3450_v61 = vld [vmem:[#allocation4 + $0x98] sm:$0xff] }
 0x729   : > { %8859 = vmatmul.mubr.msk.f32.gmra.mrb[226].mxu0 %vm3078_vm6, %v3983_v15  ;;  %v3955_v34 = vpop.xlane.xlu1 %3954 }
 0x72a   : > { %9716 = vmatpush1.bf16.msra.mxu0 %v9715_v30  ;;  %4241 = vmatprep.mubr.f32.mxu0 %v16195_v33  ;;  %v10748_v30 = vpop.eup %10747 }
 0x72b   : > { %9717 = vmatprep.subr.bf16.mxu0 %v16553_v63  ;;  %v3987_v15 = vmul.f32 %v10748_v30, %v13733_v35  ;;  %v3447_v35 = vld [vmem:[#allocation4 + $0x80] sm:$0xff]  ;;  %v3453_v30 = vld [vmem:[#allocation4 + $0xb0] sm:$0xff] }
 0x72d   : > { %8860 = vmatmul.mubr.msk.f32.gmra.mrb[228].mxu0 %vm3078_vm6, %v3984_v42  ;;  %v3446_v42 = vld [vmem:[#allocation4 + $0x78] sm:$0xff]  ;;  %v3958_v0 = vpop.xlane.xlu1 %3957 }
 0x72e   : > { %9719 = vmatpush1.bf16.msra.mxu0 %v9718_v23  ;;  %4247 = vmatprep.mubr.f32.mxu0 %v16195_v33  ;;  %v3445_v23 = vld [vmem:[#allocation4 + $0x70] sm:$0xff] }
 0x72f   : > { %9720 = vmatprep.subr.bf16.mxu0 %v16553_v63  ;;  %v9733_v49 = vpack.c.bf16 %v3446_v42, %v3445_v23  ;;  %v16554_v23 = vpack.c.bf16 %v16496_v38, %v16495_v21 }
 0x731   : > { %8861 = vmatmul.mubr.msk.f32.gmra.mrb[230].mxu0 %vm3078_vm6, %v3985_v56  ;;  %v3449_v56 = vld [vmem:[#allocation4 + $0x90] sm:$0xff]  ;;  %v3961_v31 = vpop.xlane.xlu1 %3960 }
 0x732   : > { %9722 = vmatpush1.bf16.msra.mxu0 %v9721_v51  ;;  %4253 = vmatprep.mubr.f32.mxu0 %v16195_v33  ;;  %v9736_v51 = vpack.c.bf16 %v3448_v24, %v3447_v35  ;;  %v9739_v13 = vpack.c.bf16 %v3450_v61, %v3449_v56 }
 0x733   : > { %9723 = vmatprep.subr.bf16.mxu0 %v16553_v63 }
 0x735   : > { %8862 = vmatmul.mubr.msk.f32.gmra.mrb[232].mxu0 %vm3078_vm6, %v3986_v12  ;;  %v3452_v12 = vld [vmem:[#allocation4 + $0xa8] sm:$0xff]  ;;  %v3964_v3 = vpop.xlane.xlu1 %3963 }
 0x736   : > { %9725 = vmatpush1.bf16.msra.mxu0 %v9724_v45  ;;  %4259 = vmatprep.mubr.f32.mxu0 %v16195_v33  ;;  %v3451_v45 = vld [vmem:[#allocation4 + $0xa0] sm:$0xff] }
 0x737   : > { %9726 = vmatprep.subr.bf16.mxu0 %v16553_v63  ;;  %v9742_v14 = vpack.c.bf16 %v3452_v12, %v3451_v45 }
 0x739   : > { %8863 = vmatmul.mubr.msk.f32.gmra.mrb[234].mxu0 %vm3078_vm6, %v3987_v15  ;;  %v13842_v11 = vpop.permute.xlu1 %10379 }
 0x73a   : > { %9728 = vmatpush1.bf16.msra.mxu0 %v9727_v50  ;;  %4265 = vmatprep.mubr.f32.mxu0 %v16195_v33  ;;  %v3454_v50 = vld [vmem:[#allocation4 + $0xb8] sm:$0xff]  ;;  %v10382_v42 = vunpack.i.h.bf16 %v13842_v11 }
 0x73b   : > { %9729 = vmatprep.subr.bf16.mxu0 %v16553_v63  ;;  %v9745_v29 = vpack.c.bf16 %v3454_v50, %v3453_v30 }
 0x73e   : > { %9731 = vmatpush1.bf16.msra.mxu0 %v9730_v5 }
 0x73f   : > { %9732 = vmatprep.subr.bf16.mxu0 %v16553_v63 }
 0x742   : > { %9734 = vmatpush1.bf16.msra.mxu0 %v9733_v49  ;;  %v10381_v49 = vunpack.i.l.bf16 %v13842_v11  ;;  %v16588_v11 = vld [vmem:[#allocation20_spill] sm:$0xff] }
 0x743   : > { %9735 = vmatprep.subr.bf16.mxu0 %v16553_v63 }
 0x744   : > { %v13856_v56 = vsel %vm2858_vm2, %v10381_v49, %v10382_v42 }
 0x746   : > { %9737 = vmatpush1.bf16.msra.mxu0 %v9736_v51 }
 0x747   : > { %9738 = vmatprep.subr.bf16.mxu0 %v16553_v63 }
 0x74a   : > { %9740 = vmatpush1.bf16.msra.mxu0 %v9739_v13 }
 0x74b   : > { %9741 = vmatprep.subr.bf16.mxu0 %v16553_v63 }
 0x74d   : > { %v3946_v15 = vpop.xlane.xlu0 %3945 }
 0x74e   : > { %10749 = vrcp.f32 %v3946_v15  ;;  %9743 = vmatpush1.bf16.msra.mxu0 %v9742_v14  ;;  %v16556_v15 = vld [vmem:[#allocation211_spill] sm:$0xff] }
 0x74f   : > { %9744 = vmatprep.subr.bf16.mxu0 %v16553_v63  ;;  %10751 = vrcp.f32 %v3949_v4 }
 0x750   : > { %10753 = vrcp.f32 %v3952_v32 }
 0x751   : > { %v3967_v5 = vpop.xlane.xlu0 %3966  ;;  %10755 = vrcp.f32 %v3955_v34 }
 0x752   : > { %9746 = vmatpush1.bf16.msra.mxu0 %v9745_v29  ;;  %10757 = vrcp.f32 %v3958_v0 }
 0x753   : > { %9783 = vmatprep.subr.bf16.mxu0 %v16554_v23  ;;  %10759 = vrcp.f32 %v3961_v31 }
 0x754   : > { %10761 = vrcp.f32 %v3964_v3 }
 0x755   : > { %v13849_v35 = vpop.permute.xlu0 %10374  ;;  %10763 = vrcp.f32 %v3967_v5  ;;  %v16560_v5 = vld [vmem:[#allocation219_spill] sm:$0xff] }
 0x756   : > { %v10377_v24 = vunpack.i.h.bf16 %v13849_v35  ;;  %v10376_v51 = vunpack.i.l.bf16 %v13849_v35  ;;  %v16587_v35 = vld [vmem:[#allocation22_spill] sm:$0xff] }
 0x758   : > { %v10750_v4 = vpop.eup %10749  ;;  %v13861_v32 = vsel %vm2858_vm2, %v10376_v51, %v10377_v24  ;;  %v16568_v51 = vld [vmem:[#allocation234_spill] sm:$0xff] }
 0x759   : > { %v3988_v61 = vmul.f32 %v10750_v4, %v13780_v40  ;;  %v10752_v45 = vpop.eup %10751 }
 0x75a   : > { %v3989_v34 = vmul.f32 %v10752_v45, %v13740_v6  ;;  %v10754_v12 = vpop.eup %10753 }
 0x75b   : > { %8864 = vmatmul.mubr.msk.f32.gmra.mrb[236].mxu0 %vm3078_vm6, %v3988_v61  ;;  %v3990_v14 = vmul.f32 %v10754_v12, %v13744_v58  ;;  %v10756_v40 = vpop.eup %10755  ;;  %v16572_v61 = vld [vmem:[#allocation241_spill] sm:$0xff] }
 0x75c   : > { %4271 = vmatprep.mubr.f32.mxu0 %v16195_v33  ;;  %v3991_v0 = vmul.f32 %v10756_v40, %v13748_v53  ;;  %v10758_v30 = vpop.eup %10757 }
 0x75d   : > { %v3992_v6 = vmul.f32 %v10758_v30, %v13752_v8  ;;  %v10760_v31 = vpop.eup %10759 }
 0x75e   : > { %v3993_v58 = vmul.f32 %v10760_v31, %v13756_v46  ;;  %v10762_v3 = vpop.eup %10761  ;;  %v16555_v46 = vld [vmem:[#allocation215_spill] sm:$0xff]  ;;  %v16586_v31 = vld [vmem:[#allocation12_spill] sm:$0xff] }
 0x75f   : > { %8865 = vmatmul.mubr.msk.f32.gmra.mrb[238].mxu0 %vm3078_vm6, %v3989_v34  ;;  %v3994_v53 = vmul.f32 %v10762_v3, %v13769_v47  ;;  %v10764_v50 = vpop.eup %10763  ;;  %v16557_v29 = vpack.c.bf16 %v16555_v46, %v16556_v15  ;;  %v16558_v47 = vpack.c.bf16 %v16498_v16, %v16497_v41  ;;  %v16576_v34 = vld [vmem:[#allocation249_spill] sm:$0xff]  ;;  %v16593_v3 = vld [vmem:[#allocation36_spill] sm:$0xff]  ;;  %v16598_v15 = vld [vmem:[#allocation14_spill] sm:$0xff] }
 0x760   : > { %4277 = vmatprep.mubr.f32.mxu0 %v16195_v33  ;;  %v3995_v8 = vmul.f32 %v10764_v50, %v13788_v17  ;;  %v16559_v17 = vld [vmem:[#allocation223_spill] sm:$0xff]  ;;  %v16595_v50 = vld [vmem:[#allocation42_spill] sm:$0xff]  ;;  %v16597_v46 = vld [vmem:[#allocation16_spill] sm:$0xff] }
 0x761   : > { %v16561_v23 = vpack.c.bf16 %v16559_v17, %v16560_v5  ;;  %v16599_v17 = vld [vmem:[#allocation119_spill] sm:$0xff] }
 0x762   : > { %v16600_v5 = vld [vmem:[#allocation115_spill] sm:$0xff] }
 0x763   : > { %8866 = vmatmul.mubr.msk.f32.gmra.mrb[240].mxu0 %vm3078_vm6, %v3990_v14  ;;  %v16579_v14 = vld [vmem:[#allocation258_spill] sm:$0xff] }
 0x764   : > { %4283 = vmatprep.mubr.f32.mxu0 %v16195_v33 }
 0x767   : > { %8867 = vmatmul.mubr.msk.f32.gmra.mrb[242].mxu0 %vm3078_vm6, %v3991_v0  ;;  %v16582_v0 = vld [vmem:[#allocation257_spill] sm:$0xff] }
 0x768   : > { %4289 = vmatprep.mubr.f32.mxu0 %v16195_v33 }
 0x76b   : > { %8868 = vmatmul.mubr.msk.f32.gmra.mrb[244].mxu0 %vm3078_vm6, %v3992_v6  ;;  %v16954_v6 = vld [vmem:[#allocation278_spill] sm:$0xff] }
 0x76c   : > { %4295 = vmatprep.mubr.f32.mxu0 %v16195_v33 }
 0x76f   : > { %8869 = vmatmul.mubr.msk.f32.gmra.mrb[246].mxu0 %vm3078_vm6, %v3993_v58  ;;  %v16592_v58 = vld [vmem:[#allocation28_spill] sm:$0xff] }
 0x770   : > { %4301 = vmatprep.mubr.f32.mxu0 %v16195_v33 }
 0x773   : > { %8870 = vmatmul.mubr.msk.f32.gmra.mrb[248].mxu0 %vm3078_vm6, %v3994_v53  ;;  %v16594_v53 = vld [vmem:[#allocation33_spill] sm:$0xff] }
 0x774   : > { %4307 = vmatprep.mubr.f32.mxu0 %v16195_v33 }
 0x777   : > { %8871 = vmatmul.mubr.msk.f32.gmra.mrb[250].mxu0 %vm3078_vm6, %v3995_v8  ;;  %v16596_v8 = vld [vmem:[#allocation39_spill] sm:$0xff] }
 0x778   : > { %8886 = vmatprep.mubr.msk.f32.mxu0 %vm2858_vm2, %v13560_v2  ;;  %v16563_v2 = vld [vmem:[#allocation230_spill] sm:$0xff] }
 0x77b   : > { %4623 = vmatmul.mubr.f32.vlgmr.msra.gmra.mrb[252].mxu0 %v13557_v57  ;;  %v16562_v57 = vpack.c.bf16 %v16500_v60, %v16499_v25 }
 0x77c   : > { %9785 = vmatpush1.bf16.msra.mxu0 %v16557_v29  ;;  %8887 = vmatprep.mubr.msk.f32.mxu0 %vm2858_vm2, %v13574_v19  ;;  %v16564_v19 = vld [vmem:[#allocation226_spill] sm:$0xff] }
 0x77d   : > { %9787 = vmatprep.subr.bf16.mxu0 %v16558_v47  ;;  %v16565_v49 = vpack.c.bf16 %v16563_v2, %v16564_v19  ;;  %v16602_v2 = vpack.c.bf16 %v16542_v18, %v16547_v44 }
 0x77f   : > { %4628 = vmatmul.mubr.f32.gmra.mrb[254].mxu0 %v13566_v54  ;;  %v16566_v54 = vpack.c.bf16 %v16502_v52, %v16501_v48 }
 0x780   : > { %9789 = vmatpush1.bf16.msra.mxu0 %v16561_v23  ;;  %8888 = vmatprep.mubr.msk.f32.mxu0 %vm2858_vm2, %v13580_v9  ;;  %v16567_v9 = vld [vmem:[#allocation238_spill] sm:$0xff]  ;;  %v16601_v23 = vpack.c.bf16 %v16599_v17, %v16600_v5  ;;  %v16632_v17 = vld [vmem:[#allocation167_spill] sm:$0xff] }
 0x781   : > { %9791 = vmatprep.subr.bf16.mxu0 %v16562_v57  ;;  %v16569_v4 = vpack.c.bf16 %v16567_v9, %v16568_v51  ;;  %v16603_v9 = vld [vmem:[#allocation127_spill] sm:$0xff] }
 0x782   : > { %v16604_v51 = vld [vmem:[#allocation123_spill] sm:$0xff] }
 0x783   : > { %4633 = vmatmul.mubr.f32.gmra.mrb[0].mxu0 %v13577_v62  ;;  %v16570_v62 = vpack.c.bf16 %v16504_v43, %v16503_v36  ;;  %v16633_v5 = vld [vmem:[#allocation163_spill] sm:$0xff] }
 0x784   : > { %9793 = vmatpush1.bf16.msra.mxu0 %v16565_v49  ;;  %8889 = vmatprep.mubr.msk.f32.mxu0 %vm2858_vm2, %v13587_v20  ;;  %v16571_v20 = vld [vmem:[#allocation245_spill] sm:$0xff] }
 0x785   : > { %9795 = vmatprep.subr.bf16.mxu0 %v16566_v54  ;;  %v16573_v45 = vpack.c.bf16 %v16571_v20, %v16572_v61  ;;  %v16606_v20 = vld [vmem:[#allocation136_spill] sm:$0xff] }
 0x786   : > { %v16607_v18 = vpack.c.bf16 %v16606_v20, %v16550_v1 }
 0x787   : > { %4638 = vmatmul.mubr.f32.gmra.mrb[2].mxu0 %v13585_v37  ;;  %v16574_v37 = vpack.c.bf16 %v16506_v10, %v16505_v7 }
 0x788   : > { %9797 = vmatpush1.bf16.msra.mxu0 %v16569_v4  ;;  %8890 = vmatprep.mubr.msk.f32.mxu0 %vm2858_vm2, %v13593_v26  ;;  %v16575_v26 = vld [vmem:[#allocation253_spill] sm:$0xff]  ;;  %v16605_v4 = vpack.c.bf16 %v16603_v9, %v16604_v51 }
 0x789   : > { %9799 = vmatprep.subr.bf16.mxu0 %v16570_v62  ;;  %v16577_v12 = vpack.c.bf16 %v16575_v26, %v16576_v34  ;;  %v16609_v26 = vld [vmem:[#allocation131_spill] sm:$0xff] }
 0x78b   : > { %4643 = vmatmul.mubr.f32.gmra.mrb[4].mxu0 %v13591_v55  ;;  %v16578_v55 = vld [vmem:[#allocation262_spill] sm:$0xff] }
 0x78c   : > { %9801 = vmatpush1.bf16.msra.mxu0 %v16573_v45  ;;  %8891 = vmatprep.mubr.msk.f32.mxu0 %vm2858_vm2, %v13597_v22  ;;  %v16580_v40 = vpack.c.bf16 %v16578_v55, %v16579_v14  ;;  %v9848_v22 = vpack.c.bf16 %v10382_v42, %v10377_v24  ;;  %v16590_v42 = vld [vmem:[#allocation24_spill] sm:$0xff]  ;;  %v16591_v24 = vld [vmem:[#allocation30_spill] sm:$0xff] }
 0x78d   : > { %9803 = vmatprep.subr.bf16.mxu0 %v16574_v37  ;;  %v16608_v37 = vld [vmem:[#allocation135_spill] sm:$0xff] }
 0x78e   : > { %v16610_v34 = vpack.c.bf16 %v16608_v37, %v16609_v26 }
 0x78f   : > { %4648 = vmatmul.mubr.f32.gmra.mrb[6].mxu0 %v13595_v27  ;;  %v16581_v27 = vld [vmem:[#allocation261_spill] sm:$0xff] }
 0x790   : > { %9805 = vmatpush1.bf16.msra.mxu0 %v16577_v12  ;;  %8892 = vmatprep.mubr.msk.f32.mxu0 %vm2858_vm2, %v13603_v59  ;;  %v16583_v30 = vpack.c.bf16 %v16581_v27, %v16582_v0  ;;  %v16584_v59 = vld [vmem:[#allocation18_spill] sm:$0xff]  ;;  %v16614_v0 = vld [vmem:[#allocation143_spill] sm:$0xff] }
 0x791   : > { %9808 = vmatprep.subr.msk.bf16.mxu0 %vm12806_vm5, %v16580_v40  ;;  %v16611_v40 = vld [vmem:[#allocation144_spill] sm:$0xff] }
 0x793   : > { %4653 = vmatmul.mubr.f32.gmra.mrb[8].mxu0 %v13601_v39  ;;  %v16589_v39 = vld [vmem:[#allocation26_spill] sm:$0xff] }
 0x794   : > { %9811 = vmatpush1.bf16.msk.msra.mxu0 %vm12806_vm5, %v16583_v30  ;;  %8893 = vmatprep.mubr.msk.f32.mxu0 %vm2858_vm2, %v16584_v59  ;;  %v16615_v30 = vld [vmem:[#allocation139_spill] sm:$0xff] }
 0x795   : > { %9850 = vmatprep.subr.msk.bf16.mxu0 %vm12233_vm3, %v9848_v22  ;;  %v16612_v22 = vld [vmem:[#allocation140_spill] sm:$0xff]  ;;  %v16616_v59 = vpack.c.bf16 %v16614_v0, %v16615_v30  ;;  %v16636_v0 = vld [vmem:[#allocation13_spill] sm:$0xff] }
 0x796   : > { %v16613_v1 = vpack.c.bf16 %v16611_v40, %v16612_v22 }
 0x797   : > { %4658 = vmatmul.mubr.f32.gmra.mrb[10].mxu0 %v16586_v31  ;;  %v16617_v31 = vld [vmem:[#allocation152_spill] sm:$0xff] }
 0x798   : > { %8894 = vmatprep.mubr.msk.f32.mxu0 %vm2858_vm2, %v16587_v35  ;;  %v16618_v35 = vld [vmem:[#allocation148_spill] sm:$0xff] }
 0x79b   : > { %4663 = vmatmul.mubr.f32.gmra.mrb[12].mxu0 %v16588_v11  ;;  %v16619_v11 = vpack.c.bf16 %v16617_v31, %v16618_v35 }
 0x79c   : > { %8895 = vmatprep.mubr.msk.f32.mxu0 %vm2858_vm2, %v16589_v39  ;;  %v16620_v39 = vld [vmem:[#allocation151_spill] sm:$0xff] }
 0x79f   : > { %4668 = vmatmul.mubr.f32.gmra.mrb[14].mxu0 %v16590_v42  ;;  %v16621_v42 = vld [vmem:[#allocation147_spill] sm:$0xff] }
 0x7a0   : > { %8896 = vmatprep.mubr.msk.f32.mxu0 %vm2858_vm2, %v16591_v24  ;;  %v16622_v24 = vpack.c.bf16 %v16620_v39, %v16621_v42  ;;  %v16638_v39 = vld [vmem:[#allocation15_spill] sm:$0xff] }
 0x7a3   : > { %4673 = vmatmul.mubr.f32.gmra.mrb[16].mxu0 %v16592_v58  ;;  %v16623_v58 = vld [vmem:[#allocation160_spill] sm:$0xff] }
 0x7a4   : > { %8897 = vmatprep.mubr.msk.f32.mxu0 %vm2858_vm2, %v16593_v3  ;;  %v16624_v3 = vld [vmem:[#allocation156_spill] sm:$0xff] }
 0x7a7   : > { %4678 = vmatmul.mubr.f32.gmra.mrb[18].mxu0 %v16594_v53  ;;  %v16625_v53 = vpack.c.bf16 %v16623_v58, %v16624_v3 }
 0x7a8   : > { %8898 = vmatprep.mubr.msk.f32.mxu0 %vm2858_vm2, %v16595_v50  ;;  %v16626_v50 = vld [vmem:[#allocation159_spill] sm:$0xff] }
 0x7ab   : > { %4683 = vmatmul.mubr.f32.gmra.mrb[20].mxu0 %v16596_v8  ;;  %v16627_v8 = vld [vmem:[#allocation155_spill] sm:$0xff] }
 0x7ac   : > { %8899 = vmatprep.mubr.msk.f32.mxu0 %vm2858_vm2, %v16597_v46  ;;  %v16628_v46 = vpack.c.bf16 %v16626_v50, %v16627_v8  ;;  %v16640_v50 = vld [vmem:[#allocation17_spill] sm:$0xff] }
 0x7af   : > { %4688 = vmatmul.mubr.f32.gmra.mrb[22].mxu0 %v16598_v15  ;;  %v16629_v15 = vld [vmem:[#allocation168_spill] sm:$0xff] }
 0x7b0   : > { %5178 = vmatprep.mubr.f32.mxu0 %v16195_v33 }
 0x7f8   : > { %v4231_v29 = vpop.f32.mrb[224].mxu0 }
 0x7f9   : > { %v4233_v47 = vpop.f32.mrb[225].mxu0 }
 0x7fa   : > { %8872 = vmatprep.mubr.msk.f32.mxu1 %vm2858_vm2, %v4233_v47 }
 0x7fb   : > { %4446 = vmatmul.mubr.f32.vlgmr.msra.gmra.mrb[238].mxu1 %v4231_v29  ;;  %v16630_v29 = vld [vmem:[#allocation164_spill] sm:$0xff] }
 0x7fc   : > { %9751 = vmatpush1.bf16.xpose.msra.mxu1 %v16601_v23  ;;  %v4237_v57 = vpop.f32.mrb[226].mxu0  ;;  %v16631_v47 = vpack.c.bf16 %v16629_v15, %v16630_v29  ;;  %v16634_v23 = vpack.c.bf16 %v16632_v17, %v16633_v5  ;;  %v16642_v17 = vld [vmem:[#allocation19_spill] sm:$0xff] }
 0x7fd   : > { %9754 = vmatprep.subr.msk.bf16.mxu1 %vm12233_vm3, %v16602_v2  ;;  %v4239_v19 = vpop.f32.mrb[227].mxu0 }
 0x7fe   : > { %8873 = vmatprep.mubr.msk.f32.mxu1 %vm2858_vm2, %v4239_v19 }
 0x7ff   : > { %4451 = vmatmul.mubr.f32.gmra.mrb[240].mxu1 %v4237_v57 }
 0x800   : > { %v4243_v49 = vpop.f32.mrb[228].mxu0 }
 0x801   : > { %v4245_v54 = vpop.f32.mrb[229].mxu0 }
 0x802   : > { %8874 = vmatprep.mubr.msk.f32.mxu1 %vm2858_vm2, %v4245_v54 }
 0x803   : > { %4456 = vmatmul.mubr.f32.gmra.mrb[242].mxu1 %v4243_v49 }
 0x804   : > { %9756 = vmatpush1.bf16.xpose.msra.mxu1 %v16605_v4  ;;  %v4249_v62 = vpop.f32.mrb[230].mxu0 }
 0x805   : > { %9759 = vmatprep.subr.msk.bf16.mxu1 %vm12233_vm3, %v16607_v18  ;;  %v4251_v44 = vpop.f32.mrb[231].mxu0 }
 0x806   : > { %8875 = vmatprep.mubr.msk.f32.mxu1 %vm2858_vm2, %v4251_v44 }
 0x807   : > { %4461 = vmatmul.mubr.f32.gmra.mrb[244].mxu1 %v4249_v62 }
 0x808   : > { %v4255_v61 = vpop.f32.mrb[232].mxu0 }
 0x809   : > { %v4257_v45 = vpop.f32.mrb[233].mxu0 }
 0x80a   : > { %8876 = vmatprep.mubr.msk.f32.mxu1 %vm2858_vm2, %v4257_v45 }
 0x80b   : > { %4466 = vmatmul.mubr.f32.gmra.mrb[246].mxu1 %v4255_v61 }
 0x80c   : > { %9761 = vmatpush1.bf16.xpose.msra.mxu1 %v16610_v34  ;;  %v4261_v12 = vpop.f32.mrb[234].mxu0 }
 0x80d   : > { %9764 = vmatprep.subr.msk.bf16.mxu1 %vm12233_vm3, %v16613_v1  ;;  %v4263_v27 = vpop.f32.mrb[235].mxu0  ;;  %v16635_v1 = vld [vmem:[#allocation44_spill] sm:$0xff] }
 0x80e   : > { %8877 = vmatprep.mubr.msk.f32.mxu1 %vm2858_vm2, %v4263_v27 }
 0x80f   : > { %4471 = vmatmul.mubr.f32.gmra.mrb[248].mxu1 %v4261_v12 }
 0x814   : > { %9766 = vmatpush1.bf16.xpose.msra.mxu1 %v16616_v59  ;;  %v16637_v59 = vld [vmem:[#allocation48_spill] sm:$0xff] }
 0x815   : > { %9769 = vmatprep.subr.msk.bf16.mxu1 %vm12233_vm3, %v16619_v11 }
 0x81c   : > { %9771 = vmatpush1.bf16.xpose.msra.mxu1 %v16622_v24  ;;  %v16639_v24 = vld [vmem:[#allocation52_spill] sm:$0xff] }
 0x81d   : > { %9774 = vmatprep.subr.msk.bf16.mxu1 %vm12233_vm3, %v16625_v53 }
 0x824   : > { %9776 = vmatpush1.bf16.xpose.msra.mxu1 %v16628_v46  ;;  %v16641_v46 = vld [vmem:[#allocation56_spill] sm:$0xff] }
 0x825   : > { %9779 = vmatprep.subr.msk.bf16.mxu1 %vm12233_vm3, %v16631_v47 }
 0x82c   : > { %9781 = vmatpush1.bf16.xpose.msra.mxu1 %v16634_v23  ;;  %v16643_v23 = vld [vmem:[#allocation60_spill] sm:$0xff] }
 0x82d   : > { %9812 = vmatprep.subr.bf16.mxu1 %v16553_v63 }
 0x82e   : > { %v4267_v57 = vpop.f32.mrb[236].mxu0 }
 0x82f   : > { %v4269_v2 = vpop.f32.mrb[237].mxu0 }
 0x830   : > { %8878 = vmatprep.mubr.msk.f32.mxu1 %vm2858_vm2, %v4269_v2  ;;  %v16644_v2 = vld [vmem:[#allocation21_spill] sm:$0xff] }
 0x831   : > { %4476 = vmatmul.mubr.f32.gmra.mrb[250].mxu1 %v4267_v57 }
 0x832   : > { %v4273_v19 = vpop.f32.mrb[238].mxu0 }
 0x833   : > { %v4275_v49 = vpop.f32.mrb[239].mxu0 }
 0x834   : > { %8879 = vmatprep.mubr.msk.f32.mxu1 %vm2858_vm2, %v4275_v49  ;;  %v16645_v49 = vld [vmem:[#allocation64_spill] sm:$0xff] }
 0x835   : > { %4481 = vmatmul.mubr.f32.gmra.mrb[252].mxu1 %v4273_v19 }
 0x836   : > { %v4279_v54 = vpop.f32.mrb[240].mxu0 }
 0x837   : > { %v4281_v9 = vpop.f32.mrb[241].mxu0 }
 0x838   : > { %8880 = vmatprep.mubr.msk.f32.mxu1 %vm2858_vm2, %v4281_v9  ;;  %v16646_v9 = vld [vmem:[#allocation23_spill] sm:$0xff] }
 0x839   : > { %4486 = vmatmul.mubr.f32.gmra.mrb[254].mxu1 %v4279_v54 }
 0x83a   : > { %v4285_v51 = vpop.f32.mrb[242].mxu0 }
 0x83b   : > { %v4287_v4 = vpop.f32.mrb[243].mxu0 }
 0x83c   : > { %8881 = vmatprep.mubr.msk.f32.mxu1 %vm2858_vm2, %v4287_v4  ;;  %v16647_v4 = vld [vmem:[#allocation68_spill] sm:$0xff] }
 0x83d   : > { %4491 = vmatmul.mubr.f32.gmra.mrb[0].mxu1 %v4285_v51 }
 0x83e   : > { %v4291_v62 = vpop.f32.mrb[244].mxu0 }
 0x83f   : > { %v4293_v18 = vpop.f32.mrb[245].mxu0 }
 0x840   : > { %8882 = vmatprep.mubr.msk.f32.mxu1 %vm2858_vm2, %v4293_v18  ;;  %v16648_v18 = vld [vmem:[#allocation25_spill] sm:$0xff] }
 0x841   : > { %4496 = vmatmul.mubr.f32.gmra.mrb[2].mxu1 %v4291_v62 }
 0x842   : > { %v4297_v44 = vpop.f32.mrb[246].mxu0 }
 0x843   : > { %v4299_v61 = vpop.f32.mrb[247].mxu0 }
 0x844   : > { %8883 = vmatprep.mubr.msk.f32.mxu1 %vm2858_vm2, %v4299_v61  ;;  %v16649_v61 = vld [vmem:[#allocation72_spill] sm:$0xff] }
 0x845   : > { %4501 = vmatmul.mubr.f32.gmra.mrb[4].mxu1 %v4297_v44 }
 0x846   : > { %v4303_v45 = vpop.f32.mrb[248].mxu0 }
 0x847   : > { %v4305_v37 = vpop.f32.mrb[249].mxu0 }
 0x848   : > { %8884 = vmatprep.mubr.msk.f32.mxu1 %vm2858_vm2, %v4305_v37  ;;  %v16650_v37 = vld [vmem:[#allocation27_spill] sm:$0xff] }
 0x849   : > { %4506 = vmatmul.mubr.f32.gmra.mrb[6].mxu1 %v4303_v45 }
 0x84a   : > { %v4309_v26 = vpop.f32.mrb[250].mxu0 }
 0x84b   : > { %v4311_v34 = vpop.f32.mrb[251].mxu0 }
 0x84c   : > { %8885 = vmatprep.mubr.msk.f32.mxu1 %vm2858_vm2, %v4311_v34  ;;  %v16651_v34 = vld [vmem:[#allocation76_spill] sm:$0xff] }
 0x84d   : > { %4511 = vmatmul.mubr.f32.gmra.mrb[8].mxu1 %v4309_v26 }
 0x84e   : > { %v4624_v12 = vpop.f32.mrb[252].mxu0  ;;  %8914 = vmatprep.mubr.msk.f32.mxu1 %vm2858_vm2, %v16635_v1 }
 0x84f   : > { %v4626_v27 = vpop.f32.mrb[253].mxu0 }
 0x851   : > { %4842 = vmatmul.mubr.f32.vlgmr.msra.gmra.mrb[10].mxu1 %v16636_v0  ;;  %v16652_v0 = vld [vmem:[#allocation29_spill] sm:$0xff] }
 0x852   : > { %v4629_v30 = vpop.f32.mrb[254].mxu0  ;;  %8915 = vmatprep.mubr.msk.f32.mxu1 %vm2858_vm2, %v16637_v59 }
 0x853   : > { %v4631_v11 = vpop.f32.mrb[255].mxu0 }
 0x855   : > { %4847 = vmatmul.mubr.f32.gmra.mrb[12].mxu1 %v16638_v39  ;;  %v16653_v39 = vld [vmem:[#allocation80_spill] sm:$0xff] }
 0x856   : > { %v4634_v42 = vpop.f32.mrb[0].mxu0  ;;  %8916 = vmatprep.mubr.msk.f32.mxu1 %vm2858_vm2, %v16639_v24 }
 0x857   : > { %v4636_v53 = vpop.f32.mrb[1].mxu0 }
 0x859   : > { %4852 = vmatmul.mubr.f32.gmra.mrb[14].mxu1 %v16640_v50  ;;  %v16654_v50 = vld [vmem:[#allocation31_spill] sm:$0xff] }
 0x85a   : > { %v4639_v8 = vpop.f32.mrb[2].mxu0  ;;  %8917 = vmatprep.mubr.msk.f32.mxu1 %vm2858_vm2, %v16641_v46 }
 0x85b   : > { %v4641_v47 = vpop.f32.mrb[3].mxu0 }
 0x85d   : > { %4857 = vmatmul.mubr.f32.gmra.mrb[16].mxu1 %v16642_v17  ;;  %v16655_v17 = vld [vmem:[#allocation84_spill] sm:$0xff] }
 0x85e   : > { %v4644_v5 = vpop.f32.mrb[4].mxu0  ;;  %8918 = vmatprep.mubr.msk.f32.mxu1 %vm2858_vm2, %v16643_v23 }
 0x85f   : > { %v4646_v57 = vpop.f32.mrb[5].mxu0 }
 0x861   : > { %4862 = vmatmul.mubr.f32.gmra.mrb[18].mxu1 %v16644_v2  ;;  %v16656_v2 = vld [vmem:[#allocation34_spill] sm:$0xff] }
 0x862   : > { %v4649_v19 = vpop.f32.mrb[6].mxu0  ;;  %8919 = vmatprep.mubr.msk.f32.mxu1 %vm2858_vm2, %v16645_v49 }
 0x863   : > { %v4651_v54 = vpop.f32.mrb[7].mxu0 }
 0x865   : > { %4867 = vmatmul.mubr.f32.gmra.mrb[20].mxu1 %v16646_v9  ;;  %v16657_v9 = vld [vmem:[#allocation88_spill] sm:$0xff] }
 0x866   : > { %v4654_v51 = vpop.f32.mrb[8].mxu0  ;;  %8920 = vmatprep.mubr.msk.f32.mxu1 %vm2858_vm2, %v16647_v4 }
 0x867   : > { %v4656_v62 = vpop.f32.mrb[9].mxu0 }
 0x869   : > { %4872 = vmatmul.mubr.f32.gmra.mrb[22].mxu1 %v16648_v18  ;;  %v16658_v18 = vld [vmem:[#allocation37_spill] sm:$0xff] }
 0x86a   : > { %v4659_v44 = vpop.f32.mrb[10].mxu0  ;;  %8921 = vmatprep.mubr.msk.f32.mxu1 %vm2858_vm2, %v16649_v61 }
 0x86b   : > { %v4661_v45 = vpop.f32.mrb[11].mxu0 }
 0x86d   : > { %4877 = vmatmul.mubr.f32.gmra.mrb[24].mxu1 %v16650_v37  ;;  %v16659_v37 = vld [vmem:[#allocation92_spill] sm:$0xff] }
 0x86e   : > { %v4664_v26 = vpop.f32.mrb[12].mxu0  ;;  %8922 = vmatprep.mubr.msk.f32.mxu1 %vm2858_vm2, %v16651_v34 }
 0x86f   : > { %v4666_v27 = vpop.f32.mrb[13].mxu0 }
 0x871   : > { %4882 = vmatmul.mubr.f32.gmra.mrb[26].mxu1 %v16652_v0  ;;  %v16660_v0 = vld [vmem:[#allocation40_spill] sm:$0xff] }
 0x872   : > { %v4669_v11 = vpop.f32.mrb[14].mxu0  ;;  %8923 = vmatprep.mubr.msk.f32.mxu1 %vm2858_vm2, %v16653_v39 }
 0x873   : > { %v4671_v53 = vpop.f32.mrb[15].mxu0 }
 0x875   : > { %4887 = vmatmul.mubr.f32.gmra.mrb[28].mxu1 %v16654_v50  ;;  %v16661_v50 = vld [vmem:[#allocation96_spill] sm:$0xff] }
 0x876   : > { %v4674_v47 = vpop.f32.mrb[16].mxu0  ;;  %8924 = vmatprep.mubr.msk.f32.mxu1 %vm2858_vm2, %v16655_v17 }
 0x877   : > { %v4676_v57 = vpop.f32.mrb[17].mxu0 }
 0x879   : > { %4892 = vmatmul.mubr.f32.gmra.mrb[30].mxu1 %v16656_v2  ;;  %v16662_v2 = vld [vmem:[#allocation43_spill] sm:$0xff] }
 0x87a   : > { %v4679_v54 = vpop.f32.mrb[18].mxu0  ;;  %8925 = vmatprep.mubr.msk.f32.mxu1 %vm2858_vm2, %v16657_v9 }
 0x87b   : > { %v4681_v62 = vpop.f32.mrb[19].mxu0 }
 0x87d   : > { %4897 = vmatmul.mubr.f32.gmra.mrb[32].mxu1 %v16658_v18 }
 0x87e   : > { %v4684_v45 = vpop.f32.mrb[20].mxu0  ;;  %8926 = vmatprep.mubr.msk.f32.mxu1 %vm2858_vm2, %v16659_v37 }
 0x87f   : > { %v4686_v27 = vpop.f32.mrb[21].mxu0 }
 0x881   : > { %4902 = vmatmul.mubr.f32.gmra.mrb[34].mxu1 %v16660_v0 }
 0x882   : > { %v4689_v53 = vpop.f32.mrb[22].mxu0  ;;  %8927 = vmatprep.mubr.msk.f32.mxu1 %vm2858_vm2, %v16661_v50 }
 0x883   : > { %v4691_v57 = vpop.f32.mrb[23].mxu0 }
 0x885   : > { %4907 = vmatmul.mubr.f32.gmra.mrb[36].mxu1 %v16662_v2 }
 0x8ce   : > { %v4447_v13 = vpop.f32.mrb[238].mxu1 }
 0x8cf   : > { %v14088_v28 = vadd.f32 %v4624_v12, %v4447_v13  ;;  %v4449_v62 = vpop.f32.mrb[239].mxu1 }
 0x8d2   : > { %v4452_v55 = vpop.f32.mrb[240].mxu1 }
 0x8d3   : > { %v14090_v18 = vadd.f32 %v4629_v30, %v4452_v55  ;;  %v4454_v14 = vpop.f32.mrb[241].mxu1 }
 0x8d5   : > { %16663 = vst [vmem:[#allocation32_spill] sm:$0xff] %v14090_v18 }
 0x8d6   : > { %v4457_v10 = vpop.f32.mrb[242].mxu1 }
 0x8d7   : > { %v14092_v7 = vadd.f32 %v4634_v42, %v4457_v10  ;;  %v4459_v27 = vpop.f32.mrb[243].mxu1 }
 0x8d9   : > { %16664 = vst [vmem:[#allocation35_spill] sm:$0xff] %v14092_v7 }
 0x8da   : > { %v4462_v0 = vpop.f32.mrb[244].mxu1 }
 0x8db   : > { %v14094_v43 = vadd.f32 %v4639_v8, %v4462_v0  ;;  %v4464_v36 = vpop.f32.mrb[245].mxu1 }
 0x8dd   : > { %16665 = vst [vmem:[#allocation38_spill] sm:$0xff] %v14094_v43 }
 0x8de   : > { %v4467_v52 = vpop.f32.mrb[246].mxu1 }
 0x8df   : > { %v14096_v57 = vadd.f32 %v4644_v5, %v4467_v52  ;;  %v4469_v2 = vpop.f32.mrb[247].mxu1 }
 0x8e1   : > { %16666 = vst [vmem:[#allocation41_spill] sm:$0xff] %v14096_v57 }
 0x8e2   : > { %v4472_v48 = vpop.f32.mrb[248].mxu1 }
 0x8e3   : > { %v14098_v13 = vadd.f32 %v4649_v19, %v4472_v48  ;;  %v4474_v12 = vpop.f32.mrb[249].mxu1 }
 0x8e5   : > { %16667 = vst [vmem:[#allocation214_spill] sm:$0xff] %v14098_v13 }
 0x904   : > { %v4477_v62 = vpop.f32.mrb[250].mxu1 }
 0x905   : > { %v14100_v55 = vadd.f32 %v4654_v51, %v4477_v62  ;;  %v4479_v14 = vpop.f32.mrb[251].mxu1 }
 0x907   : > { %16668 = vst [vmem:[#allocation175_spill] sm:$0xff] %v14100_v55 }
 0x908   : > { %v4482_v30 = vpop.f32.mrb[252].mxu1 }
 0x909   : > { %v14102_v10 = vadd.f32 %v4659_v44, %v4482_v30  ;;  %v4484_v42 = vpop.f32.mrb[253].mxu1 }
 0x90b   : > { %16669 = vst [vmem:[#allocation218_spill] sm:$0xff] %v14102_v10  ;;  %v11034_v10 = vld [vmem:[#allocation7 + $0x60] sm:$0xff] }
 0x90c   : > { %v4487_v27 = vpop.f32.mrb[254].mxu1 }
 0x90d   : > { %v14104_v8 = vadd.f32 %v4664_v26, %v4487_v27  ;;  %v4489_v36 = vpop.f32.mrb[255].mxu1 }
 0x90f   : > { %16670 = vst [vmem:[#allocation178_spill] sm:$0xff] %v14104_v8  ;;  %v11033_v8 = vld [vmem:[#allocation7 + $0x58] sm:$0xff] }
 0x910   : > { %v4492_v0 = vpop.f32.mrb[0].mxu1 }
 0x911   : > { %v14106_v52 = vadd.f32 %v4669_v11, %v4492_v0  ;;  %v4494_v5 = vpop.f32.mrb[1].mxu1  ;;  %v11022_v11 = vld [vmem:[#allocation7] sm:$0xff] }
 0x913   : > { %16671 = vst [vmem:[#allocation222_spill] sm:$0xff] %v14106_v52  ;;  %v11032_v52 = vld [vmem:[#allocation7 + $0x50] sm:$0xff] }
 0x914   : > { %v4497_v2 = vpop.f32.mrb[2].mxu1 }
 0x915   : > { %v14108_v48 = vadd.f32 %v4674_v47, %v4497_v2  ;;  %v4499_v19 = vpop.f32.mrb[3].mxu1 }
 0x917   : > { %16672 = vst [vmem:[#allocation181_spill] sm:$0xff] %v14108_v48  ;;  %v11031_v48 = vld [vmem:[#allocation7 + $0x48] sm:$0xff] }
 0x918   : > { %v4502_v12 = vpop.f32.mrb[4].mxu1 }
 0x919   : > { %v14110_v51 = vadd.f32 %v4679_v54, %v4502_v12  ;;  %v4504_v62 = vpop.f32.mrb[5].mxu1  ;;  %v11023_v54 = vld [vmem:[#allocation7 + $0x8] sm:$0xff] }
 0x91a   : > { %v11024_v62 = vld [vmem:[#allocation7 + $0x10] sm:$0xff] }
 0x91b   : > { %16673 = vst [vmem:[#allocation229_spill] sm:$0xff] %v14110_v51  ;;  %v11030_v51 = vld [vmem:[#allocation7 + $0x40] sm:$0xff] }
 0x91c   : > { %v4507_v14 = vpop.f32.mrb[6].mxu1 }
 0x91d   : > { %v14112_v44 = vadd.f32 %v4684_v45, %v4507_v14  ;;  %v4509_v30 = vpop.f32.mrb[7].mxu1 }
 0x91f   : > { %16674 = vst [vmem:[#allocation186_spill] sm:$0xff] %v14112_v44  ;;  %v11029_v44 = vld [vmem:[#allocation7 + $0x38] sm:$0xff] }
 0x920   : > { %v4512_v42 = vpop.f32.mrb[8].mxu1 }
 0x921   : > { %v14114_v26 = vadd.f32 %v4689_v53, %v4512_v42  ;;  %v4514_v27 = vpop.f32.mrb[9].mxu1 }
 0x923   : > { %16675 = vst [vmem:[#allocation233_spill] sm:$0xff] %v14114_v26  ;;  %v11028_v26 = vld [vmem:[#allocation7 + $0x30] sm:$0xff] }
 0x924   : > { %v4843_v36 = vpop.f32.mrb[10].mxu1 }
 0x925   : > { %v14116_v0 = vadd.f32 %v11022_v11, %v4843_v36  ;;  %v4845_v5 = vpop.f32.mrb[11].mxu1  ;;  %v11025_v36 = vld [vmem:[#allocation7 + $0x18] sm:$0xff] }
 0x927   : > { %v4912_v47 = vsel %vm3078_vm6, %v14116_v0, -inf }
 0x928   : > { %v4848_v2 = vpop.f32.mrb[12].mxu1  ;;  %4913 = vmax.xlane.f32.xlu1 %v4912_v47 }
 0x929   : > { %v14120_v19 = vadd.f32 %v11023_v54, %v4848_v2  ;;  %v4850_v45 = vpop.f32.mrb[13].mxu1  ;;  %v11026_v54 = vld [vmem:[#allocation7 + $0x20] sm:$0xff] }
 0x92b   : > { %v4915_v12 = vsel %vm3078_vm6, %v14120_v19, -inf }
 0x92c   : > { %v4853_v53 = vpop.f32.mrb[14].mxu1  ;;  %4916 = vmax.xlane.f32.xlu0 %v4915_v12 }
 0x92d   : > { %v14124_v14 = vadd.f32 %v11024_v62, %v4853_v53  ;;  %v4855_v30 = vpop.f32.mrb[15].mxu1 }
 0x92e   : > { %v11027_v30 = vld [vmem:[#allocation7 + $0x28] sm:$0xff] }
 0x92f   : > { %v4918_v42 = vsel %vm3078_vm6, %v14124_v14, -inf }
 0x930   : > { %v4858_v27 = vpop.f32.mrb[16].mxu1  ;;  %4919 = vmax.xlane.f32.xlu1 %v4918_v42 }
 0x931   : > { %v14128_v11 = vadd.f32 %v11025_v36, %v4858_v27  ;;  %v4860_v5 = vpop.f32.mrb[17].mxu1 }
 0x933   : > { %v4921_v47 = vsel %vm3078_vm6, %v14128_v11, -inf }
 0x934   : > { %v4863_v2 = vpop.f32.mrb[18].mxu1  ;;  %4922 = vmax.xlane.f32.xlu0 %v4921_v47 }
 0x935   : > { %v14132_v45 = vadd.f32 %v11026_v54, %v4863_v2  ;;  %v4865_v12 = vpop.f32.mrb[19].mxu1 }
 0x937   : > { %v4924_v53 = vsel %vm3078_vm6, %v14132_v45, -inf }
 0x938   : > { %v4868_v62 = vpop.f32.mrb[20].mxu1  ;;  %4925 = vmax.xlane.f32.xlu1 %v4924_v53 }
 0x939   : > { %v14136_v42 = vadd.f32 %v11027_v30, %v4868_v62  ;;  %v4870_v27 = vpop.f32.mrb[21].mxu1 }
 0x93b   : > { %v4927_v36 = vsel %vm3078_vm6, %v14136_v42, -inf }
 0x93c   : > { %v4873_v5 = vpop.f32.mrb[22].mxu1  ;;  %4928 = vmax.xlane.f32.xlu0 %v4927_v36 }
 0x93d   : > { %v14140_v47 = vadd.f32 %v11028_v26, %v4873_v5  ;;  %v4875_v2 = vpop.f32.mrb[23].mxu1 }
 0x93f   : > { %v4930_v54 = vsel %vm3078_vm6, %v14140_v47, -inf }
 0x940   : > { %v4878_v12 = vpop.f32.mrb[24].mxu1  ;;  %4931 = vmax.xlane.f32.xlu1 %v4930_v54 }
 0x941   : > { %v14144_v53 = vadd.f32 %v11029_v44, %v4878_v12  ;;  %v4880_v62 = vpop.f32.mrb[25].mxu1 }
 0x943   : > { %v4933_v30 = vsel %vm3078_vm6, %v14144_v53, -inf }
 0x944   : > { %v4883_v27 = vpop.f32.mrb[26].mxu1  ;;  %4934 = vmax.xlane.f32.xlu0 %v4933_v30 }
 0x945   : > { %v14148_v36 = vadd.f32 %v11030_v51, %v4883_v27  ;;  %v4885_v26 = vpop.f32.mrb[27].mxu1 }
 0x947   : > { %v4936_v5 = vsel %vm3078_vm6, %v14148_v36, -inf }
 0x948   : > { %v4888_v2 = vpop.f32.mrb[28].mxu1  ;;  %4937 = vmax.xlane.f32.xlu1 %v4936_v5 }
 0x949   : > { %v14152_v54 = vadd.f32 %v11031_v48, %v4888_v2  ;;  %v4890_v44 = vpop.f32.mrb[29].mxu1 }
 0x94b   : > { %v4939_v12 = vsel %vm3078_vm6, %v14152_v54, -inf }
 0x94c   : > { %v4893_v62 = vpop.f32.mrb[30].mxu1  ;;  %4940 = vmax.xlane.f32.xlu0 %v4939_v12 }
 0x94d   : > { %v14156_v30 = vadd.f32 %v11032_v52, %v4893_v62  ;;  %v4895_v51 = vpop.f32.mrb[31].mxu1 }
 0x94f   : > { %v4942_v27 = vsel %vm3078_vm6, %v14156_v30, -inf }
 0x950   : > { %v4898_v26 = vpop.f32.mrb[32].mxu1  ;;  %4943 = vmax.xlane.f32.xlu1 %v4942_v27  ;;  %v16676_v27 = vld [vmem:[#allocation137_spill] sm:$0xff] }
 0x951   : > { %v14160_v5 = vadd.f32 %v11033_v8, %v4898_v26  ;;  %v4900_v48 = vpop.f32.mrb[33].mxu1  ;;  %v16677_v8 = vpack.i.bf16 %v16676_v27, %v16606_v20  ;;  %v16678_v26 = vld [vmem:[#allocation141_spill] sm:$0xff] }
 0x952   : > { %v16679_v48 = vpack.i.bf16 %v16678_v26, %v16612_v22 }
 0x953   : > { %v4945_v2 = vsel %vm3078_vm6, %v14160_v5, -inf }
 0x954   : > { %v4903_v44 = vpop.f32.mrb[34].mxu1  ;;  %4946 = vmax.xlane.f32.xlu0 %v4945_v2  ;;  %v11035_v2 = vld [vmem:[#allocation7 + $0x68] sm:$0x3f] }
 0x955   : > { %v14164_v12 = vadd.f32 %v11034_v10, %v4903_v44  ;;  %v4905_v52 = vpop.f32.mrb[35].mxu1 }
 0x956   : > { %v14180_v52 = vpop.permute.xlu0 %10384 }
 0x957   : > { %v4948_v62 = vsel %vm3078_vm6, %v14164_v12, -inf }
 0x958   : > { %v4908_v51 = vpop.f32.mrb[36].mxu1  ;;  %4949 = vmax.xlane.f32.xlu1 %v4948_v62 }
 0x959   : > { %v4910_v55 = vpop.f32.mrb[37].mxu1  ;;  %v14176_v10 = vadd.f32 %v11035_v2, %v4908_v51 }
 0x95a   : > { %v14182_v55 = vpop.permute.xlu1 %10389  ;;  %v14184_v62 = vpop.permute.xlu0 %10394 }
 0x95b   : > { %v4951_v44 = vsel %vm3118_vm7, %v14176_v10, -inf }
 0x969   : > { %10399 = vrot.lane.b32.xlu1 %v16677_v8, %s11205_s13 }
 0x96a   : > { %10404 = vrot.lane.b32.xlu0 %v16679_v48, %s11205_s13 }
 0x989   : > { %4952 = vmax.xlane.f32.xlu0 %v4951_v44 }
 0x9b5   : > { %v4914_v20 = vpop.xlane.xlu1 %4913 }
 0x9b6   : > { %v4954_v27 = vsub.f32 %v14116_v0, %v4914_v20 }
 0x9b8   : > { %v4968_v8 = vmul.f32 1.442695, %v4954_v27 }
 0x9b9   : > { %v4917_v13 = vpop.xlane.xlu0 %4916 }
 0x9ba   : > { %10765 = vpow2.f32 %v4968_v8  ;;  %v4955_v22 = vsub.f32 %v14120_v19, %v4917_v13 }
 0x9bc   : > { %v4970_v51 = vmul.f32 1.442695, %v4955_v22 }
 0x9bd   : > { %v4920_v26 = vpop.xlane.xlu1 %4919 }
 0x9be   : > { %10767 = vpow2.f32 %v4970_v51  ;;  %v4956_v48 = vsub.f32 %v14124_v14, %v4920_v26 }
 0x9c0   : > { %v4972_v2 = vmul.f32 1.442695, %v4956_v48 }
 0x9c1   : > { %v4923_v44 = vpop.xlane.xlu0 %4922 }
 0x9c2   : > { %10769 = vpow2.f32 %v4972_v2  ;;  %v4957_v57 = vsub.f32 %v14128_v11, %v4923_v44 }
 0x9c4   : > { %v14190_v43 = vpop.eup %10765  ;;  %v4974_v7 = vmul.f32 1.442695, %v4957_v57 }
 0x9c5   : > { %v4926_v18 = vpop.xlane.xlu1 %4925  ;;  %v4996_v0 = vsel %vm3078_vm6, %v14190_v43, 0.0 }
 0x9c6   : > { %10771 = vpow2.f32 %v4974_v7  ;;  %v4958_v13 = vsub.f32 %v14132_v45, %v4926_v18  ;;  %4997 = vadd.xlane.f32.xlu1 %v4996_v0 }
 0x9c8   : > { %v14195_v19 = vpop.eup %10767  ;;  %v4976_v20 = vmul.f32 1.442695, %v4958_v13 }
 0x9c9   : > { %v4929_v14 = vpop.xlane.xlu0 %4928  ;;  %v4999_v27 = vsel %vm3078_vm6, %v14195_v19, 0.0 }
 0x9ca   : > { %10773 = vpow2.f32 %v4976_v20  ;;  %v4959_v11 = vsub.f32 %v14136_v42, %v4929_v14  ;;  %5000 = vadd.xlane.f32.xlu0 %v4999_v27 }
 0x9cc   : > { %v14200_v57 = vpop.eup %10769  ;;  %v4978_v8 = vmul.f32 1.442695, %v4959_v11 }
 0x9cd   : > { %v4932_v22 = vpop.xlane.xlu1 %4931  ;;  %v5002_v7 = vsel %vm3078_vm6, %v14200_v57, 0.0 }
 0x9ce   : > { %10775 = vpow2.f32 %v4978_v8  ;;  %v4960_v18 = vsub.f32 %v14140_v47, %v4932_v22  ;;  %5003 = vadd.xlane.f32.xlu1 %v5002_v7 }
 0x9d0   : > { %v14205_v45 = vpop.eup %10771  ;;  %v4980_v51 = vmul.f32 1.442695, %v4960_v18 }
 0x9d1   : > { %v4935_v26 = vpop.xlane.xlu0 %4934  ;;  %v5005_v48 = vsel %vm3078_vm6, %v14205_v45, 0.0 }
 0x9d2   : > { %10777 = vpow2.f32 %v4980_v51  ;;  %v4961_v42 = vsub.f32 %v14144_v53, %v4935_v26  ;;  %5006 = vadd.xlane.f32.xlu0 %v5005_v48 }
 0x9d4   : > { %v14210_v2 = vpop.eup %10773  ;;  %v4982_v44 = vmul.f32 1.442695, %v4961_v42 }
 0x9d5   : > { %v4938_v0 = vpop.xlane.xlu1 %4937  ;;  %v5008_v13 = vsel %vm3078_vm6, %v14210_v2, 0.0 }
 0x9d6   : > { %10779 = vpow2.f32 %v4982_v44  ;;  %v4962_v47 = vsub.f32 %v14148_v36, %v4938_v0  ;;  %5009 = vadd.xlane.f32.xlu1 %v5008_v13 }
 0x9d8   : > { %v14215_v20 = vpop.eup %10775  ;;  %v4984_v14 = vmul.f32 1.442695, %v4962_v47 }
 0x9d9   : > { %v4941_v27 = vpop.xlane.xlu0 %4940  ;;  %v5011_v11 = vsel %vm3078_vm6, %v14215_v20, 0.0 }
 0x9da   : > { %10781 = vpow2.f32 %v4984_v14  ;;  %v4963_v53 = vsub.f32 %v14152_v54, %v4941_v27  ;;  %5012 = vadd.xlane.f32.xlu0 %v5011_v11 }
 0x9dc   : > { %v14220_v8 = vpop.eup %10777  ;;  %v4986_v22 = vmul.f32 1.442695, %v4963_v53  ;;  %v16680_v53 = vld [vmem:[#allocation145_spill] sm:$0xff] }
 0x9dd   : > { %v4944_v7 = vpop.xlane.xlu1 %4943  ;;  %v5014_v18 = vsel %vm3078_vm6, %v14220_v8, 0.0 }
 0x9de   : > { %10783 = vpow2.f32 %v4986_v22  ;;  %v4964_v36 = vsub.f32 %v14156_v30, %v4944_v7  ;;  %5015 = vadd.xlane.f32.xlu1 %v5014_v18  ;;  %v16681_v22 = vpack.i.bf16 %v16680_v53, %v16611_v40  ;;  %v16682_v7 = vld [vmem:[#allocation149_spill] sm:$0xff] }
 0x9df   : > { %v16683_v18 = vpack.i.bf16 %v16682_v7, %v16618_v35  ;;  %v16690_v35 = vld [vmem:[#allocation165_spill] sm:$0xff] }
 0x9e0   : > { %v14225_v51 = vpop.eup %10779  ;;  %v4988_v26 = vmul.f32 1.442695, %v4964_v36  ;;  %v16684_v36 = vld [vmem:[#allocation153_spill] sm:$0xff] }
 0x9e1   : > { %v4947_v48 = vpop.xlane.xlu0 %4946  ;;  %v5017_v42 = vsel %vm3078_vm6, %v14225_v51, 0.0 }
 0x9e2   : > { %10785 = vpow2.f32 %v4988_v26  ;;  %v4965_v54 = vsub.f32 %v14160_v5, %v4947_v48  ;;  %5018 = vadd.xlane.f32.xlu1 %v5017_v42  ;;  %v16685_v26 = vpack.i.bf16 %v16684_v36, %v16617_v31  ;;  %v16686_v48 = vld [vmem:[#allocation157_spill] sm:$0xff] }
 0x9e3   : > { %v16687_v42 = vpack.i.bf16 %v16686_v48, %v16624_v3  ;;  %v5265_v48 = vld [vmem:[#allocation4 + $0x188] sm:$0xff] }
 0x9e4   : > { %v14230_v44 = vpop.eup %10781  ;;  %v4990_v0 = vmul.f32 1.442695, %v4965_v54  ;;  %v16688_v54 = vld [vmem:[#allocation161_spill] sm:$0xff] }
 0x9e5   : > { %v5020_v13 = vsel %vm3078_vm6, %v14230_v44, 0.0  ;;  %v16689_v40 = vpack.i.bf16 %v16688_v54, %v16623_v58  ;;  %v16694_v58 = vld [vmem:[#allocation45_spill] sm:$0xff] }
 0x9e6   : > { %10787 = vpow2.f32 %v4990_v0  ;;  %5021 = vadd.xlane.f32.xlu0 %v5020_v13  ;;  %v14266_v0 = vpop.permute.xlu0 %10404  ;;  %v16691_v13 = vpack.i.bf16 %v16690_v35, %v16630_v29  ;;  %v4950_v29 = vpop.xlane.xlu1 %4949  ;;  %v16698_v54 = vld [vmem:[#allocation217_spill] sm:$0xff] }
 0x9e7   : > { %v16700_v35 = vld [vmem:[#allocation57_spill] sm:$0xff] }
 0x9e8   : > { %v14234_v30 = vpop.eup %10783 }
 0x9e9   : > { %v5023_v47 = vsel %vm3078_vm6, %v14234_v30, 0.0 }
 0x9ea   : > { %5024 = vadd.xlane.f32.xlu1 %v5023_v47 }
 0x9ec   : > { %v14238_v14 = vpop.eup %10785 }
 0x9ed   : > { %v5026_v5 = vsel %vm3078_vm6, %v14238_v14, 0.0 }
 0x9ee   : > { %5027 = vadd.xlane.f32.xlu0 %v5026_v5  ;;  %v16692_v5 = vld [vmem:[#allocation169_spill] sm:$0xff] }
 0x9ef   : > { %v16693_v3 = vpack.i.bf16 %v16692_v5, %v16629_v15  ;;  %v16695_v15 = vld [vmem:[#allocation49_spill] sm:$0xff] }
 0x9f0   : > { %v14242_v27 = vpop.eup %10787 }
 0x9f1   : > { %v5029_v11 = vsel %vm3078_vm6, %v14242_v27, 0.0 }
 0x9f2   : > { %5030 = vadd.xlane.f32.xlu1 %v5029_v11 }
 0xa03   : > { %10409 = vrot.lane.b32.xlu1 %v16681_v22, %s11205_s13 }
 0xa04   : > { %10414 = vrot.lane.b32.xlu0 %v16683_v18, %s11205_s13 }
 0xa08   : > { %10419 = vrot.lane.b32.xlu0 %v16685_v26, %s11205_s13  ;;  %v16697_v26 = vpack.c.bf16 %v13856_v56, %v13861_v32 }
 0xa0c   : > { %10424 = vrot.lane.b32.xlu0 %v16687_v42, %s11205_s13  ;;  %v10391_v42 = vunpack.i.l.bf16 %v14182_v55 }
 0xa10   : > { %10429 = vrot.lane.b32.xlu0 %v16689_v40, %s11205_s13  ;;  %v16699_v40 = vpack.i.bf16 %v16698_v54, %v16496_v38  ;;  %v10397_v38 = vunpack.i.h.bf16 %v14184_v62  ;;  %v5275_v54 = vld [vmem:[#allocation4 + $0x1d8] sm:$0xff] }
 0xa14   : > { %10434 = vrot.lane.b32.xlu0 %v16691_v13, %s11205_s13  ;;  %v5267_v13 = vld [vmem:[#allocation4 + $0x198] sm:$0xff] }
 0xa16   : > { %v4953_v47 = vpop.xlane.xlu0 %4952 }
 0xa17   : > { %v4967_v31 = vsub.f32 %v14176_v10, %v4953_v47  ;;  %v4966_v10 = vsub.f32 %v14164_v12, %v4950_v29  ;;  %v14302_v12 = vpop.permute.xlu1 %10399 }
 0xa18   : > { %10439 = vrot.lane.b32.xlu0 %v16693_v3, %s11205_s13  ;;  %v10402_v32 = vunpack.i.h.bf16 %v14302_v12 }
 0xa19   : > { %v4994_v11 = vmul.f32 1.442695, %v4967_v31  ;;  %v4992_v7 = vmul.f32 1.442695, %v4966_v10  ;;  %v10401_v10 = vunpack.i.l.bf16 %v14302_v12 }
 0xa1b   : > { %10789 = vpow2.f32 %v4994_v11  ;;  %v16701_v11 = vld [vmem:[#allocation221_spill] sm:$0xff] }
 0xa1c   : > { %5493 = vrot.lane.b32.xlu0 %v16635_v1, %s11205_s13  ;;  %10791 = vpow2.f32 %v4992_v7  ;;  %v16703_v7 = vld [vmem:[#allocation61_spill] sm:$0xff] }
 0xa20   : > { %5495 = vrot.lane.b32.xlu0 %v16694_v58, %s11205_s13  ;;  %v16702_v58 = vpack.i.bf16 %v16701_v11, %v16497_v41 }
 0xa25   : > { %v14281_v53 = vpop.eup %10789 }
 0xa26   : > { %v5035_v22 = vsel %vm3118_vm7, %v14281_v53, 0.0  ;;  %v14288_v18 = vpop.eup %10791 }
 0xa27   : > { %5036 = vadd.xlane.f32.xlu1 %v5035_v22  ;;  %v5032_v1 = vsel %vm3078_vm6, %v14288_v18, 0.0  ;;  %v9858_v22 = vpack.c.bf16 %v10402_v32, %v10397_v38 }
 0xa38   : > { %5499 = vrot.lane.b32.xlu1 %v16695_v15, %s11205_s13  ;;  %v5268_v15 = vld [vmem:[#allocation4 + $0x1a0] sm:$0xff] }
 0xa3c   : > { %5509 = vrot.lane.b32.xlu1 %v16643_v23, %s11205_s13 }
 0xa3f   : > { %5033 = vadd.xlane.f32.xlu0 %v5032_v1  ;;  %v5269_v1 = vld [vmem:[#allocation4 + $0x1a8] sm:$0xff] }
 0xa40   : > { %5513 = vrot.lane.b32.xlu1 %v16645_v49, %s11205_s13  ;;  %v9819_v12 = vpack.c.bf16 %v5269_v1, %v5268_v15  ;;  %v5281_v15 = vld [vmem:[#allocation4 + $0x208] sm:$0xff] }
 0xa44   : > { %5517 = vrot.lane.b32.xlu1 %v16647_v4, %s11205_s13 }
 0xa48   : > { %5521 = vrot.lane.b32.xlu1 %v16649_v61, %s11205_s13  ;;  %v10387_v61 = vunpack.i.h.bf16 %v14180_v52 }
 0xa4c   : > { %5525 = vrot.lane.b32.xlu1 %v16651_v34, %s11205_s13  ;;  %v16696_v34 = vld [vmem:[#allocation53_spill] sm:$0xff] }
 0xa50   : > { %5529 = vrot.lane.b32.xlu1 %v16653_v39, %s11205_s13 }
 0xa53   : > { %v4998_v23 = vpop.xlane.xlu1 %4997 }
 0xa54   : > { %10793 = vrcp.f32 %v4998_v23  ;;  %5533 = vrot.lane.b32.xlu1 %v16655_v17, %s11205_s13  ;;  %v10396_v23 = vunpack.i.l.bf16 %v14184_v62  ;;  %v5270_v62 = vld [vmem:[#allocation4 + $0x1b0] sm:$0xff] }
 0xa55   : > { %5497 = vrot.lane.b32.xlu0 %v16637_v59, %s11205_s13  ;;  %v10392_v59 = vunpack.i.h.bf16 %v14182_v55 }
 0xa57   : > { %v5001_v49 = vpop.xlane.xlu0 %5000  ;;  %v5650_v47 = vsel %vm2858_vm2, %v10391_v42, %v10392_v59 }
 0xa58   : > { %10795 = vrcp.f32 %v5001_v49  ;;  %5537 = vrot.lane.b32.xlu1 %v16657_v9, %s11205_s13  ;;  %v10386_v9 = vunpack.i.l.bf16 %v14180_v52 }
 0xa59   : > { %5501 = vrot.lane.b32.xlu0 %v16639_v24, %s11205_s13  ;;  %v9853_v24 = vpack.c.bf16 %v10392_v59, %v10387_v61 }
 0xa5a   : > { %v5649_v56 = vsel %vm2858_vm2, %v10386_v9, %v10387_v61  ;;  %v16704_v61 = vld [vmem:[#allocation65_spill] sm:$0xff] }
 0xa5b   : > { %v5004_v4 = vpop.xlane.xlu1 %5003  ;;  %v9856_v29 = vpack.c.bf16 %v5650_v47, %v5649_v56  ;;  %v16705_v9 = vld [vmem:[#allocation69_spill] sm:$0xff] }
 0xa5c   : > { %10797 = vrcp.f32 %v5004_v4  ;;  %5541 = vrot.lane.b32.xlu1 %v16659_v37, %s11205_s13  ;;  %v5652_v4 = vsel %vm2858_vm2, %v10401_v10, %v10402_v32  ;;  %v16707_v32 = vld [vmem:[#allocation77_spill] sm:$0xff] }
 0xa5d   : > { %5503 = vrot.lane.b32.xlu0 %v16696_v34, %s11205_s13 }
 0xa5e   : > { %v10794_v39 = vpop.eup %10793 }
 0xa5f   : > { %v5052_v17 = vmul.f32 %v10794_v39, %v14190_v43  ;;  %v5007_v36 = vpop.xlane.xlu0 %5006  ;;  %v5264_v43 = vld [vmem:[#allocation4 + $0x180] sm:$0xff]  ;;  %v5651_v39 = vsel %vm2858_vm2, %v10396_v23, %v10397_v38 }
 0xa60   : > { %10799 = vrcp.f32 %v5007_v36  ;;  %5545 = vrot.lane.b32.xlu1 %v16661_v50, %s11205_s13  ;;  %v16708_v38 = vld [vmem:[#allocation81_spill] sm:$0xff] }
 0xa61   : > { %5505 = vrot.lane.b32.xlu0 %v16641_v46, %s11205_s13  ;;  %8930 = vmatmul.mubr.msk.f32.vlgmr.msra.gmra.mrb[24].mxu0 %vm3078_vm6, %v5052_v17  ;;  %v9813_v46 = vpack.c.bf16 %v5265_v48, %v5264_v43  ;;  %v5273_v43 = vld [vmem:[#allocation4 + $0x1c8] sm:$0xff] }
 0xa62   : > { %v10796_v37 = vpop.eup %10795  ;;  %9852 = vmatpush1.bf16.xpose.msra.mxu0 %v16697_v26  ;;  %5184 = vmatprep.mubr.f32.mxu0 %v16195_v33  ;;  %v5272_v26 = vld [vmem:[#allocation4 + $0x1c0] sm:$0xff] }
 0xa63   : > { %v5053_v50 = vmul.f32 %v10796_v37, %v14195_v19  ;;  %9855 = vmatprep.subr.msk.bf16.mxu0 %vm12233_vm3, %v9853_v24  ;;  %v5010_v52 = vpop.xlane.xlu1 %5009  ;;  %9814 = vmatpush1.bf16.msra.mxu1 %v9813_v46  ;;  %v5266_v19 = vld [vmem:[#allocation4 + $0x190] sm:$0xff]  ;;  %v9861_v24 = vpack.c.bf16 %v5652_v4, %v5651_v39  ;;  %v9825_v42 = vpack.c.bf16 %v5273_v43, %v5272_v26 }
 0xa64   : > { %10801 = vrcp.f32 %v5010_v52  ;;  %10449 = vrot.lane.b32.xlu1 %v16699_v40, %s11205_s13  ;;  %9815 = vmatprep.subr.bf16.mxu1 %v16553_v63  ;;  %v9816_v3 = vpack.c.bf16 %v5267_v13, %v5266_v19  ;;  %v5274_v46 = vld [vmem:[#allocation4 + $0x1d0] sm:$0xff]  ;;  %v5277_v19 = vld [vmem:[#allocation4 + $0x1e8] sm:$0xff] }
 0xa65   : > { %5507 = vrot.lane.b32.xlu0 %v16700_v35, %s11205_s13  ;;  %8931 = vmatmul.mubr.msk.f32.gmra.mrb[26].mxu0 %vm3078_vm6, %v5053_v50  ;;  %v16706_v50 = vld [vmem:[#allocation73_spill] sm:$0xff]  ;;  %v5282_v39 = vld [vmem:[#allocation4 + $0x210] sm:$0xff] }
 0xa66   : > { %v10798_v55 = vpop.eup %10797  ;;  %5190 = vmatprep.mubr.f32.mxu0 %v16195_v33 }
 0xa67   : > { %v5054_v31 = vmul.f32 %v10798_v55, %v14200_v57  ;;  %v5013_v5 = vpop.xlane.xlu0 %5012  ;;  %9817 = vmatpush1.bf16.msra.mxu1 %v9816_v3  ;;  %v5276_v55 = vld [vmem:[#allocation4 + $0x1e0] sm:$0xff]  ;;  %v5279_v3 = vld [vmem:[#allocation4 + $0x1f8] sm:$0xff] }
 0xa68   : > { %10803 = vrcp.f32 %v5013_v5  ;;  %10454 = vrot.lane.b32.xlu1 %v16702_v58, %s11205_s13  ;;  %9818 = vmatprep.subr.bf16.mxu1 %v16553_v63  ;;  %v5278_v5 = vld [vmem:[#allocation4 + $0x1f0] sm:$0xff] }
 0xa69   : > { %5511 = vrot.lane.b32.xlu0 %v16703_v7, %s11205_s13  ;;  %8932 = vmatmul.mubr.msk.f32.gmra.mrb[28].mxu0 %vm3078_vm6, %v5054_v31  ;;  %v10407_v7 = vunpack.i.h.bf16 %v14266_v0 }
 0xa6a   : > { %v10800_v57 = vpop.eup %10799  ;;  %9857 = vmatpush1.bf16.xpose.msra.mxu0 %v9856_v29  ;;  %5196 = vmatprep.mubr.f32.mxu0 %v16195_v33  ;;  %v9834_v29 = vpack.c.bf16 %v5279_v3, %v5278_v5 }
 0xa6b   : > { %v5055_v41 = vmul.f32 %v10800_v57, %v14205_v45  ;;  %9860 = vmatprep.subr.msk.bf16.mxu0 %vm12233_vm3, %v9858_v22  ;;  %v5016_v49 = vpop.xlane.xlu1 %5015  ;;  %v5271_v45 = vld [vmem:[#allocation4 + $0x1b8] sm:$0xff]  ;;  %9820 = vmatpush1.bf16.msra.mxu1 %v9819_v12  ;;  %v10406_v57 = vunpack.i.l.bf16 %v14266_v0 }
 0xa6c   : > { %10805 = vrcp.f32 %v5016_v49  ;;  %v9822_v36 = vpack.c.bf16 %v5271_v45, %v5270_v62  ;;  %9821 = vmatprep.subr.bf16.mxu1 %v16553_v63  ;;  %v16709_v22 = vld [vmem:[#allocation85_spill] sm:$0xff] }
 0xa6d   : > { %5515 = vrot.lane.b32.xlu0 %v16704_v61, %s11205_s13  ;;  %8933 = vmatmul.mubr.msk.f32.gmra.mrb[30].mxu0 %vm3078_vm6, %v5055_v41  ;;  %v5653_v62 = vsel %vm2858_vm2, %v10406_v57, %v10407_v7 }
 0xa6e   : > { %v10802_v34 = vpop.eup %10801  ;;  %5202 = vmatprep.mubr.f32.mxu0 %v16195_v33 }
 0xa6f   : > { %v5056_v59 = vmul.f32 %v10802_v34, %v14210_v2  ;;  %v5019_v17 = vpop.xlane.xlu1 %5018  ;;  %9823 = vmatpush1.bf16.msra.mxu1 %v9822_v36  ;;  %v16710_v34 = vld [vmem:[#allocation89_spill] sm:$0xff] }
 0xa70   : > { %10807 = vrcp.f32 %v5019_v17  ;;  %9824 = vmatprep.subr.bf16.mxu1 %v16553_v63 }
 0xa71   : > { %5519 = vrot.lane.b32.xlu0 %v16705_v9, %s11205_s13  ;;  %8934 = vmatmul.mubr.msk.f32.gmra.mrb[32].mxu0 %vm3078_vm6, %v5056_v59  ;;  %v5283_v59 = vld [vmem:[#allocation4 + $0x218] sm:$0xff] }
 0xa72   : > { %v10804_v37 = vpop.eup %10803  ;;  %9862 = vmatpush1.bf16.xpose.msra.mxu0 %v9861_v24  ;;  %5208 = vmatprep.mubr.f32.mxu0 %v16195_v33 }
 0xa73   : > { %v5057_v2 = vmul.f32 %v10804_v37, %v14215_v20  ;;  %v5022_v48 = vpop.xlane.xlu0 %5021  ;;  %9826 = vmatpush1.bf16.msra.mxu1 %v9825_v42  ;;  %v9828_v20 = vpack.c.bf16 %v5275_v54, %v5274_v46  ;;  %v9840_v37 = vpack.c.bf16 %v5283_v59, %v5282_v39  ;;  %v5285_v42 = vld [vmem:[#allocation4 + $0x228] sm:$0xff] }
 0xa74   : > { %10809 = vrcp.f32 %v5022_v48  ;;  %9827 = vmatprep.subr.bf16.mxu1 %v16553_v63 }
 0xa75   : > { %5523 = vrot.lane.b32.xlu0 %v16706_v50, %s11205_s13  ;;  %8935 = vmatmul.mubr.msk.f32.gmra.mrb[34].mxu0 %vm3078_vm6, %v5057_v2  ;;  %v16711_v2 = vld [vmem:[#allocation93_spill] sm:$0xff] }
 0xa76   : > { %v10806_v52 = vpop.eup %10805  ;;  %5214 = vmatprep.mubr.f32.mxu0 %v16195_v33 }
 0xa77   : > { %v5058_v40 = vmul.f32 %v10806_v52, %v14220_v8  ;;  %v5025_v56 = vpop.xlane.xlu1 %5024  ;;  %9829 = vmatpush1.bf16.msra.mxu1 %v9828_v20  ;;  %v9831_v8 = vpack.c.bf16 %v5277_v19, %v5276_v55  ;;  %v16712_v20 = vld [vmem:[#allocation97_spill] sm:$0xff] }
 0xa78   : > { %10811 = vrcp.f32 %v5025_v56  ;;  %9830 = vmatprep.subr.bf16.mxu1 %v16553_v63 }
 0xa79   : > { %5527 = vrot.lane.b32.xlu0 %v16707_v32, %s11205_s13  ;;  %8936 = vmatmul.mubr.msk.f32.gmra.mrb[36].mxu0 %vm3078_vm6, %v5058_v40  ;;  %v5286_v32 = vld [vmem:[#allocation4 + $0x230] sm:$0xff] }
 0xa7a   : > { %v10808_v35 = vpop.eup %10807  ;;  %5220 = vmatprep.mubr.f32.mxu0 %v16195_v33 }
 0xa7b   : > { %v5059_v13 = vmul.f32 %v10808_v35, %v14225_v51  ;;  %v5028_v47 = vpop.xlane.xlu0 %5027  ;;  %9832 = vmatpush1.bf16.msra.mxu1 %v9831_v8 }
 0xa7c   : > { %10813 = vrcp.f32 %v5028_v47  ;;  %9833 = vmatprep.subr.bf16.mxu1 %v16553_v63 }
 0xa7d   : > { %5531 = vrot.lane.b32.xlu0 %v16708_v38, %s11205_s13  ;;  %8937 = vmatmul.mubr.msk.f32.gmra.mrb[38].mxu0 %vm3078_vm6, %v5059_v13 }
 0xa7e   : > { %v10810_v31 = vpop.eup %10809  ;;  %5226 = vmatprep.mubr.f32.mxu0 %v16195_v33 }
 0xa7f   : > { %v5060_v11 = vmul.f32 %v10810_v31, %v14230_v44  ;;  %v14394_v58 = vpop.permute.xlu0 %10414  ;;  %v5031_v51 = vpop.xlane.xlu1 %5030  ;;  %v5280_v44 = vld [vmem:[#allocation4 + $0x200] sm:$0xff]  ;;  %9835 = vmatpush1.bf16.msra.mxu1 %v9834_v29 }
 0xa80   : > { %10815 = vrcp.f32 %v5031_v51  ;;  %v9837_v49 = vpack.c.bf16 %v5281_v15, %v5280_v44  ;;  %9836 = vmatprep.subr.bf16.mxu1 %v16553_v63  ;;  %v10417_v36 = vunpack.i.h.bf16 %v14394_v58  ;;  %v10416_v50 = vunpack.i.l.bf16 %v14394_v58  ;;  %v16713_v31 = vld [vmem:[#allocation213_spill] sm:$0xff]  ;;  %v16717_v15 = vld [vmem:[#allocation228_spill] sm:$0xff] }
 0xa81   : > { %5535 = vrot.lane.b32.xlu0 %v16709_v22, %s11205_s13  ;;  %8938 = vmatmul.mubr.msk.f32.gmra.mrb[40].mxu0 %vm3078_vm6, %v5060_v11  ;;  %v16714_v5 = vpack.i.bf16 %v16713_v31, %v16495_v21  ;;  %v16715_v29 = vld [vmem:[#allocation225_spill] sm:$0xff]  ;;  %v6348_v31 = vld [vmem:[#allocation4 + $0x288] sm:$0xff] }
 0xa82   : > { %v10812_v10 = vpop.eup %10811  ;;  %5232 = vmatprep.mubr.f32.mxu0 %v16195_v33  ;;  %v5655_v35 = vsel %vm2858_vm2, %v10416_v50, %v10417_v36  ;;  %v16716_v22 = vpack.i.bf16 %v16715_v29, %v16498_v16  ;;  %v16719_v16 = vld [vmem:[#allocation232_spill] sm:$0xff] }
 0xa83   : > { %v5061_v1 = vmul.f32 %v10812_v10, %v14234_v30  ;;  %v10420_v23 = vpop.permute.xlu0 %10419  ;;  %v10410_v41 = vpop.permute.xlu1 %10409  ;;  %9838 = vmatpush1.bf16.msra.mxu1 %v9837_v49  ;;  %v16720_v49 = vpack.i.bf16 %v16719_v16, %v16500_v60  ;;  %v6342_v50 = vld [vmem:[#allocation4 + $0x258] sm:$0xff] }
 0xa84   : > { %v10412_v12 = vunpack.i.h.bf16 %v10410_v41  ;;  %v10411_v4 = vunpack.i.l.bf16 %v10410_v41  ;;  %v10422_v61 = vunpack.i.h.bf16 %v10420_v23  ;;  %9839 = vmatprep.subr.bf16.mxu1 %v16553_v63  ;;  %v10421_v26 = vunpack.i.l.bf16 %v10420_v23  ;;  %v6354_v16 = vld [vmem:[#allocation4 + $0x2b8] sm:$0xff] }
 0xa85   : > { %5539 = vrot.lane.b32.xlu0 %v16710_v34, %s11205_s13  ;;  %8939 = vmatmul.mubr.msk.f32.gmra.mrb[42].mxu0 %vm3078_vm6, %v5061_v1  ;;  %v16718_v1 = vpack.i.bf16 %v16717_v15, %v16499_v25 }
 0xa86   : > { %v10814_v0 = vpop.eup %10813  ;;  %v9863_v45 = vpack.c.bf16 %v10412_v12, %v10407_v7  ;;  %v5654_v30 = vsel %vm2858_vm2, %v10411_v4, %v10412_v12  ;;  %5238 = vmatprep.mubr.f32.mxu0 %v16195_v33  ;;  %v9868_v43 = vpack.c.bf16 %v10422_v61, %v10417_v36  ;;  %v5656_v40 = vsel %vm2858_vm2, %v10421_v26, %v10422_v61 }
 0xa87   : > { %v5062_v17 = vmul.f32 %v10814_v0, %v14238_v14  ;;  %v10425_v24 = vpop.permute.xlu0 %10424  ;;  %v9866_v9 = vpack.c.bf16 %v5654_v30, %v5653_v62  ;;  %v5284_v14 = vld [vmem:[#allocation4 + $0x220] sm:$0xff]  ;;  %9841 = vmatpush1.bf16.msra.mxu1 %v9840_v37  ;;  %v9871_v47 = vpack.c.bf16 %v5656_v40, %v5655_v35  ;;  %v6344_v40 = vld [vmem:[#allocation4 + $0x268] sm:$0xff]  ;;  %v6345_v35 = vld [vmem:[#allocation4 + $0x270] sm:$0xff] }
 0xa88   : > { %9865 = vmatprep.subr.msk.bf16.mxu0 %vm12233_vm3, %v9863_v45  ;;  %v9843_v54 = vpack.c.bf16 %v5285_v42, %v5284_v14  ;;  %9842 = vmatprep.subr.bf16.mxu1 %v16553_v63  ;;  %v10427_v55 = vunpack.i.h.bf16 %v10425_v24  ;;  %v10426_v3 = vunpack.i.l.bf16 %v10425_v24  ;;  %v6341_v42 = vld [vmem:[#allocation4 + $0x250] sm:$0xff] }
 0xa89   : > { %5543 = vrot.lane.b32.xlu0 %v16711_v2, %s11205_s13  ;;  %8940 = vmatmul.mubr.msk.f32.gmra.mrb[44].mxu0 %vm3078_vm6, %v5062_v17  ;;  %v6340_v2 = vld [vmem:[#allocation4 + $0x248] sm:$0xff] }
 0xa8a   : > { %v10816_v48 = vpop.eup %10815  ;;  %9867 = vmatpush1.bf16.xpose.msra.mxu0 %v9866_v9  ;;  %5244 = vmatprep.mubr.f32.mxu0 %v16195_v33  ;;  %v5657_v10 = vsel %vm2858_vm2, %v10426_v3, %v10427_v55 }
 0xa8b   : > { %v5063_v52 = vmul.f32 %v10816_v48, %v14242_v27  ;;  %9870 = vmatprep.subr.msk.bf16.mxu0 %vm12233_vm3, %v9868_v43  ;;  %v10430_v46 = vpop.permute.xlu0 %10429  ;;  %v5287_v27 = vld [vmem:[#allocation4 + $0x238] sm:$0xff]  ;;  %9844 = vmatpush1.bf16.msra.mxu1 %v9843_v54  ;;  %v6339_v43 = vld [vmem:[#allocation4 + $0x240] sm:$0xff] }
 0xa8c   : > { %v10432_v56 = vunpack.i.h.bf16 %v10430_v46  ;;  %v9846_v13 = vpack.c.bf16 %v5287_v27, %v5286_v32  ;;  %9845 = vmatprep.subr.bf16.mxu1 %v16553_v63  ;;  %v10431_v8 = vunpack.i.l.bf16 %v10430_v46  ;;  %v9914_v48 = vpack.c.bf16 %v6340_v2, %v6339_v43  ;;  %v6343_v54 = vld [vmem:[#allocation4 + $0x260] sm:$0xff]  ;;  %v6361_v2 = vld [vmem:[#allocation4 + $0x2f0] sm:$0xff] }
 0xa8d   : > { %5547 = vrot.lane.b32.xlu0 %v16712_v20, %s11205_s13  ;;  %8941 = vmatmul.mubr.msk.f32.gmra.mrb[46].mxu0 %vm3078_vm6, %v5063_v52  ;;  %v9920_v32 = vpack.c.bf16 %v6344_v40, %v6343_v54  ;;  %v16721_v40 = vld [vmem:[#allocation269_spill] sm:$0xff] }
 0xa8e   : > { %5250 = vmatprep.mubr.f32.mxu0 %v16195_v33  ;;  %v9873_v38 = vpack.c.bf16 %v10432_v56, %v10427_v55  ;;  %v5658_v58 = vsel %vm2858_vm2, %v10431_v8, %v10432_v56  ;;  %v6346_v55 = vld [vmem:[#allocation4 + $0x278] sm:$0xff] }
 0xa8f   : > { %v10435_v19 = vpop.permute.xlu0 %10434  ;;  %9847 = vmatpush1.bf16.msra.mxu1 %v9846_v13  ;;  %v9876_v21 = vpack.c.bf16 %v5658_v58, %v5657_v10  ;;  %v9923_v13 = vpack.c.bf16 %v6346_v55, %v6345_v35  ;;  %v6349_v58 = vld [vmem:[#allocation4 + $0x290] sm:$0xff] }
 0xa90   : > { %v10437_v7 = vunpack.i.h.bf16 %v10435_v19  ;;  %v10436_v23 = vunpack.i.l.bf16 %v10435_v19 }
 0xa91   : > { %10444 = vrot.lane.b32.xlu0 %v16714_v5, %s11205_s13 }
 0xa92   : > { %9872 = vmatpush1.bf16.xpose.msra.mxu0 %v9871_v47  ;;  %v5659_v12 = vsel %vm2858_vm2, %v10436_v23, %v10437_v7 }
 0xa93   : > { %9875 = vmatprep.subr.msk.bf16.mxu0 %vm12233_vm3, %v9873_v38  ;;  %v10440_v11 = vpop.permute.xlu0 %10439  ;;  %v6347_v38 = vld [vmem:[#allocation4 + $0x280] sm:$0xff] }
 0xa94   : > { %v10442_v51 = vunpack.i.h.bf16 %v10440_v11  ;;  %v10441_v57 = vunpack.i.l.bf16 %v10440_v11  ;;  %v9926_v3 = vpack.c.bf16 %v6348_v31, %v6347_v38 }
 0xa95   : > { %10459 = vrot.lane.b32.xlu0 %v16716_v22, %s11205_s13 }
 0xa96   : > { %v9878_v44 = vpack.c.bf16 %v10442_v51, %v10437_v7  ;;  %v5660_v41 = vsel %vm2858_vm2, %v10441_v57, %v10442_v51  ;;  %v6350_v51 = vld [vmem:[#allocation4 + $0x298] sm:$0xff]  ;;  %v6352_v57 = vld [vmem:[#allocation4 + $0x2a8] sm:$0xff] }
 0xa97   : > { %v9881_v4 = vpack.c.bf16 %v5660_v41, %v5659_v12  ;;  %v5494_v25 = vpop.permute.xlu0 %5493  ;;  %v9929_v10 = vpack.c.bf16 %v6350_v51, %v6349_v58  ;;  %v6353_v41 = vld [vmem:[#allocation4 + $0x2b0] sm:$0xff] }
 0xa98   : > { %v9935_v12 = vpack.c.bf16 %v6354_v16, %v6353_v41 }
 0xa99   : > { %10464 = vrot.lane.b32.xlu0 %v16718_v1, %s11205_s13 }
 0xa9a   : > { %9877 = vmatpush1.bf16.xpose.msra.mxu0 %v9876_v21  ;;  %v6351_v21 = vld [vmem:[#allocation4 + $0x2a0] sm:$0xff] }
 0xa9b   : > { %9880 = vmatprep.subr.msk.bf16.mxu0 %vm12233_vm3, %v9878_v44  ;;  %v5496_v34 = vpop.permute.xlu0 %5495  ;;  %v9932_v15 = vpack.c.bf16 %v6352_v57, %v6351_v21 }
 0xa9c   : > { %v5549_v52 = vsel %vm2858_vm2, %v5494_v25, %v5496_v34  ;;  %v6355_v25 = vld [vmem:[#allocation4 + $0x2c0] sm:$0xff] }
 0xa9d   : > { %10469 = vrot.lane.b32.xlu0 %v16720_v49, %s11205_s13 }
 0xaa2   : > { %9882 = vmatpush1.bf16.xpose.msra.mxu0 %v9881_v4 }
 0xaa3   : > { %9913 = vmatprep.subr.bf16.mxu0 %v16553_v63 }
 0xab4   : > { %v5037_v61 = vpop.xlane.xlu1 %5036 }
 0xab8   : > { %v5500_v0 = vpop.permute.xlu1 %5499 }
 0xabc   : > { %v5510_v45 = vpop.permute.xlu1 %5509 }
 0xac0   : > { %v14457_v39 = vpop.permute.xlu1 %5513 }
 0xac4   : > { %v14460_v9 = vpop.permute.xlu1 %5517 }
 0xac8   : > { %v14467_v14 = vpop.permute.xlu1 %5521 }
 0xacc   : > { %v5034_v62 = vpop.xlane.xlu0 %5033  ;;  %v14473_v20 = vpop.permute.xlu1 %5525 }
 0xacd   : > { %10817 = vrcp.f32 %v5034_v62 }
 0xace   : > { %10819 = vrcp.f32 %v5037_v61  ;;  %v6356_v61 = vld [vmem:[#allocation4 + $0x2c8] sm:$0xff] }
 0xacf   : > { %v9938_v62 = vpack.c.bf16 %v6356_v61, %v6355_v25 }
 0xad0   : > { %v5498_v30 = vpop.permute.xlu0 %5497  ;;  %v14479_v47 = vpop.permute.xlu1 %5529 }
 0xad1   : > { %v5550_v56 = vsel %vm2858_vm2, %v5498_v30, %v5500_v0  ;;  %v6357_v30 = vld [vmem:[#allocation4 + $0x2d0] sm:$0xff] }
 0xad4   : > { %v5502_v59 = vpop.permute.xlu0 %5501  ;;  %v5534_v22 = vpop.permute.xlu1 %5533 }
 0xad7   : > { %v10818_v60 = vpop.eup %10817 }
 0xad8   : > { %v5064_v17 = vmul.f32 %v10818_v60, %v14288_v18  ;;  %v5504_v36 = vpop.permute.xlu0 %5503  ;;  %v10820_v24 = vpop.eup %10819 }
 0xad9   : > { %v5065_v37 = vmul.f32 %v10820_v24, %v14281_v53  ;;  %v9917_v53 = vpack.c.bf16 %v6342_v50, %v6341_v42  ;;  %v5551_v19 = vsel %vm2858_vm2, %v5502_v59, %v5504_v36  ;;  %v5538_v1 = vpop.permute.xlu1 %5537  ;;  %v6359_v24 = vld [vmem:[#allocation4 + $0x2e0] sm:$0xff] }
 0xada   : > { %8942 = vmatmul.mubr.msk.f32.gmra.mrb[48].mxu0 %vm3078_vm6, %v5064_v17 }
 0xadb   : > { %5256 = vmatprep.mubr.f32.mxu0 %v16195_v33 }
 0xadc   : > { %v5506_v26 = vpop.permute.xlu0 %5505 }
 0xade   : > { %8943 = vmatmul.mubr.msk.f32.gmra.mrb[50].mxu0 %vm3078_vm6, %v5065_v37 }
 0xadf   : > { %8972 = vmatprep.mubr.msk.f32.mxu0 %vm2858_vm2, %v5496_v34 }
 0xae0   : > { %v5508_v18 = vpop.permute.xlu0 %5507 }
 0xae1   : > { %v5552_v5 = vsel %vm2858_vm2, %v5506_v26, %v5508_v18 }
 0xae2   : > { %5796 = vmatmul.mubr.f32.vlgmr.msra.gmra.mrb[52].mxu0 %v5549_v52 }
 0xae3   : > { %9915 = vmatpush1.bf16.msra.mxu0 %v9914_v48  ;;  %8973 = vmatprep.mubr.msk.f32.mxu0 %vm2858_vm2, %v5500_v0  ;;  %v5542_v0 = vpop.permute.xlu1 %5541  ;;  %v6362_v48 = vld [vmem:[#allocation4 + $0x2f8] sm:$0xff] }
 0xae4   : > { %v5512_v46 = vpop.permute.xlu0 %5511  ;;  %9916 = vmatprep.subr.bf16.mxu0 %v16553_v63  ;;  %v9947_v42 = vpack.c.bf16 %v6362_v48, %v6361_v2 }
 0xae5   : > { %v5553_v29 = vsel %vm2858_vm2, %v5510_v45, %v5512_v46 }
 0xae6   : > { %5801 = vmatmul.mubr.f32.gmra.mrb[54].mxu0 %v5550_v56  ;;  %v16722_v56 = vld [vmem:[#allocation266_spill] sm:$0xff] }
 0xae7   : > { %9918 = vmatpush1.bf16.msra.mxu0 %v9917_v53  ;;  %8974 = vmatprep.mubr.msk.f32.mxu0 %vm2858_vm2, %v5504_v36  ;;  %v5546_v17 = vpop.permute.xlu1 %5545 }
 0xae8   : > { %v5516_v27 = vpop.permute.xlu0 %5515  ;;  %9919 = vmatprep.subr.bf16.mxu0 %v16553_v63 }
 0xae9   : > { %v5554_v44 = vsel %vm2858_vm2, %v14457_v39, %v5516_v27  ;;  %v6358_v39 = vld [vmem:[#allocation4 + $0x2d8] sm:$0xff] }
 0xaea   : > { %5806 = vmatmul.mubr.f32.gmra.mrb[56].mxu0 %v5551_v19  ;;  %v9941_v60 = vpack.c.bf16 %v6358_v39, %v6357_v30 }
 0xaeb   : > { %9921 = vmatpush1.bf16.msra.mxu0 %v9920_v32  ;;  %8975 = vmatprep.mubr.msk.f32.mxu0 %vm2858_vm2, %v5508_v18  ;;  %v10450_v18 = vpop.permute.xlu1 %10449 }
 0xaec   : > { %v5520_v8 = vpop.permute.xlu0 %5519  ;;  %9922 = vmatprep.subr.bf16.mxu0 %v16553_v63  ;;  %v10452_v52 = vunpack.i.h.bf16 %v10450_v18 }
 0xaed   : > { %v5555_v49 = vsel %vm2858_vm2, %v14460_v9, %v5520_v8  ;;  %v6360_v9 = vld [vmem:[#allocation4 + $0x2e8] sm:$0xff] }
 0xaee   : > { %5811 = vmatmul.mubr.f32.gmra.mrb[58].mxu0 %v5552_v5  ;;  %v9944_v26 = vpack.c.bf16 %v6360_v9, %v6359_v24 }
 0xaef   : > { %9924 = vmatpush1.bf16.msra.mxu0 %v9923_v13  ;;  %8976 = vmatprep.mubr.msk.f32.mxu0 %vm2858_vm2, %v5512_v46  ;;  %v10451_v13 = vunpack.i.l.bf16 %v10450_v18 }
 0xaf0   : > { %v5524_v11 = vpop.permute.xlu0 %5523  ;;  %9925 = vmatprep.subr.bf16.mxu0 %v16553_v63 }
 0xaf1   : > { %v5556_v34 = vsel %vm2858_vm2, %v14467_v14, %v5524_v11 }
 0xaf2   : > { %5816 = vmatmul.mubr.f32.gmra.mrb[60].mxu0 %v5553_v29 }
 0xaf3   : > { %9927 = vmatpush1.bf16.msra.mxu0 %v9926_v3  ;;  %8977 = vmatprep.mubr.msk.f32.mxu0 %vm2858_vm2, %v5516_v27 }
 0xaf4   : > { %v5528_v7 = vpop.permute.xlu0 %5527  ;;  %9928 = vmatprep.subr.bf16.mxu0 %v16553_v63 }
 0xaf5   : > { %v5557_v59 = vsel %vm2858_vm2, %v14473_v20, %v5528_v7  ;;  %v16723_v20 = vpack.c.bf16 %v16721_v40, %v16722_v56 }
 0xaf6   : > { %5821 = vmatmul.mubr.f32.gmra.mrb[62].mxu0 %v5554_v44 }
 0xaf7   : > { %9930 = vmatpush1.bf16.msra.mxu0 %v9929_v10  ;;  %8978 = vmatprep.mubr.msk.f32.mxu0 %vm2858_vm2, %v5520_v8 }
 0xaf8   : > { %v5532_v23 = vpop.permute.xlu0 %5531  ;;  %9931 = vmatprep.subr.bf16.mxu0 %v16553_v63 }
 0xaf9   : > { %v5558_v37 = vsel %vm2858_vm2, %v14479_v47, %v5532_v23  ;;  %v10455_v47 = vpop.permute.xlu1 %10454 }
 0xafa   : > { %5826 = vmatmul.mubr.f32.gmra.mrb[64].mxu0 %v5555_v49  ;;  %v10457_v58 = vunpack.i.h.bf16 %v10455_v47  ;;  %v10456_v51 = vunpack.i.l.bf16 %v10455_v47 }
 0xafb   : > { %9933 = vmatpush1.bf16.msra.mxu0 %v9932_v15  ;;  %8979 = vmatprep.mubr.msk.f32.mxu0 %vm2858_vm2, %v5524_v11  ;;  %v6104_v11 = vsel %vm2858_vm2, %v10451_v13, %v10452_v52 }
 0xafc   : > { %v5536_v4 = vpop.permute.xlu0 %5535  ;;  %9934 = vmatprep.subr.bf16.mxu0 %v16553_v63  ;;  %v6105_v15 = vsel %vm2858_vm2, %v10456_v51, %v10457_v58 }
 0xafd   : > { %v5559_v14 = vsel %vm2858_vm2, %v5534_v22, %v5536_v4 }
 0xafe   : > { %5831 = vmatmul.mubr.f32.gmra.mrb[66].mxu0 %v5556_v34 }
 0xaff   : > { %9936 = vmatpush1.bf16.msra.mxu0 %v9935_v12  ;;  %8980 = vmatprep.mubr.msk.f32.mxu0 %vm2858_vm2, %v5528_v7 }
 0xb00   : > { %v5540_v45 = vpop.permute.xlu0 %5539  ;;  %9937 = vmatprep.subr.bf16.mxu0 %v16553_v63 }
 0xb01   : > { %v5560_v53 = vsel %vm2858_vm2, %v5538_v1, %v5540_v45 }
 0xb02   : > { %5836 = vmatmul.mubr.f32.gmra.mrb[68].mxu0 %v5557_v59 }
 0xb03   : > { %9939 = vmatpush1.bf16.msra.mxu0 %v9938_v62  ;;  %8981 = vmatprep.mubr.msk.f32.mxu0 %vm2858_vm2, %v5532_v23 }
 0xb04   : > { %v5544_v36 = vpop.permute.xlu0 %5543  ;;  %9940 = vmatprep.subr.bf16.mxu0 %v16553_v63 }
 0xb05   : > { %v5561_v32 = vsel %vm2858_vm2, %v5542_v0, %v5544_v36 }
 0xb06   : > { %5841 = vmatmul.mubr.f32.gmra.mrb[70].mxu0 %v5558_v37 }
 0xb07   : > { %9942 = vmatpush1.bf16.msra.mxu0 %v9941_v60  ;;  %8982 = vmatprep.mubr.msk.f32.mxu0 %vm2858_vm2, %v5536_v4 }
 0xb08   : > { %v5548_v43 = vpop.permute.xlu0 %5547  ;;  %9943 = vmatprep.subr.bf16.mxu0 %v16553_v63 }
 0xb09   : > { %v5562_v27 = vsel %vm2858_vm2, %v5546_v17, %v5548_v43 }
 0xb0a   : > { %5846 = vmatmul.mubr.f32.gmra.mrb[72].mxu0 %v5559_v14 }
 0xb0b   : > { %9945 = vmatpush1.bf16.msra.mxu0 %v9944_v26  ;;  %8983 = vmatprep.mubr.msk.f32.mxu0 %vm2858_vm2, %v5540_v45 }
 0xb0c   : > { %v10445_v50 = vpop.permute.xlu0 %10444  ;;  %9946 = vmatprep.subr.bf16.mxu0 %v16553_v63 }
 0xb0d   : > { %v10447_v46 = vunpack.i.h.bf16 %v10445_v50  ;;  %v10446_v19 = vunpack.i.l.bf16 %v10445_v50 }
 0xb0e   : > { %5851 = vmatmul.mubr.f32.gmra.mrb[74].mxu0 %v5560_v53 }
 0xb0f   : > { %9948 = vmatpush1.bf16.msra.mxu0 %v9947_v42  ;;  %8984 = vmatprep.mubr.msk.f32.mxu0 %vm2858_vm2, %v5544_v36  ;;  %v9883_v54 = vpack.c.bf16 %v10452_v52, %v10447_v46  ;;  %v6103_v8 = vsel %vm2858_vm2, %v10446_v19, %v10447_v46 }
 0xb10   : > { %9985 = vmatprep.subr.bf16.mxu0 %v16723_v20  ;;  %v10460_v35 = vpop.permute.xlu0 %10459  ;;  %v9885_v22 = vpack.c.bf16 %v6104_v11, %v6103_v8 }
 0xb11   : > { %9884 = vmatprep.subr.bf16.mxu1 %v9883_v54  ;;  %v10462_v38 = vunpack.i.h.bf16 %v10460_v35  ;;  %v10461_v31 = vunpack.i.l.bf16 %v10460_v35  ;;  %v14540_v54 = vld [vmem:[#allocation7] sm:$0xff] }
 0xb12   : > { %5856 = vmatmul.mubr.f32.gmra.mrb[76].mxu0 %v5561_v32 }
 0xb13   : > { %8985 = vmatprep.mubr.msk.f32.mxu0 %vm2858_vm2, %v5548_v43  ;;  %v6106_v10 = vsel %vm2858_vm2, %v10461_v31, %v10462_v38  ;;  %v9887_v57 = vpack.c.bf16 %v10462_v38, %v10457_v58  ;;  %v14554_v38 = vld [vmem:[#allocation7 + $0x10] sm:$0xff]  ;;  %v14561_v58 = vld [vmem:[#allocation7 + $0x18] sm:$0xff] }
 0xb14   : > { %v10465_v55 = vpop.permute.xlu0 %10464  ;;  %v9889_v16 = vpack.c.bf16 %v6106_v10, %v6105_v15 }
 0xb15   : > { %v10467_v1 = vunpack.i.h.bf16 %v10465_v55  ;;  %v10466_v23 = vunpack.i.l.bf16 %v10465_v55  ;;  %v14547_v55 = vld [vmem:[#allocation7 + $0x8] sm:$0xff] }
 0xb16   : > { %5861 = vmatmul.mubr.f32.gmra.mrb[78].mxu0 %v5562_v27 }
 0xb17   : > { %v6107_v25 = vsel %vm2858_vm2, %v10466_v23, %v10467_v1 }
 0xb18   : > { %v10470_v5 = vpop.permute.xlu0 %10469 }
 0xb19   : > { %v10472_v7 = vunpack.i.h.bf16 %v10470_v5  ;;  %v10471_v21 = vunpack.i.l.bf16 %v10470_v5 }
 0xb1b   : > { %v6108_v49 = vsel %vm2858_vm2, %v10471_v21, %v10472_v7  ;;  %v9891_v12 = vpack.c.bf16 %v10472_v7, %v10467_v1  ;;  %v14568_v7 = vld [vmem:[#allocation7 + $0x20] sm:$0xff]  ;;  %v14575_v1 = vld [vmem:[#allocation7 + $0x28] sm:$0xff] }
 0xb1c   : > { %v9893_v34 = vpack.c.bf16 %v6108_v49, %v6107_v25 }
 0xb34   : > { %v5180_v3 = vpop.f32.mrb[24].mxu0 }
 0xb35   : > { %v5182_v29 = vpop.f32.mrb[25].mxu0 }
 0xb36   : > { %8944 = vmatprep.mubr.msk.f32.mxu1 %vm2858_vm2, %v5182_v29 }
 0xb37   : > { %5395 = vmatmul.mubr.f32.vlgmr.msra.gmra.mrb[38].mxu1 %v5180_v3 }
 0xb38   : > { %9886 = vmatpush1.bf16.msra.mxu1 %v9885_v22  ;;  %v5186_v44 = vpop.f32.mrb[26].mxu0 }
 0xb39   : > { %9888 = vmatprep.subr.bf16.mxu1 %v9887_v57  ;;  %v5188_v41 = vpop.f32.mrb[27].mxu0 }
 0xb3a   : > { %8945 = vmatprep.mubr.msk.f32.mxu1 %vm2858_vm2, %v5188_v41 }
 0xb3b   : > { %5400 = vmatmul.mubr.f32.gmra.mrb[40].mxu1 %v5186_v44 }
 0xb3c   : > { %9890 = vmatpush1.bf16.msra.mxu1 %v9889_v16  ;;  %v5192_v4 = vpop.f32.mrb[28].mxu0 }
 0xb3d   : > { %9892 = vmatprep.subr.bf16.mxu1 %v9891_v12  ;;  %v5194_v61 = vpop.f32.mrb[29].mxu0  ;;  %v14582_v12 = vld [vmem:[#allocation7 + $0x30] sm:$0xff] }
 0xb3e   : > { %8946 = vmatprep.mubr.msk.f32.mxu1 %vm2858_vm2, %v5194_v61 }
 0xb3f   : > { %5405 = vmatmul.mubr.f32.gmra.mrb[42].mxu1 %v5192_v4 }
 0xb40   : > { %9894 = vmatpush1.bf16.msra.mxu1 %v9893_v34  ;;  %v5198_v0 = vpop.f32.mrb[30].mxu0 }
 0xb41   : > { %v5200_v62 = vpop.f32.mrb[31].mxu0 }
 0xb42   : > { %8947 = vmatprep.mubr.msk.f32.mxu1 %vm2858_vm2, %v5200_v62 }
 0xb43   : > { %5410 = vmatmul.mubr.f32.gmra.mrb[44].mxu1 %v5198_v0  ;;  %v14589_v0 = vld [vmem:[#allocation7 + $0x38] sm:$0xff] }
 0xb44   : > { %v5204_v45 = vpop.f32.mrb[32].mxu0 }
 0xb45   : > { %v5206_v30 = vpop.f32.mrb[33].mxu0 }
 0xb46   : > { %8948 = vmatprep.mubr.msk.f32.mxu1 %vm2858_vm2, %v5206_v30 }
 0xb47   : > { %5415 = vmatmul.mubr.f32.gmra.mrb[46].mxu1 %v5204_v45 }
 0xb48   : > { %v5210_v39 = vpop.f32.mrb[34].mxu0 }
 0xb49   : > { %v5212_v59 = vpop.f32.mrb[35].mxu0 }
 0xb4a   : > { %8949 = vmatprep.mubr.msk.f32.mxu1 %vm2858_vm2, %v5212_v59 }
 0xb4b   : > { %5420 = vmatmul.mubr.f32.gmra.mrb[48].mxu1 %v5210_v39 }
 0xb4c   : > { %v5216_v60 = vpop.f32.mrb[36].mxu0 }
 0xb4d   : > { %v5218_v17 = vpop.f32.mrb[37].mxu0 }
 0xb4e   : > { %8950 = vmatprep.mubr.msk.f32.mxu1 %vm2858_vm2, %v5218_v17 }
 0xb4f   : > { %5425 = vmatmul.mubr.f32.gmra.mrb[50].mxu1 %v5216_v60 }
 0xb50   : > { %v5222_v36 = vpop.f32.mrb[38].mxu0 }
 0xb51   : > { %v5224_v24 = vpop.f32.mrb[39].mxu0 }
 0xb52   : > { %8951 = vmatprep.mubr.msk.f32.mxu1 %vm2858_vm2, %v5224_v24 }
 0xb53   : > { %5430 = vmatmul.mubr.f32.gmra.mrb[52].mxu1 %v5222_v36 }
 0xb54   : > { %v5228_v9 = vpop.f32.mrb[40].mxu0 }
 0xb55   : > { %v5230_v37 = vpop.f32.mrb[41].mxu0 }
 0xb56   : > { %8952 = vmatprep.mubr.msk.f32.mxu1 %vm2858_vm2, %v5230_v37 }
 0xb57   : > { %5435 = vmatmul.mubr.f32.gmra.mrb[54].mxu1 %v5228_v9 }
 0xb58   : > { %v5234_v26 = vpop.f32.mrb[42].mxu0 }
 0xb59   : > { %v5236_v43 = vpop.f32.mrb[43].mxu0 }
 0xb5a   : > { %8953 = vmatprep.mubr.msk.f32.mxu1 %vm2858_vm2, %v5236_v43 }
 0xb5b   : > { %5440 = vmatmul.mubr.f32.gmra.mrb[56].mxu1 %v5234_v26 }
 0xb5c   : > { %v5240_v2 = vpop.f32.mrb[44].mxu0 }
 0xb5d   : > { %v5242_v48 = vpop.f32.mrb[45].mxu0 }
 0xb5e   : > { %8954 = vmatprep.mubr.msk.f32.mxu1 %vm2858_vm2, %v5242_v48  ;;  %v16725_v48 = vld [vmem:[#allocation235_spill] sm:$0xff] }
 0xb5f   : > { %5445 = vmatmul.mubr.f32.gmra.mrb[58].mxu1 %v5240_v2  ;;  %v16724_v2 = vld [vmem:[#allocation236_spill] sm:$0xff] }
 0xb60   : > { %v5246_v14 = vpop.f32.mrb[46].mxu0 }
 0xb61   : > { %v5248_v18 = vpop.f32.mrb[47].mxu0 }
 0xb62   : > { %8955 = vmatprep.mubr.msk.f32.mxu1 %vm2858_vm2, %v5248_v18  ;;  %v16727_v18 = vld [vmem:[#allocation240_spill] sm:$0xff] }
 0xb63   : > { %5450 = vmatmul.mubr.f32.gmra.mrb[60].mxu1 %v5246_v14  ;;  %v16726_v14 = vpack.i.bf16 %v16724_v2, %v16725_v48 }
 0xbad   : > { %v5252_v42 = vpop.f32.mrb[48].mxu0 }
 0xbae   : > { %v5254_v50 = vpop.f32.mrb[49].mxu0 }
 0xbaf   : > { %8956 = vmatprep.mubr.msk.f32.mxu1 %vm2858_vm2, %v5254_v50 }
 0xbb0   : > { %5455 = vmatmul.mubr.f32.gmra.mrb[62].mxu1 %v5252_v42  ;;  %v16728_v42 = vld [vmem:[#allocation239_spill] sm:$0xff] }
 0xbb1   : > { %v5258_v52 = vpop.f32.mrb[50].mxu0  ;;  %v16729_v50 = vpack.i.bf16 %v16727_v18, %v16728_v42 }
 0xbb2   : > { %v5260_v53 = vpop.f32.mrb[51].mxu0 }
 0xbb3   : > { %8957 = vmatprep.mubr.msk.f32.mxu1 %vm2858_vm2, %v5260_v53 }
 0xbb4   : > { %5460 = vmatmul.mubr.f32.gmra.mrb[64].mxu1 %v5258_v52 }
 0xbb5   : > { %v5797_v46 = vpop.f32.mrb[52].mxu0  ;;  %6253 = vmatprep.mubr.f32.mxu1 %v16195_v33 }
 0xbb6   : > { %v14543_v20 = vadd.f32 %v14540_v54, %v5797_v46  ;;  %v5799_v32 = vpop.f32.mrb[53].mxu0  ;;  %v16730_v46 = vld [vmem:[#allocation243_spill] sm:$0xff] }
 0xbb7   : > { %v16731_v32 = vld [vmem:[#allocation242_spill] sm:$0xff] }
 0xbb8   : > { %v5866_v27 = vsel %vm3078_vm6, %v14543_v20, -inf }
 0xbb9   : > { %v5802_v35 = vpop.f32.mrb[54].mxu0  ;;  %5867 = vmax.xlane.f32.xlu1 %v5866_v27  ;;  %v16732_v27 = vpack.i.bf16 %v16730_v46, %v16731_v32  ;;  %v16740_v32 = vld [vmem:[#allocation214_spill] sm:$0xff] }
 0xbba   : > { %v14550_v19 = vadd.f32 %v14547_v55, %v5802_v35  ;;  %v5804_v13 = vpop.f32.mrb[55].mxu0  ;;  %v16733_v35 = vld [vmem:[#allocation247_spill] sm:$0xff] }
 0xbbb   : > { %v16734_v13 = vld [vmem:[#allocation246_spill] sm:$0xff] }
 0xbbc   : > { %v5869_v47 = vsel %vm3078_vm6, %v14550_v19, -inf }
 0xbbd   : > { %v5807_v8 = vpop.f32.mrb[56].mxu0  ;;  %5870 = vmax.xlane.f32.xlu0 %v5869_v47  ;;  %v16735_v47 = vpack.i.bf16 %v16733_v35, %v16734_v13 }
 0xbbe   : > { %v14557_v31 = vadd.f32 %v14554_v38, %v5807_v8  ;;  %v5809_v5 = vpop.f32.mrb[57].mxu0  ;;  %v14612_v8 = vld [vmem:[#allocation7 + $0x48] sm:$0xff] }
 0xbc0   : > { %v5872_v3 = vsel %vm3078_vm6, %v14557_v31, -inf }
 0xbc1   : > { %v5812_v11 = vpop.f32.mrb[58].mxu0  ;;  %5873 = vmax.xlane.f32.xlu0 %v5872_v3  ;;  %v14617_v3 = vld [vmem:[#allocation7 + $0x40] sm:$0xff] }
 0xbc2   : > { %v14564_v51 = vadd.f32 %v14561_v58, %v5812_v11  ;;  %v5814_v29 = vpop.f32.mrb[59].mxu0 }
 0xbc3   : > { %v14622_v29 = vld [vmem:[#allocation7 + $0x58] sm:$0xff] }
 0xbc4   : > { %v5875_v22 = vsel %vm3078_vm6, %v14564_v51, -inf }
 0xbc5   : > { %v5817_v10 = vpop.f32.mrb[60].mxu0  ;;  %5876 = vmax.xlane.f32.xlu1 %v5875_v22 }
 0xbc6   : > { %v14571_v21 = vadd.f32 %v14568_v7, %v5817_v10  ;;  %v5819_v57 = vpop.f32.mrb[61].mxu0 }
 0xbc8   : > { %v5878_v44 = vsel %vm3078_vm6, %v14571_v21, -inf }
 0xbc9   : > { %v5822_v15 = vpop.f32.mrb[62].mxu0  ;;  %5879 = vmax.xlane.f32.xlu0 %v5878_v44 }
 0xbca   : > { %v14578_v23 = vadd.f32 %v14575_v1, %v5822_v15  ;;  %v5824_v41 = vpop.f32.mrb[63].mxu0 }
 0xbcb   : > { %v14632_v41 = vld [vmem:[#allocation7 + $0x50] sm:$0xff] }
 0xbcc   : > { %v5881_v16 = vsel %vm3078_vm6, %v14578_v23, -inf }
 0xbcd   : > { %v5827_v49 = vpop.f32.mrb[64].mxu0  ;;  %5882 = vmax.xlane.f32.xlu1 %v5881_v16 }
 0xbce   : > { %v14585_v4 = vadd.f32 %v14582_v12, %v5827_v49  ;;  %v5829_v25 = vpop.f32.mrb[65].mxu0  ;;  %v14637_v49 = vld [vmem:[#allocation7 + $0x68] sm:$0x3f] }
 0xbd0   : > { %v5884_v61 = vsel %vm3078_vm6, %v14585_v4, -inf }
 0xbd1   : > { %v5832_v34 = vpop.f32.mrb[66].mxu0  ;;  %5885 = vmax.xlane.f32.xlu0 %v5884_v61 }
 0xbd2   : > { %v14592_v62 = vadd.f32 %v14589_v0, %v5832_v34  ;;  %v5834_v45 = vpop.f32.mrb[67].mxu0 }
 0xbd4   : > { %v5887_v30 = vsel %vm3078_vm6, %v14592_v62, -inf }
 0xbd5   : > { %v5837_v39 = vpop.f32.mrb[68].mxu0  ;;  %5888 = vmax.xlane.f32.xlu1 %v5887_v30 }
 0xbd6   : > { %v5839_v59 = vpop.f32.mrb[69].mxu0  ;;  %v14620_v11 = vadd.f32 %v14617_v3, %v5837_v39 }
 0xbd7   : > { %v14649_v59 = vld [vmem:[#allocation7 + $0x60] sm:$0xff] }
 0xbd8   : > { %v5890_v61 = vsel %vm3078_vm6, %v14620_v11, -inf }
 0xbd9   : > { %v5842_v60 = vpop.f32.mrb[70].mxu0 }
 0xbda   : > { %v5844_v17 = vpop.f32.mrb[71].mxu0  ;;  %v14615_v5 = vadd.f32 %v14612_v8, %v5842_v60 }
 0xbdc   : > { %v5893_v10 = vsel %vm3078_vm6, %v14615_v5, -inf }
 0xbdd   : > { %v5847_v36 = vpop.f32.mrb[72].mxu0 }
 0xbde   : > { %v5849_v24 = vpop.f32.mrb[73].mxu0  ;;  %v14635_v16 = vadd.f32 %v14632_v41, %v5847_v36 }
 0xbe0   : > { %v5896_v17 = vsel %vm3078_vm6, %v14635_v16, -inf }
 0xbe1   : > { %v5852_v9 = vpop.f32.mrb[74].mxu0 }
 0xbe2   : > { %v5854_v37 = vpop.f32.mrb[75].mxu0  ;;  %v14625_v22 = vadd.f32 %v14622_v29, %v5852_v9  ;;  %v16737_v9 = vld [vmem:[#allocation35_spill] sm:$0xff] }
 0xbe4   : > { %v5899_v34 = vsel %vm3078_vm6, %v14625_v22, -inf }
 0xbe5   : > { %v5857_v26 = vpop.f32.mrb[76].mxu0 }
 0xbe6   : > { %v5859_v43 = vpop.f32.mrb[77].mxu0  ;;  %10474 = vrot.lane.b32.xlu1 %v16726_v14, %s11205_s13  ;;  %v14652_v60 = vadd.f32 %v14649_v59, %v5857_v26  ;;  %v16738_v26 = vld [vmem:[#allocation38_spill] sm:$0xff] }
 0xbe7   : > { %10479 = vrot.lane.b32.xlu0 %v16729_v50, %s11205_s13  ;;  %v16739_v50 = vld [vmem:[#allocation41_spill] sm:$0xff] }
 0xbe8   : > { %v5902_v2 = vsel %vm3078_vm6, %v14652_v60, -inf }
 0xbe9   : > { %v5862_v52 = vpop.f32.mrb[78].mxu0 }
 0xbea   : > { %v5864_v53 = vpop.f32.mrb[79].mxu0  ;;  %v14640_v25 = vadd.f32 %v14637_v49, %v5862_v52 }
 0xbeb   : > { %10484 = vrot.lane.b32.xlu0 %v16732_v27, %s11205_s13 }
 0xbec   : > { %v5905_v36 = vsel %vm3118_vm7, %v14640_v25, -inf }
 0xbef   : > { %10489 = vrot.lane.b32.xlu0 %v16735_v47, %s11205_s13  ;;  %v16741_v47 = vld [vmem:[#allocation175_spill] sm:$0xff] }
 0xc0a   : > { %v5396_v57 = vpop.f32.mrb[38].mxu1  ;;  %5894 = vmax.xlane.f32.xlu1 %v5893_v10 }
 0xc0b   : > { %v14630_v44 = vadd.f32 %v5396_v57, %v14088_v28  ;;  %v5398_v15 = vpop.f32.mrb[39].mxu1  ;;  %v16736_v28 = vld [vmem:[#allocation32_spill] sm:$0xff] }
 0xc0e   : > { %v5401_v45 = vpop.f32.mrb[40].mxu1  ;;  %5891 = vmax.xlane.f32.xlu0 %v5890_v61  ;;  %5900 = vmax.xlane.f32.xlu1 %v5899_v34  ;;  %v16742_v61 = vld [vmem:[#allocation218_spill] sm:$0xff] }
 0xc0f   : > { %v14647_v30 = vadd.f32 %v5401_v45, %v16736_v28  ;;  %v5403_v39 = vpop.f32.mrb[41].mxu1 }
 0xc10   : > { %v16743_v39 = vld [vmem:[#allocation178_spill] sm:$0xff] }
 0xc12   : > { %v5406_v24 = vpop.f32.mrb[42].mxu1  ;;  %5897 = vmax.xlane.f32.xlu0 %v5896_v17  ;;  %5906 = vmax.xlane.f32.xlu1 %v5905_v36 }
 0xc13   : > { %v14659_v37 = vadd.f32 %v5406_v24, %v16737_v9  ;;  %v5408_v43 = vpop.f32.mrb[43].mxu1  ;;  %v16745_v9 = vld [vmem:[#allocation222_spill] sm:$0xff] }
 0xc16   : > { %v5411_v48 = vpop.f32.mrb[44].mxu1  ;;  %5903 = vmax.xlane.f32.xlu0 %v5902_v2 }
 0xc17   : > { %v14664_v14 = vadd.f32 %v5411_v48, %v16738_v26  ;;  %v5413_v18 = vpop.f32.mrb[45].mxu1  ;;  %v16747_v26 = vld [vmem:[#allocation181_spill] sm:$0xff] }
 0xc1a   : > { %v5416_v42 = vpop.f32.mrb[46].mxu1 }
 0xc1b   : > { %v14667_v52 = vadd.f32 %v5416_v42, %v16739_v50  ;;  %v5418_v53 = vpop.f32.mrb[47].mxu1 }
 0xc1c   : > { %v16749_v53 = vld [vmem:[#allocation229_spill] sm:$0xff] }
 0xc1e   : > { %v5421_v46 = vpop.f32.mrb[48].mxu1 }
 0xc1f   : > { %v14670_v27 = vadd.f32 %v5421_v46, %v16740_v32  ;;  %v5423_v35 = vpop.f32.mrb[49].mxu1 }
 0xc22   : > { %v5426_v13 = vpop.f32.mrb[50].mxu1 }
 0xc23   : > { %v14673_v10 = vadd.f32 %v5426_v13, %v16741_v47  ;;  %v5428_v57 = vpop.f32.mrb[51].mxu1 }
 0xc26   : > { %v5431_v15 = vpop.f32.mrb[52].mxu1 }
 0xc27   : > { %v14676_v34 = vadd.f32 %v5431_v15, %v16742_v61  ;;  %v5433_v45 = vpop.f32.mrb[53].mxu1 }
 0xc2a   : > { %v5436_v28 = vpop.f32.mrb[54].mxu1 }
 0xc2b   : > { %v14679_v17 = vadd.f32 %v5436_v28, %v16743_v39  ;;  %v5438_v36 = vpop.f32.mrb[55].mxu1 }
 0xc2d   : > { %16744 = vst [vmem:[#allocation189_spill] sm:$0xff] %v14679_v17 }
 0xc2e   : > { %v5441_v24 = vpop.f32.mrb[56].mxu1 }
 0xc2f   : > { %v14682_v43 = vadd.f32 %v5441_v24, %v16745_v9  ;;  %v5443_v2 = vpop.f32.mrb[57].mxu1 }
 0xc31   : > { %16746 = vst [vmem:[#allocation237_spill] sm:$0xff] %v14682_v43 }
 0xc32   : > { %v5446_v48 = vpop.f32.mrb[58].mxu1 }
 0xc33   : > { %v14685_v18 = vadd.f32 %v5446_v48, %v16747_v26  ;;  %v5448_v42 = vpop.f32.mrb[59].mxu1 }
 0xc35   : > { %16748 = vst [vmem:[#allocation192_spill] sm:$0xff] %v14685_v18 }
 0xc36   : > { %v5451_v50 = vpop.f32.mrb[60].mxu1 }
 0xc37   : > { %v14688_v46 = vadd.f32 %v5451_v50, %v16749_v53  ;;  %v5453_v32 = vpop.f32.mrb[61].mxu1 }
 0xc39   : > { %16750 = vst [vmem:[#allocation212_spill] sm:$0xff] %v14688_v46 }
 0xc46   : > { %v5868_v35 = vpop.xlane.xlu1 %5867 }
 0xc47   : > { %v5908_v13 = vsub.f32 %v14543_v20, %v5868_v35 }
 0xc49   : > { %v5922_v47 = vmul.f32 1.442695, %v5908_v13 }
 0xc4a   : > { %v5871_v57 = vpop.xlane.xlu0 %5870 }
 0xc4b   : > { %10821 = vpow2.f32 %v5922_v47  ;;  %v5909_v15 = vsub.f32 %v14550_v19, %v5871_v57 }
 0xc4d   : > { %v5924_v61 = vmul.f32 1.442695, %v5909_v15 }
 0xc4e   : > { %v5874_v45 = vpop.xlane.xlu0 %5873 }
 0xc4f   : > { %10823 = vpow2.f32 %v5924_v61  ;;  %v5910_v28 = vsub.f32 %v14557_v31, %v5874_v45 }
 0xc51   : > { %v5926_v39 = vmul.f32 1.442695, %v5910_v28 }
 0xc52   : > { %v5877_v20 = vpop.xlane.xlu1 %5876 }
 0xc53   : > { %10825 = vpow2.f32 %v5926_v39 }
 0xc55   : > { %v14693_v36 = vpop.eup %10821 }
 0xc56   : > { %v5950_v24 = vsel %vm3078_vm6, %v14693_v36, 0.0  ;;  %v5880_v2 = vpop.xlane.xlu0 %5879 }
 0xc57   : > { %5951 = vadd.xlane.f32.xlu1 %v5950_v24 }
 0xc59   : > { %v14697_v9 = vpop.eup %10823 }
 0xc5a   : > { %v5953_v19 = vsel %vm3078_vm6, %v14697_v9, 0.0  ;;  %v14703_v26 = vpop.xlane.xlu1 %5882 }
 0xc5b   : > { %5954 = vadd.xlane.f32.xlu0 %v5953_v19 }
 0xc5d   : > { %v14701_v48 = vpop.eup %10825 }
 0xc5e   : > { %v5886_v31 = vpop.xlane.xlu0 %5885  ;;  %v5956_v42 = vsel %vm3078_vm6, %v14701_v48, 0.0 }
 0xc5f   : > { %5957 = vadd.xlane.f32.xlu1 %v5956_v42 }
 0xc62   : > { %v10480_v50 = vpop.permute.xlu0 %10479  ;;  %v5889_v53 = vpop.xlane.xlu1 %5888 }
 0xc63   : > { %v10482_v32 = vunpack.i.h.bf16 %v10480_v50  ;;  %v10481_v35 = vunpack.i.l.bf16 %v10480_v50 }
 0xc65   : > { %v6110_v39 = vsel %vm2858_vm2, %v10481_v35, %v10482_v32  ;;  %v16755_v35 = vld [vmem:[#allocation254_spill] sm:$0xff] }
 0xc66   : > { %v10485_v13 = vpop.permute.xlu0 %10484  ;;  %v10475_v47 = vpop.permute.xlu1 %10474 }
 0xc67   : > { %v10477_v57 = vunpack.i.h.bf16 %v10475_v47  ;;  %v10476_v15 = vunpack.i.l.bf16 %v10475_v47  ;;  %v10487_v61 = vunpack.i.h.bf16 %v10485_v13  ;;  %v10486_v45 = vunpack.i.l.bf16 %v10485_v13  ;;  %v16751_v13 = vld [vmem:[#allocation251_spill] sm:$0xff]  ;;  %v16752_v47 = vld [vmem:[#allocation250_spill] sm:$0xff] }
 0xc68   : > { %v16753_v17 = vpack.i.bf16 %v16751_v13, %v16752_v47 }
 0xc69   : > { %v9895_v28 = vpack.c.bf16 %v10482_v32, %v10477_v57  ;;  %v6109_v24 = vsel %vm2858_vm2, %v10476_v15, %v10477_v57  ;;  %v6111_v46 = vsel %vm2858_vm2, %v10486_v45, %v10487_v61  ;;  %v16754_v32 = vld [vmem:[#allocation255_spill] sm:$0xff]  ;;  %v5911_v15 = vsub.f32 %v14564_v51, %v5877_v20 }
 0xc6a   : > { %v10490_v19 = vpop.permute.xlu0 %10489  ;;  %v9897_v42 = vpack.c.bf16 %v6110_v39, %v6109_v24  ;;  %v16756_v57 = vpack.i.bf16 %v16754_v32, %v16755_v35  ;;  %v5915_v39 = vsub.f32 %v14592_v62, %v5889_v53 }
 0xc6b   : > { %v10492_v40 = vunpack.i.h.bf16 %v10490_v19  ;;  %v10491_v56 = vunpack.i.l.bf16 %v10490_v19  ;;  %9896 = vmatprep.subr.bf16.mxu1 %v9895_v28  ;;  %v5928_v45 = vmul.f32 1.442695, %v5911_v15  ;;  %v16758_v19 = vld [vmem:[#allocation233_spill] sm:$0xff] }
 0xc6c   : > { %9898 = vmatpush1.bf16.msra.mxu1 %v9897_v42 }
 0xc6d   : > { %v6112_v50 = vsel %vm2858_vm2, %v10491_v56, %v10492_v40  ;;  %v9899_v18 = vpack.c.bf16 %v10492_v40, %v10487_v61  ;;  %v5912_v56 = vsub.f32 %v14571_v21, %v5880_v2  ;;  %10827 = vpow2.f32 %v5928_v45  ;;  %v16757_v61 = vld [vmem:[#allocation186_spill] sm:$0xff] }
 0xc6e   : > { %v9901_v43 = vpack.c.bf16 %v6112_v50, %v6111_v46  ;;  %v5936_v21 = vmul.f32 1.442695, %v5915_v39  ;;  %v16760_v39 = vld [vmem:[#allocation259_spill] sm:$0xff] }
 0xc6f   : > { %9900 = vmatprep.subr.bf16.mxu1 %v9899_v18  ;;  %v5930_v40 = vmul.f32 1.442695, %v5912_v56  ;;  %v5914_v18 = vsub.f32 %v14585_v4, %v5886_v31 }
 0xc70   : > { %10494 = vrot.lane.b32.xlu1 %v16753_v17, %s11205_s13  ;;  %9902 = vmatpush1.bf16.msra.mxu1 %v9901_v43 }
 0xc71   : > { %10499 = vrot.lane.b32.xlu0 %v16756_v57, %s11205_s13  ;;  %10829 = vpow2.f32 %v5930_v40  ;;  %v5934_v43 = vmul.f32 1.442695, %v5914_v18 }
 0xc73   : > { %10831 = vpow2.f32 %v5934_v43 }
 0xc74   : > { %10833 = vpow2.f32 %v5936_v21  ;;  %v16764_v21 = vld [vmem:[#allocation262_spill] sm:$0xff] }
 0xc77   : > { %v14729_v20 = vpop.eup %10827 }
 0xc78   : > { %v5959_v4 = vsel %vm3078_vm6, %v14729_v20, 0.0 }
 0xc7b   : > { %v14733_v2 = vpop.eup %10829 }
 0xc7c   : > { %v5962_v31 = vsel %vm3078_vm6, %v14733_v2, 0.0 }
 0xc7d   : > { %v14737_v62 = vpop.eup %10831 }
 0xc7e   : > { %v5968_v50 = vsel %vm3078_vm6, %v14737_v62, 0.0  ;;  %v14741_v13 = vpop.eup %10833 }
 0xc7f   : > { %v5971_v35 = vsel %vm3078_vm6, %v14741_v13, 0.0 }
 0xc83   : > { %v5456_v46 = vpop.f32.mrb[62].mxu1 }
 0xc84   : > { %v14723_v28 = vadd.f32 %v5456_v46, %v16757_v61  ;;  %v5458_v17 = vpop.f32.mrb[63].mxu1 }
 0xc87   : > { %v5461_v24 = vpop.f32.mrb[64].mxu1 }
 0xc88   : > { %v14727_v42 = vadd.f32 %v5461_v24, %v16758_v19  ;;  %v5463_v51 = vpop.f32.mrb[65].mxu1 }
 0xc8a   : > { %16759 = vst [vmem:[#allocation216_spill] sm:$0xff] %v14727_v42 }
 0xc90   : > { %5960 = vadd.xlane.f32.xlu0 %v5959_v4 }
 0xc94   : > { %5963 = vadd.xlane.f32.xlu1 %v5962_v31 }
 0xc97   : > { %v5895_v53 = vpop.xlane.xlu1 %5894 }
 0xc98   : > { %5969 = vadd.xlane.f32.xlu1 %v5968_v50  ;;  %v5917_v47 = vsub.f32 %v14615_v5, %v5895_v53  ;;  %v5913_v50 = vsub.f32 %v14578_v23, %v14703_v26 }
 0xc9a   : > { %v5940_v45 = vmul.f32 1.442695, %v5917_v47 }
 0xc9b   : > { %v5892_v32 = vpop.xlane.xlu0 %5891  ;;  %v5901_v15 = vpop.xlane.xlu1 %5900 }
 0xc9c   : > { %v5916_v57 = vsub.f32 %v14620_v11, %v5892_v32  ;;  %5972 = vadd.xlane.f32.xlu1 %v5971_v35  ;;  %v5919_v46 = vsub.f32 %v14625_v22, %v5901_v15  ;;  %v16761_v11 = vld [vmem:[#allocation258_spill] sm:$0xff] }
 0xc9d   : > { %v16762_v24 = vpack.i.bf16 %v16760_v39, %v16761_v11  ;;  %v16770_v39 = vld [vmem:[#allocation176_spill] sm:$0xff] }
 0xc9e   : > { %v5938_v56 = vmul.f32 1.442695, %v5916_v57  ;;  %v5944_v5 = vmul.f32 1.442695, %v5919_v46  ;;  %v5932_v57 = vmul.f32 1.442695, %v5913_v50 }
 0xc9f   : > { %v5898_v40 = vpop.xlane.xlu0 %5897  ;;  %v5907_v17 = vpop.xlane.xlu1 %5906 }
 0xca0   : > { %10835 = vpow2.f32 %v5938_v56  ;;  %v5918_v18 = vsub.f32 %v14635_v16, %v5898_v40  ;;  %v5921_v43 = vsub.f32 %v14640_v25, %v5907_v17  ;;  %v16763_v16 = vld [vmem:[#allocation263_spill] sm:$0xff] }
 0xca1   : > { %10837 = vpow2.f32 %v5940_v45  ;;  %v16765_v4 = vpack.i.bf16 %v16763_v16, %v16764_v21  ;;  %v16767_v17 = vld [vmem:[#allocation171_spill] sm:$0xff]  ;;  %v16775_v21 = vld [vmem:[#allocation180_spill] sm:$0xff] }
 0xca2   : > { %v5942_v61 = vmul.f32 1.442695, %v5918_v18  ;;  %v5948_v51 = vmul.f32 1.442695, %v5921_v43  ;;  %v16769_v43 = vld [vmem:[#allocation177_spill] sm:$0xff] }
 0xca3   : > { %v5904_v35 = vpop.xlane.xlu0 %5903  ;;  %v16771_v11 = vpack.i.bf16 %v16769_v43, %v16770_v39 }
 0xca4   : > { %10839 = vpow2.f32 %v5942_v61  ;;  %v5920_v15 = vsub.f32 %v14652_v60, %v5904_v35  ;;  %v16766_v61 = vld [vmem:[#allocation172_spill] sm:$0xff] }
 0xca5   : > { %10841 = vpow2.f32 %v5944_v5  ;;  %v16768_v5 = vpack.i.bf16 %v16766_v61, %v16767_v17 }
 0xca6   : > { %10504 = vrot.lane.b32.xlu0 %v16762_v24, %s11205_s13  ;;  %10843 = vpow2.f32 %v5948_v51  ;;  %v5946_v40 = vmul.f32 1.442695, %v5920_v15  ;;  %v16772_v24 = vld [vmem:[#allocation174_spill] sm:$0xff]  ;;  %v16773_v51 = vld [vmem:[#allocation173_spill] sm:$0xff] }
 0xca7   : > { %10845 = vpow2.f32 %v5932_v57  ;;  %v16774_v16 = vpack.i.bf16 %v16772_v24, %v16773_v51 }
 0xca8   : > { %10847 = vpow2.f32 %v5946_v40 }
 0xcaa   : > { %v14754_v19 = vpop.eup %10835  ;;  %10509 = vrot.lane.b32.xlu0 %v16765_v4, %s11205_s13  ;;  %v16776_v4 = vld [vmem:[#allocation179_spill] sm:$0xff] }
 0xcab   : > { %v5974_v22 = vsel %vm3078_vm6, %v14754_v19, 0.0  ;;  %v14762_v31 = vpop.eup %10837 }
 0xcac   : > { %5975 = vadd.xlane.f32.xlu1 %v5974_v22  ;;  %v5977_v25 = vsel %vm3078_vm6, %v14762_v31, 0.0  ;;  %v16777_v22 = vpack.i.bf16 %v16775_v21, %v16776_v4 }
 0xcae   : > { %v14766_v53 = vpop.eup %10839 }
 0xcaf   : > { %v5980_v47 = vsel %vm3078_vm6, %v14766_v53, 0.0  ;;  %v14772_v32 = vpop.eup %10841 }
 0xcb0   : > { %5978 = vadd.xlane.f32.xlu1 %v5977_v25  ;;  %v5983_v45 = vsel %vm3078_vm6, %v14772_v32, 0.0  ;;  %v14777_v56 = vpop.eup %10843 }
 0xcb1   : > { %v5989_v23 = vsel %vm3118_vm7, %v14777_v56, 0.0  ;;  %v14781_v26 = vpop.eup %10845 }
 0xcb2   : > { %v5965_v18 = vsel %vm3078_vm6, %v14781_v26, 0.0  ;;  %v14785_v46 = vpop.eup %10847 }
 0xcb3   : > { %v5986_v60 = vsel %vm3078_vm6, %v14785_v46, 0.0 }
 0xcb4   : > { %5981 = vadd.xlane.f32.xlu1 %v5980_v47 }
 0xcb8   : > { %5984 = vadd.xlane.f32.xlu1 %v5983_v45 }
 0xcbc   : > { %5990 = vadd.xlane.f32.xlu1 %v5989_v23 }
 0xcc9   : > { %5966 = vadd.xlane.f32.xlu0 %v5965_v18 }
 0xccd   : > { %5987 = vadd.xlane.f32.xlu0 %v5986_v60  ;;  %10514 = vrot.lane.b32.xlu1 %v16768_v5, %s11205_s13 }
 0xcd1   : > { %10524 = vrot.lane.b32.xlu1 %v16771_v11, %s11205_s13 }
 0xce3   : > { %10519 = vrot.lane.b32.xlu0 %v16774_v16, %s11205_s13 }
 0xce4   : > { %v5952_v25 = vpop.xlane.xlu1 %5951 }
 0xce5   : > { %10849 = vrcp.f32 %v5952_v25 }
 0xce7   : > { %10529 = vrot.lane.b32.xlu0 %v16777_v22, %s11205_s13 }
 0xce8   : > { %v5955_v50 = vpop.xlane.xlu0 %5954 }
 0xce9   : > { %10851 = vrcp.f32 %v5955_v50  ;;  %v16779_v50 = vpack.c.bf16 %v16773_v51, %v16767_v17  ;;  %v16780_v17 = vld [vmem:[#allocation122_spill] sm:$0xff] }
 0xcea   : > { %v16781_v51 = vld [vmem:[#allocation118_spill] sm:$0xff] }
 0xcec   : > { %v10500_v47 = vpop.permute.xlu0 %10499  ;;  %v5958_v35 = vpop.xlane.xlu1 %5957 }
 0xced   : > { %v10502_v57 = vunpack.i.h.bf16 %v10500_v47  ;;  %v10501_v15 = vunpack.i.l.bf16 %v10500_v47  ;;  %10853 = vrcp.f32 %v5958_v35 }
 0xcef   : > { %v6114_v18 = vsel %vm2858_vm2, %v10501_v15, %v10502_v57 }
 0xcf0   : > { %v10495_v45 = vpop.permute.xlu1 %10494 }
 0xcf1   : > { %v10497_v40 = vunpack.i.h.bf16 %v10495_v45  ;;  %v10496_v23 = vunpack.i.l.bf16 %v10495_v45 }
 0xcf3   : > { %v6113_v60 = vsel %vm2858_vm2, %v10496_v23, %v10497_v40  ;;  %v9903_v61 = vpack.c.bf16 %v10502_v57, %v10497_v40  ;;  %v10850_v23 = vpop.eup %10849 }
 0xcf4   : > { %v9905_v5 = vpack.c.bf16 %v6114_v18, %v6113_v60  ;;  %v6006_v25 = vmul.f32 %v10850_v23, %v14693_v36  ;;  %v10852_v35 = vpop.eup %10851 }
 0xcf5   : > { %9904 = vmatprep.subr.bf16.mxu1 %v9903_v61 }
 0xcf6   : > { %9906 = vmatpush1.bf16.msra.mxu1 %v9905_v5  ;;  %v16782_v5 = vpack.c.bf16 %v16780_v17, %v16781_v51  ;;  %v16797_v17 = vld [vmem:[#allocation142_spill] sm:$0xff] }
 0xcf7   : > { %v10854_v61 = vpop.eup %10853 }
 0xcf8   : > { %v6008_v36 = vmul.f32 %v10854_v61, %v14701_v48 }
 0xd1d   : > { %v5961_v43 = vpop.xlane.xlu0 %5960 }
 0xd1e   : > { %10855 = vrcp.f32 %v5961_v43 }
 0xd21   : > { %v10505_v11 = vpop.permute.xlu0 %10504  ;;  %v5964_v57 = vpop.xlane.xlu1 %5963 }
 0xd22   : > { %v10507_v24 = vunpack.i.h.bf16 %v10505_v11  ;;  %v10506_v16 = vunpack.i.l.bf16 %v10505_v11  ;;  %10857 = vrcp.f32 %v5964_v57  ;;  %v16790_v57 = vld [vmem:[#allocation138_spill] sm:$0xff] }
 0xd24   : > { %v6115_v45 = vsel %vm2858_vm2, %v10506_v16, %v10507_v24 }
 0xd25   : > { %v10510_v21 = vpop.permute.xlu0 %10509  ;;  %v5970_v60 = vpop.xlane.xlu1 %5969 }
 0xd26   : > { %v10512_v22 = vunpack.i.h.bf16 %v10510_v21  ;;  %v10511_v47 = vunpack.i.l.bf16 %v10510_v21 }
 0xd28   : > { %v6116_v15 = vsel %vm2858_vm2, %v10511_v47, %v10512_v22  ;;  %v9907_v42 = vpack.c.bf16 %v10512_v22, %v10507_v24  ;;  %v10856_v43 = vpop.eup %10855  ;;  %v16783_v24 = vpack.c.bf16 %v16776_v4, %v16770_v39  ;;  %v16784_v22 = vld [vmem:[#allocation130_spill] sm:$0xff] }
 0xd29   : > { %v9910_v40 = vpack.c.bf16 %v6116_v15, %v6115_v45  ;;  %v5973_v11 = vpop.xlane.xlu1 %5972  ;;  %v16785_v47 = vld [vmem:[#allocation126_spill] sm:$0xff]  ;;  %v16787_v45 = vld [vmem:[#allocation184_spill] sm:$0xff] }
 0xd2a   : > { %9909 = vmatprep.subr.msk.bf16.mxu1 %vm12806_vm5, %v9907_v42  ;;  %v6007_v42 = vmul.f32 %v10852_v35, %v14697_v9  ;;  %v6009_v9 = vmul.f32 %v10856_v43, %v14729_v20  ;;  %v16786_v39 = vpack.c.bf16 %v16784_v22, %v16785_v47  ;;  %v16788_v15 = vld [vmem:[#allocation182_spill] sm:$0xff]  ;;  %v16794_v35 = vld [vmem:[#allocation187_spill] sm:$0xff] }
 0xd2b   : > { %9912 = vmatpush1.bf16.msk.msra.mxu1 %vm12806_vm5, %v9910_v40  ;;  %v16789_v23 = vpack.c.bf16 %v16787_v45, %v16788_v15  ;;  %v16791_v40 = vld [vmem:[#allocation134_spill] sm:$0xff]  ;;  %v16799_v43 = vld [vmem:[#allocation195_spill] sm:$0xff] }
 0xd2c   : > { %9951 = vmatprep.subr.msk.bf16.mxu1 %vm12233_vm3, %v16779_v50  ;;  %v10858_v16 = vpop.eup %10857  ;;  %v16793_v50 = vld [vmem:[#allocation190_spill] sm:$0xff] }
 0xd2d   : > { %v6010_v21 = vmul.f32 %v10858_v16, %v14733_v2  ;;  %v16802_v47 = vld [vmem:[#allocation154_spill] sm:$0xff] }
 0xd2e   : > { %8988 = vmatmul.mubr.msk.f32.vlgmr.msra.gmra.mrb[66].mxu1 %vm3078_vm6, %v6006_v25  ;;  %v16792_v25 = vpack.c.bf16 %v16790_v57, %v16791_v40  ;;  %v16805_v57 = vld [vmem:[#allocation201_spill] sm:$0xff]  ;;  %v16806_v40 = vld [vmem:[#allocation198_spill] sm:$0xff] }
 0xd2f   : > { %6259 = vmatprep.mubr.f32.mxu1 %v16195_v33 }
 0xd32   : > { %8989 = vmatmul.mubr.msk.f32.gmra.mrb[68].mxu1 %vm3078_vm6, %v6007_v42  ;;  %v16795_v42 = vpack.c.bf16 %v16793_v50, %v16794_v35 }
 0xd33   : > { %6265 = vmatprep.mubr.f32.mxu1 %v16195_v33 }
 0xd34   : > { %9953 = vmatpush1.bf16.xpose.msra.mxu1 %v16782_v5 }
 0xd35   : > { %9956 = vmatprep.subr.msk.bf16.mxu1 %vm12233_vm3, %v16783_v24  ;;  %v16800_v24 = vld [vmem:[#allocation193_spill] sm:$0xff] }
 0xd36   : > { %8990 = vmatmul.mubr.msk.f32.gmra.mrb[70].mxu1 %vm3078_vm6, %v6008_v36  ;;  %v16796_v36 = vld [vmem:[#allocation146_spill] sm:$0xff] }
 0xd37   : > { %6271 = vmatprep.mubr.f32.mxu1 %v16195_v33  ;;  %v16798_v51 = vpack.c.bf16 %v16796_v36, %v16797_v17  ;;  %v16808_v17 = vld [vmem:[#allocation162_spill] sm:$0xff] }
 0xd39   : > { %v5976_v48 = vpop.xlane.xlu1 %5975 }
 0xd3a   : > { %8991 = vmatmul.mubr.msk.f32.gmra.mrb[72].mxu1 %vm3078_vm6, %v6009_v9  ;;  %v16801_v9 = vpack.c.bf16 %v16799_v43, %v16800_v24 }
 0xd3b   : > { %6277 = vmatprep.mubr.f32.mxu1 %v16195_v33 }
 0xd3c   : > { %9958 = vmatpush1.bf16.xpose.msra.mxu1 %v16786_v39  ;;  %v16803_v39 = vld [vmem:[#allocation150_spill] sm:$0xff] }
 0xd3d   : > { %v5979_v4 = vpop.xlane.xlu1 %5978  ;;  %9961 = vmatprep.subr.msk.bf16.mxu1 %vm12233_vm3, %v16789_v23  ;;  %v16804_v23 = vpack.c.bf16 %v16802_v47, %v16803_v39 }
 0xd3e   : > { %8992 = vmatmul.mubr.msk.f32.gmra.mrb[74].mxu1 %vm3078_vm6, %v6010_v21 }
 0xd3f   : > { %6283 = vmatprep.mubr.f32.mxu1 %v16195_v33 }
 0xd41   : > { %v5982_v20 = vpop.xlane.xlu1 %5981 }
 0xd44   : > { %9963 = vmatpush1.bf16.xpose.msra.mxu1 %v16792_v25  ;;  %v16807_v25 = vpack.c.bf16 %v16805_v57, %v16806_v40 }
 0xd45   : > { %v5985_v2 = vpop.xlane.xlu1 %5984  ;;  %9966 = vmatprep.subr.msk.bf16.mxu1 %vm12233_vm3, %v16795_v42 }
 0xd49   : > { %v5991_v61 = vpop.xlane.xlu1 %5990 }
 0xd4c   : > { %9968 = vmatpush1.bf16.xpose.msra.mxu1 %v16798_v51  ;;  %v16809_v51 = vld [vmem:[#allocation158_spill] sm:$0xff] }
 0xd4d   : > { %v14860_v5 = vpop.permute.xlu1 %10514  ;;  %9971 = vmatprep.subr.msk.bf16.mxu1 %vm12233_vm3, %v16801_v9  ;;  %v16810_v9 = vpack.c.bf16 %v16808_v17, %v16809_v51  ;;  %v16815_v51 = vld [vmem:[#allocation166_spill] sm:$0xff] }
 0xd4e   : > { %v16131_v16 = vunpack.i.h.bf16 %v14860_v5  ;;  %v10516_v21 = vunpack.i.l.bf16 %v14860_v5 }
 0xd50   : > { %v14872_v22 = vsel %vm2858_vm2, %v10516_v21, %v16131_v16  ;;  %v16811_v21 = vld [vmem:[#allocation207_spill] sm:$0xff]  ;;  %v16812_v16 = vld [vmem:[#allocation204_spill] sm:$0xff] }
 0xd51   : > { %v16813_v43 = vpack.c.bf16 %v16811_v21, %v16812_v16 }
 0xd54   : > { %9973 = vmatpush1.bf16.xpose.msra.mxu1 %v16804_v23 }
 0xd55   : > { %9976 = vmatprep.subr.msk.bf16.mxu1 %vm12233_vm3, %v16807_v25 }
 0xd56   : > { %v5967_v42 = vpop.xlane.xlu0 %5966 }
 0xd57   : > { %10859 = vrcp.f32 %v5967_v42  ;;  %v16848_v42 = vld [vmem:[#allocation277_spill] sm:$0xff] }
 0xd58   : > { %10861 = vrcp.f32 %v5970_v60 }
 0xd59   : > { %10863 = vrcp.f32 %v5973_v11 }
 0xd5a   : > { %v5988_v36 = vpop.xlane.xlu0 %5987  ;;  %10865 = vrcp.f32 %v5976_v48 }
 0xd5b   : > { %10867 = vrcp.f32 %v5979_v4 }
 0xd5c   : > { %9978 = vmatpush1.bf16.xpose.msra.mxu1 %v16810_v9  ;;  %10869 = vrcp.f32 %v5982_v20 }
 0xd5d   : > { %9981 = vmatprep.subr.msk.bf16.mxu1 %vm12233_vm3, %v16813_v43  ;;  %v16814_v43 = vld [vmem:[#allocation170_spill] sm:$0xff]  ;;  %10871 = vrcp.f32 %v5985_v2 }
 0xd5e   : > { %v14890_v47 = vpop.permute.xlu0 %10519  ;;  %v16816_v9 = vpack.c.bf16 %v16814_v43, %v16815_v51  ;;  %10873 = vrcp.f32 %v5988_v36  ;;  %v16819_v43 = vld [vmem:[#allocation51_spill] sm:$0xff]  ;;  %v16820_v51 = vld [vmem:[#allocation50_spill] sm:$0xff] }
 0xd5f   : > { %v16132_v39 = vunpack.i.h.bf16 %v14890_v47  ;;  %v10521_v23 = vunpack.i.l.bf16 %v14890_v47  ;;  %10875 = vrcp.f32 %v5991_v61  ;;  %v16817_v61 = vld [vmem:[#allocation47_spill] sm:$0xff] }
 0xd61   : > { %v10860_v25 = vpop.eup %10859  ;;  %v14897_v60 = vsel %vm2858_vm2, %v10521_v23, %v16132_v39  ;;  %v16849_v39 = vld [vmem:[#allocation273_spill] sm:$0xff] }
 0xd62   : > { %v6011_v11 = vmul.f32 %v10860_v25, %v14781_v26  ;;  %v10862_v17 = vpop.eup %10861 }
 0xd63   : > { %v6012_v48 = vmul.f32 %v10862_v17, %v14737_v62  ;;  %v10864_v23 = vpop.eup %10863 }
 0xd64   : > { %8993 = vmatmul.mubr.msk.f32.gmra.mrb[76].mxu1 %vm3078_vm6, %v6011_v11  ;;  %v6013_v26 = vmul.f32 %v10864_v23, %v14741_v13  ;;  %v10866_v25 = vpop.eup %10865  ;;  %v16825_v23 = vld [vmem:[#allocation63_spill] sm:$0xff] }
 0xd65   : > { %9983 = vmatpush1.bf16.xpose.msra.mxu1 %v16816_v9  ;;  %6289 = vmatprep.mubr.f32.mxu1 %v16195_v33  ;;  %v6014_v4 = vmul.f32 %v10866_v25, %v14754_v19  ;;  %v10868_v11 = vpop.eup %10867  ;;  %v16822_v9 = vld [vmem:[#allocation54_spill] sm:$0xff]  ;;  %v16827_v25 = vld [vmem:[#allocation67_spill] sm:$0xff] }
 0xd66   : > { %10014 = vmatprep.subr.bf16.mxu1 %v16553_v63  ;;  %v6015_v62 = vmul.f32 %v10868_v11, %v14762_v31  ;;  %v10870_v20 = vpop.eup %10869  ;;  %v16829_v11 = vld [vmem:[#allocation71_spill] sm:$0xff] }
 0xd67   : > { %v6016_v13 = vmul.f32 %v10870_v20, %v14766_v53  ;;  %v10872_v2 = vpop.eup %10871  ;;  %v16831_v20 = vld [vmem:[#allocation75_spill] sm:$0xff] }
 0xd68   : > { %8994 = vmatmul.mubr.msk.f32.gmra.mrb[78].mxu1 %vm3078_vm6, %v6012_v48  ;;  %v6017_v19 = vmul.f32 %v10872_v2, %v14772_v32  ;;  %v10874_v36 = vpop.eup %10873  ;;  %v16818_v32 = vld [vmem:[#allocation46_spill] sm:$0xff]  ;;  %v16823_v48 = vld [vmem:[#allocation59_spill] sm:$0xff] }
 0xd69   : > { %6295 = vmatprep.mubr.f32.mxu1 %v16195_v33  ;;  %v6018_v31 = vmul.f32 %v10874_v36, %v14785_v46  ;;  %v10876_v17 = vpop.eup %10875  ;;  %v16821_v46 = vld [vmem:[#allocation55_spill] sm:$0xff] }
 0xd6a   : > { %v6019_v53 = vmul.f32 %v10876_v17, %v14777_v56  ;;  %v16824_v56 = vld [vmem:[#allocation58_spill] sm:$0xff]  ;;  %v16833_v2 = vld [vmem:[#allocation79_spill] sm:$0xff] }
 0xd6b   : > { %v16835_v36 = vld [vmem:[#allocation83_spill] sm:$0xff] }
 0xd6c   : > { %8995 = vmatmul.mubr.msk.f32.gmra.mrb[80].mxu1 %vm3078_vm6, %v6013_v26  ;;  %v16826_v26 = vld [vmem:[#allocation62_spill] sm:$0xff]  ;;  %v16837_v17 = vld [vmem:[#allocation87_spill] sm:$0xff] }
 0xd6d   : > { %6301 = vmatprep.mubr.f32.mxu1 %v16195_v33 }
 0xd70   : > { %8996 = vmatmul.mubr.msk.f32.gmra.mrb[82].mxu1 %vm3078_vm6, %v6014_v4  ;;  %v16828_v4 = vld [vmem:[#allocation66_spill] sm:$0xff] }
 0xd71   : > { %6307 = vmatprep.mubr.f32.mxu1 %v16195_v33 }
 0xd74   : > { %8997 = vmatmul.mubr.msk.f32.gmra.mrb[84].mxu1 %vm3078_vm6, %v6015_v62  ;;  %v16830_v62 = vld [vmem:[#allocation70_spill] sm:$0xff] }
 0xd75   : > { %6313 = vmatprep.mubr.f32.mxu1 %v16195_v33 }
 0xd78   : > { %8998 = vmatmul.mubr.msk.f32.gmra.mrb[86].mxu1 %vm3078_vm6, %v6016_v13  ;;  %v16832_v13 = vld [vmem:[#allocation74_spill] sm:$0xff] }
 0xd79   : > { %6319 = vmatprep.mubr.f32.mxu1 %v16195_v33 }
 0xd7c   : > { %8999 = vmatmul.mubr.msk.f32.gmra.mrb[88].mxu1 %vm3078_vm6, %v6017_v19  ;;  %v16834_v19 = vld [vmem:[#allocation78_spill] sm:$0xff] }
 0xd7d   : > { %6325 = vmatprep.mubr.f32.mxu1 %v16195_v33 }
 0xd80   : > { %9000 = vmatmul.mubr.msk.f32.gmra.mrb[90].mxu1 %vm3078_vm6, %v6018_v31  ;;  %v16836_v31 = vld [vmem:[#allocation82_spill] sm:$0xff] }
 0xd81   : > { %6331 = vmatprep.mubr.f32.mxu1 %v16195_v33 }
 0xd84   : > { %9001 = vmatmul.mubr.msk.f32.gmra.mrb[92].mxu1 %vm3078_vm6, %v6019_v53  ;;  %v16838_v53 = vld [vmem:[#allocation86_spill] sm:$0xff] }
 0xd85   : > { %9030 = vmatprep.mubr.msk.f32.mxu1 %vm2858_vm2, %v16817_v61 }
 0xd88   : > { %6703 = vmatmul.mubr.f32.vlgmr.msra.gmra.mrb[94].mxu1 %v16818_v32  ;;  %v16839_v32 = vld [vmem:[#allocation91_spill] sm:$0xff] }
 0xd89   : > { %9031 = vmatprep.mubr.msk.f32.mxu1 %vm2858_vm2, %v16819_v43 }
 0xd8c   : > { %6708 = vmatmul.mubr.f32.gmra.mrb[96].mxu1 %v16820_v51  ;;  %v16840_v51 = vld [vmem:[#allocation90_spill] sm:$0xff] }
 0xd8d   : > { %9032 = vmatprep.mubr.msk.f32.mxu1 %vm2858_vm2, %v16821_v46 }
 0xd90   : > { %6713 = vmatmul.mubr.f32.gmra.mrb[98].mxu1 %v16822_v9  ;;  %v16841_v9 = vld [vmem:[#allocation95_spill] sm:$0xff] }
 0xd91   : > { %9033 = vmatprep.mubr.msk.f32.mxu1 %vm2858_vm2, %v16823_v48 }
 0xd94   : > { %6718 = vmatmul.mubr.f32.gmra.mrb[100].mxu1 %v16824_v56  ;;  %v16842_v56 = vld [vmem:[#allocation94_spill] sm:$0xff] }
 0xd95   : > { %9034 = vmatprep.mubr.msk.f32.mxu1 %vm2858_vm2, %v16825_v23 }
 0xd98   : > { %6723 = vmatmul.mubr.f32.gmra.mrb[102].mxu1 %v16826_v26  ;;  %v16843_v26 = vld [vmem:[#allocation99_spill] sm:$0xff] }
 0xd99   : > { %9035 = vmatprep.mubr.msk.f32.mxu1 %vm2858_vm2, %v16827_v25 }
 0xd9c   : > { %6728 = vmatmul.mubr.f32.gmra.mrb[104].mxu1 %v16828_v4  ;;  %v16844_v4 = vld [vmem:[#allocation98_spill] sm:$0xff] }
 0xd9d   : > { %9036 = vmatprep.mubr.msk.f32.mxu1 %vm2858_vm2, %v16829_v11 }
 0xda0   : > { %6733 = vmatmul.mubr.f32.gmra.mrb[106].mxu1 %v16830_v62 }
 0xda1   : > { %9037 = vmatprep.mubr.msk.f32.mxu1 %vm2858_vm2, %v16831_v20  ;;  %v16879_v20 = vld [vmem:[#allocation303_spill] sm:$0xff] }
 0xda4   : > { %6738 = vmatmul.mubr.f32.gmra.mrb[108].mxu1 %v16832_v13 }
 0xda5   : > { %9038 = vmatprep.mubr.msk.f32.mxu1 %vm2858_vm2, %v16833_v2 }
 0xda8   : > { %6743 = vmatmul.mubr.f32.gmra.mrb[110].mxu1 %v16834_v19  ;;  %v16845_v19 = vld [vmem:[#allocation268_spill] sm:$0xff] }
 0xda9   : > { %9039 = vmatprep.mubr.msk.f32.mxu1 %vm2858_vm2, %v16835_v36 }
 0xdac   : > { %6748 = vmatmul.mubr.f32.gmra.mrb[112].mxu1 %v16836_v31  ;;  %v16846_v31 = vld [vmem:[#allocation264_spill] sm:$0xff] }
 0xdad   : > { %9040 = vmatprep.mubr.msk.f32.mxu1 %vm2858_vm2, %v16837_v17 }
 0xdb0   : > { %6753 = vmatmul.mubr.f32.gmra.mrb[114].mxu1 %v16838_v53  ;;  %v16847_v53 = vpack.c.bf16 %v16845_v19, %v16846_v31  ;;  %v16857_v31 = vld [vmem:[#allocation284_spill] sm:$0xff] }
 0xdb1   : > { %9041 = vmatprep.mubr.msk.f32.mxu1 %vm2858_vm2, %v16839_v32 }
 0xdb4   : > { %6758 = vmatmul.mubr.f32.gmra.mrb[116].mxu1 %v16840_v51 }
 0xdb5   : > { %9042 = vmatprep.mubr.msk.f32.mxu1 %vm2858_vm2, %v16841_v9  ;;  %v16850_v9 = vpack.c.bf16 %v16848_v42, %v16849_v39 }
 0xdb8   : > { %6763 = vmatmul.mubr.f32.gmra.mrb[118].mxu1 %v16842_v56 }
 0xdb9   : > { %9043 = vmatprep.mubr.msk.f32.mxu1 %vm2858_vm2, %v16843_v26  ;;  %v16851_v26 = vld [vmem:[#allocation276_spill] sm:$0xff] }
 0xdbc   : > { %6768 = vmatmul.mubr.f32.gmra.mrb[120].mxu1 %v16844_v4  ;;  %v16852_v4 = vld [vmem:[#allocation272_spill] sm:$0xff] }
 0xdbd   : > { %v16853_v32 = vpack.c.bf16 %v16851_v26, %v16852_v4  ;;  %v16864_v4 = vld [vmem:[#allocation288_spill] sm:$0xff] }
 0xe01   : > { %v6255_v62 = vpop.f32.mrb[66].mxu1 }
 0xe02   : > { %v6257_v13 = vpop.f32.mrb[67].mxu1 }
 0xe03   : > { %9002 = vmatprep.mubr.msk.f32.mxu0 %vm2858_vm2, %v6257_v13  ;;  %v16854_v13 = vld [vmem:[#allocation285_spill] sm:$0xff] }
 0xe04   : > { %6470 = vmatmul.mubr.f32.vlgmr.msra.gmra.mrb[80].mxu0 %v6255_v62  ;;  %v16855_v62 = vld [vmem:[#allocation281_spill] sm:$0xff] }
 0xe05   : > { %9987 = vmatpush1.bf16.msra.mxu0 %v16847_v53  ;;  %v6261_v51 = vpop.f32.mrb[68].mxu1  ;;  %v16856_v36 = vpack.c.bf16 %v16854_v13, %v16855_v62  ;;  %v16858_v53 = vld [vmem:[#allocation280_spill] sm:$0xff] }
 0xe06   : > { %9989 = vmatprep.subr.bf16.mxu0 %v16850_v9  ;;  %v6263_v56 = vpop.f32.mrb[69].mxu1  ;;  %v16859_v9 = vpack.c.bf16 %v16857_v31, %v16858_v53  ;;  %v16869_v53 = vld [vmem:[#allocation296_spill] sm:$0xff] }
 0xe07   : > { %9003 = vmatprep.mubr.msk.f32.mxu0 %vm2858_vm2, %v6263_v56  ;;  %v16860_v56 = vld [vmem:[#allocation293_spill] sm:$0xff] }
 0xe08   : > { %6475 = vmatmul.mubr.f32.gmra.mrb[82].mxu0 %v6261_v51  ;;  %v16861_v51 = vld [vmem:[#allocation289_spill] sm:$0xff] }
 0xe09   : > { %9991 = vmatpush1.bf16.msra.mxu0 %v16853_v32  ;;  %v6267_v17 = vpop.f32.mrb[70].mxu1  ;;  %v16862_v39 = vpack.c.bf16 %v16860_v56, %v16861_v51  ;;  %v16863_v32 = vld [vmem:[#allocation292_spill] sm:$0xff]  ;;  %v16872_v56 = vld [vmem:[#allocation301_spill] sm:$0xff] }
 0xe0a   : > { %9993 = vmatprep.subr.bf16.mxu0 %v16856_v36  ;;  %v6269_v19 = vpop.f32.mrb[71].mxu1  ;;  %v16865_v36 = vpack.c.bf16 %v16863_v32, %v16864_v4  ;;  %v16875_v51 = vld [vmem:[#allocation300_spill] sm:$0xff]  ;;  %v16876_v32 = vld [vmem:[#allocation298_spill] sm:$0xff] }
 0xe0b   : > { %9004 = vmatprep.mubr.msk.f32.mxu0 %vm2858_vm2, %v6269_v19  ;;  %v16866_v19 = vld [vmem:[#allocation297_spill] sm:$0xff]  ;;  %v16877_v4 = vpack.c.bf16 %v16875_v51, %v16876_v32 }
 0xe0c   : > { %6480 = vmatmul.mubr.f32.gmra.mrb[84].mxu0 %v6267_v17  ;;  %v16867_v17 = vld [vmem:[#allocation295_spill] sm:$0xff] }
 0xe0d   : > { %9995 = vmatpush1.bf16.msra.mxu0 %v16859_v9  ;;  %v6273_v42 = vpop.f32.mrb[72].mxu1  ;;  %v16868_v2 = vpack.c.bf16 %v16866_v19, %v16867_v17  ;;  %v16870_v9 = vld [vmem:[#allocation294_spill] sm:$0xff] }
 0xe0e   : > { %9997 = vmatprep.subr.bf16.mxu0 %v16862_v39  ;;  %v6275_v26 = vpop.f32.mrb[73].mxu1  ;;  %v16871_v39 = vpack.c.bf16 %v16869_v53, %v16870_v9  ;;  %v16883_v53 = vld [vmem:[#allocation304_spill] sm:$0xff]  ;;  %v16884_v9 = vld [vmem:[#allocation302_spill] sm:$0xff] }
 0xe0f   : > { %9005 = vmatprep.mubr.msk.f32.mxu0 %vm2858_vm2, %v6275_v26  ;;  %v16873_v26 = vld [vmem:[#allocation299_spill] sm:$0xff] }
 0xe10   : > { %6485 = vmatmul.mubr.f32.gmra.mrb[86].mxu0 %v6273_v42  ;;  %v16874_v42 = vpack.c.bf16 %v16872_v56, %v16873_v26 }
 0xe11   : > { %9999 = vmatpush1.bf16.msra.mxu0 %v16865_v36  ;;  %v6279_v13 = vpop.f32.mrb[74].mxu1  ;;  %v16878_v36 = vld [vmem:[#allocation305_spill] sm:$0xff] }
 0xe12   : > { %10001 = vmatprep.subr.bf16.mxu0 %v16868_v2  ;;  %v6281_v31 = vpop.f32.mrb[75].mxu1  ;;  %v16880_v19 = vpack.c.bf16 %v16878_v36, %v16879_v20  ;;  %v16881_v2 = vunpack.i.h.bf16 %v14860_v5 }
 0xe13   : > { %9006 = vmatprep.mubr.msk.f32.mxu0 %vm2858_vm2, %v6281_v31 }
 0xe14   : > { %6490 = vmatmul.mubr.f32.gmra.mrb[88].mxu0 %v6279_v13  ;;  %v16882_v13 = vunpack.i.h.bf16 %v14890_v47 }
 0xe15   : > { %10003 = vmatpush1.bf16.msra.mxu0 %v16871_v39  ;;  %v16885_v39 = vpack.c.bf16 %v16883_v53, %v16884_v9 }
 0xe16   : > { %10005 = vmatprep.subr.bf16.mxu0 %v16874_v42  ;;  %v10050_v31 = vpack.c.bf16 %v16882_v13, %v16881_v2 }
 0xe19   : > { %10007 = vmatpush1.bf16.msra.mxu0 %v16877_v4 }
 0xe1a   : > { %10010 = vmatprep.subr.msk.bf16.mxu0 %vm12806_vm5, %v16880_v19 }
 0xe1d   : > { %10013 = vmatpush1.bf16.msk.msra.mxu0 %vm12806_vm5, %v16885_v39 }
 0xe1e   : > { %10052 = vmatprep.subr.msk.bf16.mxu0 %vm12233_vm3, %v10050_v31 }
 0xe37   : > { %v6285_v51 = vpop.f32.mrb[76].mxu1 }
 0xe38   : > { %v6287_v42 = vpop.f32.mrb[77].mxu1 }
 0xe39   : > { %9007 = vmatprep.mubr.msk.f32.mxu0 %vm2858_vm2, %v6287_v42 }
 0xe3a   : > { %6495 = vmatmul.mubr.f32.gmra.mrb[90].mxu0 %v6285_v51 }
 0xe3b   : > { %v6291_v19 = vpop.f32.mrb[78].mxu1 }
 0xe3c   : > { %v6293_v32 = vpop.f32.mrb[79].mxu1 }
 0xe3d   : > { %9008 = vmatprep.mubr.msk.f32.mxu0 %vm2858_vm2, %v6293_v32 }
 0xe3e   : > { %6500 = vmatmul.mubr.f32.gmra.mrb[92].mxu0 %v6291_v19 }
 0xe3f   : > { %v6297_v5 = vpop.f32.mrb[80].mxu1 }
 0xe40   : > { %v6299_v47 = vpop.f32.mrb[81].mxu1 }
 0xe41   : > { %9009 = vmatprep.mubr.msk.f32.mxu0 %vm2858_vm2, %v6299_v47 }
 0xe42   : > { %6505 = vmatmul.mubr.f32.gmra.mrb[94].mxu0 %v6297_v5 }
 0xe43   : > { %v6303_v4 = vpop.f32.mrb[82].mxu1 }
 0xe44   : > { %v6305_v2 = vpop.f32.mrb[83].mxu1 }
 0xe45   : > { %9010 = vmatprep.mubr.msk.f32.mxu0 %vm2858_vm2, %v6305_v2 }
 0xe46   : > { %6510 = vmatmul.mubr.f32.gmra.mrb[96].mxu0 %v6303_v4 }
 0xe47   : > { %v6309_v13 = vpop.f32.mrb[84].mxu1 }
 0xe48   : > { %v6311_v31 = vpop.f32.mrb[85].mxu1 }
 0xe49   : > { %9011 = vmatprep.mubr.msk.f32.mxu0 %vm2858_vm2, %v6311_v31 }
 0xe4a   : > { %6515 = vmatmul.mubr.f32.gmra.mrb[98].mxu0 %v6309_v13 }
 0xe4b   : > { %v6315_v53 = vpop.f32.mrb[86].mxu1 }
 0xe4c   : > { %v6317_v9 = vpop.f32.mrb[87].mxu1 }
 0xe4d   : > { %9012 = vmatprep.mubr.msk.f32.mxu0 %vm2858_vm2, %v6317_v9 }
 0xe4e   : > { %6520 = vmatmul.mubr.f32.gmra.mrb[100].mxu0 %v6315_v53 }
 0xe4f   : > { %v6321_v39 = vpop.f32.mrb[88].mxu1 }
 0xe50   : > { %v6323_v51 = vpop.f32.mrb[89].mxu1 }
 0xe51   : > { %9013 = vmatprep.mubr.msk.f32.mxu0 %vm2858_vm2, %v6323_v51 }
 0xe52   : > { %6525 = vmatmul.mubr.f32.gmra.mrb[102].mxu0 %v6321_v39 }
 0xe53   : > { %v6327_v42 = vpop.f32.mrb[90].mxu1 }
 0xe54   : > { %v6329_v19 = vpop.f32.mrb[91].mxu1 }
 0xe55   : > { %9014 = vmatprep.mubr.msk.f32.mxu0 %vm2858_vm2, %v6329_v19 }
 0xe56   : > { %6530 = vmatmul.mubr.f32.gmra.mrb[104].mxu0 %v6327_v42 }
 0xe57   : > { %v6333_v32 = vpop.f32.mrb[92].mxu1 }
 0xe58   : > { %v6335_v5 = vpop.f32.mrb[93].mxu1 }
 0xe59   : > { %9015 = vmatprep.mubr.msk.f32.mxu0 %vm2858_vm2, %v6335_v5 }
 0xe5a   : > { %6535 = vmatmul.mubr.f32.gmra.mrb[106].mxu0 %v6333_v32 }
 0xe5b   : > { %v6704_v47 = vpop.f32.mrb[94].mxu1  ;;  %7039 = vmatprep.mubr.f32.mxu0 %v16195_v33 }
 0xe5c   : > { %v15038_v4 = vadd.f32 %v14540_v54, %v6704_v47  ;;  %v6706_v2 = vpop.f32.mrb[95].mxu1 }
 0xe5e   : > { %v6773_v13 = vsel %vm3078_vm6, %v15038_v4, -inf }
 0xe5f   : > { %v6709_v31 = vpop.f32.mrb[96].mxu1  ;;  %6774 = vmax.xlane.f32.xlu0 %v6773_v13 }
 0xe60   : > { %v15043_v53 = vadd.f32 %v14547_v55, %v6709_v31  ;;  %v6711_v9 = vpop.f32.mrb[97].mxu1 }
 0xe62   : > { %v6776_v39 = vsel %vm3078_vm6, %v15043_v53, -inf }
 0xe63   : > { %v6714_v51 = vpop.f32.mrb[98].mxu1  ;;  %6777 = vmax.xlane.f32.xlu1 %v6776_v39 }
 0xe64   : > { %v15048_v42 = vadd.f32 %v14554_v38, %v6714_v51  ;;  %v6716_v54 = vpop.f32.mrb[99].mxu1 }
 0xe66   : > { %v6779_v19 = vsel %vm3078_vm6, %v15048_v42, -inf }
 0xe67   : > { %v6719_v32 = vpop.f32.mrb[100].mxu1  ;;  %6780 = vmax.xlane.f32.xlu0 %v6779_v19 }
 0xe68   : > { %v15053_v5 = vadd.f32 %v14561_v58, %v6719_v32  ;;  %v6721_v55 = vpop.f32.mrb[101].mxu1 }
 0xe6a   : > { %v6782_v47 = vsel %vm3078_vm6, %v15053_v5, -inf }
 0xe6b   : > { %v6724_v2 = vpop.f32.mrb[102].mxu1  ;;  %6783 = vmax.xlane.f32.xlu1 %v6782_v47 }
 0xe6c   : > { %v15058_v13 = vadd.f32 %v14568_v7, %v6724_v2  ;;  %v6726_v38 = vpop.f32.mrb[103].mxu1 }
 0xe6e   : > { %v6785_v31 = vsel %vm3078_vm6, %v15058_v13, -inf }
 0xe6f   : > { %v6729_v9 = vpop.f32.mrb[104].mxu1  ;;  %6786 = vmax.xlane.f32.xlu0 %v6785_v31 }
 0xe70   : > { %v15063_v39 = vadd.f32 %v14575_v1, %v6729_v9  ;;  %v6731_v58 = vpop.f32.mrb[105].mxu1 }
 0xe72   : > { %v6788_v51 = vsel %vm3078_vm6, %v15063_v39, -inf }
 0xe73   : > { %v6734_v54 = vpop.f32.mrb[106].mxu1  ;;  %6789 = vmax.xlane.f32.xlu1 %v6788_v51 }
 0xe74   : > { %v15068_v19 = vadd.f32 %v14582_v12, %v6734_v54  ;;  %v6736_v7 = vpop.f32.mrb[107].mxu1 }
 0xe76   : > { %v6791_v32 = vsel %vm3078_vm6, %v15068_v19, -inf }
 0xe77   : > { %v6739_v55 = vpop.f32.mrb[108].mxu1  ;;  %6792 = vmax.xlane.f32.xlu0 %v6791_v32 }
 0xe78   : > { %v15073_v47 = vadd.f32 %v14589_v0, %v6739_v55  ;;  %v6741_v1 = vpop.f32.mrb[109].mxu1 }
 0xe7a   : > { %v6794_v2 = vsel %vm3078_vm6, %v15073_v47, -inf }
 0xe7b   : > { %v6744_v38 = vpop.f32.mrb[110].mxu1  ;;  %6795 = vmax.xlane.f32.xlu1 %v6794_v2 }
 0xe7c   : > { %v15078_v31 = vadd.f32 %v14617_v3, %v6744_v38  ;;  %v6746_v12 = vpop.f32.mrb[111].mxu1 }
 0xe7e   : > { %v6797_v9 = vsel %vm3078_vm6, %v15078_v31, -inf }
 0xe7f   : > { %v6749_v58 = vpop.f32.mrb[112].mxu1  ;;  %6798 = vmax.xlane.f32.xlu0 %v6797_v9 }
 0xe80   : > { %v15083_v51 = vadd.f32 %v14612_v8, %v6749_v58  ;;  %v6751_v0 = vpop.f32.mrb[113].mxu1 }
 0xe82   : > { %v6800_v54 = vsel %vm3078_vm6, %v15083_v51, -inf }
 0xe83   : > { %v6754_v7 = vpop.f32.mrb[114].mxu1  ;;  %6801 = vmax.xlane.f32.xlu1 %v6800_v54 }
 0xe84   : > { %v15088_v32 = vadd.f32 %v14632_v41, %v6754_v7  ;;  %v6756_v3 = vpop.f32.mrb[115].mxu1 }
 0xe85   : > { %v16886_v3 = vld [vmem:[#allocation183_spill] sm:$0xff] }
 0xe86   : > { %v6803_v55 = vsel %vm3078_vm6, %v15088_v32, -inf }
 0xe87   : > { %v6759_v1 = vpop.f32.mrb[116].mxu1  ;;  %6804 = vmax.xlane.f32.xlu0 %v6803_v55  ;;  %v16887_v55 = vpack.i.bf16 %v16886_v3, %v16788_v15 }
 0xe88   : > { %v15093_v2 = vadd.f32 %v14622_v29, %v6759_v1  ;;  %v6761_v8 = vpop.f32.mrb[117].mxu1 }
 0xe8a   : > { %v6806_v38 = vsel %vm3078_vm6, %v15093_v2, -inf }
 0xe8b   : > { %v6764_v12 = vpop.f32.mrb[118].mxu1  ;;  %6807 = vmax.xlane.f32.xlu1 %v6806_v38 }
 0xe8c   : > { %v15098_v9 = vadd.f32 %v14649_v59, %v6764_v12  ;;  %v6766_v41 = vpop.f32.mrb[119].mxu1  ;;  %v16888_v59 = vld [vmem:[#allocation185_spill] sm:$0xff] }
 0xe8d   : > { %v16889_v1 = vpack.i.bf16 %v16888_v59, %v16787_v45  ;;  %v15127_v59 = vpop.permute.xlu0 %10529 }
 0xe8e   : > { %v6809_v58 = vsel %vm3078_vm6, %v15098_v9, -inf }
 0xe8f   : > { %v6769_v0 = vpop.f32.mrb[120].mxu1  ;;  %6810 = vmax.xlane.f32.xlu0 %v6809_v58 }
 0xe90   : > { %v15103_v54 = vadd.f32 %v14637_v49, %v6769_v0  ;;  %v6771_v29 = vpop.f32.mrb[121].mxu1 }
 0xe92   : > { %v6812_v7 = vsel %vm3118_vm7, %v15103_v54, -inf }
 0xe93   : > { %6813 = vmax.xlane.f32.xlu1 %v6812_v7 }
 0xea4   : > { %10534 = vrot.lane.b32.xlu1 %v16887_v55, %s11205_s13 }
 0xea5   : > { %10539 = vrot.lane.b32.xlu0 %v16889_v1, %s11205_s13 }
 0xed7   : > { %v6471_v8 = vpop.f32.mrb[80].mxu0 }
 0xed8   : > { %v15116_v38 = vadd.f32 %v6471_v8, %v14630_v44  ;;  %v6473_v49 = vpop.f32.mrb[81].mxu0 }
 0xedb   : > { %v6476_v12 = vpop.f32.mrb[82].mxu0 }
 0xedc   : > { %v15119_v41 = vadd.f32 %v6476_v12, %v14647_v30  ;;  %v6478_v58 = vpop.f32.mrb[83].mxu0  ;;  %v15132_v30 = vpop.permute.xlu1 %10524 }
 0xedf   : > { %v6481_v0 = vpop.f32.mrb[84].mxu0 }
 0xee0   : > { %v15122_v29 = vadd.f32 %v6481_v0, %v14659_v37  ;;  %v6483_v15 = vpop.f32.mrb[85].mxu0 }
 0xee3   : > { %v6486_v7 = vpop.f32.mrb[86].mxu0 }
 0xee4   : > { %v15125_v3 = vadd.f32 %v6486_v7, %v14664_v14  ;;  %v6488_v45 = vpop.f32.mrb[87].mxu0 }
 0xee7   : > { %v6491_v55 = vpop.f32.mrb[88].mxu0 }
 0xee8   : > { %v15130_v44 = vadd.f32 %v6491_v55, %v14667_v52  ;;  %v6493_v1 = vpop.f32.mrb[89].mxu0 }
 0xeec   : > { %v6775_v8 = vpop.xlane.xlu0 %6774 }
 0xeed   : > { %v6815_v49 = vsub.f32 %v15038_v4, %v6775_v8 }
 0xeef   : > { %v6829_v37 = vmul.f32 1.442695, %v6815_v49 }
 0xef0   : > { %v6778_v12 = vpop.xlane.xlu1 %6777 }
 0xef1   : > { %10877 = vpow2.f32 %v6829_v37  ;;  %v6816_v58 = vsub.f32 %v15043_v53, %v6778_v12 }
 0xef3   : > { %v6831_v14 = vmul.f32 1.442695, %v6816_v58 }
 0xef4   : > { %v6781_v0 = vpop.xlane.xlu0 %6780 }
 0xef5   : > { %10879 = vpow2.f32 %v6831_v14  ;;  %v6817_v15 = vsub.f32 %v15048_v42, %v6781_v0 }
 0xef7   : > { %v6833_v7 = vmul.f32 1.442695, %v6817_v15 }
 0xef8   : > { %v6784_v45 = vpop.xlane.xlu1 %6783 }
 0xef9   : > { %10881 = vpow2.f32 %v6833_v7  ;;  %v6818_v52 = vsub.f32 %v15053_v5, %v6784_v45 }
 0xefb   : > { %v15138_v55 = vpop.eup %10877  ;;  %v6835_v1 = vmul.f32 1.442695, %v6818_v52 }
 0xefc   : > { %v6787_v18 = vpop.xlane.xlu0 %6786  ;;  %v6857_v4 = vsel %vm3078_vm6, %v15138_v55, 0.0 }
 0xefd   : > { %10883 = vpow2.f32 %v6835_v1  ;;  %v6819_v53 = vsub.f32 %v15058_v13, %v6787_v18  ;;  %6858 = vadd.xlane.f32.xlu0 %v6857_v4 }
 0xeff   : > { %v15143_v8 = vpop.eup %10879  ;;  %v6837_v49 = vmul.f32 1.442695, %v6819_v53 }
 0xf00   : > { %v6790_v42 = vpop.xlane.xlu1 %6789  ;;  %v6860_v37 = vsel %vm3078_vm6, %v15143_v8, 0.0 }
 0xf01   : > { %10885 = vpow2.f32 %v6837_v49  ;;  %v6820_v5 = vsub.f32 %v15063_v39, %v6790_v42  ;;  %6861 = vadd.xlane.f32.xlu1 %v6860_v37 }
 0xf03   : > { %v15148_v12 = vpop.eup %10881  ;;  %v6839_v58 = vmul.f32 1.442695, %v6820_v5 }
 0xf04   : > { %v6793_v14 = vpop.xlane.xlu0 %6792  ;;  %v6863_v0 = vsel %vm3078_vm6, %v15148_v12, 0.0 }
 0xf05   : > { %10887 = vpow2.f32 %v6839_v58  ;;  %v6821_v18 = vsub.f32 %v15068_v19, %v6793_v14  ;;  %6864 = vadd.xlane.f32.xlu0 %v6863_v0 }
 0xf07   : > { %v15153_v13 = vpop.eup %10883  ;;  %v6841_v15 = vmul.f32 1.442695, %v6821_v18 }
 0xf08   : > { %v6796_v7 = vpop.xlane.xlu1 %6795  ;;  %v6866_v45 = vsel %vm3078_vm6, %v15153_v13, 0.0 }
 0xf09   : > { %10889 = vpow2.f32 %v6841_v15  ;;  %v6822_v39 = vsub.f32 %v15073_v47, %v6796_v7  ;;  %6867 = vadd.xlane.f32.xlu1 %v6866_v45 }
 0xf0b   : > { %v15158_v52 = vpop.eup %10885  ;;  %v6843_v1 = vmul.f32 1.442695, %v6822_v39 }
 0xf0c   : > { %v6799_v4 = vpop.xlane.xlu0 %6798  ;;  %v6869_v53 = vsel %vm3078_vm6, %v15158_v52, 0.0 }
 0xf0d   : > { %10891 = vpow2.f32 %v6843_v1  ;;  %v6823_v19 = vsub.f32 %v15078_v31, %v6799_v4  ;;  %v6496_v49 = vpop.f32.mrb[90].mxu0  ;;  %6870 = vadd.xlane.f32.xlu0 %v6869_v53 }
 0xf0e   : > { %v15164_v42 = vadd.f32 %v6496_v49, %v14670_v27  ;;  %v6498_v37 = vpop.f32.mrb[91].mxu0 }
 0xf0f   : > { %v15166_v5 = vpop.eup %10887  ;;  %v6845_v47 = vmul.f32 1.442695, %v6823_v19 }
 0xf10   : > { %v6802_v58 = vpop.xlane.xlu1 %6801  ;;  %v6872_v14 = vsel %vm3078_vm6, %v15166_v5, 0.0 }
 0xf11   : > { %10893 = vpow2.f32 %v6845_v47  ;;  %v6824_v0 = vsub.f32 %v15083_v51, %v6802_v58  ;;  %v6501_v18 = vpop.f32.mrb[92].mxu0  ;;  %6873 = vadd.xlane.f32.xlu1 %v6872_v14  ;;  %v16890_v14 = vld [vmem:[#allocation189_spill] sm:$0xff] }
 0xf12   : > { %v15172_v31 = vadd.f32 %v6501_v18, %v14673_v10  ;;  %v6503_v15 = vpop.f32.mrb[93].mxu0 }
 0xf13   : > { %v15174_v7 = vpop.eup %10889  ;;  %v6847_v27 = vmul.f32 1.442695, %v6824_v0 }
 0xf14   : > { %v6805_v45 = vpop.xlane.xlu0 %6804  ;;  %v6875_v39 = vsel %vm3078_vm6, %v15174_v7, 0.0 }
 0xf15   : > { %10895 = vpow2.f32 %v6847_v27  ;;  %v6825_v1 = vsub.f32 %v15088_v32, %v6805_v45  ;;  %v6506_v4 = vpop.f32.mrb[94].mxu0  ;;  %6876 = vadd.xlane.f32.xlu0 %v6875_v39  ;;  %v16891_v45 = vld [vmem:[#allocation237_spill] sm:$0xff] }
 0xf16   : > { %v15180_v51 = vadd.f32 %v6506_v4, %v14676_v34  ;;  %v6508_v53 = vpop.f32.mrb[95].mxu0 }
 0xf17   : > { %v15182_v19 = vpop.eup %10891  ;;  %v6849_v10 = vmul.f32 1.442695, %v6825_v1 }
 0xf18   : > { %v6808_v49 = vpop.xlane.xlu1 %6807  ;;  %v6878_v37 = vsel %vm3078_vm6, %v15182_v19, 0.0 }
 0xf19   : > { %10897 = vpow2.f32 %v6849_v10  ;;  %v6826_v47 = vsub.f32 %v15093_v2, %v6808_v49  ;;  %v6511_v58 = vpop.f32.mrb[96].mxu0  ;;  %6879 = vadd.xlane.f32.xlu1 %v6878_v37  ;;  %v16892_v10 = vld [vmem:[#allocation192_spill] sm:$0xff] }
 0xf1a   : > { %v15188_v32 = vadd.f32 %v6511_v58, %v16890_v14  ;;  %v6513_v0 = vpop.f32.mrb[97].mxu0 }
 0xf1b   : > { %v15190_v18 = vpop.eup %10893  ;;  %v6851_v34 = vmul.f32 1.442695, %v6826_v47  ;;  %v16893_v0 = vld [vmem:[#allocation212_spill] sm:$0xff] }
 0xf1c   : > { %v6881_v15 = vsel %vm3078_vm6, %v15190_v18, 0.0 }
 0xf1d   : > { %10899 = vpow2.f32 %v6851_v34  ;;  %v6516_v27 = vpop.f32.mrb[98].mxu0  ;;  %6882 = vadd.xlane.f32.xlu0 %v6881_v15 }
 0xf1e   : > { %v15195_v39 = vadd.f32 %v6516_v27, %v16891_v45  ;;  %v6518_v1 = vpop.f32.mrb[99].mxu0 }
 0xf1f   : > { %v15197_v2 = vpop.eup %10895 }
 0xf20   : > { %v6884_v4 = vsel %vm3078_vm6, %v15197_v2, 0.0 }
 0xf21   : > { %v6521_v53 = vpop.f32.mrb[100].mxu0  ;;  %6885 = vadd.xlane.f32.xlu1 %v6884_v4 }
 0xf22   : > { %v15202_v49 = vadd.f32 %v6521_v53, %v16892_v10  ;;  %v6523_v37 = vpop.f32.mrb[101].mxu0 }
 0xf23   : > { %v15204_v47 = vpop.eup %10897  ;;  %v16894_v37 = vld [vmem:[#allocation216_spill] sm:$0xff] }
 0xf24   : > { %v6887_v58 = vsel %vm3078_vm6, %v15204_v47, 0.0 }
 0xf25   : > { %v6526_v14 = vpop.f32.mrb[102].mxu0  ;;  %6888 = vadd.xlane.f32.xlu0 %v6887_v58 }
 0xf26   : > { %v15209_v34 = vadd.f32 %v6526_v14, %v16893_v0  ;;  %v6528_v15 = vpop.f32.mrb[103].mxu0  ;;  %v16895_v14 = vld [vmem:[#allocation188_spill] sm:$0xff] }
 0xf27   : > { %v15211_v27 = vpop.eup %10899  ;;  %v16896_v0 = vpack.i.bf16 %v16895_v14, %v16794_v35  ;;  %v16897_v15 = vld [vmem:[#allocation191_spill] sm:$0xff] }
 0xf28   : > { %v6890_v45 = vsel %vm3078_vm6, %v15211_v27, 0.0  ;;  %v16898_v56 = vpack.i.bf16 %v16897_v15, %v16793_v50  ;;  %v16906_v50 = vld [vmem:[#allocation202_spill] sm:$0xff] }
 0xf29   : > { %v6531_v1 = vpop.f32.mrb[104].mxu0  ;;  %6891 = vadd.xlane.f32.xlu1 %v6890_v45  ;;  %v16899_v45 = vld [vmem:[#allocation194_spill] sm:$0xff] }
 0xf2a   : > { %v15216_v4 = vadd.f32 %v6531_v1, %v14723_v28  ;;  %v6533_v53 = vpop.f32.mrb[105].mxu0  ;;  %v16900_v28 = vpack.i.bf16 %v16899_v45, %v16800_v24  ;;  %v16901_v1 = vld [vmem:[#allocation196_spill] sm:$0xff] }
 0xf2b   : > { %v16902_v53 = vld [vmem:[#allocation195_spill] sm:$0xff]  ;;  %v16910_v45 = vld [vmem:[#allocation208_spill] sm:$0xff] }
 0xf2d   : > { %v6536_v10 = vpop.f32.mrb[106].mxu0 }
 0xf2e   : > { %v15219_v36 = vadd.f32 %v6536_v10, %v16894_v37  ;;  %v6538_v58 = vpop.f32.mrb[107].mxu0  ;;  %v16903_v10 = vpack.i.bf16 %v16901_v1, %v16902_v53  ;;  %v6814_v37 = vpop.xlane.xlu1 %6813 }
 0xf2f   : > { %v16904_v58 = vld [vmem:[#allocation199_spill] sm:$0xff]  ;;  %v6828_v14 = vsub.f32 %v15103_v54, %v6814_v37  ;;  %v6811_v54 = vpop.xlane.xlu0 %6810  ;;  %v16914_v37 = vld [vmem:[#allocation106_spill] sm:$0xff] }
 0xf30   : > { %v16905_v35 = vpack.i.bf16 %v16904_v58, %v16806_v40  ;;  %v6827_v1 = vsub.f32 %v15098_v9, %v6811_v54  ;;  %v16915_v9 = vld [vmem:[#allocation107_spill] sm:$0xff]  ;;  %v16922_v54 = vld [vmem:[#allocation112_spill] sm:$0xff] }
 0xf31   : > { %v6855_v24 = vmul.f32 1.442695, %v6828_v14 }
 0xf32   : > { %v15281_v14 = vpop.permute.xlu1 %10534 }
 0xf33   : > { %10901 = vpow2.f32 %v6855_v24  ;;  %v15277_v58 = vpop.permute.xlu0 %10539  ;;  %v16919_v24 = vld [vmem:[#allocation100_spill] sm:$0xff] }
 0xf3a   : > { %10544 = vrot.lane.b32.xlu1 %v16896_v0, %s11205_s13  ;;  %v16908_v0 = vld [vmem:[#allocation205_spill] sm:$0xff] }
 0xf3b   : > { %10549 = vrot.lane.b32.xlu0 %v16898_v56, %s11205_s13  ;;  %v16907_v56 = vpack.i.bf16 %v16906_v50, %v16805_v57  ;;  %v16909_v15 = vpack.i.bf16 %v16908_v0, %v16812_v16  ;;  %v6853_v16 = vmul.f32 1.442695, %v6827_v1 }
 0xf3d   : > { %v15256_v40 = vpop.eup %10901  ;;  %10903 = vpow2.f32 %v6853_v16  ;;  %v10527_v16 = vunpack.i.h.bf16 %v15132_v30 }
 0xf3e   : > { %v6896_v57 = vsel %vm3118_vm7, %v15256_v40, 0.0 }
 0xf3f   : > { %10554 = vrot.lane.b32.xlu0 %v16900_v28, %s11205_s13  ;;  %v16911_v28 = vpack.i.bf16 %v16910_v45, %v16811_v21  ;;  %v16912_v21 = vld [vmem:[#allocation104_spill] sm:$0xff]  ;;  %v16921_v45 = vld [vmem:[#allocation101_spill] sm:$0xff] }
 0xf43   : > { %10559 = vrot.lane.b32.xlu0 %v16903_v10, %s11205_s13  ;;  %v16913_v10 = vld [vmem:[#allocation105_spill] sm:$0xff] }
 0xf47   : > { %10564 = vrot.lane.b32.xlu0 %v16905_v35, %s11205_s13  ;;  %v15263_v53 = vpop.eup %10903  ;;  %v16917_v35 = vld [vmem:[#allocation109_spill] sm:$0xff] }
 0xf4b   : > { %10569 = vrot.lane.b32.xlu0 %v16907_v56, %s11205_s13  ;;  %v16918_v56 = vld [vmem:[#allocation110_spill] sm:$0xff] }
 0xf4f   : > { %10574 = vrot.lane.b32.xlu0 %v16909_v15, %s11205_s13  ;;  %v16920_v15 = vld [vmem:[#allocation111_spill] sm:$0xff] }
 0xf53   : > { %10579 = vrot.lane.b32.xlu0 %v16911_v28, %s11205_s13 }
 0xf57   : > { %7354 = vrot.lane.b32.xlu0 %v16817_v61, %s11205_s13  ;;  %v6893_v61 = vsel %vm3078_vm6, %v15263_v53, 0.0 }
 0xf5e   : > { %6897 = vadd.xlane.f32.xlu1 %v6896_v57  ;;  %v10532_v57 = vunpack.i.h.bf16 %v15127_v59 }
 0xf6f   : > { %7358 = vrot.lane.b32.xlu1 %v16819_v43, %s11205_s13  ;;  %v16916_v43 = vld [vmem:[#allocation108_spill] sm:$0xff] }
 0xf73   : > { %7368 = vrot.lane.b32.xlu1 %v16912_v21, %s11205_s13 }
 0xf76   : > { %6894 = vadd.xlane.f32.xlu0 %v6893_v61 }
 0xf77   : > { %7372 = vrot.lane.b32.xlu1 %v16913_v10, %s11205_s13  ;;  %v16923_v10 = vld [vmem:[#allocation113_spill] sm:$0xff] }
 0xf7b   : > { %7376 = vrot.lane.b32.xlu1 %v16914_v37, %s11205_s13  ;;  %v10531_v37 = vunpack.i.l.bf16 %v15127_v59 }
 0xf7f   : > { %7380 = vrot.lane.b32.xlu1 %v16915_v9, %s11205_s13  ;;  %v10055_v9 = vpack.c.bf16 %v10532_v57, %v10527_v16 }
 0xf83   : > { %7384 = vrot.lane.b32.xlu1 %v16916_v43, %s11205_s13  ;;  %v16924_v43 = vld [vmem:[#allocation103_spill] sm:$0xff] }
 0xf87   : > { %7388 = vrot.lane.b32.xlu1 %v16917_v35, %s11205_s13 }
 0xf8a   : > { %v6859_v50 = vpop.xlane.xlu0 %6858 }
 0xf8b   : > { %10905 = vrcp.f32 %v6859_v50  ;;  %7392 = vrot.lane.b32.xlu1 %v16918_v56, %s11205_s13  ;;  %v7126_v50 = vld [vmem:[#allocation4 + $0x308] sm:$0xff]  ;;  %v10526_v56 = vunpack.i.l.bf16 %v15132_v30 }
 0xf8c   : > { %7356 = vrot.lane.b32.xlu0 %v16919_v24, %s11205_s13 }
 0xf8e   : > { %v6862_v0 = vpop.xlane.xlu1 %6861 }
 0xf8f   : > { %10907 = vrcp.f32 %v6862_v0  ;;  %7396 = vrot.lane.b32.xlu1 %v16920_v15, %s11205_s13  ;;  %v16926_v15 = vld [vmem:[#allocation114_spill] sm:$0xff] }
 0xf90   : > { %7360 = vrot.lane.b32.xlu0 %v16921_v45, %s11205_s13  ;;  %v7128_v45 = vld [vmem:[#allocation4 + $0x318] sm:$0xff] }
 0xf92   : > { %v6865_v28 = vpop.xlane.xlu0 %6864 }
 0xf93   : > { %10909 = vrcp.f32 %v6865_v28  ;;  %7400 = vrot.lane.b32.xlu1 %v16922_v54, %s11205_s13  ;;  %v7510_v28 = vsel %vm2858_vm2, %v10526_v56, %v10527_v16  ;;  %v10542_v54 = vunpack.i.h.bf16 %v15277_v58  ;;  %v7129_v16 = vld [vmem:[#allocation4 + $0x320] sm:$0xff] }
 0xf94   : > { %7362 = vrot.lane.b32.xlu0 %v16821_v46, %s11205_s13  ;;  %v16925_v46 = vpack.c.bf16 %v14897_v60, %v14872_v22  ;;  %v7511_v22 = vsel %vm2858_vm2, %v10531_v37, %v10532_v57  ;;  %v10537_v60 = vunpack.i.h.bf16 %v15281_v14 }
 0xf95   : > { %v10906_v1 = vpop.eup %10905  ;;  %v10058_v37 = vpack.c.bf16 %v7511_v22, %v7510_v28 }
 0xf96   : > { %v6913_v21 = vmul.f32 %v10906_v1, %v15138_v55  ;;  %v6868_v61 = vpop.xlane.xlu1 %6867  ;;  %v7125_v55 = vld [vmem:[#allocation4 + $0x300] sm:$0xff] }
 0xf97   : > { %10911 = vrcp.f32 %v6868_v61  ;;  %7404 = vrot.lane.b32.xlu1 %v16923_v10, %s11205_s13  ;;  %v10015_v0 = vpack.c.bf16 %v7126_v50, %v7125_v55  ;;  %v16928_v61 = vld [vmem:[#allocation266_spill] sm:$0xff] }
 0xf98   : > { %7364 = vrot.lane.b32.xlu0 %v16924_v43, %s11205_s13  ;;  %9046 = vmatmul.mubr.msk.f32.vlgmr.msra.gmra.mrb[108].mxu0 %vm3078_vm6, %v6913_v21  ;;  %v10060_v43 = vpack.c.bf16 %v10542_v54, %v10537_v60 }
 0xf99   : > { %v10908_v35 = vpop.eup %10907  ;;  %10054 = vmatpush1.bf16.xpose.msra.mxu0 %v16925_v46  ;;  %7045 = vmatprep.mubr.f32.mxu0 %v16195_v33  ;;  %v10541_v46 = vunpack.i.l.bf16 %v15277_v58  ;;  %v7131_v58 = vld [vmem:[#allocation4 + $0x330] sm:$0xff] }
 0xf9a   : > { %v6914_v24 = vmul.f32 %v10908_v35, %v15143_v8  ;;  %10057 = vmatprep.subr.msk.bf16.mxu0 %vm12233_vm3, %v10055_v9  ;;  %v6871_v59 = vpop.xlane.xlu0 %6870  ;;  %10016 = vmatpush1.bf16.msra.mxu1 %v10015_v0  ;;  %v7127_v8 = vld [vmem:[#allocation4 + $0x310] sm:$0xff]  ;;  %v10536_v9 = vunpack.i.l.bf16 %v15281_v14  ;;  %v7130_v35 = vld [vmem:[#allocation4 + $0x328] sm:$0xff] }
 0xf9b   : > { %10913 = vrcp.f32 %v6871_v59  ;;  %7408 = vrot.lane.b32.xlu1 %v16926_v15, %s11205_s13  ;;  %10017 = vmatprep.subr.bf16.mxu1 %v16553_v63  ;;  %v10018_v21 = vpack.c.bf16 %v7128_v45, %v7127_v8  ;;  %v10021_v50 = vpack.c.bf16 %v7130_v35, %v7129_v16  ;;  %v7132_v59 = vld [vmem:[#allocation4 + $0x338] sm:$0xff]  ;;  %v7513_v0 = vsel %vm2858_vm2, %v10541_v46, %v10542_v54  ;;  %v7134_v8 = vld [vmem:[#allocation4 + $0x348] sm:$0xff]  ;;  %v7139_v46 = vld [vmem:[#allocation4 + $0x370] sm:$0xff] }
 0xf9c   : > { %7366 = vrot.lane.b32.xlu0 %v16823_v48, %s11205_s13  ;;  %9047 = vmatmul.mubr.msk.f32.gmra.mrb[110].mxu0 %vm3078_vm6, %v6914_v24  ;;  %v16927_v48 = vld [vmem:[#allocation267_spill] sm:$0xff]  ;;  %v7512_v24 = vsel %vm2858_vm2, %v10536_v9, %v10537_v60  ;;  %v10024_v22 = vpack.c.bf16 %v7132_v59, %v7131_v58  ;;  %v7133_v60 = vld [vmem:[#allocation4 + $0x340] sm:$0xff] }
 0xf9d   : > { %v10910_v30 = vpop.eup %10909  ;;  %7051 = vmatprep.mubr.f32.mxu0 %v16195_v33  ;;  %v16929_v10 = vpack.i.bf16 %v16927_v48, %v16928_v61  ;;  %v10027_v28 = vpack.c.bf16 %v7134_v8, %v7133_v60  ;;  %v16932_v54 = vld [vmem:[#allocation75_spill] sm:$0xff]  ;;  %v7141_v59 = vld [vmem:[#allocation4 + $0x380] sm:$0xff] }
 0xf9e   : > { %v6915_v1 = vmul.f32 %v10910_v30, %v15148_v12  ;;  %v6874_v57 = vpop.xlane.xlu1 %6873  ;;  %10019 = vmatpush1.bf16.msra.mxu1 %v10018_v21  ;;  %v10063_v30 = vpack.c.bf16 %v7513_v0, %v7512_v24  ;;  %v16933_v61 = vld [vmem:[#allocation79_spill] sm:$0xff] }
 0xf9f   : > { %10915 = vrcp.f32 %v6874_v57  ;;  %10584 = vrot.lane.b32.xlu1 %v16929_v10, %s11205_s13  ;;  %10020 = vmatprep.subr.bf16.mxu1 %v16553_v63  ;;  %v7136_v57 = vld [vmem:[#allocation4 + $0x358] sm:$0xff]  ;;  %v7138_v9 = vld [vmem:[#allocation4 + $0x368] sm:$0xff] }
 0xfa0   : > { %7370 = vrot.lane.b32.xlu0 %v16825_v23, %s11205_s13  ;;  %9048 = vmatmul.mubr.msk.f32.gmra.mrb[112].mxu0 %vm3078_vm6, %v6915_v1  ;;  %v16930_v23 = vld [vmem:[#allocation275_spill] sm:$0xff] }
 0xfa1   : > { %v10912_v12 = vpop.eup %10911  ;;  %10059 = vmatpush1.bf16.xpose.msra.mxu0 %v10058_v37  ;;  %7057 = vmatprep.mubr.f32.mxu0 %v16195_v33  ;;  %v16931_v56 = vpack.i.bf16 %v16930_v23, %v16855_v62  ;;  %v7135_v1 = vld [vmem:[#allocation4 + $0x350] sm:$0xff]  ;;  %v7137_v37 = vld [vmem:[#allocation4 + $0x360] sm:$0xff]  ;;  %v7142_v0 = vld [vmem:[#allocation4 + $0x388] sm:$0xff] }
 0xfa2   : > { %v6916_v55 = vmul.f32 %v10912_v12, %v15153_v13  ;;  %10062 = vmatprep.subr.msk.bf16.mxu0 %vm12233_vm3, %v10060_v43  ;;  %v6877_v14 = vpop.xlane.xlu0 %6876  ;;  %10022 = vmatpush1.bf16.msra.mxu1 %v10021_v50  ;;  %v16934_v16 = vld [vmem:[#allocation83_spill] sm:$0xff] }
 0xfa3   : > { %10917 = vrcp.f32 %v6877_v14  ;;  %10604 = vrot.lane.b32.xlu1 %v16931_v56, %s11205_s13  ;;  %10023 = vmatprep.subr.bf16.mxu1 %v16553_v63  ;;  %v16935_v56 = vld [vmem:[#allocation87_spill] sm:$0xff] }
 0xfa4   : > { %7374 = vrot.lane.b32.xlu0 %v16827_v25, %s11205_s13  ;;  %9049 = vmatmul.mubr.msk.f32.gmra.mrb[114].mxu0 %vm3078_vm6, %v6916_v55  ;;  %v7140_v55 = vld [vmem:[#allocation4 + $0x378] sm:$0xff]  ;;  %v16936_v60 = vld [vmem:[#allocation91_spill] sm:$0xff] }
 0xfa5   : > { %v10914_v13 = vpop.eup %10913  ;;  %7063 = vmatprep.mubr.f32.mxu0 %v16195_v33  ;;  %v10036_v23 = vpack.c.bf16 %v7140_v55, %v7139_v46  ;;  %v16938_v55 = vld [vmem:[#allocation99_spill] sm:$0xff] }
 0xfa6   : > { %v6917_v15 = vmul.f32 %v10914_v13, %v15158_v52  ;;  %v6880_v62 = vpop.xlane.xlu1 %6879  ;;  %10025 = vmatpush1.bf16.msra.mxu1 %v10024_v22  ;;  %v10039_v22 = vpack.c.bf16 %v7142_v0, %v7141_v59  ;;  %v16939_v59 = vld [vmem:[#allocation265_spill] sm:$0xff] }
 0xfa7   : > { %10919 = vrcp.f32 %v6880_v62  ;;  %10026 = vmatprep.subr.bf16.mxu1 %v16553_v63  ;;  %v16940_v0 = vld [vmem:[#allocation269_spill] sm:$0xff] }
 0xfa8   : > { %7378 = vrot.lane.b32.xlu0 %v16829_v11, %s11205_s13  ;;  %9050 = vmatmul.mubr.msk.f32.gmra.mrb[116].mxu0 %vm3078_vm6, %v6917_v15 }
 0xfa9   : > { %v10916_v25 = vpop.eup %10915  ;;  %10064 = vmatpush1.bf16.xpose.msra.mxu0 %v10063_v30  ;;  %7069 = vmatprep.mubr.f32.mxu0 %v16195_v33 }
 0xfaa   : > { %v6918_v52 = vmul.f32 %v10916_v25, %v15166_v5  ;;  %v6883_v45 = vpop.xlane.xlu0 %6882  ;;  %10028 = vmatpush1.bf16.msra.mxu1 %v10027_v28  ;;  %v10030_v5 = vpack.c.bf16 %v7136_v57, %v7135_v1 }
 0xfab   : > { %10921 = vrcp.f32 %v6883_v45  ;;  %10029 = vmatprep.subr.bf16.mxu1 %v16553_v63 }
 0xfac   : > { %7382 = vrot.lane.b32.xlu0 %v16932_v54, %s11205_s13  ;;  %9051 = vmatmul.mubr.msk.f32.gmra.mrb[118].mxu0 %vm3078_vm6, %v6918_v52  ;;  %v7144_v54 = vld [vmem:[#allocation4 + $0x398] sm:$0xff] }
 0xfad   : > { %v10918_v11 = vpop.eup %10917  ;;  %7075 = vmatprep.mubr.f32.mxu0 %v16195_v33 }
 0xfae   : > { %v6919_v21 = vmul.f32 %v10918_v11, %v15174_v7  ;;  %v6886_v48 = vpop.xlane.xlu1 %6885  ;;  %10031 = vmatpush1.bf16.msra.mxu1 %v10030_v5  ;;  %v10033_v7 = vpack.c.bf16 %v7138_v9, %v7137_v37 }
 0xfaf   : > { %10923 = vrcp.f32 %v6886_v48  ;;  %10032 = vmatprep.subr.bf16.mxu1 %v16553_v63 }
 0xfb0   : > { %7386 = vrot.lane.b32.xlu0 %v16933_v61, %s11205_s13  ;;  %9052 = vmatmul.mubr.msk.f32.gmra.mrb[120].mxu0 %vm3078_vm6, %v6919_v21 }
 0xfb1   : > { %v10920_v10 = vpop.eup %10919  ;;  %7081 = vmatprep.mubr.f32.mxu0 %v16195_v33 }
 0xfb2   : > { %v6920_v43 = vmul.f32 %v10920_v10, %v15182_v19  ;;  %v6889_v12 = vpop.xlane.xlu0 %6888  ;;  %10034 = vmatpush1.bf16.msra.mxu1 %v10033_v7  ;;  %v16937_v10 = vld [vmem:[#allocation95_spill] sm:$0xff] }
 0xfb3   : > { %10925 = vrcp.f32 %v6889_v12  ;;  %10035 = vmatprep.subr.bf16.mxu1 %v16553_v63 }
 0xfb4   : > { %7390 = vrot.lane.b32.xlu0 %v16934_v16, %s11205_s13  ;;  %9053 = vmatmul.mubr.msk.f32.gmra.mrb[122].mxu0 %vm3078_vm6, %v6920_v43  ;;  %v7146_v43 = vld [vmem:[#allocation4 + $0x3a8] sm:$0xff] }
 0xfb5   : > { %v10922_v35 = vpop.eup %10921  ;;  %7087 = vmatprep.mubr.f32.mxu0 %v16195_v33 }
 0xfb6   : > { %v6921_v14 = vmul.f32 %v10922_v35, %v15190_v18  ;;  %v6892_v50 = vpop.xlane.xlu1 %6891  ;;  %v10550_v19 = vpop.permute.xlu0 %10549  ;;  %10037 = vmatpush1.bf16.msra.mxu1 %v10036_v23 }
 0xfb7   : > { %10927 = vrcp.f32 %v6892_v50  ;;  %v10552_v13 = vunpack.i.h.bf16 %v10550_v19  ;;  %v10551_v58 = vunpack.i.l.bf16 %v10550_v19  ;;  %10038 = vmatprep.subr.bf16.mxu1 %v16553_v63 }
 0xfb8   : > { %7394 = vrot.lane.b32.xlu0 %v16935_v56, %s11205_s13  ;;  %9054 = vmatmul.mubr.msk.f32.gmra.mrb[124].mxu0 %vm3078_vm6, %v6921_v14  ;;  %v7147_v14 = vld [vmem:[#allocation4 + $0x3b0] sm:$0xff] }
 0xfb9   : > { %v10924_v24 = vpop.eup %10923  ;;  %7093 = vmatprep.mubr.f32.mxu0 %v16195_v33  ;;  %v7515_v52 = vsel %vm2858_vm2, %v10551_v58, %v10552_v13 }
 0xfba   : > { %v6922_v18 = vmul.f32 %v10924_v24, %v15197_v2  ;;  %v10545_v15 = vpop.permute.xlu1 %10544  ;;  %v10555_v62 = vpop.permute.xlu0 %10554  ;;  %v7143_v2 = vld [vmem:[#allocation4 + $0x390] sm:$0xff]  ;;  %10040 = vmatpush1.bf16.msra.mxu1 %v10039_v22 }
 0xfbb   : > { %v10547_v30 = vunpack.i.h.bf16 %v10545_v15  ;;  %v10546_v25 = vunpack.i.l.bf16 %v10545_v15  ;;  %v10042_v21 = vpack.c.bf16 %v7144_v54, %v7143_v2  ;;  %v10557_v48 = vunpack.i.h.bf16 %v10555_v62  ;;  %10041 = vmatprep.subr.bf16.mxu1 %v16553_v63 }
 0xfbc   : > { %7398 = vrot.lane.b32.xlu0 %v16936_v60, %s11205_s13  ;;  %9055 = vmatmul.mubr.msk.f32.gmra.mrb[126].mxu0 %vm3078_vm6, %v6922_v18  ;;  %v10556_v7 = vunpack.i.l.bf16 %v10555_v62  ;;  %v16941_v18 = vpack.i.bf16 %v16939_v59, %v16940_v0  ;;  %v16943_v60 = vld [vmem:[#allocation273_spill] sm:$0xff] }
 0xfbd   : > { %v10926_v8 = vpop.eup %10925  ;;  %v7514_v45 = vsel %vm2858_vm2, %v10546_v25, %v10547_v30  ;;  %v10065_v28 = vpack.c.bf16 %v10552_v13, %v10547_v30  ;;  %7099 = vmatprep.mubr.f32.mxu0 %v16195_v33  ;;  %v16942_v25 = vld [vmem:[#allocation271_spill] sm:$0xff] }
 0xfbe   : > { %v6923_v11 = vmul.f32 %v10926_v8, %v15204_v47  ;;  %v10068_v1 = vpack.c.bf16 %v7515_v52, %v7514_v45  ;;  %v10560_v57 = vpop.permute.xlu0 %10559  ;;  %v7145_v47 = vld [vmem:[#allocation4 + $0x3a0] sm:$0xff]  ;;  %10043 = vmatpush1.bf16.msra.mxu1 %v10042_v21  ;;  %v7516_v50 = vsel %vm2858_vm2, %v10556_v7, %v10557_v48  ;;  %v16944_v8 = vpack.i.bf16 %v16942_v25, %v16943_v60 }
 0xfbf   : > { %v10562_v5 = vunpack.i.h.bf16 %v10560_v57  ;;  %10067 = vmatprep.subr.msk.bf16.mxu0 %vm12233_vm3, %v10065_v28  ;;  %v10561_v61 = vunpack.i.l.bf16 %v10560_v57  ;;  %v10045_v35 = vpack.c.bf16 %v7146_v43, %v7145_v47  ;;  %10044 = vmatprep.subr.bf16.mxu1 %v16553_v63  ;;  %v16946_v57 = vld [vmem:[#allocation277_spill] sm:$0xff] }
 0xfc0   : > { %7402 = vrot.lane.b32.xlu0 %v16937_v10, %s11205_s13  ;;  %9056 = vmatmul.mubr.msk.f32.gmra.mrb[128].mxu0 %vm3078_vm6, %v6923_v11  ;;  %v16948_v10 = vld [vmem:[#allocation274_spill] sm:$0xff]  ;;  %v16952_v7 = vld [vmem:[#allocation289_spill] sm:$0xff] }
 0xfc1   : > { %v10928_v37 = vpop.eup %10927  ;;  %v10070_v9 = vpack.c.bf16 %v10562_v5, %v10557_v48  ;;  %10069 = vmatpush1.bf16.xpose.msra.mxu0 %v10068_v1  ;;  %7105 = vmatprep.mubr.f32.mxu0 %v16195_v33  ;;  %v7517_v46 = vsel %vm2858_vm2, %v10561_v61, %v10562_v5  ;;  %v16945_v1 = vld [vmem:[#allocation270_spill] sm:$0xff] }
 0xfc2   : > { %v6924_v12 = vmul.f32 %v10928_v37, %v15211_v27  ;;  %v10565_v16 = vpop.permute.xlu0 %10564  ;;  %v7148_v27 = vld [vmem:[#allocation4 + $0x3b8] sm:$0xff]  ;;  %10046 = vmatpush1.bf16.msra.mxu1 %v10045_v35  ;;  %v10073_v56 = vpack.c.bf16 %v7517_v46, %v7516_v50  ;;  %v16947_v21 = vpack.i.bf16 %v16945_v1, %v16946_v57 }
 0xfc3   : > { %10072 = vmatprep.subr.msk.bf16.mxu0 %vm12233_vm3, %v10070_v9  ;;  %v10048_v23 = vpack.c.bf16 %v7148_v27, %v7147_v14  ;;  %v10567_v24 = vunpack.i.h.bf16 %v10565_v16  ;;  %10047 = vmatprep.subr.bf16.mxu1 %v16553_v63  ;;  %v10566_v62 = vunpack.i.l.bf16 %v10565_v16  ;;  %v16949_v37 = vld [vmem:[#allocation285_spill] sm:$0xff] }
 0xfc4   : > { %7406 = vrot.lane.b32.xlu0 %v16938_v55, %s11205_s13  ;;  %9057 = vmatmul.mubr.msk.f32.gmra.mrb[130].mxu0 %vm3078_vm6, %v6924_v12  ;;  %v16950_v9 = vpack.i.bf16 %v16948_v10, %v16949_v37  ;;  %v16951_v12 = vld [vmem:[#allocation279_spill] sm:$0xff]  ;;  %v16955_v35 = vld [vmem:[#allocation293_spill] sm:$0xff] }
 0xfc5   : > { %7111 = vmatprep.mubr.f32.mxu0 %v16195_v33  ;;  %v7518_v52 = vsel %vm2858_vm2, %v10566_v62, %v10567_v24  ;;  %v16953_v16 = vpack.i.bf16 %v16951_v12, %v16952_v7  ;;  %v16956_v46 = vpack.i.bf16 %v16954_v6, %v16955_v35 }
 0xfc6   : > { %v10570_v19 = vpop.permute.xlu0 %10569  ;;  %10049 = vmatpush1.bf16.msra.mxu1 %v10048_v23 }
 0xfc7   : > { %v10572_v13 = vunpack.i.h.bf16 %v10570_v19  ;;  %v10571_v58 = vunpack.i.l.bf16 %v10570_v19 }
 0xfc8   : > { %10589 = vrot.lane.b32.xlu0 %v16941_v18, %s11205_s13 }
 0xfc9   : > { %v10075_v15 = vpack.c.bf16 %v10572_v13, %v10567_v24  ;;  %10074 = vmatpush1.bf16.xpose.msra.mxu0 %v10073_v56  ;;  %v7519_v30 = vsel %vm2858_vm2, %v10571_v58, %v10572_v13 }
 0xfca   : > { %v10575_v22 = vpop.permute.xlu0 %10574  ;;  %v10078_v28 = vpack.c.bf16 %v7519_v30, %v7518_v52 }
 0xfcb   : > { %10077 = vmatprep.subr.msk.bf16.mxu0 %vm12233_vm3, %v10075_v15  ;;  %v10577_v2 = vunpack.i.h.bf16 %v10575_v22  ;;  %v10576_v5 = vunpack.i.l.bf16 %v10575_v22 }
 0xfcc   : > { %10594 = vrot.lane.b32.xlu0 %v16944_v8, %s11205_s13 }
 0xfcd   : > { %v7520_v47 = vsel %vm2858_vm2, %v10576_v5, %v10577_v2 }
 0xfce   : > { %v10580_v45 = vpop.permute.xlu0 %10579 }
 0xfcf   : > { %v10582_v54 = vunpack.i.h.bf16 %v10580_v45  ;;  %v10581_v11 = vunpack.i.l.bf16 %v10580_v45 }
 0xfd0   : > { %10599 = vrot.lane.b32.xlu0 %v16947_v21, %s11205_s13 }
 0xfd1   : > { %v10080_v48 = vpack.c.bf16 %v10582_v54, %v10577_v2  ;;  %10079 = vmatpush1.bf16.xpose.msra.mxu0 %v10078_v28  ;;  %v7521_v61 = vsel %vm2858_vm2, %v10581_v11, %v10582_v54 }
 0xfd2   : > { %v10083_v43 = vpack.c.bf16 %v7521_v61, %v7520_v47  ;;  %v7355_v27 = vpop.permute.xlu0 %7354 }
 0xfd3   : > { %10082 = vmatprep.subr.msk.bf16.mxu0 %vm12233_vm3, %v10080_v48 }
 0xfd4   : > { %10609 = vrot.lane.b32.xlu0 %v16950_v9, %s11205_s13 }
 0xfd8   : > { %10614 = vrot.lane.b32.xlu0 %v16953_v16, %s11205_s13 }
 0xfd9   : > { %10084 = vmatpush1.bf16.xpose.msra.mxu0 %v10083_v43 }
 0xfda   : > { %10115 = vmatprep.subr.bf16.mxu0 %v16553_v63 }
 0xfdc   : > { %10619 = vrot.lane.b32.xlu0 %v16956_v46, %s11205_s13 }
 0xfeb   : > { %v6898_v55 = vpop.xlane.xlu1 %6897 }
 0xfef   : > { %v7359_v14 = vpop.permute.xlu1 %7358 }
 0xff3   : > { %v7369_v50 = vpop.permute.xlu1 %7368 }
 0xff7   : > { %v7373_v23 = vpop.permute.xlu1 %7372 }
 0xffb   : > { %v7377_v24 = vpop.permute.xlu1 %7376 }
 0xfff   : > { %v7381_v15 = vpop.permute.xlu1 %7380 }
0x1003   : > { %v6895_v19 = vpop.xlane.xlu0 %6894  ;;  %v7385_v30 = vpop.permute.xlu1 %7384 }
0x1004   : > { %10929 = vrcp.f32 %v6895_v19 }
0x1005   : > { %10931 = vrcp.f32 %v6898_v55 }
0x1007   : > { %v7357_v56 = vpop.permute.xlu0 %7356  ;;  %v7389_v52 = vpop.permute.xlu1 %7388 }
0x1008   : > { %v7410_v60 = vsel %vm2858_vm2, %v7355_v27, %v7357_v56 }
0x100b   : > { %v7361_v13 = vpop.permute.xlu0 %7360  ;;  %v7393_v28 = vpop.permute.xlu1 %7392 }
0x100c   : > { %v7411_v8 = vsel %vm2858_vm2, %v7359_v14, %v7361_v13 }
0x100e   : > { %v10930_v58 = vpop.eup %10929 }
0x100f   : > { %v6925_v59 = vmul.f32 %v10930_v58, %v15263_v53  ;;  %v7363_v0 = vpop.permute.xlu0 %7362  ;;  %v10932_v18 = vpop.eup %10931 }
0x1010   : > { %v6926_v62 = vmul.f32 %v10932_v18, %v15256_v40  ;;  %v7397_v57 = vpop.permute.xlu1 %7396 }
0x1011   : > { %9058 = vmatmul.mubr.msk.f32.gmra.mrb[132].mxu0 %vm3078_vm6, %v6925_v59 }
0x1012   : > { %7117 = vmatprep.mubr.f32.mxu0 %v16195_v33 }
0x1013   : > { %v7365_v22 = vpop.permute.xlu0 %7364 }
0x1014   : > { %v7412_v45 = vsel %vm2858_vm2, %v7363_v0, %v7365_v22  ;;  %v7401_v5 = vpop.permute.xlu1 %7400 }
0x1015   : > { %9059 = vmatmul.mubr.msk.f32.gmra.mrb[134].mxu0 %vm3078_vm6, %v6926_v62 }
0x1016   : > { %9088 = vmatprep.mubr.msk.f32.mxu0 %vm2858_vm2, %v7357_v56 }
0x1017   : > { %v7367_v25 = vpop.permute.xlu0 %7366 }
0x1018   : > { %v7413_v54 = vsel %vm2858_vm2, %v7367_v25, %v7369_v50  ;;  %v7405_v47 = vpop.permute.xlu1 %7404 }
0x1019   : > { %7657 = vmatmul.mubr.f32.vlgmr.msra.gmra.mrb[136].mxu0 %v7410_v60 }
0x101a   : > { %9089 = vmatprep.mubr.msk.f32.mxu0 %vm2858_vm2, %v7361_v13 }
0x101b   : > { %v7371_v53 = vpop.permute.xlu0 %7370 }
0x101c   : > { %v7414_v1 = vsel %vm2858_vm2, %v7371_v53, %v7373_v23  ;;  %v7409_v7 = vpop.permute.xlu1 %7408 }
0x101d   : > { %7662 = vmatmul.mubr.f32.gmra.mrb[138].mxu0 %v7411_v8 }
0x101e   : > { %9090 = vmatprep.mubr.msk.f32.mxu0 %vm2858_vm2, %v7365_v22 }
0x101f   : > { %v7375_v40 = vpop.permute.xlu0 %7374 }
0x1020   : > { %v7415_v48 = vsel %vm2858_vm2, %v7375_v40, %v7377_v24  ;;  %v10585_v55 = vpop.permute.xlu1 %10584 }
0x1021   : > { %7667 = vmatmul.mubr.f32.gmra.mrb[140].mxu0 %v7412_v45  ;;  %v10587_v27 = vunpack.i.h.bf16 %v10585_v55  ;;  %v10586_v18 = vunpack.i.l.bf16 %v10585_v55 }
0x1022   : > { %9091 = vmatprep.mubr.msk.f32.mxu0 %vm2858_vm2, %v7369_v50 }
0x1023   : > { %v7379_v2 = vpop.permute.xlu0 %7378  ;;  %v7964_v60 = vsel %vm2858_vm2, %v10586_v18, %v10587_v27 }
0x1024   : > { %v7416_v10 = vsel %vm2858_vm2, %v7379_v2, %v7381_v15  ;;  %v10605_v40 = vpop.permute.xlu1 %10604 }
0x1025   : > { %7672 = vmatmul.mubr.f32.gmra.mrb[142].mxu0 %v7413_v54 }
0x1026   : > { %9092 = vmatprep.mubr.msk.f32.mxu0 %vm2858_vm2, %v7373_v23 }
0x1027   : > { %v7383_v11 = vpop.permute.xlu0 %7382 }
0x1028   : > { %v7417_v9 = vsel %vm2858_vm2, %v7383_v11, %v7385_v30 }
0x1029   : > { %7677 = vmatmul.mubr.f32.gmra.mrb[144].mxu0 %v7414_v1 }
0x102a   : > { %9093 = vmatprep.mubr.msk.f32.mxu0 %vm2858_vm2, %v7377_v24 }
0x102b   : > { %v7387_v21 = vpop.permute.xlu0 %7386 }
0x102c   : > { %v7418_v12 = vsel %vm2858_vm2, %v7387_v21, %v7389_v52  ;;  %v10607_v21 = vunpack.i.h.bf16 %v10605_v40 }
0x102d   : > { %7682 = vmatmul.mubr.f32.gmra.mrb[146].mxu0 %v7415_v48  ;;  %v10606_v48 = vunpack.i.l.bf16 %v10605_v40 }
0x102e   : > { %9094 = vmatprep.mubr.msk.f32.mxu0 %vm2858_vm2, %v7381_v15 }
0x102f   : > { %v7391_v61 = vpop.permute.xlu0 %7390 }
0x1030   : > { %v7419_v6 = vsel %vm2858_vm2, %v7391_v61, %v7393_v28 }
0x1031   : > { %7687 = vmatmul.mubr.f32.gmra.mrb[148].mxu0 %v7416_v10 }
0x1032   : > { %9095 = vmatprep.mubr.msk.f32.mxu0 %vm2858_vm2, %v7385_v30 }
0x1033   : > { %v7395_v37 = vpop.permute.xlu0 %7394 }
0x1034   : > { %v7420_v46 = vsel %vm2858_vm2, %v7395_v37, %v7397_v57 }
0x1035   : > { %7692 = vmatmul.mubr.f32.gmra.mrb[150].mxu0 %v7417_v9 }
0x1036   : > { %9096 = vmatprep.mubr.msk.f32.mxu0 %vm2858_vm2, %v7389_v52 }
0x1037   : > { %v7399_v43 = vpop.permute.xlu0 %7398 }
0x1038   : > { %v7421_v50 = vsel %vm2858_vm2, %v7399_v43, %v7401_v5 }
0x1039   : > { %7697 = vmatmul.mubr.f32.gmra.mrb[152].mxu0 %v7418_v12 }
0x103a   : > { %9097 = vmatprep.mubr.msk.f32.mxu0 %vm2858_vm2, %v7393_v28 }
0x103b   : > { %v7403_v16 = vpop.permute.xlu0 %7402 }
0x103c   : > { %v7422_v56 = vsel %vm2858_vm2, %v7403_v16, %v7405_v47 }
0x103d   : > { %7702 = vmatmul.mubr.f32.gmra.mrb[154].mxu0 %v7419_v6 }
0x103e   : > { %9098 = vmatprep.mubr.msk.f32.mxu0 %vm2858_vm2, %v7397_v57 }
0x103f   : > { %v7407_v35 = vpop.permute.xlu0 %7406 }
0x1040   : > { %v7423_v24 = vsel %vm2858_vm2, %v7407_v35, %v7409_v7 }
0x1041   : > { %7707 = vmatmul.mubr.f32.gmra.mrb[156].mxu0 %v7420_v46 }
0x1042   : > { %9099 = vmatprep.mubr.msk.f32.mxu0 %vm2858_vm2, %v7401_v5 }
0x1043   : > { %v10590_v14 = vpop.permute.xlu0 %10589 }
0x1044   : > { %v10592_v19 = vunpack.i.h.bf16 %v10590_v14  ;;  %v10591_v0 = vunpack.i.l.bf16 %v10590_v14 }
0x1045   : > { %7712 = vmatmul.mubr.f32.gmra.mrb[158].mxu0 %v7421_v50 }
0x1046   : > { %v10085_v23 = vpack.c.bf16 %v10592_v19, %v10587_v27  ;;  %9100 = vmatprep.mubr.msk.f32.mxu0 %vm2858_vm2, %v7405_v47  ;;  %v7965_v62 = vsel %vm2858_vm2, %v10591_v0, %v10592_v19 }
0x1047   : > { %v10595_v13 = vpop.permute.xlu0 %10594  ;;  %v10087_v45 = vpack.c.bf16 %v7965_v62, %v7964_v60 }
0x1048   : > { %10086 = vmatprep.subr.bf16.mxu1 %v10085_v23  ;;  %v10597_v53 = vunpack.i.h.bf16 %v10595_v13  ;;  %v10596_v8 = vunpack.i.l.bf16 %v10595_v13 }
0x1049   : > { %7717 = vmatmul.mubr.f32.gmra.mrb[160].mxu0 %v7422_v56 }
0x104a   : > { %9101 = vmatprep.mubr.msk.f32.mxu0 %vm2858_vm2, %v7409_v7  ;;  %v7966_v5 = vsel %vm2858_vm2, %v10596_v8, %v10597_v53  ;;  %v7968_v7 = vsel %vm2858_vm2, %v10606_v48, %v10607_v21 }
0x104b   : > { %v10600_v58 = vpop.permute.xlu0 %10599 }
0x104c   : > { %v10602_v22 = vunpack.i.h.bf16 %v10600_v58  ;;  %v10601_v30 = vunpack.i.l.bf16 %v10600_v58 }
0x104d   : > { %7722 = vmatmul.mubr.f32.gmra.mrb[162].mxu0 %v7423_v24 }
0x104e   : > { %v7967_v28 = vsel %vm2858_vm2, %v10601_v30, %v10602_v22  ;;  %v10089_v2 = vpack.c.bf16 %v10602_v22, %v10597_v53 }
0x104f   : > { %v10610_v59 = vpop.permute.xlu0 %10609  ;;  %v10091_v10 = vpack.c.bf16 %v7967_v28, %v7966_v5  ;;  %v11051_v5 = vld [vmem:[#allocation7 + $0x8] sm:$0xff] }
0x1050   : > { %v10612_v54 = vunpack.i.h.bf16 %v10610_v59  ;;  %v10611_v11 = vunpack.i.l.bf16 %v10610_v59 }
0x1052   : > { %v10093_v37 = vpack.c.bf16 %v10612_v54, %v10607_v21  ;;  %v7969_v9 = vsel %vm2858_vm2, %v10611_v11, %v10612_v54  ;;  %v11050_v11 = vld [vmem:[#allocation7] sm:$0xff] }
0x1053   : > { %v10615_v15 = vpop.permute.xlu0 %10614  ;;  %v10095_v46 = vpack.c.bf16 %v7969_v9, %v7968_v7 }
0x1054   : > { %v10617_v16 = vunpack.i.h.bf16 %v10615_v15  ;;  %v10616_v6 = vunpack.i.l.bf16 %v10615_v15 }
0x1056   : > { %v7970_v50 = vsel %vm2858_vm2, %v10616_v6, %v10617_v16  ;;  %v11053_v6 = vld [vmem:[#allocation7 + $0x18] sm:$0xff] }
0x1057   : > { %v10620_v1 = vpop.permute.xlu0 %10619 }
0x1058   : > { %v10622_v47 = vunpack.i.h.bf16 %v10620_v1  ;;  %v10621_v43 = vunpack.i.l.bf16 %v10620_v1 }
0x105a   : > { %v7971_v55 = vsel %vm2858_vm2, %v10621_v43, %v10622_v47  ;;  %v10097_v14 = vpack.c.bf16 %v10622_v47, %v10617_v16  ;;  %v11052_v47 = vld [vmem:[#allocation7 + $0x10] sm:$0xff] }
0x105b   : > { %v10099_v23 = vpack.c.bf16 %v7971_v55, %v7970_v50 }
0x106b   : > { %v7041_v25 = vpop.f32.mrb[108].mxu0 }
0x106c   : > { %v7043_v52 = vpop.f32.mrb[109].mxu0 }
0x106d   : > { %9060 = vmatprep.mubr.msk.f32.mxu1 %vm2858_vm2, %v7043_v52 }
0x106e   : > { %7256 = vmatmul.mubr.f32.vlgmr.msra.gmra.mrb[122].mxu1 %v7041_v25 }
0x106f   : > { %10088 = vmatpush1.bf16.msra.mxu1 %v10087_v45  ;;  %v7047_v57 = vpop.f32.mrb[110].mxu0 }
0x1070   : > { %10090 = vmatprep.subr.bf16.mxu1 %v10089_v2  ;;  %v7049_v61 = vpop.f32.mrb[111].mxu0 }
0x1071   : > { %9061 = vmatprep.mubr.msk.f32.mxu1 %vm2858_vm2, %v7049_v61 }
0x1072   : > { %7261 = vmatmul.mubr.f32.gmra.mrb[124].mxu1 %v7047_v57 }
0x1073   : > { %10092 = vmatpush1.bf16.msra.mxu1 %v10091_v10  ;;  %v7053_v12 = vpop.f32.mrb[112].mxu0 }
0x1074   : > { %10094 = vmatprep.subr.bf16.mxu1 %v10093_v37  ;;  %v7055_v35 = vpop.f32.mrb[113].mxu0 }
0x1075   : > { %9062 = vmatprep.mubr.msk.f32.mxu1 %vm2858_vm2, %v7055_v35 }
0x1076   : > { %7266 = vmatmul.mubr.f32.gmra.mrb[126].mxu1 %v7053_v12 }
0x1077   : > { %10096 = vmatpush1.bf16.msra.mxu1 %v10095_v46  ;;  %v7059_v27 = vpop.f32.mrb[114].mxu0 }
0x1078   : > { %10098 = vmatprep.subr.bf16.mxu1 %v10097_v14  ;;  %v7061_v19 = vpop.f32.mrb[115].mxu0 }
0x1079   : > { %9063 = vmatprep.mubr.msk.f32.mxu1 %vm2858_vm2, %v7061_v19 }
0x107a   : > { %7271 = vmatmul.mubr.f32.gmra.mrb[128].mxu1 %v7059_v27  ;;  %v11054_v27 = vld [vmem:[#allocation7 + $0x20] sm:$0xff] }
0x107b   : > { %10100 = vmatpush1.bf16.msra.mxu1 %v10099_v23  ;;  %v7065_v56 = vpop.f32.mrb[116].mxu0 }
0x107c   : > { %v7067_v24 = vpop.f32.mrb[117].mxu0 }
0x107d   : > { %9064 = vmatprep.mubr.msk.f32.mxu1 %vm2858_vm2, %v7067_v24  ;;  %v11055_v24 = vld [vmem:[#allocation7 + $0x28] sm:$0xff] }
0x107e   : > { %7276 = vmatmul.mubr.f32.gmra.mrb[130].mxu1 %v7065_v56 }
0x107f   : > { %v7071_v13 = vpop.f32.mrb[118].mxu0 }
0x1080   : > { %v7073_v58 = vpop.f32.mrb[119].mxu0 }
0x1081   : > { %9065 = vmatprep.mubr.msk.f32.mxu1 %vm2858_vm2, %v7073_v58 }
0x1082   : > { %7281 = vmatmul.mubr.f32.gmra.mrb[132].mxu1 %v7071_v13 }
0x1083   : > { %v7077_v59 = vpop.f32.mrb[120].mxu0 }
0x1084   : > { %v7079_v0 = vpop.f32.mrb[121].mxu0 }
0x1085   : > { %9066 = vmatprep.mubr.msk.f32.mxu1 %vm2858_vm2, %v7079_v0 }
0x1086   : > { %7286 = vmatmul.mubr.f32.gmra.mrb[134].mxu1 %v7077_v59 }
0x1087   : > { %v7083_v18 = vpop.f32.mrb[122].mxu0 }
0x1088   : > { %v7085_v15 = vpop.f32.mrb[123].mxu0 }
0x1089   : > { %9067 = vmatprep.mubr.msk.f32.mxu1 %vm2858_vm2, %v7085_v15 }
0x108a   : > { %7291 = vmatmul.mubr.f32.gmra.mrb[136].mxu1 %v7083_v18  ;;  %v11056_v18 = vld [vmem:[#allocation7 + $0x30] sm:$0xff] }
0x108b   : > { %v7089_v62 = vpop.f32.mrb[124].mxu0 }
0x108c   : > { %v7091_v22 = vpop.f32.mrb[125].mxu0 }
0x108d   : > { %9068 = vmatprep.mubr.msk.f32.mxu1 %vm2858_vm2, %v7091_v22 }
0x108e   : > { %7296 = vmatmul.mubr.f32.gmra.mrb[138].mxu1 %v7089_v62 }
0x108f   : > { %v7095_v30 = vpop.f32.mrb[126].mxu0 }
0x1090   : > { %v7097_v25 = vpop.f32.mrb[127].mxu0 }
0x1091   : > { %9069 = vmatprep.mubr.msk.f32.mxu1 %vm2858_vm2, %v7097_v25  ;;  %v11057_v25 = vld [vmem:[#allocation7 + $0x38] sm:$0xff] }
0x1092   : > { %7301 = vmatmul.mubr.f32.gmra.mrb[140].mxu1 %v7095_v30 }
0x1093   : > { %v7101_v60 = vpop.f32.mrb[128].mxu0 }
0x1094   : > { %v7103_v53 = vpop.f32.mrb[129].mxu0 }
0x1095   : > { %9070 = vmatprep.mubr.msk.f32.mxu1 %vm2858_vm2, %v7103_v53 }
0x1096   : > { %7306 = vmatmul.mubr.f32.gmra.mrb[142].mxu1 %v7101_v60 }
0x1097   : > { %v7107_v8 = vpop.f32.mrb[130].mxu0 }
0x1098   : > { %v7109_v52 = vpop.f32.mrb[131].mxu0 }
0x1099   : > { %9071 = vmatprep.mubr.msk.f32.mxu1 %vm2858_vm2, %v7109_v52 }
0x109a   : > { %7311 = vmatmul.mubr.f32.gmra.mrb[144].mxu1 %v7107_v8 }
0x10e4   : > { %v7113_v40 = vpop.f32.mrb[132].mxu0 }
0x10e5   : > { %v7115_v45 = vpop.f32.mrb[133].mxu0 }
0x10e6   : > { %9072 = vmatprep.mubr.msk.f32.mxu1 %vm2858_vm2, %v7115_v45 }
0x10e7   : > { %7316 = vmatmul.mubr.f32.gmra.mrb[146].mxu1 %v7113_v40  ;;  %v11058_v40 = vld [vmem:[#allocation7 + $0x40] sm:$0xff] }
0x10e8   : > { %v7119_v28 = vpop.f32.mrb[134].mxu0 }
0x10e9   : > { %v7121_v2 = vpop.f32.mrb[135].mxu0 }
0x10ea   : > { %9073 = vmatprep.mubr.msk.f32.mxu1 %vm2858_vm2, %v7121_v2 }
0x10eb   : > { %7321 = vmatmul.mubr.f32.gmra.mrb[148].mxu1 %v7119_v28 }
0x10ec   : > { %v7658_v54 = vpop.f32.mrb[136].mxu0  ;;  %8114 = vmatprep.mubr.f32.mxu1 %v16195_v33 }
0x10ed   : > { %v15494_v1 = vadd.f32 %v11050_v11, %v7658_v54  ;;  %v7660_v57 = vpop.f32.mrb[137].mxu0 }
0x10ef   : > { %v7727_v21 = vsel %vm3078_vm6, %v15494_v1, -inf }
0x10f0   : > { %v7663_v48 = vpop.f32.mrb[138].mxu0  ;;  %7728 = vmax.xlane.f32.xlu0 %v7727_v21 }
0x10f1   : > { %v15498_v61 = vadd.f32 %v11051_v5, %v7663_v48  ;;  %v7665_v10 = vpop.f32.mrb[139].mxu0 }
0x10f3   : > { %v7730_v37 = vsel %vm3078_vm6, %v15498_v61, -inf }
0x10f4   : > { %v7668_v9 = vpop.f32.mrb[140].mxu0  ;;  %7731 = vmax.xlane.f32.xlu1 %v7730_v37 }
0x10f5   : > { %v15502_v43 = vadd.f32 %v11052_v47, %v7668_v9  ;;  %v7670_v12 = vpop.f32.mrb[141].mxu0 }
0x10f6   : > { %v16957_v12 = vld [vmem:[#allocation283_spill] sm:$0xff] }
0x10f7   : > { %v7733_v7 = vsel %vm3078_vm6, %v15502_v43, -inf }
0x10f8   : > { %v7673_v16 = vpop.f32.mrb[142].mxu0  ;;  %7734 = vmax.xlane.f32.xlu0 %v7733_v7  ;;  %v16958_v7 = vpack.i.bf16 %v16957_v12, %v16867_v17 }
0x10f9   : > { %v15506_v35 = vadd.f32 %v11053_v6, %v7673_v16  ;;  %v7675_v46 = vpop.f32.mrb[143].mxu0  ;;  %v16959_v16 = vld [vmem:[#allocation282_spill] sm:$0xff]  ;;  %v16960_v6 = vld [vmem:[#allocation297_spill] sm:$0xff] }
0x10fa   : > { %v16961_v46 = vpack.i.bf16 %v16959_v16, %v16960_v6 }
0x10fb   : > { %v7736_v55 = vsel %vm3078_vm6, %v15506_v35, -inf }
0x10fc   : > { %v7678_v14 = vpop.f32.mrb[144].mxu0  ;;  %7737 = vmax.xlane.f32.xlu0 %v7736_v55  ;;  %v11059_v55 = vld [vmem:[#allocation7 + $0x48] sm:$0xff] }
0x10fd   : > { %v15510_v50 = vadd.f32 %v11054_v27, %v7678_v14  ;;  %v7680_v19 = vpop.f32.mrb[145].mxu0  ;;  %v11060_v27 = vld [vmem:[#allocation7 + $0x50] sm:$0xff] }
0x10ff   : > { %v7739_v23 = vsel %vm3078_vm6, %v15510_v50, -inf }
0x1100   : > { %v7683_v56 = vpop.f32.mrb[146].mxu0  ;;  %7740 = vmax.xlane.f32.xlu1 %v7739_v23 }
0x1101   : > { %v15514_v13 = vadd.f32 %v11055_v24, %v7683_v56  ;;  %v7685_v58 = vpop.f32.mrb[147].mxu0 }
0x1102   : > { %v11061_v58 = vld [vmem:[#allocation7 + $0x60] sm:$0xff] }
0x1103   : > { %v7742_v59 = vsel %vm3078_vm6, %v15514_v13, -inf }
0x1104   : > { %v7688_v0 = vpop.f32.mrb[148].mxu0  ;;  %7743 = vmax.xlane.f32.xlu0 %v7742_v59 }
0x1105   : > { %v15518_v15 = vadd.f32 %v11056_v18, %v7688_v0  ;;  %v7690_v62 = vpop.f32.mrb[149].mxu0 }
0x1107   : > { %v7745_v22 = vsel %vm3078_vm6, %v15518_v15, -inf }
0x1108   : > { %v7693_v30 = vpop.f32.mrb[150].mxu0  ;;  %7746 = vmax.xlane.f32.xlu1 %v7745_v22 }
0x1109   : > { %v15522_v60 = vadd.f32 %v11057_v25, %v7693_v30  ;;  %v7695_v53 = vpop.f32.mrb[151].mxu0 }
0x110b   : > { %v7748_v8 = vsel %vm3078_vm6, %v15522_v60, -inf }
0x110c   : > { %v7698_v52 = vpop.f32.mrb[152].mxu0  ;;  %7749 = vmax.xlane.f32.xlu0 %v7748_v8 }
0x110d   : > { %v15526_v45 = vadd.f32 %v11058_v40, %v7698_v52  ;;  %v7700_v28 = vpop.f32.mrb[153].mxu0 }
0x110f   : > { %v7751_v2 = vsel %vm3078_vm6, %v15526_v45, -inf }
0x1110   : > { %v7703_v54 = vpop.f32.mrb[154].mxu0  ;;  %7752 = vmax.xlane.f32.xlu1 %v7751_v2 }
0x1111   : > { %v7705_v11 = vpop.f32.mrb[155].mxu0  ;;  %v15538_v14 = vadd.f32 %v11059_v55, %v7703_v54 }
0x1113   : > { %v7754_v23 = vsel %vm3078_vm6, %v15538_v14, -inf }
0x1114   : > { %v7708_v57 = vpop.f32.mrb[156].mxu0 }
0x1115   : > { %v7710_v21 = vpop.f32.mrb[157].mxu0  ;;  %v15540_v19 = vadd.f32 %v11060_v27, %v7708_v57 }
0x1116   : > { %v16962_v21 = vld [vmem:[#allocation287_spill] sm:$0xff] }
0x1117   : > { %v7757_v0 = vsel %vm3078_vm6, %v15540_v19, -inf }
0x1118   : > { %v7713_v48 = vpop.f32.mrb[158].mxu0 }
0x1119   : > { %v7715_v5 = vpop.f32.mrb[159].mxu0 }
0x111c   : > { %v7718_v10 = vpop.f32.mrb[160].mxu0 }
0x111d   : > { %v7720_v37 = vpop.f32.mrb[161].mxu0  ;;  %v15547_v59 = vadd.f32 %v11061_v58, %v7718_v10 }
0x111f   : > { %v7763_v30 = vsel %vm3078_vm6, %v15547_v59, -inf }
0x1120   : > { %v7723_v9 = vpop.f32.mrb[162].mxu0 }
0x1121   : > { %v7725_v47 = vpop.f32.mrb[163].mxu0  ;;  %10624 = vrot.lane.b32.xlu1 %v16958_v7, %s11205_s13 }
0x1122   : > { %10629 = vrot.lane.b32.xlu0 %v16961_v46, %s11205_s13 }
0x1141   : > { %v7257_v56 = vpop.f32.mrb[122].mxu1  ;;  %7755 = vmax.xlane.f32.xlu0 %v7754_v23 }
0x1142   : > { %v15545_v24 = vadd.f32 %v7257_v56, %v15116_v38  ;;  %v7259_v17 = vpop.f32.mrb[123].mxu1  ;;  %v11062_v56 = vld [vmem:[#allocation7 + $0x58] sm:$0xff] }
0x1143   : > { %v15590_v17 = vadd.f32 %v11062_v56, %v7713_v48 }
0x1145   : > { %v7262_v18 = vpop.f32.mrb[124].mxu1  ;;  %7758 = vmax.xlane.f32.xlu1 %v7757_v0 }
0x1146   : > { %v15552_v62 = vadd.f32 %v7262_v18, %v15119_v41  ;;  %v7264_v22 = vpop.f32.mrb[125].mxu1 }
0x1149   : > { %v7267_v25 = vpop.f32.mrb[126].mxu1  ;;  %7764 = vmax.xlane.f32.xlu1 %v7763_v30 }
0x114a   : > { %v15557_v38 = vadd.f32 %v7267_v25, %v15122_v29  ;;  %v7269_v53 = vpop.f32.mrb[127].mxu1  ;;  %v16963_v29 = vpack.i.bf16 %v16962_v21, %v16873_v26 }
0x114d   : > { %v7272_v8 = vpop.f32.mrb[128].mxu1 }
0x114e   : > { %v15560_v52 = vadd.f32 %v7272_v8, %v15125_v3  ;;  %v7274_v40 = vpop.f32.mrb[129].mxu1 }
0x1151   : > { %v7277_v28 = vpop.f32.mrb[130].mxu1 }
0x1152   : > { %v15563_v2 = vadd.f32 %v7277_v28, %v15130_v44  ;;  %v7279_v41 = vpop.f32.mrb[131].mxu1 }
0x1155   : > { %v7282_v54 = vpop.f32.mrb[132].mxu1 }
0x1156   : > { %v15566_v11 = vadd.f32 %v7282_v54, %v15164_v42  ;;  %v7284_v57 = vpop.f32.mrb[133].mxu1 }
0x1157   : > { %10634 = vrot.lane.b32.xlu0 %v16963_v29, %s11205_s13 }
0x1159   : > { %v7287_v5 = vpop.f32.mrb[134].mxu1 }
0x115a   : > { %v15573_v3 = vadd.f32 %v7287_v5, %v15172_v31  ;;  %v7289_v10 = vpop.f32.mrb[135].mxu1 }
0x115d   : > { %v7292_v37 = vpop.f32.mrb[136].mxu1 }
0x115e   : > { %v15576_v44 = vadd.f32 %v7292_v37, %v15180_v51  ;;  %v7294_v47 = vpop.f32.mrb[137].mxu1 }
0x1161   : > { %v7297_v12 = vpop.f32.mrb[138].mxu1 }
0x1162   : > { %v15579_v42 = vadd.f32 %v7297_v12, %v15188_v32  ;;  %v7299_v7 = vpop.f32.mrb[139].mxu1  ;;  %v11063_v32 = vld [vmem:[#allocation7 + $0x68] sm:$0x3f] }
0x1163   : > { %v15592_v58 = vadd.f32 %v11063_v32, %v7723_v9 }
0x1165   : > { %v7302_v16 = vpop.f32.mrb[140].mxu1 }
0x1166   : > { %v15582_v6 = vadd.f32 %v7302_v16, %v15195_v39  ;;  %v7304_v26 = vpop.f32.mrb[141].mxu1  ;;  %v7760_v39 = vsel %vm3078_vm6, %v15590_v17, -inf }
0x1169   : > { %v7307_v46 = vpop.f32.mrb[142].mxu1 }
0x116a   : > { %v15585_v31 = vadd.f32 %v7307_v46, %v15202_v49  ;;  %v7309_v55 = vpop.f32.mrb[143].mxu1  ;;  %v7766_v49 = vsel %vm3118_vm7, %v15592_v58, -inf }
0x116d   : > { %v7312_v27 = vpop.f32.mrb[144].mxu1 }
0x116e   : > { %v15588_v51 = vadd.f32 %v7312_v27, %v15209_v34  ;;  %v7314_v23 = vpop.f32.mrb[145].mxu1 }
0x1176   : > { %7761 = vmax.xlane.f32.xlu0 %v7760_v39 }
0x117a   : > { %7767 = vmax.xlane.f32.xlu0 %v7766_v49 }
0x117d   : > { %v7729_v0 = vpop.xlane.xlu0 %7728 }
0x117e   : > { %v7769_v18 = vsub.f32 %v15494_v1, %v7729_v0 }
0x1180   : > { %v7783_v34 = vmul.f32 1.442695, %v7769_v18  ;;  %v16964_v18 = vld [vmem:[#allocation291_spill] sm:$0xff] }
0x1181   : > { %v7732_v22 = vpop.xlane.xlu1 %7731 }
0x1182   : > { %10933 = vpow2.f32 %v7783_v34  ;;  %v7770_v48 = vsub.f32 %v15498_v61, %v7732_v22  ;;  %v16965_v34 = vpack.i.bf16 %v16964_v18, %v16879_v20  ;;  %v16966_v22 = vld [vmem:[#allocation286_spill] sm:$0xff] }
0x1184   : > { %v7785_v30 = vmul.f32 1.442695, %v7770_v48  ;;  %v16967_v48 = vld [vmem:[#allocation301_spill] sm:$0xff] }
0x1185   : > { %v7735_v25 = vpop.xlane.xlu0 %7734 }
0x1186   : > { %10935 = vpow2.f32 %v7785_v30  ;;  %v7771_v9 = vsub.f32 %v15502_v43, %v7735_v25  ;;  %v16968_v30 = vpack.i.bf16 %v16966_v22, %v16967_v48  ;;  %v16969_v25 = vld [vmem:[#allocation290_spill] sm:$0xff] }
0x1188   : > { %v7787_v53 = vmul.f32 1.442695, %v7771_v9  ;;  %v16970_v9 = vld [vmem:[#allocation305_spill] sm:$0xff] }
0x1189   : > { %v7738_v8 = vpop.xlane.xlu0 %7737 }
0x118a   : > { %10937 = vpow2.f32 %v7787_v53  ;;  %v7772_v40 = vsub.f32 %v15506_v35, %v7738_v8  ;;  %v16971_v53 = vpack.i.bf16 %v16969_v25, %v16970_v9 }
0x118c   : > { %v15602_v28 = vpop.eup %10933  ;;  %v7789_v41 = vmul.f32 1.442695, %v7772_v40 }
0x118d   : > { %v7741_v54 = vpop.xlane.xlu1 %7740  ;;  %v7811_v1 = vsel %vm3078_vm6, %v15602_v28, 0.0 }
0x118e   : > { %10939 = vpow2.f32 %v7789_v41  ;;  %v7773_v61 = vsub.f32 %v15510_v50, %v7741_v54  ;;  %7812 = vadd.xlane.f32.xlu1 %v7811_v1 }
0x1190   : > { %v15607_v57 = vpop.eup %10935  ;;  %v7791_v21 = vmul.f32 1.442695, %v7773_v61 }
0x1191   : > { %v7814_v43 = vsel %vm3078_vm6, %v15607_v57, 0.0  ;;  %v7744_v29 = vpop.xlane.xlu0 %7743 }
0x1192   : > { %10941 = vpow2.f32 %v7791_v21  ;;  %7815 = vadd.xlane.f32.xlu0 %v7814_v43  ;;  %v7774_v8 = vsub.f32 %v15514_v13, %v7744_v29 }
0x1194   : > { %v15611_v35 = vpop.eup %10937  ;;  %v7793_v1 = vmul.f32 1.442695, %v7774_v8 }
0x1195   : > { %v7817_v5 = vsel %vm3078_vm6, %v15611_v35, 0.0  ;;  %v7747_v37 = vpop.xlane.xlu1 %7746 }
0x1196   : > { %7818 = vadd.xlane.f32.xlu1 %v7817_v5  ;;  %v7775_v5 = vsub.f32 %v15518_v15, %v7747_v37  ;;  %10943 = vpow2.f32 %v7793_v1 }
0x1198   : > { %v15615_v10 = vpop.eup %10939  ;;  %v7795_v13 = vmul.f32 1.442695, %v7775_v5 }
0x1199   : > { %v7750_v50 = vpop.xlane.xlu0 %7749  ;;  %v7820_v47 = vsel %vm3078_vm6, %v15615_v10, 0.0 }
0x119a   : > { %7821 = vadd.xlane.f32.xlu0 %v7820_v47  ;;  %v7776_v20 = vsub.f32 %v15522_v60, %v7750_v50 }
0x119c   : > { %v15619_v12 = vpop.eup %10941  ;;  %v7797_v47 = vmul.f32 1.442695, %v7776_v20 }
0x119d   : > { %v7753_v7 = vpop.xlane.xlu1 %7752  ;;  %v10630_v16 = vpop.permute.xlu0 %10629  ;;  %v7823_v26 = vsel %vm3078_vm6, %v15619_v12, 0.0 }
0x119e   : > { %7824 = vadd.xlane.f32.xlu1 %v7823_v26  ;;  %v10632_v46 = vunpack.i.h.bf16 %v10630_v16  ;;  %v10631_v55 = vunpack.i.l.bf16 %v10630_v16  ;;  %v7777_v16 = vsub.f32 %v15526_v45, %v7753_v7  ;;  %10945 = vpow2.f32 %v7797_v47 }
0x119f   : > { %10947 = vpow2.f32 %v7795_v13 }
0x11a0   : > { %v7973_v32 = vsel %vm2858_vm2, %v10631_v55, %v10632_v46  ;;  %v7799_v29 = vmul.f32 1.442695, %v7777_v16 }
0x11a1   : > { %v10625_v27 = vpop.permute.xlu1 %10624 }
0x11a2   : > { %v10627_v23 = vunpack.i.h.bf16 %v10625_v27  ;;  %v10626_v56 = vunpack.i.l.bf16 %v10625_v27  ;;  %10949 = vpow2.f32 %v7799_v29 }
0x11a4   : > { %v7972_v39 = vsel %vm2858_vm2, %v10626_v56, %v10627_v23  ;;  %v10101_v49 = vpack.c.bf16 %v10632_v46, %v10627_v23 }
0x11a5   : > { %v10103_v0 = vpack.c.bf16 %v7973_v32, %v7972_v39 }
0x11a6   : > { %10102 = vmatprep.subr.bf16.mxu1 %v10101_v49 }
0x11a7   : > { %10104 = vmatpush1.bf16.msra.mxu1 %v10103_v0 }
0x11af   : > { %10644 = vrot.lane.b32.xlu1 %v16965_v34, %s11205_s13 }
0x11b0   : > { %10639 = vrot.lane.b32.xlu0 %v16968_v30, %s11205_s13 }
0x11b3   : > { %10649 = vrot.lane.b32.xlu1 %v16971_v53, %s11205_s13 }
0x11ba   : > { %v7317_v40 = vpop.f32.mrb[146].mxu1 }
0x11bb   : > { %v15639_v41 = vadd.f32 %v7317_v40, %v15216_v4  ;;  %v7319_v54 = vpop.f32.mrb[147].mxu1  ;;  %v15647_v4 = vpop.eup %10943 }
0x11bc   : > { %v7826_v60 = vsel %vm3078_vm6, %v15647_v4, 0.0 }
0x11be   : > { %v7322_v61 = vpop.f32.mrb[148].mxu1 }
0x11bf   : > { %v15643_v21 = vadd.f32 %v7322_v61, %v15219_v36  ;;  %v7324_v43 = vpop.f32.mrb[149].mxu1  ;;  %v15651_v36 = vpop.eup %10945 }
0x11c0   : > { %v15654_v37 = vpop.eup %10947  ;;  %v7832_v7 = vsel %vm3078_vm6, %v15651_v36, 0.0 }
0x11c1   : > { %v15658_v46 = vpop.eup %10949  ;;  %v7829_v23 = vsel %vm3078_vm6, %v15654_v37, 0.0 }
0x11ce   : > { %v7756_v26 = vpop.xlane.xlu0 %7755 }
0x11cf   : > { %v7778_v50 = vsub.f32 %v15538_v14, %v7756_v26  ;;  %7827 = vadd.xlane.f32.xlu0 %v7826_v60  ;;  %v7835_v14 = vsel %vm3078_vm6, %v15658_v46, 0.0 }
0x11d1   : > { %v7801_v15 = vmul.f32 1.442695, %v7778_v50 }
0x11d2   : > { %v7759_v45 = vpop.xlane.xlu1 %7758  ;;  %v10635_v49 = vpop.permute.xlu0 %10634 }
0x11d3   : > { %10951 = vpow2.f32 %v7801_v15  ;;  %v7779_v55 = vsub.f32 %v15540_v19, %v7759_v45  ;;  %7833 = vadd.xlane.f32.xlu0 %v7832_v7  ;;  %v10637_v5 = vunpack.i.h.bf16 %v10635_v49  ;;  %v10636_v47 = vunpack.i.l.bf16 %v10635_v49 }
0x11d5   : > { %v7803_v27 = vmul.f32 1.442695, %v7779_v55  ;;  %v7974_v60 = vsel %vm2858_vm2, %v10636_v47, %v10637_v5  ;;  %v8207_v47 = vld [vmem:[#allocation4 + $0x3f8] sm:$0xff] }
0x11d6   : > { %v7765_v0 = vpop.xlane.xlu1 %7764 }
0x11d7   : > { %10953 = vpow2.f32 %v7803_v27  ;;  %7830 = vadd.xlane.f32.xlu1 %v7829_v23  ;;  %7836 = vadd.xlane.f32.xlu0 %v7835_v14  ;;  %v7781_v18 = vsub.f32 %v15547_v59, %v7765_v0 }
0x11d9   : > { %v7807_v48 = vmul.f32 1.442695, %v7781_v18 }
0x11dd   : > { %v15665_v56 = vpop.eup %10951 }
0x11de   : > { %v7838_v32 = vsel %vm3078_vm6, %v15665_v56, 0.0 }
0x11df   : > { %7839 = vadd.xlane.f32.xlu0 %v7838_v32 }
0x11e1   : > { %v15669_v39 = vpop.eup %10953 }
0x11e2   : > { %v7841_v19 = vsel %vm3078_vm6, %v15669_v39, 0.0 }
0x11e3   : > { %7842 = vadd.xlane.f32.xlu0 %v7841_v19 }
0x1203   : > { %v7762_v34 = vpop.xlane.xlu0 %7761 }
0x1204   : > { %v7780_v22 = vsub.f32 %v15590_v17, %v7762_v34 }
0x1206   : > { %v7805_v30 = vmul.f32 1.442695, %v7780_v22  ;;  %v8200_v22 = vld [vmem:[#allocation4 + $0x3c0] sm:$0xff] }
0x1207   : > { %v7768_v25 = vpop.xlane.xlu0 %7767 }
0x1208   : > { %10955 = vpow2.f32 %v7805_v30  ;;  %v7782_v9 = vsub.f32 %v15592_v58, %v7768_v25  ;;  %v8202_v30 = vld [vmem:[#allocation4 + $0x3d0] sm:$0xff] }
0x1209   : > { %10957 = vpow2.f32 %v7807_v48  ;;  %v8201_v48 = vld [vmem:[#allocation4 + $0x3c8] sm:$0xff] }
0x120a   : > { %v7809_v53 = vmul.f32 1.442695, %v7782_v9  ;;  %v10116_v9 = vpack.c.bf16 %v8201_v48, %v8200_v22  ;;  %v8220_v48 = vld [vmem:[#allocation4 + $0x460] sm:$0xff] }
0x120c   : > { %10959 = vpow2.f32 %v7809_v53  ;;  %v8203_v53 = vld [vmem:[#allocation4 + $0x3d8] sm:$0xff]  ;;  %10117 = vmatpush1.bf16.msra.mxu0 %v10116_v9 }
0x120d   : > { %10118 = vmatprep.subr.bf16.mxu0 %v16553_v63 }
0x1212   : > { %v15676_v8 = vpop.eup %10955 }
0x1213   : > { %v7844_v40 = vsel %vm3078_vm6, %v15676_v8, 0.0  ;;  %v15680_v54 = vpop.eup %10957 }
0x1214   : > { %7845 = vadd.xlane.f32.xlu0 %v7844_v40  ;;  %v7847_v59 = vsel %vm3078_vm6, %v15680_v54, 0.0 }
0x1216   : > { %v15684_v17 = vpop.eup %10959 }
0x1217   : > { %v7850_v58 = vsel %vm3118_vm7, %v15684_v17, 0.0 }
0x1218   : > { %7848 = vadd.xlane.f32.xlu0 %v7847_v59  ;;  %v10119_v59 = vpack.c.bf16 %v8203_v53, %v8202_v30  ;;  %v8221_v30 = vld [vmem:[#allocation4 + $0x468] sm:$0xff] }
0x121a   : > { %10120 = vmatpush1.bf16.msra.mxu0 %v10119_v59 }
0x121b   : > { %v7813_v1 = vpop.xlane.xlu1 %7812  ;;  %10121 = vmatprep.subr.bf16.mxu0 %v16553_v63 }
0x121c   : > { %7851 = vadd.xlane.f32.xlu0 %v7850_v58  ;;  %10961 = vrcp.f32 %v7813_v1  ;;  %v8204_v1 = vld [vmem:[#allocation4 + $0x3e0] sm:$0xff] }
0x121f   : > { %v7816_v20 = vpop.xlane.xlu0 %7815 }
0x1220   : > { %10963 = vrcp.f32 %v7816_v20  ;;  %v8205_v20 = vld [vmem:[#allocation4 + $0x3e8] sm:$0xff] }
0x1223   : > { %v7819_v61 = vpop.xlane.xlu1 %7818 }
0x1224   : > { %10965 = vrcp.f32 %v7819_v61 }
0x1226   : > { %v10962_v18 = vpop.eup %10961 }
0x1227   : > { %v7822_v43 = vpop.xlane.xlu0 %7821  ;;  %v7867_v40 = vmul.f32 %v10962_v18, %v15602_v28  ;;  %v8218_v18 = vld [vmem:[#allocation4 + $0x450] sm:$0xff] }
0x1228   : > { %10967 = vrcp.f32 %v7822_v43  ;;  %v10122_v43 = vpack.c.bf16 %v8205_v20, %v8204_v1 }
0x122a   : > { %v10964_v58 = vpop.eup %10963  ;;  %10123 = vmatpush1.bf16.msra.mxu0 %v10122_v43 }
0x122b   : > { %v7825_v16 = vpop.xlane.xlu1 %7824  ;;  %v10640_v13 = vpop.permute.xlu0 %10639  ;;  %v7868_v61 = vmul.f32 %v10964_v58, %v15607_v57  ;;  %10124 = vmatprep.subr.bf16.mxu0 %v16553_v63 }
0x122c   : > { %v10642_v29 = vunpack.i.h.bf16 %v10640_v13  ;;  %v10641_v26 = vunpack.i.l.bf16 %v10640_v13  ;;  %10969 = vrcp.f32 %v7825_v16 }
0x122e   : > { %v7975_v50 = vsel %vm2858_vm2, %v10641_v26, %v10642_v29  ;;  %v10105_v15 = vpack.c.bf16 %v10642_v29, %v10637_v5  ;;  %v10966_v28 = vpop.eup %10965  ;;  %v8206_v5 = vld [vmem:[#allocation4 + $0x3f0] sm:$0xff]  ;;  %v8208_v29 = vld [vmem:[#allocation4 + $0x400] sm:$0xff]  ;;  %v8209_v26 = vld [vmem:[#allocation4 + $0x408] sm:$0xff] }
0x122f   : > { %v10107_v45 = vpack.c.bf16 %v7975_v50, %v7974_v60  ;;  %v10645_v7 = vpop.permute.xlu1 %10644  ;;  %v7869_v16 = vmul.f32 %v10966_v28, %v15611_v35  ;;  %v10125_v13 = vpack.c.bf16 %v8207_v47, %v8206_v5  ;;  %v10128_v50 = vpack.c.bf16 %v8209_v26, %v8208_v29 }
0x1230   : > { %10106 = vmatprep.subr.bf16.mxu1 %v10105_v15  ;;  %v10647_v55 = vunpack.i.h.bf16 %v10645_v7  ;;  %v10646_v27 = vunpack.i.l.bf16 %v10645_v7  ;;  %v8210_v15 = vld [vmem:[#allocation4 + $0x410] sm:$0xff] }
0x1231   : > { %10108 = vmatpush1.bf16.msra.mxu1 %v10107_v45  ;;  %10126 = vmatpush1.bf16.msra.mxu0 %v10125_v13  ;;  %v8211_v45 = vld [vmem:[#allocation4 + $0x418] sm:$0xff] }
0x1232   : > { %v7976_v19 = vsel %vm2858_vm2, %v10646_v27, %v10647_v55  ;;  %v10968_v57 = vpop.eup %10967  ;;  %10127 = vmatprep.subr.bf16.mxu0 %v16553_v63  ;;  %v8213_v27 = vld [vmem:[#allocation4 + $0x428] sm:$0xff] }
0x1233   : > { %v10650_v23 = vpop.permute.xlu1 %10649  ;;  %v7870_v60 = vmul.f32 %v10968_v57, %v15615_v10  ;;  %v8212_v10 = vld [vmem:[#allocation4 + $0x420] sm:$0xff]  ;;  %v8222_v57 = vld [vmem:[#allocation4 + $0x470] sm:$0xff] }
0x1234   : > { %v10652_v14 = vunpack.i.h.bf16 %v10650_v23  ;;  %v10651_v32 = vunpack.i.l.bf16 %v10650_v23  ;;  %v10134_v23 = vpack.c.bf16 %v8213_v27, %v8212_v10 }
0x1235   : > { %10129 = vmatpush1.bf16.msra.mxu0 %v10128_v50 }
0x1236   : > { %v7977_v49 = vsel %vm2858_vm2, %v10651_v32, %v10652_v14  ;;  %v10109_v0 = vpack.c.bf16 %v10652_v14, %v10647_v55  ;;  %v10970_v35 = vpop.eup %10969  ;;  %v10131_v55 = vpack.c.bf16 %v8211_v45, %v8210_v15  ;;  %10130 = vmatprep.subr.bf16.mxu0 %v16553_v63  ;;  %v8215_v14 = vld [vmem:[#allocation4 + $0x438] sm:$0xff] }
0x1237   : > { %v10112_v34 = vpack.c.bf16 %v7977_v49, %v7976_v19  ;;  %v7871_v7 = vmul.f32 %v10970_v35, %v15619_v12  ;;  %v8214_v12 = vld [vmem:[#allocation4 + $0x430] sm:$0xff]  ;;  %v8216_v19 = vld [vmem:[#allocation4 + $0x440] sm:$0xff]  ;;  %v8217_v49 = vld [vmem:[#allocation4 + $0x448] sm:$0xff] }
0x1238   : > { %10111 = vmatprep.subr.msk.bf16.mxu1 %vm12806_vm5, %v10109_v0  ;;  %v10137_v32 = vpack.c.bf16 %v8215_v14, %v8214_v12  ;;  %v10140_v0 = vpack.c.bf16 %v8217_v49, %v8216_v19 }
0x1239   : > { %10114 = vmatpush1.bf16.msk.msra.mxu1 %vm12806_vm5, %v10112_v34  ;;  %10132 = vmatpush1.bf16.msra.mxu0 %v10131_v55  ;;  %v8219_v34 = vld [vmem:[#allocation4 + $0x458] sm:$0xff] }
0x123a   : > { %10151 = vmatprep.subr.bf16.mxu1 %v16553_v63  ;;  %10133 = vmatprep.subr.bf16.mxu0 %v16553_v63  ;;  %v10143_v22 = vpack.c.bf16 %v8219_v34, %v8218_v18 }
0x123c   : > { %9104 = vmatmul.mubr.msk.f32.vlgmr.msra.gmra.mrb[150].mxu1 %vm3078_vm6, %v7867_v40 }
0x123d   : > { %8120 = vmatprep.mubr.f32.mxu1 %v16195_v33  ;;  %10163 = vmatpush1.bf16.msra.mxu1 %v10116_v9  ;;  %v10146_v9 = vpack.c.bf16 %v8221_v30, %v8220_v48 }
0x123e   : > { %10152 = vmatprep.subr.bf16.mxu1 %v16553_v63  ;;  %10135 = vmatpush1.bf16.msra.mxu0 %v10134_v23 }
0x123f   : > { %10136 = vmatprep.subr.bf16.mxu0 %v16553_v63 }
0x1240   : > { %9105 = vmatmul.mubr.msk.f32.gmra.mrb[152].mxu1 %vm3078_vm6, %v7868_v61 }
0x1241   : > { %8126 = vmatprep.mubr.f32.mxu1 %v16195_v33  ;;  %10164 = vmatpush1.bf16.msra.mxu1 %v10119_v59 }
0x1242   : > { %10153 = vmatprep.subr.bf16.mxu1 %v16553_v63  ;;  %10138 = vmatpush1.bf16.msra.mxu0 %v10137_v32 }
0x1243   : > { %10139 = vmatprep.subr.bf16.mxu0 %v16553_v63 }
0x1244   : > { %9106 = vmatmul.mubr.msk.f32.gmra.mrb[154].mxu1 %vm3078_vm6, %v7869_v16 }
0x1245   : > { %8132 = vmatprep.mubr.f32.mxu1 %v16195_v33  ;;  %10165 = vmatpush1.bf16.msra.mxu1 %v10122_v43 }
0x1246   : > { %10154 = vmatprep.subr.bf16.mxu1 %v16553_v63  ;;  %10141 = vmatpush1.bf16.msra.mxu0 %v10140_v0 }
0x1247   : > { %10142 = vmatprep.subr.bf16.mxu0 %v16553_v63 }
0x1248   : > { %9107 = vmatmul.mubr.msk.f32.gmra.mrb[156].mxu1 %vm3078_vm6, %v7870_v60 }
0x1249   : > { %8138 = vmatprep.mubr.f32.mxu1 %v16195_v33  ;;  %10166 = vmatpush1.bf16.msra.mxu1 %v10125_v13 }
0x124a   : > { %10155 = vmatprep.subr.bf16.mxu1 %v16553_v63  ;;  %10144 = vmatpush1.bf16.msra.mxu0 %v10143_v22 }
0x124b   : > { %10145 = vmatprep.subr.bf16.mxu0 %v16553_v63 }
0x124c   : > { %9108 = vmatmul.mubr.msk.f32.gmra.mrb[158].mxu1 %vm3078_vm6, %v7871_v7 }
0x124d   : > { %8144 = vmatprep.mubr.f32.mxu1 %v16195_v33  ;;  %10167 = vmatpush1.bf16.msra.mxu1 %v10128_v50 }
0x124e   : > { %10156 = vmatprep.subr.bf16.mxu1 %v16553_v63  ;;  %10147 = vmatpush1.bf16.msra.mxu0 %v10146_v9 }
0x124f   : > { %10148 = vmatprep.subr.bf16.mxu0 %v16553_v63 }
0x1251   : > { %10168 = vmatpush1.bf16.msra.mxu1 %v10131_v55 }
0x1252   : > { %10157 = vmatprep.subr.bf16.mxu1 %v16553_v63 }
0x1255   : > { %10169 = vmatpush1.bf16.msra.mxu1 %v10134_v23 }
0x1256   : > { %10158 = vmatprep.subr.bf16.mxu1 %v16553_v63 }
0x1259   : > { %10170 = vmatpush1.bf16.msra.mxu1 %v10137_v32 }
0x125a   : > { %10159 = vmatprep.subr.bf16.mxu1 %v16553_v63 }
0x125c   : > { %v7828_v25 = vpop.xlane.xlu0 %7827 }
0x125d   : > { %10971 = vrcp.f32 %v7828_v25  ;;  %10171 = vmatpush1.bf16.msra.mxu1 %v10140_v0 }
0x125e   : > { %10160 = vmatprep.subr.bf16.mxu1 %v16553_v63 }
0x1260   : > { %v7834_v53 = vpop.xlane.xlu0 %7833 }
0x1261   : > { %10172 = vmatpush1.bf16.msra.mxu1 %v10143_v22 }
0x1262   : > { %10161 = vmatprep.subr.bf16.mxu1 %v16553_v63 }
0x1264   : > { %v7831_v40 = vpop.xlane.xlu1 %7830  ;;  %v7837_v1 = vpop.xlane.xlu0 %7836 }
0x1265   : > { %10973 = vrcp.f32 %v7831_v40  ;;  %10173 = vmatpush1.bf16.msra.mxu1 %v10146_v9 }
0x1266   : > { %10162 = vmatprep.subr.bf16.mxu1 %v16553_v63  ;;  %10975 = vrcp.f32 %v7834_v53 }
0x1267   : > { %v10972_v59 = vpop.eup %10971  ;;  %10977 = vrcp.f32 %v7837_v1 }
0x1268   : > { %v7872_v58 = vmul.f32 %v10972_v59, %v15647_v4 }
0x126a   : > { %9109 = vmatmul.mubr.msk.f32.gmra.mrb[160].mxu1 %vm3078_vm6, %v7872_v58 }
0x126b   : > { %8150 = vmatprep.mubr.f32.mxu1 %v16195_v33 }
0x126c   : > { %v7840_v20 = vpop.xlane.xlu0 %7839 }
0x126d   : > { %10979 = vrcp.f32 %v7840_v20 }
0x126f   : > { %v10974_v61 = vpop.eup %10973 }
0x1270   : > { %v7873_v43 = vmul.f32 %v10974_v61, %v15654_v37  ;;  %v7843_v28 = vpop.xlane.xlu0 %7842  ;;  %v10976_v5 = vpop.eup %10975 }
0x1271   : > { %10981 = vrcp.f32 %v7843_v28  ;;  %v7874_v63 = vmul.f32 %v10976_v5, %v15651_v36  ;;  %v10978_v4 = vpop.eup %10977  ;;  %v15774_v28 = vld [vmem:[#allocation6] ss:$0 sm:$0xff] }
0x1272   : > { %9110 = vmatmul.mubr.msk.f32.gmra.mrb[162].mxu1 %vm3078_vm6, %v7873_v43  ;;  %v7875_v47 = vmul.f32 %v10978_v4, %v15658_v46  ;;  %v8223_v46 = vld [vmem:[#allocation4 + $0x478] sm:$0xff] }
0x1273   : > { %8156 = vmatprep.mubr.f32.mxu1 %v16195_v33  ;;  %v10149_v29 = vpack.c.bf16 %v8223_v46, %v8222_v57 }
0x1275   : > { %10150 = vmatpush1.bf16.msra.mxu0 %v10149_v29  ;;  %10174 = vmatpush1.bf16.msra.mxu1 %v10149_v29 }
0x1276   : > { %9111 = vmatmul.mubr.msk.f32.gmra.mrb[164].mxu1 %vm3078_vm6, %v7874_v63 }
0x1277   : > { %8162 = vmatprep.mubr.f32.mxu1 %v16195_v33  ;;  %v10980_v16 = vpop.eup %10979 }
0x1278   : > { %v7876_v37 = vmul.f32 %v10980_v16, %v15665_v56 }
0x127a   : > { %9112 = vmatmul.mubr.msk.f32.gmra.mrb[166].mxu1 %vm3078_vm6, %v7875_v47 }
0x127b   : > { %8168 = vmatprep.mubr.f32.mxu1 %v16195_v33  ;;  %v10982_v13 = vpop.eup %10981 }
0x127c   : > { %v7877_v36 = vmul.f32 %v10982_v13, %v15669_v39 }
0x127e   : > { %9113 = vmatmul.mubr.msk.f32.gmra.mrb[168].mxu1 %vm3078_vm6, %v7876_v37 }
0x127f   : > { %8174 = vmatprep.mubr.f32.mxu1 %v16195_v33 }
0x1282   : > { %9114 = vmatmul.mubr.msk.f32.gmra.mrb[170].mxu1 %vm3078_vm6, %v7877_v36 }
0x1283   : > { %8180 = vmatprep.mubr.f32.mxu1 %v16195_v33 }
0x12a1   : > { %v7846_v26 = vpop.xlane.xlu0 %7845 }
0x12a2   : > { %10983 = vrcp.f32 %v7846_v26 }
0x12a5   : > { %v7849_v60 = vpop.xlane.xlu0 %7848 }
0x12a6   : > { %10985 = vrcp.f32 %v7849_v60 }
0x12a9   : > { %v7852_v56 = vpop.xlane.xlu0 %7851 }
0x12aa   : > { %10987 = vrcp.f32 %v7852_v56 }
0x12ac   : > { %v10984_v50 = vpop.eup %10983 }
0x12ad   : > { %v7878_v35 = vmul.f32 %v10984_v50, %v15676_v8 }
0x12af   : > { %9115 = vmatmul.mubr.msk.f32.gmra.mrb[172].mxu1 %vm3078_vm6, %v7878_v35 }
0x12b0   : > { %v10986_v39 = vpop.eup %10985  ;;  %8186 = vmatprep.mubr.f32.mxu1 %v16195_v33 }
0x12b1   : > { %v7879_v15 = vmul.f32 %v10986_v39, %v15680_v54 }
0x12b3   : > { %9116 = vmatmul.mubr.msk.f32.gmra.mrb[174].mxu1 %vm3078_vm6, %v7879_v15 }
0x12b4   : > { %v10988_v45 = vpop.eup %10987  ;;  %8192 = vmatprep.mubr.f32.mxu1 %v16195_v33 }
0x12b5   : > { %v7880_v7 = vmul.f32 %v10988_v45, %v15684_v17 }
0x12b7   : > { %9117 = vmatmul.mubr.msk.f32.gmra.mrb[176].mxu1 %vm3078_vm6, %v7880_v7 }
0x130f   : > { %v8116_v55 = vpop.f32.mrb[150].mxu1 }
0x1310   : > { %v8118_v10 = vpop.f32.mrb[151].mxu1 }
0x1311   : > { %9118 = vmatprep.mubr.msk.f32.mxu0 %vm2858_vm2, %v8118_v10 }
0x1312   : > { %8331 = vmatmul.mubr.f32.vlgmr.msra.gmra.mrb[164].mxu0 %v8116_v55 }
0x1313   : > { %v8122_v8 = vpop.f32.mrb[152].mxu1 }
0x1314   : > { %v8124_v27 = vpop.f32.mrb[153].mxu1 }
0x1315   : > { %9119 = vmatprep.mubr.msk.f32.mxu0 %vm2858_vm2, %v8124_v27 }
0x1316   : > { %8336 = vmatmul.mubr.f32.gmra.mrb[166].mxu0 %v8122_v8 }
0x1317   : > { %v8128_v54 = vpop.f32.mrb[154].mxu1 }
0x1318   : > { %v8130_v23 = vpop.f32.mrb[155].mxu1 }
0x1319   : > { %9120 = vmatprep.mubr.msk.f32.mxu0 %vm2858_vm2, %v8130_v23 }
0x131a   : > { %8341 = vmatmul.mubr.f32.gmra.mrb[168].mxu0 %v8128_v54 }
0x131b   : > { %v8134_v33 = vpop.f32.mrb[156].mxu1 }
0x131c   : > { %v8136_v12 = vpop.f32.mrb[157].mxu1 }
0x131d   : > { %9121 = vmatprep.mubr.msk.f32.mxu0 %vm2858_vm2, %v8136_v12 }
0x131e   : > { %8346 = vmatmul.mubr.f32.gmra.mrb[170].mxu0 %v8134_v33 }
0x131f   : > { %v8140_v17 = vpop.f32.mrb[158].mxu1 }
0x1320   : > { %v8142_v14 = vpop.f32.mrb[159].mxu1 }
0x1321   : > { %9122 = vmatprep.mubr.msk.f32.mxu0 %vm2858_vm2, %v8142_v14 }
0x1322   : > { %8351 = vmatmul.mubr.f32.gmra.mrb[172].mxu0 %v8140_v17 }
0x133d   : > { %v8146_v32 = vpop.f32.mrb[160].mxu1 }
0x133e   : > { %v8148_v19 = vpop.f32.mrb[161].mxu1 }
0x133f   : > { %9123 = vmatprep.mubr.msk.f32.mxu0 %vm2858_vm2, %v8148_v19 }
0x1340   : > { %8356 = vmatmul.mubr.f32.gmra.mrb[174].mxu0 %v8146_v32 }
0x1345   : > { %v8152_v49 = vpop.f32.mrb[162].mxu1 }
0x1346   : > { %v8154_v0 = vpop.f32.mrb[163].mxu1 }
0x1347   : > { %9124 = vmatprep.mubr.msk.f32.mxu0 %vm2858_vm2, %v8154_v0 }
0x1348   : > { %8361 = vmatmul.mubr.f32.gmra.mrb[176].mxu0 %v8152_v49 }
0x1349   : > { %v8158_v18 = vpop.f32.mrb[164].mxu1 }
0x134a   : > { %v8160_v34 = vpop.f32.mrb[165].mxu1 }
0x134b   : > { %9125 = vmatprep.mubr.msk.f32.mxu0 %vm2858_vm2, %v8160_v34 }
0x134c   : > { %8366 = vmatmul.mubr.f32.gmra.mrb[178].mxu0 %v8158_v18 }
0x134d   : > { %v8164_v22 = vpop.f32.mrb[166].mxu1 }
0x134e   : > { %v8166_v48 = vpop.f32.mrb[167].mxu1 }
0x134f   : > { %9126 = vmatprep.mubr.msk.f32.mxu0 %vm2858_vm2, %v8166_v48 }
0x1350   : > { %8371 = vmatmul.mubr.f32.gmra.mrb[180].mxu0 %v8164_v22 }
0x1351   : > { %v8170_v30 = vpop.f32.mrb[168].mxu1 }
0x1352   : > { %v8172_v25 = vpop.f32.mrb[169].mxu1 }
0x1353   : > { %9127 = vmatprep.mubr.msk.f32.mxu0 %vm2858_vm2, %v8172_v25 }
0x1354   : > { %8376 = vmatmul.mubr.f32.gmra.mrb[182].mxu0 %v8170_v30 }
0x1355   : > { %v8176_v9 = vpop.f32.mrb[170].mxu1 }
0x1356   : > { %v8178_v53 = vpop.f32.mrb[171].mxu1 }
0x1357   : > { %9128 = vmatprep.mubr.msk.f32.mxu0 %vm2858_vm2, %v8178_v53 }
0x1358   : > { %8381 = vmatmul.mubr.f32.gmra.mrb[184].mxu0 %v8176_v9 }
0x1382   : > { %v8182_v40 = vpop.f32.mrb[172].mxu1 }
0x1383   : > { %v8184_v59 = vpop.f32.mrb[173].mxu1 }
0x1384   : > { %9129 = vmatprep.mubr.msk.f32.mxu1 %vm2858_vm2, %v8184_v59 }
0x1385   : > { %8386 = vmatmul.mubr.f32.vlgmr.msra.gmra.mrb[178].mxu1 %v8182_v40 }
0x1386   : > { %v8188_v58 = vpop.f32.mrb[174].mxu1 }
0x1387   : > { %v8190_v1 = vpop.f32.mrb[175].mxu1 }
0x1388   : > { %9130 = vmatprep.mubr.msk.f32.mxu1 %vm2858_vm2, %v8190_v1 }
0x1389   : > { %8391 = vmatmul.mubr.f32.gmra.mrb[180].mxu1 %v8188_v58 }
0x138a   : > { %v8194_v20 = vpop.f32.mrb[176].mxu1 }
0x138b   : > { %v8196_v61 = vpop.f32.mrb[177].mxu1 }
0x138c   : > { %9131 = vmatprep.mubr.msk.f32.mxu1 %vm2858_vm2, %v8196_v61 }
0x138d   : > { %8396 = vmatmul.mubr.f32.gmra.mrb[182].mxu1 %v8194_v20 }
0x13e5   : > { %v8332_v43 = vpop.f32.mrb[164].mxu0 }
0x13e6   : > { %v8401_v5 = vadd.f32 %v8332_v43, %v15545_v24  ;;  %v8334_v63 = vpop.f32.mrb[165].mxu0 }
0x13e8   : > { %v8422_v4 = vadd.f32 %v15774_v28, %v8401_v5 }
0x13e9   : > { %v8337_v47 = vpop.f32.mrb[166].mxu0 }
0x13ea   : > { %8436 = vst [vmem:[%s15782_s23] sm:$0xff] %v8422_v4  ;;  %v8402_v16 = vadd.f32 %v8337_v47, %v15552_v62  ;;  %v8339_v37 = vpop.f32.mrb[167].mxu0 }
0x13ec   : > { %v8423_v24 = vadd.f32 %v15774_v28, %v8402_v16 }
0x13ed   : > { %v8342_v13 = vpop.f32.mrb[168].mxu0 }
0x13ee   : > { %8437 = vst [vmem:[%s15782_s23 + $0x8] sm:$0xff] %v8423_v24  ;;  %v8403_v36 = vadd.f32 %v8342_v13, %v15557_v38  ;;  %v8344_v57 = vpop.f32.mrb[169].mxu0 }
0x13f0   : > { %v8424_v46 = vadd.f32 %v15774_v28, %v8403_v36 }
0x13f1   : > { %v8347_v29 = vpop.f32.mrb[170].mxu0 }
0x13f2   : > { %8438 = vst [vmem:[%s15782_s23 + $0x10] sm:$0xff] %v8424_v46  ;;  %v8404_v26 = vadd.f32 %v8347_v29, %v15560_v52  ;;  %v8349_v60 = vpop.f32.mrb[171].mxu0 }
0x13f4   : > { %v8425_v56 = vadd.f32 %v15774_v28, %v8404_v26 }
0x13f5   : > { %v8352_v62 = vpop.f32.mrb[172].mxu0 }
0x13f6   : > { %8439 = vst [vmem:[%s15782_s23 + $0x18] sm:$0xff] %v8425_v56  ;;  %v8405_v50 = vadd.f32 %v8352_v62, %v15563_v2  ;;  %v8354_v35 = vpop.f32.mrb[173].mxu0 }
0x13f8   : > { %v8426_v39 = vadd.f32 %v15774_v28, %v8405_v50 }
0x13fa   : > { %8440 = vst [vmem:[%s15782_s23 + $0x20] sm:$0xff] %v8426_v39 }
0x1413   : > { %v8357_v38 = vpop.f32.mrb[174].mxu0 }
0x1414   : > { %v8406_v15 = vadd.f32 %v8357_v38, %v15566_v11  ;;  %v8359_v45 = vpop.f32.mrb[175].mxu0 }
0x1416   : > { %v8427_v7 = vadd.f32 %v15774_v28, %v8406_v15 }
0x1418   : > { %8441 = vst [vmem:[%s15782_s23 + $0x28] sm:$0xff] %v8427_v7 }
0x141b   : > { %v8362_v52 = vpop.f32.mrb[176].mxu0 }
0x141c   : > { %v8407_v55 = vadd.f32 %v8362_v52, %v15573_v3  ;;  %v8364_v10 = vpop.f32.mrb[177].mxu0 }
0x141e   : > { %v8428_v8 = vadd.f32 %v15774_v28, %v8407_v55 }
0x141f   : > { %v8367_v2 = vpop.f32.mrb[178].mxu0 }
0x1420   : > { %8442 = vst [vmem:[%s15782_s23 + $0x30] sm:$0xff] %v8428_v8  ;;  %v8408_v27 = vadd.f32 %v8367_v2, %v15576_v44  ;;  %v8369_v54 = vpop.f32.mrb[179].mxu0 }
0x1422   : > { %v8429_v23 = vadd.f32 %v15774_v28, %v8408_v27 }
0x1423   : > { %v8372_v11 = vpop.f32.mrb[180].mxu0 }
0x1424   : > { %8443 = vst [vmem:[%s15782_s23 + $0x38] sm:$0xff] %v8429_v23  ;;  %v8409_v33 = vadd.f32 %v8372_v11, %v15579_v42  ;;  %v8374_v12 = vpop.f32.mrb[181].mxu0 }
0x1426   : > { %v8430_v17 = vadd.f32 %v15774_v28, %v8409_v33 }
0x1427   : > { %v8377_v3 = vpop.f32.mrb[182].mxu0 }
0x1428   : > { %8444 = vst [vmem:[%s15782_s23 + $0x40] sm:$0xff] %v8430_v17  ;;  %v8410_v14 = vadd.f32 %v8377_v3, %v15582_v6  ;;  %v8379_v32 = vpop.f32.mrb[183].mxu0 }
0x142a   : > { %v8431_v19 = vadd.f32 %v15774_v28, %v8410_v14 }
0x142b   : > { %v8382_v44 = vpop.f32.mrb[184].mxu0 }
0x142c   : > { %8445 = vst [vmem:[%s15782_s23 + $0x48] sm:$0xff] %v8431_v19  ;;  %v8411_v49 = vadd.f32 %v8382_v44, %v15585_v31  ;;  %v8384_v0 = vpop.f32.mrb[185].mxu0 }
0x142e   : > { %v8432_v18 = vadd.f32 %v15774_v28, %v8411_v49 }
0x1430   : > { %8446 = vst [vmem:[%s15782_s23 + $0x50] sm:$0xff] %v8432_v18 }
0x1458   : > { %v8387_v42 = vpop.f32.mrb[178].mxu1 }
0x1459   : > { %v8412_v34 = vadd.f32 %v8387_v42, %v15588_v51  ;;  %v8389_v22 = vpop.f32.mrb[179].mxu1 }
0x145b   : > { %v8433_v48 = vadd.f32 %v15774_v28, %v8412_v34 }
0x145c   : > { %v8392_v6 = vpop.f32.mrb[180].mxu1 }
0x145d   : > { %8447 = vst [vmem:[%s15782_s23 + $0x58] sm:$0xff] %v8433_v48  ;;  %v8413_v30 = vadd.f32 %v8392_v6, %v15639_v41  ;;  %v8394_v25 = vpop.f32.mrb[181].mxu1 }
0x145f   : > { %v8434_v9 = vadd.f32 %v15774_v28, %v8413_v30 }
0x1460   : > { %v8397_v53 = vpop.f32.mrb[182].mxu1 }
0x1461   : > { %8448 = vst [vmem:[%s15782_s23 + $0x60] sm:$0xff] %v8434_v9  ;;  %v8414_v31 = vadd.f32 %v8397_v53, %v15643_v21  ;;  %v8399_v40 = vpop.f32.mrb[183].mxu1 }
0x1463   : > { %v8435_v59 = vadd.f32 %v15774_v28, %v8414_v31 }
0x1465   : > { %8449 = vst [vmem:[%s15782_s23 + $0x68] sm:$0x3f] %v8435_v59 }
0x1466 PF: > { %s18_s18 = sadd.s32 1, %s11194_s18  }
0x1467   : > { %p15_p1 = scmp.ge.s32.totalorder %s18_s18, 4  }
0x1469   :  { %17 = sbr.rel (!%p15_p1) target bundleno = 3 (0x3), region = 92 }
0x1470   :  { %8471 = vsyncpa [#allocation3], 1 }
0x1471   :  { %8473 = vsyncpa [#allocation3 + $0x1], 1 }
0x1472   :  { %8474 = vsyncpa [#allocation5], 1 }
0x1473   :  { %8475 = vsyncpa [#allocation8], 1 }

</bundles_post_ra>
